<compile_context>
chip_gen: v7x
topology: tpu7x:2x2x1
jax: 0.10.0
libtpu: 0.0.40
codegen_flags: <defaults>
</compile_context>

<pallas_src>
import jax
import jax.numpy as jnp
from jax.experimental import pallas as pl
from jax.experimental.pallas import tpu as pltpu

# ----------------------------- model dimensions ------------------------------
CIN, COUT, K, STRIDE, PAD = 3, 256, 5, 8, 2
HIN = WIN = 128               # fc expects a 16x16 conv output -> input spatial = 128
HOUT = WOUT = 16
KKC = K * K * CIN             # 75   im2col contraction size
KKC_PAD = 128                 # lane-aligned, zero-padded contraction size
FC_IN = COUT * HOUT * WOUT    # 65536
FC_OUT = 64
BN_EPS = 1e-5

# FC K tile: 16384*64*2 B = 2 MiB bf16 weight block (4 MiB double-buffered),
# 4 grid steps total.  Safe inside every scoped-VMEM default (16 MiB on v5e).
FC_TK = 16384


# ------------------------------ Pallas kernels --------------------------------
def conv_bn_relu_kernel(p_ref, w_ref, g_ref, b_ref, o_ref):
    """Fused conv-as-matmul (M,128)@(128,256) + training-mode BN + ReLU.

    bf16 MXU operands, f32 accumulation.  One-pass stats: mean = E[y],
    var = E[y^2] - mean^2 (biased, as PyTorch training mode).  The conv bias is
    intentionally omitted: a per-channel bias feeding training-mode BatchNorm
    is cancelled exactly by the batch mean.
    """
    y = jnp.dot(p_ref[...], w_ref[...], preferred_element_type=jnp.float32)
    inv_m = 1.0 / y.shape[0]
    mean = jnp.sum(y, axis=0, keepdims=True) * inv_m
    var = jnp.sum(y * y, axis=0, keepdims=True) * inv_m - mean * mean
    scale = g_ref[...] * jax.lax.rsqrt(var + BN_EPS)
    shift = b_ref[...] - mean * scale
    o_ref[...] = jnp.maximum(y * scale + shift, 0.0).astype(o_ref.dtype)


def fc_kernel(x_ref, w_ref, b_ref, o_ref):
    """HBM-bound FC matmul; grid = (FC_IN // FC_TK,) over the reduction axis.

    The (n, 64) f32 output block index is constant across the reduction axis,
    so the block stays VMEM-resident: initialize it with the bias at k == 0 and
    accumulate straight into it (no scratch accumulator, no XLA epilogue op).
    """
    @pl.when(pl.program_id(0) == 0)
    def _():
        o_ref[...] = jnp.broadcast_to(b_ref[...], o_ref.shape)

    o_ref[...] += jnp.dot(
        x_ref[...], w_ref[...], preferred_element_type=jnp.float32
    )


# ------------------------------ JAX glue + calls -------------------------------
def _extract_patches(x_nchw):
    """(N,3,128,128) -> (N*16*16, 128) bf16 im2col, feature dim zero-padded.

    conv_general_dilated_patches output feature index = cin*25 + kh*5 + kw.
    """
    p = jax.lax.conv_general_dilated_patches(
        x_nchw,
        filter_shape=(K, K),
        window_strides=(STRIDE, STRIDE),
        padding=((PAD, PAD), (PAD, PAD)),
        dimension_numbers=("NCHW", "OIHW", "NHWC"),
    )                                                   # (N, 16, 16, 75)
    n = x_nchw.shape[0]
    p = p.reshape(n * HOUT * WOUT, KKC)
    p = jnp.pad(p, ((0, 0), (0, KKC_PAD - KKC)))        # (M, 128)
    return p.astype(jnp.bfloat16)                       # bf16 MXU operand


def prepare_params(params):
    """One-time weight layout prep (done once, outside the per-call jit)."""
    # conv: (O, Cin, KH, KW) -> (Cin*KH*KW, O), zero-padded to (128, O), bf16.
    wc = params["conv_w"].reshape(COUT, KKC).T
    wc = jnp.pad(wc, ((0, KKC_PAD - KKC), (0, 0))).astype(jnp.bfloat16)
    # NOTE: conv bias is dropped on purpose — a per-channel bias followed by
    # training-mode BatchNorm is exactly cancelled by the batch mean.
    # fc: PyTorch flattens (c, h, w); our activation flattens (h, w, c).
    w_fc = (
        params["fc_w"]
        .reshape(FC_OUT, COUT, HOUT, WOUT)              # (o, c, h, w)
        .transpose(2, 3, 1, 0)                          # (h, w, c, o)
        .reshape(FC_IN, FC_OUT)
        .astype(jnp.bfloat16)                           # FC is HBM-bound: bf16 weights
    )
    return {
        "conv_w_mat": wc,
        "bn_g": params["bn_g"].reshape(1, COUT).astype(jnp.float32),
        "bn_b": params["bn_b"].reshape(1, COUT).astype(jnp.float32),
        "fc_w_mat": w_fc,
        "fc_b": params["fc_b"].reshape(1, FC_OUT).astype(jnp.float32),
    }


@jax.jit
def exercise_model_forward(x, prep):
    n = x.shape[0]
    m = n * HOUT * WOUT

    # ---- fused conv (im2col matmul) + BatchNorm(batch stats) + ReLU ----
    # At N=2 the whole-batch block is tiny; for large N, tile M with a grid
    # axis and stream the BN sums instead of grid=(1,) full-array blocks.
    patches = _extract_patches(x)                       # (M, 128) bf16
    act = pl.pallas_call(
        conv_bn_relu_kernel,
        out_shape=jax.ShapeDtypeStruct((m, COUT), jnp.bfloat16),
        grid=(1,),
        in_specs=[
            pl.BlockSpec((m, KKC_PAD), lambda i: (0, 0)),
            pl.BlockSpec((KKC_PAD, COUT), lambda i: (0, 0)),
            pl.BlockSpec((1, COUT), lambda i: (0, 0)),
            pl.BlockSpec((1, COUT), lambda i: (0, 0)),
        ],
        out_specs=pl.BlockSpec((m, COUT), lambda i: (0, 0)),
    )(patches, prep["conv_w_mat"], prep["bn_g"], prep["bn_b"])

    # ---- flatten ((h,w,c) order; free contiguous reshape) + bf16 FC matmul ----
    x_flat = act.reshape(n, FC_IN)                      # (N, 65536) bf16
    k_steps = FC_IN // FC_TK                            # 4 reduction steps

    out = pl.pallas_call(
        fc_kernel,
        out_shape=jax.ShapeDtypeStruct((n, FC_OUT), jnp.float32),
        grid=(k_steps,),
        in_specs=[
            pl.BlockSpec((n, FC_TK), lambda k: (0, k)),
            pl.BlockSpec((FC_TK, FC_OUT), lambda k: (k, 0)),
            pl.BlockSpec((1, FC_OUT), lambda k: (0, 0)),
        ],
        out_specs=pl.BlockSpec((n, FC_OUT), lambda k: (0, 0)),
        compiler_params=pltpu.CompilerParams(
            dimension_semantics=("arbitrary",)
        ),
    )(x_flat, prep["fc_w_mat"], prep["fc_b"])
    return out


def init_params(key):
    k1, k2, k3, k4 = jax.random.split(key, 4)
    return {
        "conv_w": 0.05 * jax.random.normal(k1, (COUT, CIN, K, K), jnp.float32),
        # conv_b kept for interface fidelity; it has no effect through training-mode BN.
        "conv_b": 0.05 * jax.random.normal(k2, (COUT,), jnp.float32),
        "bn_g": jnp.ones((COUT,), jnp.float32),   # PyTorch BatchNorm2d defaults
        "bn_b": jnp.zeros((COUT,), jnp.float32),
        "fc_w": 0.01 * jax.random.normal(k3, (FC_OUT, FC_IN), jnp.float32),
        "fc_b": 0.01 * jax.random.normal(k4, (FC_OUT,), jnp.float32),
    }


# TODO(synk): BatchNorm2d running_mean/running_var buffer updates are a
# training-time side effect and are not materialized; the forward output
# (training-mode batch stats) is unaffected.

if __name__ == "__main__":
    key = jax.random.PRNGKey(0)
    kx, kp = jax.random.split(key)
    # batch=2; spatial must be 128 so the conv output is 16x16 as the fc expects.
    x = jax.random.normal(kx, (2, CIN, HIN, WIN), jnp.float32)
    params = init_params(kp)
    prep = prepare_params(params)

    out = exercise_model_forward(x, prep)
    out = jax.block_until_ready(out)
    assert out.shape == (2, FC_OUT) and out.dtype == jnp.float32
    print("KERNEL_OK")
</pallas_src>

<mosaic_0001>
module attributes {stable_mosaic.version = 11 : i64} {
  func.func @conv_bn_relu_kernel(%arg0: i32, %arg1: memref<512x128xbf16, #tpu.memory_space<vmem>>, %arg2: memref<128x256xbf16, #tpu.memory_space<vmem>>, %arg3: memref<1x256xf32, #tpu.memory_space<vmem>>, %arg4: memref<1x256xf32, #tpu.memory_space<vmem>>, %arg5: memref<512x256xbf16, #tpu.memory_space<vmem>>) attributes {dimension_semantics = [#tpu.dimension_semantics<arbitrary>], iteration_bounds = array<i64: 1>, scalar_prefetch = 0 : i64, scratch_operands = 0 : i64, tpu.core_type = #tpu.core_type<tc>, window_params = [{pipeline_mode = #tpu.pipeline_mode<synchronous>, transform_indices = @transform_0, window_bounds = array<i64: 512, 128>}, {pipeline_mode = #tpu.pipeline_mode<synchronous>, transform_indices = @transform_1, window_bounds = array<i64: 128, 256>}, {pipeline_mode = #tpu.pipeline_mode<synchronous>, transform_indices = @transform_2, window_bounds = array<i64: 1, 256>}, {pipeline_mode = #tpu.pipeline_mode<synchronous>, transform_indices = @transform_3, window_bounds = array<i64: 1, 256>}, {pipeline_mode = #tpu.pipeline_mode<synchronous>, transform_indices = @transform_4, window_bounds = array<i64: 512, 256>}]} {
    %c0 = arith.constant 0 : index
    %c0_0 = arith.constant 0 : index
    %0 = vector.load %arg1[%c0, %c0_0] : memref<512x128xbf16, #tpu.memory_space<vmem>>, vector<512x128xbf16>
    %c0_1 = arith.constant 0 : index
    %c0_2 = arith.constant 0 : index
    %1 = vector.load %arg2[%c0_1, %c0_2] : memref<128x256xbf16, #tpu.memory_space<vmem>>, vector<128x256xbf16>
    %cst = arith.constant dense<0.000000e+00> : vector<512x256xf32>
    %2 = tpu.matmul %0, %1, %cst {dimension_numbers = #tpu.dot_dimension_numbers<[1], [0], [0], [1], [0, 0, 1, 1], [], []>} : vector<512x128xbf16>, vector<128x256xbf16>, vector<512x256xf32> -> vector<512x256xf32>
    %cst_3 = arith.constant dense<0.000000e+00> : vector<256xf32>
    %3 = vector.multi_reduction <add>, %2, %cst_3 [0] : vector<512x256xf32> to vector<256xf32>
    %4 = vector.shape_cast %3 : vector<256xf32> to vector<1x256xf32>
    %cst_4 = arith.constant 0.001953125 : f32
    %5 = vector.broadcast %cst_4 : f32 to vector<1x256xf32>
    %6 = arith.mulf %4, %5 : vector<1x256xf32>
    %7 = arith.mulf %2, %2 : vector<512x256xf32>
    %cst_5 = arith.constant dense<0.000000e+00> : vector<256xf32>
    %8 = vector.multi_reduction <add>, %7, %cst_5 [0] : vector<512x256xf32> to vector<256xf32>
    %9 = vector.shape_cast %8 : vector<256xf32> to vector<1x256xf32>
    %cst_6 = arith.constant 0.001953125 : f32
    %10 = vector.broadcast %cst_6 : f32 to vector<1x256xf32>
    %11 = arith.mulf %9, %10 : vector<1x256xf32>
    %12 = arith.mulf %6, %6 : vector<1x256xf32>
    %13 = arith.subf %11, %12 : vector<1x256xf32>
    %c0_7 = arith.constant 0 : index
    %c0_8 = arith.constant 0 : index
    %14 = vector.load %arg3[%c0_7, %c0_8] : memref<1x256xf32, #tpu.memory_space<vmem>>, vector<1x256xf32>
    %cst_9 = arith.constant 9.99999974E-6 : f32
    %15 = vector.broadcast %cst_9 : f32 to vector<1x256xf32>
    %16 = arith.addf %13, %15 : vector<1x256xf32>
    %17 = math.rsqrt %16 : vector<1x256xf32>
    %18 = arith.mulf %14, %17 : vector<1x256xf32>
    %c0_10 = arith.constant 0 : index
    %c0_11 = arith.constant 0 : index
    %19 = vector.load %arg4[%c0_10, %c0_11] : memref<1x256xf32, #tpu.memory_space<vmem>>, vector<1x256xf32>
    %20 = arith.mulf %6, %18 : vector<1x256xf32>
    %21 = arith.subf %19, %20 : vector<1x256xf32>
    %22 = vector.broadcast %18 : vector<1x256xf32> to vector<512x256xf32>
    %23 = arith.mulf %2, %22 : vector<512x256xf32>
    %24 = vector.broadcast %21 : vector<1x256xf32> to vector<512x256xf32>
    %25 = arith.addf %23, %24 : vector<512x256xf32>
    %cst_12 = arith.constant 0.000000e+00 : f32
    %26 = vector.broadcast %cst_12 : f32 to vector<512x256xf32>
    %27 = arith.maximumf %25, %26 : vector<512x256xf32>
    %28 = arith.truncf %27 : vector<512x256xf32> to vector<512x256xbf16>
    %c0_13 = arith.constant 0 : index
    %c0_14 = arith.constant 0 : index
    %29 = vector.load %arg5[%c0_13, %c0_14] : memref<512x256xbf16, #tpu.memory_space<vmem>>, vector<512x256xbf16>
    tpu.vector_store %arg5[%c0_13, %c0_14], %28 {strides = array<i32>} : memref<512x256xbf16, #tpu.memory_space<vmem>>, vector<512x256xbf16>,
    return
  }
  func.func @transform_0(%arg0: i32) -> (i32, i32) {
    %c0_i32 = arith.constant 0 : i32
    %c0_i32_0 = arith.constant 0 : i32
    %c0_i32_1 = arith.constant 0 : i32
    return %c0_i32, %c0_i32_0 : i32, i32
  }
  func.func @transform_1(%arg0: i32) -> (i32, i32) {
    %c0_i32 = arith.constant 0 : i32
    %c0_i32_0 = arith.constant 0 : i32
    %c0_i32_1 = arith.constant 0 : i32
    return %c0_i32, %c0_i32_0 : i32, i32
  }
  func.func @transform_2(%arg0: i32) -> (i32, i32) {
    %c0_i32 = arith.constant 0 : i32
    %c0_i32_0 = arith.constant 0 : i32
    %c0_i32_1 = arith.constant 0 : i32
    return %c0_i32, %c0_i32_0 : i32, i32
  }
  func.func @transform_3(%arg0: i32) -> (i32, i32) {
    %c0_i32 = arith.constant 0 : i32
    %c0_i32_0 = arith.constant 0 : i32
    %c0_i32_1 = arith.constant 0 : i32
    return %c0_i32, %c0_i32_0 : i32, i32
  }
  func.func @transform_4(%arg0: i32) -> (i32, i32) {
    %c0_i32 = arith.constant 0 : i32
    %c0_i32_0 = arith.constant 0 : i32
    %c0_i32_1 = arith.constant 0 : i32
    return %c0_i32, %c0_i32_0 : i32, i32
  }
}

module attributes {stable_mosaic.version = 11 : i64} {
  func.func @fc_kernel(%arg0: i32, %arg1: memref<2x16384xbf16, #tpu.memory_space<vmem>>, %arg2: memref<16384x64xbf16, #tpu.memory_space<vmem>>, %arg3: memref<1x64xf32, #tpu.memory_space<vmem>>, %arg4: memref<2x64xf32, #tpu.memory_space<vmem>>) attributes {dimension_semantics = [#tpu.dimension_semantics<arbitrary>], iteration_bounds = array<i64: 4>, scalar_prefetch = 0 : i64, scratch_operands = 0 : i64, tpu.core_type = #tpu.core_type<tc>, window_params = [{transform_indices = @transform_0, window_bounds = array<i64: 2, 16384>}, {transform_indices = @transform_1, window_bounds = array<i64: 16384, 64>}, {pipeline_mode = #tpu.pipeline_mode<synchronous>, transform_indices = @transform_2, window_bounds = array<i64: 1, 64>}, {pipeline_mode = #tpu.pipeline_mode<synchronous>, transform_indices = @transform_3, window_bounds = array<i64: 2, 64>}]} {
    %c0_i32 = arith.constant 0 : i32
    %0 = arith.cmpi eq, %arg0, %c0_i32 : i32
    %1 = arith.extui %0 : i1 to i32
    %c0_i32_0 = arith.constant 0 : i32
    %2 = arith.cmpi ne, %1, %c0_i32_0 : i32
    scf.if %2 {
      %c0_8 = arith.constant 0 : index
      %c0_9 = arith.constant 0 : index
      %9 = vector.load %arg3[%c0_8, %c0_9] : memref<1x64xf32, #tpu.memory_space<vmem>>, vector<1x64xf32>
      %10 = vector.shape_cast %9 : vector<1x64xf32> to vector<1x64xf32>
      %11 = vector.broadcast %10 : vector<1x64xf32> to vector<2x64xf32>
      %c0_10 = arith.constant 0 : index
      %c0_11 = arith.constant 0 : index
      %12 = vector.load %arg4[%c0_10, %c0_11] : memref<2x64xf32, #tpu.memory_space<vmem>>, vector<2x64xf32>
      tpu.vector_store %arg4[%c0_10, %c0_11], %11 {strides = array<i32>} : memref<2x64xf32, #tpu.memory_space<vmem>>, vector<2x64xf32>,
    } else {
    }
    %c0 = arith.constant 0 : index
    %c0_1 = arith.constant 0 : index
    %3 = vector.load %arg4[%c0, %c0_1] : memref<2x64xf32, #tpu.memory_space<vmem>>, vector<2x64xf32>
    %c0_2 = arith.constant 0 : index
    %c0_3 = arith.constant 0 : index
    %4 = vector.load %arg1[%c0_2, %c0_3] : memref<2x16384xbf16, #tpu.memory_space<vmem>>, vector<2x16384xbf16>
    %c0_4 = arith.constant 0 : index
    %c0_5 = arith.constant 0 : index
    %5 = vector.load %arg2[%c0_4, %c0_5] : memref<16384x64xbf16, #tpu.memory_space<vmem>>, vector<16384x64xbf16>
    %cst = arith.constant dense<0.000000e+00> : vector<2x64xf32>
    %6 = tpu.matmul %4, %5, %cst {dimension_numbers = #tpu.dot_dimension_numbers<[1], [0], [0], [1], [0, 0, 1, 1], [], []>} : vector<2x16384xbf16>, vector<16384x64xbf16>, vector<2x64xf32> -> vector<2x64xf32>
    %7 = arith.addf %3, %6 : vector<2x64xf32>
    %c0_6 = arith.constant 0 : index
    %c0_7 = arith.constant 0 : index
    %8 = vector.load %arg4[%c0_6, %c0_7] : memref<2x64xf32, #tpu.memory_space<vmem>>, vector<2x64xf32>
    tpu.vector_store %arg4[%c0_6, %c0_7], %7 {strides = array<i32>} : memref<2x64xf32, #tpu.memory_space<vmem>>, vector<2x64xf32>,
    return
  }
  func.func @transform_0(%arg0: i32) -> (i32, i32) {
    %c0_i32 = arith.constant 0 : i32
    %c0_i32_0 = arith.constant 0 : i32
    return %c0_i32, %arg0 : i32, i32
  }
  func.func @transform_1(%arg0: i32) -> (i32, i32) {
    %c0_i32 = arith.constant 0 : i32
    %c0_i32_0 = arith.constant 0 : i32
    return %arg0, %c0_i32 : i32, i32
  }
  func.func @transform_2(%arg0: i32) -> (i32, i32) {
    %c0_i32 = arith.constant 0 : i32
    %c0_i32_0 = arith.constant 0 : i32
    %c0_i32_1 = arith.constant 0 : i32
    return %c0_i32, %c0_i32_0 : i32, i32
  }
  func.func @transform_3(%arg0: i32) -> (i32, i32) {
    %c0_i32 = arith.constant 0 : i32
    %c0_i32_0 = arith.constant 0 : i32
    %c0_i32_1 = arith.constant 0 : i32
    return %c0_i32, %c0_i32_0 : i32, i32
  }
}

</mosaic_0001>

<bundles_post_ra>
// kernel: exercise_model_forward.2
= control target key start
LH: loop header
LB: loop body
LE: loop exit
PB: predicated region body
PF: predicated region fallthrough
CT: control target
= control target key end

     0   :  { %v2293_v1 = vmov 0   ;;  %s4769_s1 = inlined_call_operand.vmem [shape: bf16[128,256], index: 1, kind: input, shape index: {}]   ;;  %s4770_s0 = inlined_call_operand.vmem [shape: bf16[512,128], index: 0, kind: input, shape index: {}]   ;;  %s4771_s2 = inlined_call_operand.vmem [shape: f32[1,256], index: 2, kind: input, shape index: {}]   ;;  %s4772_s3 = inlined_call_operand.vmem [shape: f32[1,256], index: 3, kind: input, shape index: {}]   ;;  %s4773_s4 = inlined_call_operand.vmem [shape: bf16[512,256], index: 4, kind: output, shape index: {}]  }
   0x1   :  { %v2233_v0 = vld [vmem:[%s4769_s1 + $0x4] ss:$8 sps:$4 sm:$0xff]   ;;  %402 = vmatprep.mubr.bf16.mxu0 %v2293_v1  ;;  %562 = vmatprep.mubr.bf16.mxu1 %v2293_v1  ;;  %v2235_v2 = vld [vmem:[%s4769_s1] ss:$8 sps:$4 sm:$0xff]   ;;  %v2236_v3 = vld [vmem:[%s4769_s1 + $0x14] ss:$8 sps:$4 sm:$0xff]  }
   0x2   :  { %370 = vmatprep.subr.bf16.mxu0 %v2233_v0  ;;  %2215 = vmatprep.subr.bf16.mxu1 %v2233_v0  ;;  %v2238_v4 = vld [vmem:[%s4769_s1 + $0x10] ss:$8 sps:$4 sm:$0xff]   ;;  %v2239_v5 = vld [vmem:[%s4769_s1 + $0x24] ss:$8 sps:$4 sm:$0xff]   ;;  %v2241_v6 = vld [vmem:[%s4769_s1 + $0x20] ss:$8 sps:$4 sm:$0xff]  }
   0x3   :  { %371 = vmatpush1.bf16.msra.mxu0 %v2235_v2  ;;  %2223 = vmatpush1.bf16.msra.mxu1 %v2235_v2  ;;  %v2242_v7 = vld [vmem:[%s4769_s1 + $0x34] ss:$8 sps:$4 sm:$0xff]   ;;  %v2244_v8 = vld [vmem:[%s4769_s1 + $0x30] ss:$8 sps:$4 sm:$0xff]   ;;  %v2245_v9 = vld [vmem:[%s4769_s1 + $0x44] ss:$8 sps:$4 sm:$0xff]  }
   0x4   :  { %372 = vmatprep.subr.bf16.mxu0 %v2236_v3  ;;  %2216 = vmatprep.subr.bf16.mxu1 %v2236_v3  ;;  %v2247_v10 = vld [vmem:[%s4769_s1 + $0x40] ss:$8 sps:$4 sm:$0xff]   ;;  %v2248_v11 = vld [vmem:[%s4769_s1 + $0x54] ss:$8 sps:$4 sm:$0xff]   ;;  %v2250_v12 = vld [vmem:[%s4769_s1 + $0x50] ss:$8 sps:$4 sm:$0xff]  }
   0x5   :  { %v2251_v13 = vld [vmem:[%s4769_s1 + $0x64] ss:$8 sps:$4 sm:$0xff]   ;;  %v2253_v14 = vld [vmem:[%s4769_s1 + $0x60] ss:$8 sps:$4 sm:$0xff]   ;;  %v2254_v15 = vld [vmem:[%s4769_s1 + $0x74] ss:$8 sps:$4 sm:$0xff]  }
   0x6   :  { %v2256_v16 = vld [vmem:[%s4769_s1 + $0x70] ss:$8 sps:$4 sm:$0xff]   ;;  %v2257_v17 = vld [vmem:[%s4770_s0] sm:$0xff]   ;;  %v2258_v19 = vld [vmem:[%s4770_s0 + $0x8] sm:$0xff]  }
   0x7   :  { %373 = vmatpush1.bf16.msra.mxu0 %v2238_v4  ;;  %2224 = vmatpush1.bf16.msra.mxu1 %v2238_v4  ;;  %v2265_v18 = vld [vmem:[%s4770_s0 + $0x80] sm:$0xff]   ;;  %v2267_v20 = vld [vmem:[%s4770_s0 + $0x88] sm:$0xff]   ;;  %v2259_v21 = vld [vmem:[%s4770_s0 + $0x10] sm:$0xff]  }
   0x8   :  { %374 = vmatprep.subr.bf16.mxu0 %v2239_v5  ;;  %2217 = vmatprep.subr.bf16.mxu1 %v2239_v5  ;;  %v2269_v22 = vld [vmem:[%s4770_s0 + $0x90] sm:$0xff]   ;;  %v2260_v23 = vld [vmem:[%s4770_s0 + $0x18] sm:$0xff]   ;;  %v2261_v25 = vld [vmem:[%s4770_s0 + $0x20] sm:$0xff]  }
   0x9   :  { %v2271_v24 = vld [vmem:[%s4770_s0 + $0x98] sm:$0xff]   ;;  %v2273_v26 = vld [vmem:[%s4770_s0 + $0xa0] sm:$0xff]   ;;  %v2262_v27 = vld [vmem:[%s4770_s0 + $0x28] sm:$0xff]  }
   0xa   :  { %v2275_v28 = vld [vmem:[%s4770_s0 + $0xa8] sm:$0xff]   ;;  %v2263_v29 = vld [vmem:[%s4770_s0 + $0x30] sm:$0xff]   ;;  %v2264_v31 = vld [vmem:[%s4770_s0 + $0x38] sm:$0xff]  }
   0xb   :  { %375 = vmatpush1.bf16.msra.mxu0 %v2241_v6  ;;  %2225 = vmatpush1.bf16.msra.mxu1 %v2241_v6  ;;  %v2277_v30 = vld [vmem:[%s4770_s0 + $0xb0] sm:$0xff]   ;;  %v2279_v32 = vld [vmem:[%s4770_s0 + $0xb8] sm:$0xff]   ;;  %v2266_v33 = vld [vmem:[%s4770_s0 + $0x40] sm:$0xff]  }
   0xc   :  { %376 = vmatprep.subr.bf16.mxu0 %v2242_v7  ;;  %2218 = vmatprep.subr.bf16.mxu1 %v2242_v7  ;;  %v2281_v34 = vld [vmem:[%s4770_s0 + $0xc0] sm:$0xff]   ;;  %v2268_v35 = vld [vmem:[%s4770_s0 + $0x48] sm:$0xff]   ;;  %v2270_v37 = vld [vmem:[%s4770_s0 + $0x50] sm:$0xff]  }
   0xd   :  { %v2282_v36 = vld [vmem:[%s4770_s0 + $0xc8] sm:$0xff]   ;;  %v2283_v38 = vld [vmem:[%s4770_s0 + $0xd0] sm:$0xff]   ;;  %v2272_v39 = vld [vmem:[%s4770_s0 + $0x58] sm:$0xff]  }
   0xe   :  { %v2284_v40 = vld [vmem:[%s4770_s0 + $0xd8] sm:$0xff]   ;;  %v2274_v41 = vld [vmem:[%s4770_s0 + $0x60] sm:$0xff]   ;;  %v2276_v43 = vld [vmem:[%s4770_s0 + $0x68] sm:$0xff]  }
   0xf   :  { %377 = vmatpush1.bf16.msra.mxu0 %v2244_v8  ;;  %2226 = vmatpush1.bf16.msra.mxu1 %v2244_v8  ;;  %v2285_v42 = vld [vmem:[%s4770_s0 + $0xe0] sm:$0xff]   ;;  %v2286_v44 = vld [vmem:[%s4770_s0 + $0xe8] sm:$0xff]   ;;  %v2278_v45 = vld [vmem:[%s4770_s0 + $0x70] sm:$0xff]  }
  0x10   :  { %378 = vmatprep.subr.bf16.mxu0 %v2245_v9  ;;  %2219 = vmatprep.subr.bf16.mxu1 %v2245_v9  ;;  %v2287_v46 = vld [vmem:[%s4770_s0 + $0xf0] sm:$0xff]   ;;  %v2280_v47 = vld [vmem:[%s4770_s0 + $0x78] sm:$0xff]  }
  0x11   :  { %v2288_v48 = vld [vmem:[%s4770_s0 + $0xf8] sm:$0xff]  }
  0x13   :  { %379 = vmatpush1.bf16.msra.mxu0 %v2247_v10  ;;  %2227 = vmatpush1.bf16.msra.mxu1 %v2247_v10 }
  0x14   :  { %380 = vmatprep.subr.bf16.mxu0 %v2248_v11  ;;  %2220 = vmatprep.subr.bf16.mxu1 %v2248_v11 }
  0x17   :  { %381 = vmatpush1.bf16.msra.mxu0 %v2250_v12  ;;  %2228 = vmatpush1.bf16.msra.mxu1 %v2250_v12 }
  0x18   :  { %382 = vmatprep.subr.bf16.mxu0 %v2251_v13  ;;  %2221 = vmatprep.subr.bf16.mxu1 %v2251_v13 }
  0x1b   :  { %383 = vmatpush1.bf16.msra.mxu0 %v2253_v14  ;;  %2229 = vmatpush1.bf16.msra.mxu1 %v2253_v14 }
  0x1c   :  { %384 = vmatprep.subr.bf16.mxu0 %v2254_v15  ;;  %2222 = vmatprep.subr.bf16.mxu1 %v2254_v15 }
  0x1f   :  { %385 = vmatpush1.bf16.msra.mxu0 %v2256_v16  ;;  %2230 = vmatpush1.bf16.msra.mxu1 %v2256_v16 }
  0x22   :  { %403 = vmatmul.mubr.bf16.vlgmr.msra.gmra.mrb[0].mxu0 %v2257_v17  ;;  %563 = vmatmul.mubr.bf16.vlgmr.msra.gmra.mrb[0].mxu1 %v2265_v18 }
  0x23   :  { %412 = vmatprep.mubr.bf16.mxu0 %v2293_v1  ;;  %572 = vmatprep.mubr.bf16.mxu1 %v2293_v1 }
  0x2a   :  { %413 = vmatmul.mubr.bf16.gmra.mrb[4].mxu0 %v2258_v19  ;;  %573 = vmatmul.mubr.bf16.gmra.mrb[4].mxu1 %v2267_v20 }
  0x2b   :  { %422 = vmatprep.mubr.bf16.mxu0 %v2293_v1  ;;  %582 = vmatprep.mubr.bf16.mxu1 %v2293_v1 }
  0x32   :  { %423 = vmatmul.mubr.bf16.gmra.mrb[8].mxu0 %v2259_v21  ;;  %583 = vmatmul.mubr.bf16.gmra.mrb[8].mxu1 %v2269_v22 }
  0x33   :  { %432 = vmatprep.mubr.bf16.mxu0 %v2293_v1  ;;  %592 = vmatprep.mubr.bf16.mxu1 %v2293_v1 }
  0x3a   :  { %433 = vmatmul.mubr.bf16.gmra.mrb[12].mxu0 %v2260_v23  ;;  %593 = vmatmul.mubr.bf16.gmra.mrb[12].mxu1 %v2271_v24 }
  0x3b   :  { %442 = vmatprep.mubr.bf16.mxu0 %v2293_v1  ;;  %602 = vmatprep.mubr.bf16.mxu1 %v2293_v1 }
  0x42   :  { %443 = vmatmul.mubr.bf16.gmra.mrb[16].mxu0 %v2261_v25  ;;  %603 = vmatmul.mubr.bf16.gmra.mrb[16].mxu1 %v2273_v26 }
  0x43   :  { %452 = vmatprep.mubr.bf16.mxu0 %v2293_v1  ;;  %612 = vmatprep.mubr.bf16.mxu1 %v2293_v1 }
  0x4a   :  { %453 = vmatmul.mubr.bf16.gmra.mrb[20].mxu0 %v2262_v27  ;;  %613 = vmatmul.mubr.bf16.gmra.mrb[20].mxu1 %v2275_v28 }
  0x4b   :  { %462 = vmatprep.mubr.bf16.mxu0 %v2293_v1  ;;  %622 = vmatprep.mubr.bf16.mxu1 %v2293_v1 }
  0x52   :  { %463 = vmatmul.mubr.bf16.gmra.mrb[24].mxu0 %v2263_v29  ;;  %623 = vmatmul.mubr.bf16.gmra.mrb[24].mxu1 %v2277_v30 }
  0x53   :  { %472 = vmatprep.mubr.bf16.mxu0 %v2293_v1  ;;  %632 = vmatprep.mubr.bf16.mxu1 %v2293_v1 }
  0x5a   :  { %473 = vmatmul.mubr.bf16.gmra.mrb[28].mxu0 %v2264_v31  ;;  %633 = vmatmul.mubr.bf16.gmra.mrb[28].mxu1 %v2279_v32 }
  0x5b   :  { %482 = vmatprep.mubr.bf16.mxu0 %v2293_v1  ;;  %642 = vmatprep.mubr.bf16.mxu1 %v2293_v1 }
  0x62   :  { %483 = vmatmul.mubr.bf16.gmra.mrb[32].mxu0 %v2266_v33  ;;  %643 = vmatmul.mubr.bf16.gmra.mrb[32].mxu1 %v2281_v34 }
  0x63   :  { %492 = vmatprep.mubr.bf16.mxu0 %v2293_v1  ;;  %652 = vmatprep.mubr.bf16.mxu1 %v2293_v1 }
  0x6a   :  { %493 = vmatmul.mubr.bf16.gmra.mrb[36].mxu0 %v2268_v35  ;;  %653 = vmatmul.mubr.bf16.gmra.mrb[36].mxu1 %v2282_v36 }
  0x6b   :  { %502 = vmatprep.mubr.bf16.mxu0 %v2293_v1  ;;  %662 = vmatprep.mubr.bf16.mxu1 %v2293_v1 }
  0x72   :  { %503 = vmatmul.mubr.bf16.gmra.mrb[40].mxu0 %v2270_v37  ;;  %663 = vmatmul.mubr.bf16.gmra.mrb[40].mxu1 %v2283_v38 }
  0x73   :  { %512 = vmatprep.mubr.bf16.mxu0 %v2293_v1  ;;  %672 = vmatprep.mubr.bf16.mxu1 %v2293_v1 }
  0x7a   :  { %513 = vmatmul.mubr.bf16.gmra.mrb[44].mxu0 %v2272_v39  ;;  %673 = vmatmul.mubr.bf16.gmra.mrb[44].mxu1 %v2284_v40 }
  0x7b   :  { %522 = vmatprep.mubr.bf16.mxu0 %v2293_v1  ;;  %682 = vmatprep.mubr.bf16.mxu1 %v2293_v1 }
  0x82   :  { %523 = vmatmul.mubr.bf16.gmra.mrb[48].mxu0 %v2274_v41  ;;  %683 = vmatmul.mubr.bf16.gmra.mrb[48].mxu1 %v2285_v42 }
  0x83   :  { %532 = vmatprep.mubr.bf16.mxu0 %v2293_v1  ;;  %692 = vmatprep.mubr.bf16.mxu1 %v2293_v1 }
  0x8a   :  { %533 = vmatmul.mubr.bf16.gmra.mrb[52].mxu0 %v2276_v43  ;;  %693 = vmatmul.mubr.bf16.gmra.mrb[52].mxu1 %v2286_v44 }
  0x8b   :  { %542 = vmatprep.mubr.bf16.mxu0 %v2293_v1  ;;  %702 = vmatprep.mubr.bf16.mxu1 %v2293_v1 }
  0x92   :  { %543 = vmatmul.mubr.bf16.gmra.mrb[56].mxu0 %v2278_v45  ;;  %703 = vmatmul.mubr.bf16.gmra.mrb[56].mxu1 %v2287_v46 }
  0x93   :  { %552 = vmatprep.mubr.bf16.mxu0 %v2293_v1  ;;  %712 = vmatprep.mubr.bf16.mxu1 %v2293_v1 }
  0x9a   :  { %553 = vmatmul.mubr.bf16.gmra.mrb[60].mxu0 %v2280_v47  ;;  %713 = vmatmul.mubr.bf16.gmra.mrb[60].mxu1 %v2288_v48 }
  0xf5   :  { %v2496_v49 = vpop.f32.mrb[0].mxu0  ;;  %v2498_v50 = vpop.f32.mrb[0].mxu1 }
  0xf6   :  { %4987 = vst [vmem:[#allocation2_spill] sm:$0xff] %v2496_v49  ;;  %v2500_v51 = vpop.f32.mrb[1].mxu0  ;;  %v2502_v52 = vpop.f32.mrb[1].mxu1  ;;  %v863_v55 = vmul.f32 %v2496_v49, %v2496_v49 }
  0xf7   :  { %4988 = vst [vmem:[#allocation3_spill] sm:$0xff] %v2500_v51  ;;  %v2504_v53 = vpop.f32.mrb[2].mxu0  ;;  %v2506_v54 = vpop.f32.mrb[2].mxu1  ;;  %v864_v60 = vmul.f32 %v2500_v51, %v2500_v51 }
  0xf8   :  { %4989 = vst [vmem:[#allocation4_spill] sm:$0xff] %v2504_v53  ;;  %v723_v56 = vadd.f32 %v2504_v53, %v2496_v49  ;;  %v865_v57 = vmul.f32 %v2504_v53, %v2504_v53  ;;  %v2514_v58 = vpop.f32.mrb[3].mxu0  ;;  %v2516_v59 = vpop.f32.mrb[3].mxu1 }
  0xf9   :  { %4990 = vst [vmem:[#allocation5_spill] sm:$0xff] %v2514_v58  ;;  %v792_v61 = vadd.f32 %v2514_v58, %v2500_v51  ;;  %v866_v62 = vmul.f32 %v2514_v58, %v2514_v58 }
  0xfa   :  { %v991_v63 = vadd.f32 %v865_v57, %v863_v55 }
  0xfb   :  { %v1060_v0 = vadd.f32 %v866_v62, %v864_v60 }
  0xfd   :  { %v2524_v1 = vpop.f32.mrb[4].mxu0  ;;  %v2526_v2 = vpop.f32.mrb[4].mxu1 }
  0xfe   :  { %4991 = vst [vmem:[#allocation6_spill] sm:$0xff] %v2524_v1  ;;  %v724_v3 = vadd.f32 %v723_v56, %v2524_v1  ;;  %v867_v4 = vmul.f32 %v2524_v1, %v2524_v1  ;;  %v2531_v5 = vpop.f32.mrb[5].mxu0  ;;  %v2533_v6 = vpop.f32.mrb[5].mxu1 }
  0xff   :  { %4992 = vst [vmem:[#allocation7_spill] sm:$0xff] %v2531_v5  ;;  %v793_v7 = vadd.f32 %v792_v61, %v2531_v5  ;;  %v868_v8 = vmul.f32 %v2531_v5, %v2531_v5  ;;  %v2538_v9 = vpop.f32.mrb[6].mxu0  ;;  %v2540_v10 = vpop.f32.mrb[6].mxu1 }
 0x100   :  { %4993 = vst [vmem:[#allocation8_spill] sm:$0xff] %v2538_v9  ;;  %v992_v11 = vadd.f32 %v991_v63, %v867_v4  ;;  %v725_v12 = vadd.f32 %v724_v3, %v2538_v9  ;;  %v869_v13 = vmul.f32 %v2538_v9, %v2538_v9  ;;  %v2545_v14 = vpop.f32.mrb[7].mxu0  ;;  %v2547_v15 = vpop.f32.mrb[7].mxu1 }
 0x101   :  { %4994 = vst [vmem:[#allocation9_spill] sm:$0xff] %v2545_v14  ;;  %v1061_v16 = vadd.f32 %v1060_v0, %v868_v8  ;;  %v794_v17 = vadd.f32 %v793_v7, %v2545_v14  ;;  %v870_v18 = vmul.f32 %v2545_v14, %v2545_v14 }
 0x102   :  { %v993_v19 = vadd.f32 %v992_v11, %v869_v13 }
 0x103   :  { %v1062_v20 = vadd.f32 %v1061_v16, %v870_v18 }
 0x105   :  { %v2552_v21 = vpop.f32.mrb[8].mxu0  ;;  %v2554_v22 = vpop.f32.mrb[8].mxu1 }
 0x106   :  { %4995 = vst [vmem:[#allocation10_spill] sm:$0xff] %v2552_v21  ;;  %v726_v23 = vadd.f32 %v725_v12, %v2552_v21  ;;  %v871_v24 = vmul.f32 %v2552_v21, %v2552_v21  ;;  %v2559_v25 = vpop.f32.mrb[9].mxu0  ;;  %v2561_v26 = vpop.f32.mrb[9].mxu1 }
 0x107   :  { %4996 = vst [vmem:[#allocation11_spill] sm:$0xff] %v2559_v25  ;;  %v795_v27 = vadd.f32 %v794_v17, %v2559_v25  ;;  %v872_v28 = vmul.f32 %v2559_v25, %v2559_v25  ;;  %v2566_v29 = vpop.f32.mrb[10].mxu0  ;;  %v2568_v30 = vpop.f32.mrb[10].mxu1 }
 0x108   :  { %4997 = vst [vmem:[#allocation12_spill] sm:$0xff] %v2566_v29  ;;  %v994_v31 = vadd.f32 %v993_v19, %v871_v24  ;;  %v727_v32 = vadd.f32 %v726_v23, %v2566_v29  ;;  %v873_v33 = vmul.f32 %v2566_v29, %v2566_v29  ;;  %v2573_v34 = vpop.f32.mrb[11].mxu0  ;;  %v2575_v35 = vpop.f32.mrb[11].mxu1 }
 0x109   :  { %4998 = vst [vmem:[#allocation13_spill] sm:$0xff] %v2573_v34  ;;  %v1063_v36 = vadd.f32 %v1062_v20, %v872_v28  ;;  %v796_v37 = vadd.f32 %v795_v27, %v2573_v34  ;;  %v874_v38 = vmul.f32 %v2573_v34, %v2573_v34 }
 0x10a   :  { %v995_v39 = vadd.f32 %v994_v31, %v873_v33 }
 0x10b   :  { %v1064_v40 = vadd.f32 %v1063_v36, %v874_v38 }
 0x10d   :  { %v2580_v41 = vpop.f32.mrb[12].mxu0  ;;  %v2582_v42 = vpop.f32.mrb[12].mxu1 }
 0x10e   :  { %4999 = vst [vmem:[#allocation14_spill] sm:$0xff] %v2580_v41  ;;  %v728_v43 = vadd.f32 %v727_v32, %v2580_v41  ;;  %v875_v44 = vmul.f32 %v2580_v41, %v2580_v41  ;;  %v2587_v45 = vpop.f32.mrb[13].mxu0  ;;  %v2589_v46 = vpop.f32.mrb[13].mxu1 }
 0x10f   :  { %5000 = vst [vmem:[#allocation15_spill] sm:$0xff] %v2587_v45  ;;  %v797_v47 = vadd.f32 %v796_v37, %v2587_v45  ;;  %v876_v48 = vmul.f32 %v2587_v45, %v2587_v45  ;;  %v2594_v55 = vpop.f32.mrb[14].mxu0  ;;  %v2596_v56 = vpop.f32.mrb[14].mxu1 }
 0x110   :  { %5001 = vst [vmem:[#allocation16_spill] sm:$0xff] %v2594_v55  ;;  %v996_v57 = vadd.f32 %v995_v39, %v875_v44  ;;  %v729_v60 = vadd.f32 %v728_v43, %v2594_v55  ;;  %v877_v61 = vmul.f32 %v2594_v55, %v2594_v55  ;;  %v2601_v62 = vpop.f32.mrb[15].mxu0  ;;  %v2603_v63 = vpop.f32.mrb[15].mxu1 }
 0x111   :  { %5002 = vst [vmem:[#allocation17_spill] sm:$0xff] %v2601_v62  ;;  %v1065_v0 = vadd.f32 %v1064_v40, %v876_v48  ;;  %v798_v3 = vadd.f32 %v797_v47, %v2601_v62  ;;  %v878_v4 = vmul.f32 %v2601_v62, %v2601_v62 }
 0x112   :  { %v997_v7 = vadd.f32 %v996_v57, %v877_v61 }
 0x113   :  { %v1066_v8 = vadd.f32 %v1065_v0, %v878_v4 }
 0x115   :  { %v2608_v11 = vpop.f32.mrb[16].mxu0  ;;  %v2610_v12 = vpop.f32.mrb[16].mxu1 }
 0x116   :  { %5003 = vst [vmem:[#allocation18_spill] sm:$0xff] %v2608_v11  ;;  %v730_v13 = vadd.f32 %v729_v60, %v2608_v11  ;;  %v879_v16 = vmul.f32 %v2608_v11, %v2608_v11  ;;  %v2615_v17 = vpop.f32.mrb[17].mxu0  ;;  %v2617_v18 = vpop.f32.mrb[17].mxu1 }
 0x117   :  { %5004 = vst [vmem:[#allocation19_spill] sm:$0xff] %v2615_v17  ;;  %v799_v19 = vadd.f32 %v798_v3, %v2615_v17  ;;  %v880_v20 = vmul.f32 %v2615_v17, %v2615_v17  ;;  %v2622_v23 = vpop.f32.mrb[18].mxu0  ;;  %v2624_v24 = vpop.f32.mrb[18].mxu1 }
 0x118   :  { %5005 = vst [vmem:[#allocation20_spill] sm:$0xff] %v2622_v23  ;;  %v998_v27 = vadd.f32 %v997_v7, %v879_v16  ;;  %v731_v28 = vadd.f32 %v730_v13, %v2622_v23  ;;  %v881_v31 = vmul.f32 %v2622_v23, %v2622_v23  ;;  %v2629_v32 = vpop.f32.mrb[19].mxu0  ;;  %v2631_v33 = vpop.f32.mrb[19].mxu1 }
 0x119   :  { %5006 = vst [vmem:[#allocation21_spill] sm:$0xff] %v2629_v32  ;;  %v1067_v36 = vadd.f32 %v1066_v8, %v880_v20  ;;  %v800_v37 = vadd.f32 %v799_v19, %v2629_v32  ;;  %v882_v38 = vmul.f32 %v2629_v32, %v2629_v32 }
 0x11a   :  { %v999_v39 = vadd.f32 %v998_v27, %v881_v31 }
 0x11b   :  { %v1068_v40 = vadd.f32 %v1067_v36, %v882_v38 }
 0x11d   :  { %v2636_v43 = vpop.f32.mrb[20].mxu0  ;;  %v2638_v44 = vpop.f32.mrb[20].mxu1 }
 0x11e   :  { %5007 = vst [vmem:[#allocation22_spill] sm:$0xff] %v2636_v43  ;;  %v732_v47 = vadd.f32 %v731_v28, %v2636_v43  ;;  %v883_v48 = vmul.f32 %v2636_v43, %v2636_v43  ;;  %v2643_v57 = vpop.f32.mrb[21].mxu0  ;;  %v2645_v60 = vpop.f32.mrb[21].mxu1 }
 0x11f   :  { %5008 = vst [vmem:[#allocation23_spill] sm:$0xff] %v2643_v57  ;;  %v801_v61 = vadd.f32 %v800_v37, %v2643_v57  ;;  %v884_v0 = vmul.f32 %v2643_v57, %v2643_v57  ;;  %v2650_v3 = vpop.f32.mrb[22].mxu0  ;;  %v2652_v4 = vpop.f32.mrb[22].mxu1 }
 0x120   :  { %5009 = vst [vmem:[#allocation24_spill] sm:$0xff] %v2650_v3  ;;  %v1000_v7 = vadd.f32 %v999_v39, %v883_v48  ;;  %v733_v8 = vadd.f32 %v732_v47, %v2650_v3  ;;  %v885_v13 = vmul.f32 %v2650_v3, %v2650_v3  ;;  %v2657_v16 = vpop.f32.mrb[23].mxu0  ;;  %v2659_v19 = vpop.f32.mrb[23].mxu1 }
 0x121   :  { %5010 = vst [vmem:[#allocation25_spill] sm:$0xff] %v2657_v16  ;;  %v1069_v20 = vadd.f32 %v1068_v40, %v884_v0  ;;  %v802_v27 = vadd.f32 %v801_v61, %v2657_v16  ;;  %v886_v28 = vmul.f32 %v2657_v16, %v2657_v16 }
 0x122   :  { %v1001_v31 = vadd.f32 %v1000_v7, %v885_v13 }
 0x123   :  { %v1070_v36 = vadd.f32 %v1069_v20, %v886_v28 }
 0x125   :  { %v2664_v37 = vpop.f32.mrb[24].mxu0  ;;  %v2666_v38 = vpop.f32.mrb[24].mxu1 }
 0x126   :  { %5011 = vst [vmem:[#allocation26_spill] sm:$0xff] %v2664_v37  ;;  %v734_v39 = vadd.f32 %v733_v8, %v2664_v37  ;;  %v887_v47 = vmul.f32 %v2664_v37, %v2664_v37  ;;  %v2671_v48 = vpop.f32.mrb[25].mxu0  ;;  %v2673_v3 = vpop.f32.mrb[25].mxu1 }
 0x127   :  { %5012 = vst [vmem:[#allocation27_spill] sm:$0xff] %v2671_v48  ;;  %v803_v40 = vadd.f32 %v802_v27, %v2671_v48  ;;  %v888_v61 = vmul.f32 %v2671_v48, %v2671_v48  ;;  %v2678_v0 = vpop.f32.mrb[26].mxu0  ;;  %v2680_v7 = vpop.f32.mrb[26].mxu1 }
 0x128   :  { %5013 = vst [vmem:[#allocation28_spill] sm:$0xff] %v2678_v0  ;;  %v1002_v13 = vadd.f32 %v1001_v31, %v887_v47  ;;  %v735_v20 = vadd.f32 %v734_v39, %v2678_v0  ;;  %v889_v8 = vmul.f32 %v2678_v0, %v2678_v0  ;;  %v2685_v28 = vpop.f32.mrb[27].mxu0  ;;  %v2687_v37 = vpop.f32.mrb[27].mxu1 }
 0x129   :  { %5014 = vst [vmem:[#allocation29_spill] sm:$0xff] %v2685_v28  ;;  %v1071_v16 = vadd.f32 %v1070_v36, %v888_v61  ;;  %v804_v27 = vadd.f32 %v803_v40, %v2685_v28  ;;  %v890_v48 = vmul.f32 %v2685_v28, %v2685_v28 }
 0x12a   :  { %v1003_v57 = vadd.f32 %v1002_v13, %v889_v8 }
 0x12b   :  { %v1072_v43 = vadd.f32 %v1071_v16, %v890_v48 }
 0x12d   :  { %v2692_v32 = vpop.f32.mrb[28].mxu0  ;;  %v2694_v31 = vpop.f32.mrb[28].mxu1 }
 0x12e   :  { %5015 = vst [vmem:[#allocation30_spill] sm:$0xff] %v2692_v32  ;;  %v736_v39 = vadd.f32 %v735_v20, %v2692_v32  ;;  %v891_v47 = vmul.f32 %v2692_v32, %v2692_v32  ;;  %v2699_v0 = vpop.f32.mrb[29].mxu0  ;;  %v2701_v23 = vpop.f32.mrb[29].mxu1 }
 0x12f   :  { %5016 = vst [vmem:[#allocation31_spill] sm:$0xff] %v2699_v0  ;;  %v805_v36 = vadd.f32 %v804_v27, %v2699_v0  ;;  %v892_v40 = vmul.f32 %v2699_v0, %v2699_v0  ;;  %v2706_v61 = vpop.f32.mrb[30].mxu0  ;;  %v2708_v16 = vpop.f32.mrb[30].mxu1 }
 0x130   :  { %5017 = vst [vmem:[#allocation32_spill] sm:$0xff] %v2706_v61  ;;  %v1004_v48 = vadd.f32 %v1003_v57, %v891_v47  ;;  %v737_v13 = vadd.f32 %v736_v39, %v2706_v61  ;;  %v893_v20 = vmul.f32 %v2706_v61, %v2706_v61  ;;  %v2713_v8 = vpop.f32.mrb[31].mxu0  ;;  %v2715_v32 = vpop.f32.mrb[31].mxu1 }
 0x131   :  { %5018 = vst [vmem:[#allocation33_spill] sm:$0xff] %v2713_v8  ;;  %v1073_v28 = vadd.f32 %v1072_v43, %v892_v40  ;;  %v806_v27 = vadd.f32 %v805_v36, %v2713_v8  ;;  %v894_v0 = vmul.f32 %v2713_v8, %v2713_v8 }
 0x132   :  { %v1005_v17 = vadd.f32 %v1004_v48, %v893_v20 }
 0x133   :  { %v1074_v11 = vadd.f32 %v1073_v28, %v894_v0 }
 0x135   :  { %v2720_v62 = vpop.f32.mrb[32].mxu0  ;;  %v2722_v57 = vpop.f32.mrb[32].mxu1 }
 0x136   :  { %5019 = vst [vmem:[#allocation34_spill] sm:$0xff] %v2720_v62  ;;  %v738_v39 = vadd.f32 %v737_v13, %v2720_v62  ;;  %v895_v47 = vmul.f32 %v2720_v62, %v2720_v62  ;;  %v2727_v61 = vpop.f32.mrb[33].mxu0  ;;  %v2729_v55 = vpop.f32.mrb[33].mxu1 }
 0x137   :  { %5020 = vst [vmem:[#allocation35_spill] sm:$0xff] %v2727_v61  ;;  %v807_v43 = vadd.f32 %v806_v27, %v2727_v61  ;;  %v896_v36 = vmul.f32 %v2727_v61, %v2727_v61  ;;  %v2734_v40 = vpop.f32.mrb[34].mxu0  ;;  %v2736_v0 = vpop.f32.mrb[34].mxu1 }
 0x138   :  { %5021 = vst [vmem:[#allocation36_spill] sm:$0xff] %v2734_v40  ;;  %v1006_v28 = vadd.f32 %v1005_v17, %v895_v47  ;;  %v739_v48 = vadd.f32 %v738_v39, %v2734_v40  ;;  %v897_v13 = vmul.f32 %v2734_v40, %v2734_v40  ;;  %v2741_v20 = vpop.f32.mrb[35].mxu0  ;;  %v2743_v62 = vpop.f32.mrb[35].mxu1 }
 0x139   :  { %5022 = vst [vmem:[#allocation37_spill] sm:$0xff] %v2741_v20  ;;  %v1075_v8 = vadd.f32 %v1074_v11, %v896_v36  ;;  %v808_v27 = vadd.f32 %v807_v43, %v2741_v20  ;;  %v898_v61 = vmul.f32 %v2741_v20, %v2741_v20 }
 0x13a   :  { %v1007_v45 = vadd.f32 %v1006_v28, %v897_v13 }
 0x13b   :  { %v1076_v41 = vadd.f32 %v1075_v8, %v898_v61 }
 0x13d   :  { %v2748_v34 = vpop.f32.mrb[36].mxu0  ;;  %v2750_v17 = vpop.f32.mrb[36].mxu1 }
 0x13e   :  { %5023 = vst [vmem:[#allocation38_spill] sm:$0xff] %v2748_v34  ;;  %v740_v39 = vadd.f32 %v739_v48, %v2748_v34  ;;  %v899_v47 = vmul.f32 %v2748_v34, %v2748_v34  ;;  %v2755_v40 = vpop.f32.mrb[37].mxu0  ;;  %v2757_v29 = vpop.f32.mrb[37].mxu1 }
 0x13f   :  { %5024 = vst [vmem:[#allocation39_spill] sm:$0xff] %v2755_v40  ;;  %5025 = vst [vmem:[#allocation40_spill] sm:$0xff] %v2757_v29  ;;  %v809_v11 = vadd.f32 %v808_v27, %v2755_v40  ;;  %v900_v43 = vmul.f32 %v2755_v40, %v2755_v40  ;;  %v2762_v36 = vpop.f32.mrb[38].mxu0  ;;  %v2764_v61 = vpop.f32.mrb[38].mxu1 }
 0x140   :  { %5026 = vst [vmem:[#allocation41_spill] sm:$0xff] %v2762_v36  ;;  %5027 = vst [vmem:[#allocation42_spill] sm:$0xff] %v2764_v61  ;;  %v1008_v8 = vadd.f32 %v1007_v45, %v899_v47  ;;  %v741_v28 = vadd.f32 %v740_v39, %v2762_v36  ;;  %v901_v48 = vmul.f32 %v2762_v36, %v2762_v36  ;;  %v2769_v13 = vpop.f32.mrb[39].mxu0  ;;  %v2771_v34 = vpop.f32.mrb[39].mxu1 }
 0x141   :  { %5028 = vst [vmem:[#allocation43_spill] sm:$0xff] %v2769_v13  ;;  %5029 = vst [vmem:[#allocation44_spill] sm:$0xff] %v2771_v34  ;;  %v1077_v20 = vadd.f32 %v1076_v41, %v900_v43  ;;  %v810_v27 = vadd.f32 %v809_v11, %v2769_v13  ;;  %v902_v40 = vmul.f32 %v2769_v13, %v2769_v13 }
 0x142   :  { %v1009_v25 = vadd.f32 %v1008_v8, %v901_v48 }
 0x143   :  { %v1078_v21 = vadd.f32 %v1077_v20, %v902_v40 }
 0x145   :  { %v2776_v14 = vpop.f32.mrb[40].mxu0  ;;  %v2778_v45 = vpop.f32.mrb[40].mxu1 }
 0x146   :  { %5030 = vst [vmem:[#allocation45_spill] sm:$0xff] %v2776_v14  ;;  %5031 = vst [vmem:[#allocation46_spill] sm:$0xff] %v2778_v45  ;;  %v742_v39 = vadd.f32 %v741_v28, %v2776_v14  ;;  %v903_v47 = vmul.f32 %v2776_v14, %v2776_v14  ;;  %v2783_v36 = vpop.f32.mrb[41].mxu0  ;;  %v2785_v9 = vpop.f32.mrb[41].mxu1 }
 0x147   :  { %5032 = vst [vmem:[#allocation47_spill] sm:$0xff] %v2783_v36  ;;  %5033 = vst [vmem:[#allocation48_spill] sm:$0xff] %v2785_v9  ;;  %v811_v41 = vadd.f32 %v810_v27, %v2783_v36  ;;  %v904_v11 = vmul.f32 %v2783_v36, %v2783_v36  ;;  %v2790_v43 = vpop.f32.mrb[42].mxu0  ;;  %v2792_v40 = vpop.f32.mrb[42].mxu1 }
 0x148   :  { %5034 = vst [vmem:[#allocation49_spill] sm:$0xff] %v2790_v43  ;;  %5035 = vst [vmem:[#allocation50_spill] sm:$0xff] %v2792_v40  ;;  %v1010_v20 = vadd.f32 %v1009_v25, %v903_v47  ;;  %v743_v8 = vadd.f32 %v742_v39, %v2790_v43  ;;  %v905_v28 = vmul.f32 %v2790_v43, %v2790_v43  ;;  %v2797_v48 = vpop.f32.mrb[43].mxu0  ;;  %v2799_v14 = vpop.f32.mrb[43].mxu1 }
 0x149   :  { %5036 = vst [vmem:[#allocation51_spill] sm:$0xff] %v2797_v48  ;;  %5037 = vst [vmem:[#allocation52_spill] sm:$0xff] %v2799_v14  ;;  %v1079_v13 = vadd.f32 %v1078_v21, %v904_v11  ;;  %v812_v27 = vadd.f32 %v811_v41, %v2797_v48  ;;  %v906_v36 = vmul.f32 %v2797_v48, %v2797_v48 }
 0x14a   :  { %v1011_v5 = vadd.f32 %v1010_v20, %v905_v28 }
 0x14b   :  { %v1080_v1 = vadd.f32 %v1079_v13, %v906_v36 }
 0x14d   :  { %v2804_v58 = vpop.f32.mrb[44].mxu0  ;;  %v2806_v25 = vpop.f32.mrb[44].mxu1 }
 0x14e   :  { %5038 = vst [vmem:[#allocation53_spill] sm:$0xff] %v2804_v58  ;;  %5039 = vst [vmem:[#allocation54_spill] sm:$0xff] %v2806_v25  ;;  %v744_v39 = vadd.f32 %v743_v8, %v2804_v58  ;;  %v907_v47 = vmul.f32 %v2804_v58, %v2804_v58  ;;  %v2811_v43 = vpop.f32.mrb[45].mxu0  ;;  %v2813_v53 = vpop.f32.mrb[45].mxu1 }
 0x14f   :  { %5040 = vst [vmem:[#allocation55_spill] sm:$0xff] %v2811_v43  ;;  %5041 = vst [vmem:[#allocation56_spill] sm:$0xff] %v2813_v53  ;;  %v813_v21 = vadd.f32 %v812_v27, %v2811_v43  ;;  %v908_v41 = vmul.f32 %v2811_v43, %v2811_v43  ;;  %v2818_v11 = vpop.f32.mrb[46].mxu0  ;;  %v2820_v36 = vpop.f32.mrb[46].mxu1 }
 0x150   :  { %5042 = vst [vmem:[#allocation57_spill] sm:$0xff] %v2818_v11  ;;  %5043 = vst [vmem:[#allocation58_spill] sm:$0xff] %v2820_v36  ;;  %v1012_v13 = vadd.f32 %v1011_v5, %v907_v47  ;;  %v745_v20 = vadd.f32 %v744_v39, %v2818_v11  ;;  %v909_v8 = vmul.f32 %v2818_v11, %v2818_v11  ;;  %v2825_v28 = vpop.f32.mrb[47].mxu0  ;;  %v2827_v58 = vpop.f32.mrb[47].mxu1 }
 0x151   :  { %5044 = vst [vmem:[#allocation59_spill] sm:$0xff] %v2825_v28  ;;  %5045 = vst [vmem:[#allocation60_spill] sm:$0xff] %v2827_v58  ;;  %v1081_v48 = vadd.f32 %v1080_v1, %v908_v41  ;;  %v814_v27 = vadd.f32 %v813_v21, %v2825_v28  ;;  %v910_v43 = vmul.f32 %v2825_v28, %v2825_v28 }
 0x152   :  { %v1013_v51 = vadd.f32 %v1012_v13, %v909_v8 }
 0x153   :  { %v1082_v49 = vadd.f32 %v1081_v48, %v910_v43 }
 0x155   :  { %v2832_v53 = vpop.f32.mrb[48].mxu0  ;;  %v2834_v5 = vpop.f32.mrb[48].mxu1 }
 0x156   :  { %5046 = vst [vmem:[#allocation61_spill] sm:$0xff] %v2832_v53  ;;  %5047 = vst [vmem:[#allocation62_spill] sm:$0xff] %v2834_v5  ;;  %v746_v39 = vadd.f32 %v745_v20, %v2832_v53  ;;  %v911_v47 = vmul.f32 %v2832_v53, %v2832_v53  ;;  %v2839_v11 = vpop.f32.mrb[49].mxu0  ;;  %v2841_v58 = vpop.f32.mrb[49].mxu1 }
 0x157   :  { %5048 = vst [vmem:[#allocation63_spill] sm:$0xff] %v2839_v11  ;;  %5049 = vst [vmem:[#allocation64_spill] sm:$0xff] %v2841_v58  ;;  %v815_v1 = vadd.f32 %v814_v27, %v2839_v11  ;;  %v912_v21 = vmul.f32 %v2839_v11, %v2839_v11  ;;  %v2846_v41 = vpop.f32.mrb[50].mxu0  ;;  %v2848_v43 = vpop.f32.mrb[50].mxu1 }
 0x158   :  { %5050 = vst [vmem:[#allocation65_spill] sm:$0xff] %v2846_v41  ;;  %5051 = vst [vmem:[#allocation66_spill] sm:$0xff] %v2848_v43  ;;  %v1014_v48 = vadd.f32 %v1013_v51, %v911_v47  ;;  %v747_v13 = vadd.f32 %v746_v39, %v2846_v41  ;;  %v913_v20 = vmul.f32 %v2846_v41, %v2846_v41  ;;  %v2853_v8 = vpop.f32.mrb[51].mxu0  ;;  %v2855_v53 = vpop.f32.mrb[51].mxu1 }
 0x159   :  { %5052 = vst [vmem:[#allocation67_spill] sm:$0xff] %v2853_v8  ;;  %5053 = vst [vmem:[#allocation68_spill] sm:$0xff] %v2855_v53  ;;  %v1083_v28 = vadd.f32 %v1082_v49, %v912_v21  ;;  %v816_v27 = vadd.f32 %v815_v1, %v2853_v8  ;;  %v914_v11 = vmul.f32 %v2853_v8, %v2853_v8 }
 0x15a   :  { %v1015_v58 = vadd.f32 %v1014_v48, %v913_v20 }
 0x15b   :  { %v1084_v5 = vadd.f32 %v1083_v28, %v914_v11 }
 0x15d   :  { %v2860_v36 = vpop.f32.mrb[52].mxu0  ;;  %v2862_v51 = vpop.f32.mrb[52].mxu1 }
 0x15e   :  { %5054 = vst [vmem:[#allocation69_spill] sm:$0xff] %v2860_v36  ;;  %5055 = vst [vmem:[#allocation70_spill] sm:$0xff] %v2862_v51  ;;  %v748_v39 = vadd.f32 %v747_v13, %v2860_v36  ;;  %v915_v47 = vmul.f32 %v2860_v36, %v2860_v36  ;;  %v2867_v41 = vpop.f32.mrb[53].mxu0  ;;  %v2869_v53 = vpop.f32.mrb[53].mxu1 }
 0x15f   :  { %5056 = vst [vmem:[#allocation71_spill] sm:$0xff] %v2867_v41  ;;  %5057 = vst [vmem:[#allocation72_spill] sm:$0xff] %v2869_v53  ;;  %v817_v49 = vadd.f32 %v816_v27, %v2867_v41  ;;  %v916_v1 = vmul.f32 %v2867_v41, %v2867_v41  ;;  %v2874_v21 = vpop.f32.mrb[54].mxu0  ;;  %v2876_v11 = vpop.f32.mrb[54].mxu1 }
 0x160   :  { %5058 = vst [vmem:[#allocation73_spill] sm:$0xff] %v2874_v21  ;;  %5059 = vst [vmem:[#allocation74_spill] sm:$0xff] %v2876_v11  ;;  %v1016_v28 = vadd.f32 %v1015_v58, %v915_v47  ;;  %v749_v48 = vadd.f32 %v748_v39, %v2874_v21  ;;  %v917_v13 = vmul.f32 %v2874_v21, %v2874_v21  ;;  %v2881_v20 = vpop.f32.mrb[55].mxu0  ;;  %v2883_v36 = vpop.f32.mrb[55].mxu1 }
 0x161   :  { %5060 = vst [vmem:[#allocation75_spill] sm:$0xff] %v2881_v20  ;;  %5061 = vst [vmem:[#allocation76_spill] sm:$0xff] %v2883_v36  ;;  %v1085_v8 = vadd.f32 %v1084_v5, %v916_v1  ;;  %v818_v27 = vadd.f32 %v817_v49, %v2881_v20  ;;  %v918_v41 = vmul.f32 %v2881_v20, %v2881_v20 }
 0x162   :  { %v1017_v53 = vadd.f32 %v1016_v28, %v917_v13 }
 0x163   :  { %v1086_v51 = vadd.f32 %v1085_v8, %v918_v41 }
 0x165   :  { %v2888_v43 = vpop.f32.mrb[56].mxu0  ;;  %v2890_v58 = vpop.f32.mrb[56].mxu1 }
 0x166   :  { %5062 = vst [vmem:[#allocation77_spill] sm:$0xff] %v2888_v43  ;;  %5063 = vst [vmem:[#allocation78_spill] sm:$0xff] %v2890_v58  ;;  %v750_v39 = vadd.f32 %v749_v48, %v2888_v43  ;;  %v919_v47 = vmul.f32 %v2888_v43, %v2888_v43  ;;  %v2895_v21 = vpop.f32.mrb[57].mxu0  ;;  %v2897_v36 = vpop.f32.mrb[57].mxu1 }
 0x167   :  { %5064 = vst [vmem:[#allocation79_spill] sm:$0xff] %v2895_v21  ;;  %5065 = vst [vmem:[#allocation80_spill] sm:$0xff] %v2897_v36  ;;  %v819_v5 = vadd.f32 %v818_v27, %v2895_v21  ;;  %v920_v49 = vmul.f32 %v2895_v21, %v2895_v21  ;;  %v2902_v1 = vpop.f32.mrb[58].mxu0  ;;  %v2904_v41 = vpop.f32.mrb[58].mxu1 }
 0x168   :  { %5066 = vst [vmem:[#allocation81_spill] sm:$0xff] %v2902_v1  ;;  %5067 = vst [vmem:[#allocation82_spill] sm:$0xff] %v2904_v41  ;;  %v1018_v8 = vadd.f32 %v1017_v53, %v919_v47  ;;  %v751_v28 = vadd.f32 %v750_v39, %v2902_v1  ;;  %v921_v48 = vmul.f32 %v2902_v1, %v2902_v1  ;;  %v2909_v13 = vpop.f32.mrb[59].mxu0  ;;  %v2911_v43 = vpop.f32.mrb[59].mxu1 }
 0x169   :  { %5068 = vst [vmem:[#allocation83_spill] sm:$0xff] %v2909_v13  ;;  %5069 = vst [vmem:[#allocation84_spill] sm:$0xff] %v2911_v43  ;;  %v1087_v20 = vadd.f32 %v1086_v51, %v920_v49  ;;  %v820_v27 = vadd.f32 %v819_v5, %v2909_v13  ;;  %v922_v21 = vmul.f32 %v2909_v13, %v2909_v13 }
 0x16a   :  { %v1019_v36 = vadd.f32 %v1018_v8, %v921_v48 }
 0x16b   :  { %v1088_v58 = vadd.f32 %v1087_v20, %v922_v21 }
 0x16d   :  { %v2916_v11 = vpop.f32.mrb[60].mxu0  ;;  %v2918_v53 = vpop.f32.mrb[60].mxu1 }
 0x16e   :  { %5070 = vst [vmem:[#allocation85_spill] sm:$0xff] %v2916_v11  ;;  %5071 = vst [vmem:[#allocation86_spill] sm:$0xff] %v2918_v53  ;;  %v752_v39 = vadd.f32 %v751_v28, %v2916_v11  ;;  %v923_v47 = vmul.f32 %v2916_v11, %v2916_v11  ;;  %v2923_v1 = vpop.f32.mrb[61].mxu0  ;;  %v2925_v43 = vpop.f32.mrb[61].mxu1 }
 0x16f   :  { %5072 = vst [vmem:[#allocation87_spill] sm:$0xff] %v2923_v1  ;;  %5073 = vst [vmem:[#allocation88_spill] sm:$0xff] %v2925_v43  ;;  %v821_v51 = vadd.f32 %v820_v27, %v2923_v1  ;;  %v924_v5 = vmul.f32 %v2923_v1, %v2923_v1  ;;  %v2930_v49 = vpop.f32.mrb[62].mxu0  ;;  %v2932_v21 = vpop.f32.mrb[62].mxu1  ;;  %v927_v43 = vmul.f32 %v2498_v50, %v2498_v50 }
 0x170   :  { %5074 = vst [vmem:[#allocation89_spill] sm:$0xff] %v2930_v49  ;;  %5075 = vst [vmem:[#allocation90_spill] sm:$0xff] %v2932_v21  ;;  %v1020_v20 = vadd.f32 %v1019_v36, %v923_v47  ;;  %v753_v8 = vadd.f32 %v752_v39, %v2930_v49  ;;  %v925_v28 = vmul.f32 %v2930_v49, %v2930_v49  ;;  %v2937_v48 = vpop.f32.mrb[63].mxu0  ;;  %v2939_v11 = vpop.f32.mrb[63].mxu1 }
 0x171   :  { %5076 = vst [vmem:[#allocation91_spill] sm:$0xff] %v2937_v48  ;;  %5077 = vst [vmem:[#allocation92_spill] sm:$0xff] %v2939_v11  ;;  %v1089_v13 = vadd.f32 %v1088_v58, %v924_v5  ;;  %v822_v27 = vadd.f32 %v821_v51, %v2937_v48  ;;  %v926_v1 = vmul.f32 %v2937_v48, %v2937_v48 }
 0x172   :  { %v754_v36 = vadd.f32 %v753_v8, %v2498_v50  ;;  %v1021_v47 = vadd.f32 %v1020_v20, %v925_v28  ;;  %v928_v39 = vmul.f32 %v2502_v52, %v2502_v52  ;;  %v929_v58 = vmul.f32 %v2506_v54, %v2506_v54 }
 0x173   :  { %v823_v49 = vadd.f32 %v822_v27, %v2502_v52  ;;  %v1090_v21 = vadd.f32 %v1089_v13, %v926_v1  ;;  %v930_v48 = vmul.f32 %v2516_v59, %v2516_v59  ;;  %v931_v20 = vmul.f32 %v2526_v2, %v2526_v2 }
 0x174   :  { %v755_v51 = vadd.f32 %v754_v36, %v2506_v54  ;;  %v1022_v5 = vadd.f32 %v1021_v47, %v927_v43  ;;  %v932_v1 = vmul.f32 %v2533_v6, %v2533_v6  ;;  %v933_v43 = vmul.f32 %v2540_v10, %v2540_v10 }
 0x175   :  { %v824_v11 = vadd.f32 %v823_v49, %v2516_v59  ;;  %v1091_v53 = vadd.f32 %v1090_v21, %v928_v39  ;;  %v934_v49 = vmul.f32 %v2547_v15, %v2547_v15 }
 0x176   :  { %v756_v8 = vadd.f32 %v755_v51, %v2526_v2  ;;  %v1023_v28 = vadd.f32 %v1022_v5, %v929_v58  ;;  %v935_v58 = vmul.f32 %v2554_v22, %v2554_v22 }
 0x177   :  { %v825_v13 = vadd.f32 %v824_v11, %v2533_v6  ;;  %v1092_v27 = vadd.f32 %v1091_v53, %v930_v48  ;;  %v936_v11 = vmul.f32 %v2561_v26, %v2561_v26 }
 0x178   :  { %v757_v36 = vadd.f32 %v756_v8, %v2540_v10  ;;  %v1024_v47 = vadd.f32 %v1023_v28, %v931_v20  ;;  %v937_v20 = vmul.f32 %v2568_v30, %v2568_v30 }
 0x179   :  { %v826_v21 = vadd.f32 %v825_v13, %v2547_v15  ;;  %v1093_v39 = vadd.f32 %v1092_v27, %v932_v1  ;;  %v938_v1 = vmul.f32 %v2575_v35, %v2575_v35 }
 0x17a   :  { %v758_v51 = vadd.f32 %v757_v36, %v2554_v22  ;;  %v1025_v5 = vadd.f32 %v1024_v47, %v933_v43  ;;  %v939_v43 = vmul.f32 %v2582_v42, %v2582_v42 }
 0x17b   :  { %v827_v53 = vadd.f32 %v826_v21, %v2561_v26  ;;  %v1094_v48 = vadd.f32 %v1093_v39, %v934_v49  ;;  %v940_v49 = vmul.f32 %v2589_v46, %v2589_v46 }
 0x17c   :  { %v759_v8 = vadd.f32 %v758_v51, %v2568_v30  ;;  %v1026_v28 = vadd.f32 %v1025_v5, %v935_v58  ;;  %v941_v58 = vmul.f32 %v2596_v56, %v2596_v56 }
 0x17d   :  { %v828_v13 = vadd.f32 %v827_v53, %v2575_v35  ;;  %v1095_v27 = vadd.f32 %v1094_v48, %v936_v11  ;;  %v942_v11 = vmul.f32 %v2603_v63, %v2603_v63 }
 0x17e   :  { %v760_v36 = vadd.f32 %v759_v8, %v2582_v42  ;;  %v1027_v47 = vadd.f32 %v1026_v28, %v937_v20  ;;  %v943_v20 = vmul.f32 %v2610_v12, %v2610_v12 }
 0x17f   :  { %v829_v21 = vadd.f32 %v828_v13, %v2589_v46  ;;  %v1096_v39 = vadd.f32 %v1095_v27, %v938_v1  ;;  %v944_v1 = vmul.f32 %v2617_v18, %v2617_v18 }
 0x180   :  { %v761_v51 = vadd.f32 %v760_v36, %v2596_v56  ;;  %v1028_v5 = vadd.f32 %v1027_v47, %v939_v43  ;;  %v945_v43 = vmul.f32 %v2624_v24, %v2624_v24 }
 0x181   :  { %v830_v53 = vadd.f32 %v829_v21, %v2603_v63  ;;  %v1097_v48 = vadd.f32 %v1096_v39, %v940_v49  ;;  %v946_v49 = vmul.f32 %v2631_v33, %v2631_v33 }
 0x182   :  { %v1029_v8 = vadd.f32 %v1028_v5, %v941_v58  ;;  %v762_v28 = vadd.f32 %v761_v51, %v2610_v12  ;;  %v947_v58 = vmul.f32 %v2638_v44, %v2638_v44 }
 0x183   :  { %v1098_v13 = vadd.f32 %v1097_v48, %v942_v11  ;;  %v831_v27 = vadd.f32 %v830_v53, %v2617_v18  ;;  %v948_v11 = vmul.f32 %v2645_v60, %v2645_v60 }
 0x184   :  { %v763_v36 = vadd.f32 %v762_v28, %v2624_v24  ;;  %v1030_v47 = vadd.f32 %v1029_v8, %v943_v20  ;;  %v949_v20 = vmul.f32 %v2652_v4, %v2652_v4 }
 0x185   :  { %v832_v21 = vadd.f32 %v831_v27, %v2631_v33  ;;  %v1099_v39 = vadd.f32 %v1098_v13, %v944_v1  ;;  %v950_v1 = vmul.f32 %v2659_v19, %v2659_v19 }
 0x186   :  { %v764_v51 = vadd.f32 %v763_v36, %v2638_v44  ;;  %v1031_v5 = vadd.f32 %v1030_v47, %v945_v43  ;;  %v951_v43 = vmul.f32 %v2666_v38, %v2666_v38 }
 0x187   :  { %v833_v53 = vadd.f32 %v832_v21, %v2645_v60  ;;  %v1100_v48 = vadd.f32 %v1099_v39, %v946_v49  ;;  %v952_v49 = vmul.f32 %v2673_v3, %v2673_v3 }
 0x188   :  { %v765_v8 = vadd.f32 %v764_v51, %v2652_v4  ;;  %v1032_v28 = vadd.f32 %v1031_v5, %v947_v58  ;;  %v953_v58 = vmul.f32 %v2680_v7, %v2680_v7 }
 0x189   :  { %v834_v13 = vadd.f32 %v833_v53, %v2659_v19  ;;  %v1101_v27 = vadd.f32 %v1100_v48, %v948_v11  ;;  %v954_v11 = vmul.f32 %v2687_v37, %v2687_v37 }
 0x18a   :  { %v766_v36 = vadd.f32 %v765_v8, %v2666_v38  ;;  %v1033_v47 = vadd.f32 %v1032_v28, %v949_v20  ;;  %v955_v20 = vmul.f32 %v2694_v31, %v2694_v31 }
 0x18b   :  { %v835_v21 = vadd.f32 %v834_v13, %v2673_v3  ;;  %v1102_v39 = vadd.f32 %v1101_v27, %v950_v1  ;;  %v956_v1 = vmul.f32 %v2701_v23, %v2701_v23 }
 0x18c   :  { %v767_v51 = vadd.f32 %v766_v36, %v2680_v7  ;;  %v1034_v5 = vadd.f32 %v1033_v47, %v951_v43  ;;  %v957_v43 = vmul.f32 %v2708_v16, %v2708_v16 }
 0x18d   :  { %v836_v53 = vadd.f32 %v835_v21, %v2687_v37  ;;  %v1103_v48 = vadd.f32 %v1102_v39, %v952_v49  ;;  %v958_v49 = vmul.f32 %v2715_v32, %v2715_v32 }
 0x18e   :  { %v768_v8 = vadd.f32 %v767_v51, %v2694_v31  ;;  %v1035_v28 = vadd.f32 %v1034_v5, %v953_v58  ;;  %v959_v51 = vmul.f32 %v2722_v57, %v2722_v57 }
 0x18f   :  { %v837_v13 = vadd.f32 %v836_v53, %v2701_v23  ;;  %v1104_v27 = vadd.f32 %v1103_v48, %v954_v11  ;;  %v960_v53 = vmul.f32 %v2729_v55, %v2729_v55 }
 0x190   :  { %v769_v36 = vadd.f32 %v768_v8, %v2708_v16  ;;  %v1036_v47 = vadd.f32 %v1035_v28, %v955_v20  ;;  %v961_v28 = vmul.f32 %v2736_v0, %v2736_v0 }
 0x191   :  { %v838_v21 = vadd.f32 %v837_v13, %v2715_v32  ;;  %v1105_v39 = vadd.f32 %v1104_v27, %v956_v1  ;;  %v962_v27 = vmul.f32 %v2743_v62, %v2743_v62 }
 0x192   :  { %v770_v58 = vadd.f32 %v769_v36, %v2722_v57  ;;  %v1037_v5 = vadd.f32 %v1036_v47, %v957_v43  ;;  %v963_v47 = vmul.f32 %v2750_v17, %v2750_v17 }
 0x193   :  { %v839_v11 = vadd.f32 %v838_v21, %v2729_v55  ;;  %v1106_v48 = vadd.f32 %v1105_v39, %v958_v49  ;;  %v964_v39 = vmul.f32 %v2757_v29, %v2757_v29 }
 0x194   :  { %v1038_v8 = vadd.f32 %v1037_v5, %v959_v51  ;;  %v771_v20 = vadd.f32 %v770_v58, %v2736_v0  ;;  %v965_v5 = vmul.f32 %v2764_v61, %v2764_v61 }
 0x195   :  { %v1107_v13 = vadd.f32 %v1106_v48, %v960_v53  ;;  %v840_v1 = vadd.f32 %v839_v11, %v2743_v62  ;;  %v966_v48 = vmul.f32 %v2771_v34, %v2771_v34 }
 0x196   :  { %v1039_v36 = vadd.f32 %v1038_v8, %v961_v28  ;;  %v772_v43 = vadd.f32 %v771_v20, %v2750_v17  ;;  %v967_v28 = vmul.f32 %v2778_v45, %v2778_v45 }
 0x197   :  { %v1108_v21 = vadd.f32 %v1107_v13, %v962_v27  ;;  %v841_v49 = vadd.f32 %v840_v1, %v2757_v29  ;;  %v968_v27 = vmul.f32 %v2785_v9, %v2785_v9 }
 0x198   :  { %v1040_v58 = vadd.f32 %v1039_v36, %v963_v47  ;;  %v773_v51 = vadd.f32 %v772_v43, %v2764_v61  ;;  %v969_v47 = vmul.f32 %v2792_v40, %v2792_v40 }
 0x199   :  { %v1109_v11 = vadd.f32 %v1108_v21, %v964_v39  ;;  %v842_v53 = vadd.f32 %v841_v49, %v2771_v34  ;;  %v970_v39 = vmul.f32 %v2799_v14, %v2799_v14 }
 0x19a   :  { %v1041_v8 = vadd.f32 %v1040_v58, %v965_v5  ;;  %v774_v20 = vadd.f32 %v773_v51, %v2778_v45  ;;  %v971_v5 = vmul.f32 %v2806_v25, %v2806_v25 }
 0x19b   :  { %v1110_v13 = vadd.f32 %v1109_v11, %v966_v48  ;;  %v843_v1 = vadd.f32 %v842_v53, %v2785_v9  ;;  %v5078_v53 = vld [vmem:[#allocation56_spill] sm:$0xff] }
 0x19c   :  { %v1042_v36 = vadd.f32 %v1041_v8, %v967_v28  ;;  %v775_v43 = vadd.f32 %v774_v20, %v2792_v40  ;;  %v972_v8 = vmul.f32 %v5078_v53, %v5078_v53  ;;  %v5079_v28 = vld [vmem:[#allocation58_spill] sm:$0xff] }
 0x19d   :  { %v1111_v21 = vadd.f32 %v1110_v13, %v968_v27  ;;  %v844_v49 = vadd.f32 %v843_v1, %v2799_v14  ;;  %v973_v1 = vmul.f32 %v5079_v28, %v5079_v28  ;;  %v5080_v14 = vld [vmem:[#allocation60_spill] sm:$0xff] }
 0x19e   :  { %v1043_v58 = vadd.f32 %v1042_v36, %v969_v47  ;;  %v776_v51 = vadd.f32 %v775_v43, %v2806_v25  ;;  %v974_v43 = vmul.f32 %v5080_v14, %v5080_v14  ;;  %v5081_v25 = vld [vmem:[#allocation62_spill] sm:$0xff] }
 0x19f   :  { %v1112_v11 = vadd.f32 %v1111_v21, %v970_v39  ;;  %v845_v48 = vadd.f32 %v844_v49, %v5078_v53  ;;  %v975_v49 = vmul.f32 %v5081_v25, %v5081_v25  ;;  %v5082_v53 = vld [vmem:[#allocation64_spill] sm:$0xff] }
 0x1a0   :  { %v1044_v20 = vadd.f32 %v1043_v58, %v971_v5  ;;  %v777_v13 = vadd.f32 %v776_v51, %v5079_v28  ;;  %v976_v51 = vmul.f32 %v5082_v53, %v5082_v53  ;;  %v5083_v28 = vld [vmem:[#allocation66_spill] sm:$0xff] }
 0x1a1   :  { %v1113_v27 = vadd.f32 %v1112_v11, %v972_v8  ;;  %v846_v36 = vadd.f32 %v845_v48, %v5080_v14  ;;  %v977_v48 = vmul.f32 %v5083_v28, %v5083_v28  ;;  %v5084_v14 = vld [vmem:[#allocation68_spill] sm:$0xff] }
 0x1a2   :  { %v1045_v47 = vadd.f32 %v1044_v20, %v973_v1  ;;  %v778_v21 = vadd.f32 %v777_v13, %v5081_v25  ;;  %v978_v13 = vmul.f32 %v5084_v14, %v5084_v14  ;;  %v5085_v25 = vld [vmem:[#allocation70_spill] sm:$0xff] }
 0x1a3   :  { %v1114_v39 = vadd.f32 %v1113_v27, %v974_v43  ;;  %v847_v58 = vadd.f32 %v846_v36, %v5082_v53  ;;  %v979_v36 = vmul.f32 %v5085_v25, %v5085_v25  ;;  %v5086_v53 = vld [vmem:[#allocation72_spill] sm:$0xff] }
 0x1a4   :  { %v1046_v5 = vadd.f32 %v1045_v47, %v975_v49  ;;  %v779_v11 = vadd.f32 %v778_v21, %v5083_v28  ;;  %v980_v21 = vmul.f32 %v5086_v53, %v5086_v53  ;;  %v5087_v28 = vld [vmem:[#allocation74_spill] sm:$0xff] }
 0x1a5   :  { %v1115_v8 = vadd.f32 %v1114_v39, %v976_v51  ;;  %v848_v20 = vadd.f32 %v847_v58, %v5084_v14  ;;  %v981_v58 = vmul.f32 %v5087_v28, %v5087_v28  ;;  %v5088_v14 = vld [vmem:[#allocation76_spill] sm:$0xff] }
 0x1a6   :  { %v1047_v1 = vadd.f32 %v1046_v5, %v977_v48  ;;  %v780_v27 = vadd.f32 %v779_v11, %v5085_v25  ;;  %v982_v11 = vmul.f32 %v5088_v14, %v5088_v14  ;;  %v5089_v25 = vld [vmem:[#allocation78_spill] sm:$0xff] }
 0x1a7   :  { %v1116_v43 = vadd.f32 %v1115_v8, %v978_v13  ;;  %v849_v47 = vadd.f32 %v848_v20, %v5086_v53  ;;  %v983_v20 = vmul.f32 %v5089_v25, %v5089_v25  ;;  %v5090_v53 = vld [vmem:[#allocation80_spill] sm:$0xff] }
 0x1a8   :  { %v1048_v49 = vadd.f32 %v1047_v1, %v979_v36  ;;  %v781_v39 = vadd.f32 %v780_v27, %v5087_v28  ;;  %v984_v27 = vmul.f32 %v5090_v53, %v5090_v53 }
 0x1a9   :  { %v1117_v51 = vadd.f32 %v1116_v43, %v980_v21  ;;  %v850_v5 = vadd.f32 %v849_v47, %v5088_v14  ;;  %v985_v47 = vmul.f32 %v2904_v41, %v2904_v41  ;;  %v5091_v21 = vld [vmem:[#allocation86_spill] sm:$0xff] }
 0x1aa   :  { %v1049_v48 = vadd.f32 %v1048_v49, %v981_v58  ;;  %v782_v8 = vadd.f32 %v781_v39, %v5089_v25  ;;  %v987_v49 = vmul.f32 %v5091_v21, %v5091_v21  ;;  %v5092_v39 = vld [vmem:[#allocation84_spill] sm:$0xff] }
 0x1ab   :  { %v1118_v13 = vadd.f32 %v1117_v51, %v982_v11  ;;  %v851_v1 = vadd.f32 %v850_v5, %v5090_v53  ;;  %v986_v51 = vmul.f32 %v5092_v39, %v5092_v39  ;;  %v5093_v11 = vld [vmem:[#allocation88_spill] sm:$0xff] }
 0x1ac   :  { %v1050_v36 = vadd.f32 %v1049_v48, %v983_v20  ;;  %v783_v43 = vadd.f32 %v782_v8, %v2904_v41  ;;  %v988_v5 = vmul.f32 %v5093_v11, %v5093_v11  ;;  %v5094_v41 = vld [vmem:[#allocation90_spill] sm:$0xff] }
 0x1ad   :  { %v1119_v58 = vadd.f32 %v1118_v13, %v984_v27  ;;  %v852_v14 = vadd.f32 %v851_v1, %v5092_v39  ;;  %v989_v13 = vmul.f32 %v5094_v41, %v5094_v41  ;;  %v5095_v1 = vld [vmem:[#allocation92_spill] sm:$0xff] }
 0x1ae   :  { %v1051_v25 = vadd.f32 %v1050_v36, %v985_v47  ;;  %v784_v48 = vadd.f32 %v783_v43, %v5091_v21  ;;  %v990_v39 = vmul.f32 %v5095_v1, %v5095_v1 }
 0x1af   :  { %v1120_v20 = vadd.f32 %v1119_v58, %v986_v51  ;;  %v853_v8 = vadd.f32 %v852_v14, %v5093_v11 }
 0x1b0   :  { %v1052_v53 = vadd.f32 %v1051_v25, %v987_v49  ;;  %v785_v28 = vadd.f32 %v784_v48, %v5094_v41 }
 0x1b1   :  { %v1121_v27 = vadd.f32 %v1120_v20, %v988_v5  ;;  %v854_v40 = vadd.f32 %v853_v8, %v5095_v1 }
 0x1b2   :  { %v786_v9 = vrot.slane %v785_v28, 4  ;;  %v1053_v45 = vadd.f32 %v1052_v53, %v989_v13 }
 0x1b3   :  { %v855_v36 = vrot.slane %v854_v40, 4  ;;  %v1122_v47 = vadd.f32 %v1121_v27, %v990_v39 }
 0x1b4   :  { %v787_v43 = vadd.f32 %v786_v9, %v785_v28  ;;  %v1054_v58 = vrot.slane %v1053_v45, 4 }
 0x1b5   :  { %v856_v51 = vadd.f32 %v855_v36, %v854_v40  ;;  %v1123_v14 = vrot.slane %v1122_v47, 4 }
 0x1b6   :  { %v788_v25 = vrot.slane %v787_v43, 2  ;;  %v1055_v49 = vadd.f32 %v1054_v58, %v1053_v45 }
 0x1b7   :  { %v857_v48 = vrot.slane %v856_v51, 2  ;;  %v1124_v11 = vadd.f32 %v1123_v14, %v1122_v47 }
 0x1b8   :  { %v789_v21 = vadd.f32 %v788_v25, %v787_v43  ;;  %v1056_v41 = vrot.slane %v1055_v49, 2 }
 0x1b9   :  { %v858_v5 = vadd.f32 %v857_v48, %v856_v51  ;;  %v1125_v20 = vrot.slane %v1124_v11, 2 }
 0x1ba   :  { %v790_v8 = vrot.slane %v789_v21, 1  ;;  %v1057_v34 = vadd.f32 %v1056_v41, %v1055_v49  ;;  %v2294_v41 = vmov 1966171168  }
 0x1bb   :  { %v859_v61 = vrot.slane %v858_v5, 1  ;;  %v1126_v1 = vadd.f32 %v1125_v20, %v1124_v11  ;;  %v1144_v11 = vunpack.c.l.s4 %v2294_v41  ;;  %v1135_v20 = vld [vmem:[%s4771_s2] sm:$0x3]  ;;  %v5099_v41 = vld [vmem:[#allocation5_spill] sm:$0xff] }
 0x1bc   :  { %v791_v29 = vadd.f32 %v790_v8, %v789_v21  ;;  %v1058_v53 = vrot.slane %v1057_v34, 1  ;;  %v1146_v21 = vlaneseq }
 0x1bd   :  { %v860_v13 = vadd.f32 %v859_v61, %v858_v5  ;;  %v1127_v39 = vrot.slane %v1126_v1, 1  ;;  %v1145_v49 = vunpack.c.0.s8 %v1144_v11 }
 0x1be   :  { %v861_v9 = vmul.f32 0.001953125, %v791_v29  ;;  %v1059_v28 = vadd.f32 %v1058_v53, %v1057_v34  ;;  %v3136_v61 = vshrl.u32 %v1146_v21, 7  ;;  %v5100_v21 = vld [vmem:[#allocation6_spill] sm:$0xff] }
 0x1bf   :  { %v862_v40 = vmul.f32 0.001953125, %v860_v13  ;;  %v1128_v27 = vadd.f32 %v1127_v39, %v1126_v1 }
 0x1c0   :  { %v1129_v36 = vmul.f32 0.001953125, %v1059_v28  ;;  %v1131_v45 = vmul.f32 %v861_v9, %v861_v9  ;;  %v1148_v34 = vsub.s32 %v1145_v49, %v3136_v61  ;;  %v4884_v53 = vsub.s32 0, %v3136_v61 }
 0x1c1   :  { %v1130_v58 = vmul.f32 0.001953125, %v1128_v27  ;;  %v1132_v47 = vmul.f32 %v862_v40, %v862_v40  ;;  %v4883_v13 = vsub.s32 1, %v3136_v61 }
 0x1c2   :  { %v1133_v43 = vsub.f32 %v1129_v36, %v1131_v45 }
 0x1c3   :  { %v1134_v14 = vsub.f32 %v1130_v58, %v1132_v47  ;;  %v5096_v58 = vld [vmem:[#allocation2_spill] sm:$0xff] }
 0x1c4   :  { %v1136_v51 = vadd.f32 1e-05, %v1133_v43  ;;  %v5097_v43 = vld [vmem:[#allocation3_spill] sm:$0xff] }
 0x1c5   :  { %v1137_v25 = vadd.f32 1e-05, %v1134_v14 }
 0x1c6   :  { %2289 = vrsqrt.f32 %v1136_v51  ;;  %v5098_v51 = vld [vmem:[#allocation4_spill] sm:$0xff] }
 0x1c7   :  { %2291 = vrsqrt.f32 %v1137_v25 }
 0x1d0   :  { %v2290_v29 = vpop.eup %2289 }
 0x1d1   :  { %v2292_v1 = vpop.eup %2291 }
 0x1d2   :  { %v1142_v48 = vcombine.low %v2290_v29, %v2292_v1  ;;  %v5102_v1 = vld [vmem:[#allocation8_spill] sm:$0xff] }
 0x1d4   :  { %v1149_v5 = vrot.slane %v1142_v48, %v1148_v34 }
 0x1d6   :  { %v1156_v8 = vrot.slane %v1149_v5, %v1148_v34  ;;  %v5103_v5 = vld [vmem:[#allocation9_spill] sm:$0xff] }
 0x1d8   :  { %v1158_v39 = vmul.f32 %v1156_v8, %v1135_v20  ;;  %v5104_v8 = vld [vmem:[#allocation10_spill] sm:$0xff] }
 0x1da   :  { %v3146_v28 = vrot.slane %v1158_v39, %v4884_v53  ;;  %v3150_v27 = vrot.slane %v1158_v39, %v4883_v13  ;;  %v5115_v13 = vld [vmem:[#allocation16_spill] sm:$0xff]  ;;  %v5117_v53 = vld [vmem:[#allocation17_spill] sm:$0xff] }
 0x1dc   :  { %v1171_v36 = vmul.f32 %v3146_v28, %v861_v9  ;;  %v1172_v45 = vmul.f32 %v3150_v27, %v862_v40  ;;  %v3156_v47 = vmul.f32 %v3146_v28, %v5096_v58  ;;  %v3160_v14 = vmul.f32 %v3150_v27, %v5097_v43  ;;  %v5101_v40 = vld [vmem:[#allocation7_spill] sm:$0xff] }
 0x1dd   :  { %v3164_v25 = vmul.f32 %v3146_v28, %v5098_v51  ;;  %v3168_v11 = vmul.f32 %v3150_v27, %v5099_v41  ;;  %v3172_v9 = vmul.f32 %v3146_v28, %v5100_v21  ;;  %v3176_v49 = vmul.f32 %v3150_v27, %v5101_v40  ;;  %v5105_v58 = vld [vmem:[#allocation11_spill] sm:$0xff]  ;;  %v5107_v51 = vld [vmem:[#allocation12_spill] sm:$0xff]  ;;  %v5111_v21 = vld [vmem:[#allocation14_spill] sm:$0xff] }
 0x1de   :  { %v1175_v29 = vcombine.low %v1171_v36, %v1172_v45  ;;  %v3180_v48 = vmul.f32 %v3146_v28, %v5102_v1  ;;  %v3184_v20 = vmul.f32 %v3150_v27, %v5103_v5  ;;  %v3188_v39 = vmul.f32 %v3146_v28, %v5104_v8  ;;  %v5109_v36 = vld [vmem:[#allocation13_spill] sm:$0xff]  ;;  %v5113_v5 = vld [vmem:[#allocation15_spill] sm:$0xff] }
 0x1df   :  { %v3192_v43 = vmul.f32 %v3150_v27, %v5105_v58  ;;  %v3196_v41 = vmul.f32 %v3146_v28, %v5107_v51  ;;  %v3200_v45 = vmul.f32 %v3150_v27, %v5109_v36  ;;  %v3204_v40 = vmul.f32 %v3146_v28, %v5111_v21  ;;  %v1159_v36 = vld [vmem:[%s4772_s3] sm:$0x3] }
 0x1e0   :  { %v1182_v1 = vrot.slane %v1175_v29, %v1148_v34  ;;  %v3208_v8 = vmul.f32 %v3150_v27, %v5113_v5  ;;  %v3212_v58 = vmul.f32 %v3146_v28, %v5115_v13  ;;  %v3216_v51 = vmul.f32 %v3150_v27, %v5117_v53  ;;  %v5121_v29 = vld [vmem:[#allocation19_spill] sm:$0xff] }
 0x1e1   :  { %5106 = vst [vmem:[#allocation2_spill] sm:$0xff] %v3192_v43  ;;  %5108 = vst [vmem:[#allocation3_spill] sm:$0xff] %v3196_v41  ;;  %v3227_v5 = vmul.f32 %v3150_v27, %v5121_v29  ;;  %v5127_v43 = vld [vmem:[#allocation23_spill] sm:$0xff] }
 0x1e2   :  { %5110 = vst [vmem:[#allocation4_spill] sm:$0xff] %v3200_v45  ;;  %5112 = vst [vmem:[#allocation5_spill] sm:$0xff] %v3204_v40  ;;  %v5119_v45 = vld [vmem:[#allocation18_spill] sm:$0xff] }
 0x1e3   :  { %5114 = vst [vmem:[#allocation6_spill] sm:$0xff] %v3208_v8  ;;  %5116 = vst [vmem:[#allocation7_spill] sm:$0xff] %v3212_v58  ;;  %v3223_v21 = vmul.f32 %v3146_v28, %v5119_v45  ;;  %v5123_v8 = vld [vmem:[#allocation20_spill] sm:$0xff]  ;;  %v5125_v58 = vld [vmem:[#allocation21_spill] sm:$0xff]  ;;  %v3243_v45 = vmul.f32 %v3150_v27, %v5127_v43 }
 0x1e4   :  { %5118 = vst [vmem:[#allocation8_spill] sm:$0xff] %v3216_v51  ;;  %5122 = vst [vmem:[#allocation10_spill] sm:$0xff] %v3227_v5  ;;  %v3231_v13 = vmul.f32 %v3146_v28, %v5123_v8  ;;  %v3235_v53 = vmul.f32 %v3150_v27, %v5125_v58  ;;  %v1189_v51 = vrot.slane %v1182_v1, %v1148_v34  ;;  %v5126_v40 = vld [vmem:[#allocation22_spill] sm:$0xff]  ;;  %v5131_v5 = vld [vmem:[#allocation25_spill] sm:$0xff] }
 0x1e5   :  { %5120 = vst [vmem:[#allocation9_spill] sm:$0xff] %v3223_v21  ;;  %v3239_v41 = vmul.f32 %v3146_v28, %v5126_v40  ;;  %5128 = vst [vmem:[#allocation12_spill] sm:$0xff] %v3243_v45  ;;  %v5129_v21 = vld [vmem:[#allocation24_spill] sm:$0xff]  ;;  %v3251_v8 = vmul.f32 %v3150_v27, %v5131_v5  ;;  %v5135_v34 = vld [vmem:[#allocation27_spill] sm:$0xff] }
 0x1e6   :  { %5124 = vst [vmem:[#allocation11_spill] sm:$0xff] %v3231_v13  ;;  %v3247_v29 = vmul.f32 %v3146_v28, %v5129_v21  ;;  %v5133_v13 = vld [vmem:[#allocation26_spill] sm:$0xff]  ;;  %v3259_v40 = vmul.f32 %v3150_v27, %v5135_v34  ;;  %v5137_v1 = vld [vmem:[#allocation28_spill] sm:$0xff]  ;;  %v3265_v45 = vsub.f32 %v1159_v36, %v1189_v51  ;;  %v5138_v21 = vld [vmem:[#allocation29_spill] sm:$0xff] }
 0x1e7   :  { %5132 = vst [vmem:[#allocation14_spill] sm:$0xff] %v3251_v8  ;;  %v3255_v58 = vmul.f32 %v3146_v28, %v5133_v13  ;;  %v3263_v43 = vmul.f32 %v3146_v28, %v5137_v1  ;;  %v5140_v5 = vld [vmem:[#allocation30_spill] sm:$0xff]  ;;  %v5142_v13 = vld [vmem:[#allocation31_spill] sm:$0xff]  ;;  %v5144_v34 = vld [vmem:[#allocation32_spill] sm:$0xff] }
 0x1e8   :  { %5130 = vst [vmem:[#allocation13_spill] sm:$0xff] %v3247_v29  ;;  %5136 = vst [vmem:[#allocation16_spill] sm:$0xff] %v3259_v40  ;;  %v3269_v29 = vmul.f32 %v3150_v27, %v5138_v21  ;;  %v3273_v8 = vmul.f32 %v3146_v28, %v5140_v5  ;;  %v3281_v40 = vmul.f32 %v3146_v28, %v5144_v34  ;;  %v5146_v1 = vld [vmem:[#allocation33_spill] sm:$0xff]  ;;  %v5148_v36 = vld [vmem:[#allocation34_spill] sm:$0xff] }
 0x1e9   :  { %5134 = vst [vmem:[#allocation15_spill] sm:$0xff] %v3255_v58  ;;  %v3277_v58 = vmul.f32 %v3150_v27, %v5142_v13  ;;  %v3285_v51 = vmul.f32 %v3150_v27, %v5146_v1  ;;  %v3289_v21 = vmul.f32 %v3146_v28, %v5148_v36 }
 0x1ea   :  { %5139 = vst [vmem:[#allocation17_spill] sm:$0xff] %v3269_v29  ;;  %5141 = vst [vmem:[#allocation18_spill] sm:$0xff] %v3273_v8  ;;  %v5150_v29 = vld [vmem:[#allocation35_spill] sm:$0xff]  ;;  %v5152_v8 = vld [vmem:[#allocation36_spill] sm:$0xff] }
 0x1eb   :  { %5143 = vst [vmem:[#allocation19_spill] sm:$0xff] %v3277_v58  ;;  %5145 = vst [vmem:[#allocation20_spill] sm:$0xff] %v3281_v40  ;;  %v3293_v5 = vmul.f32 %v3150_v27, %v5150_v29  ;;  %v3297_v13 = vmul.f32 %v3146_v28, %v5152_v8  ;;  %v5154_v58 = vld [vmem:[#allocation37_spill] sm:$0xff]  ;;  %v5156_v40 = vld [vmem:[#allocation38_spill] sm:$0xff] }
 0x1ec   :  { %5147 = vst [vmem:[#allocation21_spill] sm:$0xff] %v3285_v51  ;;  %5149 = vst [vmem:[#allocation22_spill] sm:$0xff] %v3289_v21  ;;  %v3301_v34 = vmul.f32 %v3150_v27, %v5154_v58  ;;  %v3305_v1 = vmul.f32 %v3146_v28, %v5156_v40  ;;  %v5158_v51 = vld [vmem:[#allocation39_spill] sm:$0xff]  ;;  %v5160_v21 = vld [vmem:[#allocation41_spill] sm:$0xff] }
 0x1ed   :  { %5151 = vst [vmem:[#allocation23_spill] sm:$0xff] %v3293_v5  ;;  %5153 = vst [vmem:[#allocation24_spill] sm:$0xff] %v3297_v13  ;;  %v3309_v36 = vmul.f32 %v3150_v27, %v5158_v51  ;;  %v3313_v29 = vmul.f32 %v3146_v28, %v5160_v21  ;;  %v5162_v5 = vld [vmem:[#allocation43_spill] sm:$0xff]  ;;  %v5164_v13 = vld [vmem:[#allocation45_spill] sm:$0xff] }
 0x1ee   :  { %5155 = vst [vmem:[#allocation25_spill] sm:$0xff] %v3301_v34  ;;  %5157 = vst [vmem:[#allocation26_spill] sm:$0xff] %v3305_v1  ;;  %v3317_v8 = vmul.f32 %v3150_v27, %v5162_v5  ;;  %v3321_v58 = vmul.f32 %v3146_v28, %v5164_v13  ;;  %v5166_v34 = vld [vmem:[#allocation47_spill] sm:$0xff]  ;;  %v5168_v1 = vld [vmem:[#allocation49_spill] sm:$0xff] }
 0x1ef   :  { %5159 = vst [vmem:[#allocation27_spill] sm:$0xff] %v3309_v36  ;;  %5161 = vst [vmem:[#allocation28_spill] sm:$0xff] %v3313_v29  ;;  %v3325_v40 = vmul.f32 %v3150_v27, %v5166_v34  ;;  %v3329_v51 = vmul.f32 %v3146_v28, %v5168_v1  ;;  %v5170_v36 = vld [vmem:[#allocation51_spill] sm:$0xff]  ;;  %v5172_v29 = vld [vmem:[#allocation53_spill] sm:$0xff] }
 0x1f0   :  { %5163 = vst [vmem:[#allocation29_spill] sm:$0xff] %v3317_v8  ;;  %5165 = vst [vmem:[#allocation30_spill] sm:$0xff] %v3321_v58  ;;  %v3333_v21 = vmul.f32 %v3150_v27, %v5170_v36  ;;  %v3337_v5 = vmul.f32 %v3146_v28, %v5172_v29  ;;  %v5174_v8 = vld [vmem:[#allocation55_spill] sm:$0xff]  ;;  %v5176_v58 = vld [vmem:[#allocation57_spill] sm:$0xff] }
 0x1f1   :  { %5167 = vst [vmem:[#allocation31_spill] sm:$0xff] %v3325_v40  ;;  %5169 = vst [vmem:[#allocation32_spill] sm:$0xff] %v3329_v51  ;;  %v3341_v13 = vmul.f32 %v3150_v27, %v5174_v8  ;;  %v3345_v34 = vmul.f32 %v3146_v28, %v5176_v58  ;;  %v5178_v40 = vld [vmem:[#allocation59_spill] sm:$0xff]  ;;  %v5180_v51 = vld [vmem:[#allocation61_spill] sm:$0xff] }
 0x1f2   :  { %5171 = vst [vmem:[#allocation33_spill] sm:$0xff] %v3333_v21  ;;  %5173 = vst [vmem:[#allocation34_spill] sm:$0xff] %v3337_v5  ;;  %v3349_v1 = vmul.f32 %v3150_v27, %v5178_v40  ;;  %v3353_v36 = vmul.f32 %v3146_v28, %v5180_v51  ;;  %v5182_v21 = vld [vmem:[#allocation63_spill] sm:$0xff]  ;;  %v5184_v5 = vld [vmem:[#allocation65_spill] sm:$0xff] }
 0x1f3   :  { %5175 = vst [vmem:[#allocation35_spill] sm:$0xff] %v3341_v13  ;;  %5177 = vst [vmem:[#allocation36_spill] sm:$0xff] %v3345_v34  ;;  %v3357_v29 = vmul.f32 %v3150_v27, %v5182_v21  ;;  %v3361_v8 = vmul.f32 %v3146_v28, %v5184_v5  ;;  %v5186_v13 = vld [vmem:[#allocation67_spill] sm:$0xff]  ;;  %v5188_v34 = vld [vmem:[#allocation69_spill] sm:$0xff] }
 0x1f4   :  { %5179 = vst [vmem:[#allocation37_spill] sm:$0xff] %v3349_v1  ;;  %5181 = vst [vmem:[#allocation38_spill] sm:$0xff] %v3353_v36  ;;  %v3365_v58 = vmul.f32 %v3150_v27, %v5186_v13  ;;  %v3369_v40 = vmul.f32 %v3146_v28, %v5188_v34  ;;  %v5190_v1 = vld [vmem:[#allocation71_spill] sm:$0xff]  ;;  %v5192_v36 = vld [vmem:[#allocation73_spill] sm:$0xff] }
 0x1f5   :  { %5183 = vst [vmem:[#allocation39_spill] sm:$0xff] %v3357_v29  ;;  %5185 = vst [vmem:[#allocation41_spill] sm:$0xff] %v3361_v8  ;;  %v3373_v51 = vmul.f32 %v3150_v27, %v5190_v1  ;;  %v3377_v21 = vmul.f32 %v3146_v28, %v5192_v36  ;;  %v5194_v29 = vld [vmem:[#allocation75_spill] sm:$0xff]  ;;  %v5196_v8 = vld [vmem:[#allocation77_spill] sm:$0xff] }
 0x1f6   :  { %5187 = vst [vmem:[#allocation43_spill] sm:$0xff] %v3365_v58  ;;  %5189 = vst [vmem:[#allocation45_spill] sm:$0xff] %v3369_v40  ;;  %v3381_v5 = vmul.f32 %v3150_v27, %v5194_v29  ;;  %v3385_v13 = vmul.f32 %v3146_v28, %v5196_v8  ;;  %v5198_v58 = vld [vmem:[#allocation79_spill] sm:$0xff]  ;;  %v5200_v40 = vld [vmem:[#allocation81_spill] sm:$0xff] }
 0x1f7   :  { %5191 = vst [vmem:[#allocation47_spill] sm:$0xff] %v3373_v51  ;;  %5193 = vst [vmem:[#allocation49_spill] sm:$0xff] %v3377_v21  ;;  %v3389_v34 = vmul.f32 %v3150_v27, %v5198_v58  ;;  %v3393_v1 = vmul.f32 %v3146_v28, %v5200_v40  ;;  %v5201_v51 = vld [vmem:[#allocation83_spill] sm:$0xff]  ;;  %v5202_v21 = vld [vmem:[#allocation85_spill] sm:$0xff] }
 0x1f8   :  { %5195 = vst [vmem:[#allocation51_spill] sm:$0xff] %v3381_v5  ;;  %5197 = vst [vmem:[#allocation53_spill] sm:$0xff] %v3385_v13  ;;  %v3397_v36 = vmul.f32 %v3150_v27, %v5201_v51  ;;  %v3401_v29 = vmul.f32 %v3146_v28, %v5202_v21  ;;  %v5203_v5 = vld [vmem:[#allocation87_spill] sm:$0xff]  ;;  %v5204_v13 = vld [vmem:[#allocation89_spill] sm:$0xff]  ;;  %v3417_v51 = vmul.f32 %v3146_v28, %v2498_v50 }
 0x1f9   :  { %5199 = vst [vmem:[#allocation55_spill] sm:$0xff] %v3389_v34  ;;  %v3405_v8 = vmul.f32 %v3150_v27, %v5203_v5  ;;  %v3409_v58 = vmul.f32 %v3146_v28, %v5204_v13  ;;  %v5205_v34 = vld [vmem:[#allocation91_spill] sm:$0xff]  ;;  %v3421_v21 = vmul.f32 %v3150_v27, %v2502_v52  ;;  %v3425_v5 = vmul.f32 %v3146_v28, %v2506_v54 }
 0x1fa   :  { %v3413_v40 = vmul.f32 %v3150_v27, %v5205_v34  ;;  %v3429_v13 = vmul.f32 %v3150_v27, %v2516_v59  ;;  %v3433_v34 = vmul.f32 %v3146_v28, %v2526_v2  ;;  %v3437_v50 = vmul.f32 %v3150_v27, %v2533_v6 }
 0x1fb   :  { %v3441_v52 = vmul.f32 %v3146_v28, %v2540_v10  ;;  %v3445_v54 = vmul.f32 %v3150_v27, %v2547_v15  ;;  %v3449_v59 = vmul.f32 %v3146_v28, %v2554_v22  ;;  %v3453_v2 = vmul.f32 %v3150_v27, %v2561_v26 }
 0x1fc   :  { %v3457_v6 = vmul.f32 %v3146_v28, %v2568_v30  ;;  %v3461_v10 = vmul.f32 %v3150_v27, %v2575_v35  ;;  %v3465_v15 = vmul.f32 %v3146_v28, %v2582_v42  ;;  %v3469_v22 = vmul.f32 %v3150_v27, %v2589_v46 }
 0x1fd   :  { %v3473_v26 = vmul.f32 %v3146_v28, %v2596_v56  ;;  %v3477_v30 = vmul.f32 %v3150_v27, %v2603_v63  ;;  %v3481_v35 = vmul.f32 %v3146_v28, %v2610_v12  ;;  %v3485_v42 = vmul.f32 %v3150_v27, %v2617_v18 }
 0x1fe   :  { %v3489_v46 = vmul.f32 %v3146_v28, %v2624_v24  ;;  %v3493_v56 = vmul.f32 %v3150_v27, %v2631_v33  ;;  %v3497_v63 = vmul.f32 %v3146_v28, %v2638_v44  ;;  %v3501_v12 = vmul.f32 %v3150_v27, %v2645_v60 }
 0x1ff   :  { %v3505_v18 = vmul.f32 %v3146_v28, %v2652_v4  ;;  %v3509_v24 = vmul.f32 %v3150_v27, %v2659_v19  ;;  %v3513_v33 = vmul.f32 %v3146_v28, %v2666_v38  ;;  %v3517_v44 = vmul.f32 %v3150_v27, %v2673_v3 }
 0x200   :  { %v3521_v60 = vmul.f32 %v3146_v28, %v2680_v7  ;;  %v3525_v4 = vmul.f32 %v3150_v27, %v2687_v37  ;;  %v3529_v19 = vmul.f32 %v3146_v28, %v2694_v31  ;;  %v3533_v38 = vmul.f32 %v3150_v27, %v2701_v23 }
 0x201   :  { %v3537_v3 = vmul.f32 %v3146_v28, %v2708_v16  ;;  %v3541_v7 = vmul.f32 %v3150_v27, %v2715_v32  ;;  %v3545_v37 = vmul.f32 %v3146_v28, %v2722_v57  ;;  %v3549_v31 = vmul.f32 %v3150_v27, %v2729_v55 }
 0x202   :  { %v3553_v23 = vmul.f32 %v3146_v28, %v2736_v0  ;;  %v3557_v16 = vmul.f32 %v3150_v27, %v2743_v62  ;;  %v3561_v32 = vmul.f32 %v3146_v28, %v2750_v17 }
 0x203   :  { %5206 = vst [vmem:[#allocation57_spill] sm:$0xff] %v3541_v7  ;;  %5207 = vst [vmem:[#allocation59_spill] sm:$0xff] %v3545_v37  ;;  %v5212_v7 = vld [vmem:[#allocation40_spill] sm:$0xff]  ;;  %v5214_v37 = vld [vmem:[#allocation42_spill] sm:$0xff] }
 0x204   :  { %5208 = vst [vmem:[#allocation61_spill] sm:$0xff] %v3549_v31  ;;  %5209 = vst [vmem:[#allocation63_spill] sm:$0xff] %v3553_v23  ;;  %v3565_v57 = vmul.f32 %v3150_v27, %v5212_v7  ;;  %v3569_v55 = vmul.f32 %v3146_v28, %v5214_v37  ;;  %v5216_v31 = vld [vmem:[#allocation44_spill] sm:$0xff]  ;;  %v5218_v23 = vld [vmem:[#allocation46_spill] sm:$0xff] }
 0x205   :  { %5210 = vst [vmem:[#allocation65_spill] sm:$0xff] %v3557_v16  ;;  %5211 = vst [vmem:[#allocation67_spill] sm:$0xff] %v3561_v32  ;;  %v3573_v0 = vmul.f32 %v3150_v27, %v5216_v31  ;;  %v3577_v62 = vmul.f32 %v3146_v28, %v5218_v23  ;;  %v5220_v16 = vld [vmem:[#allocation48_spill] sm:$0xff]  ;;  %v5222_v32 = vld [vmem:[#allocation50_spill] sm:$0xff] }
 0x206   :  { %5213 = vst [vmem:[#allocation69_spill] sm:$0xff] %v3565_v57  ;;  %5215 = vst [vmem:[#allocation71_spill] sm:$0xff] %v3569_v55  ;;  %v3581_v17 = vmul.f32 %v3150_v27, %v5220_v16  ;;  %v3585_v7 = vmul.f32 %v3146_v28, %v5222_v32  ;;  %v5224_v57 = vld [vmem:[#allocation52_spill] sm:$0xff]  ;;  %v5226_v55 = vld [vmem:[#allocation54_spill] sm:$0xff] }
 0x207   :  { %5217 = vst [vmem:[#allocation73_spill] sm:$0xff] %v3573_v0  ;;  %5219 = vst [vmem:[#allocation75_spill] sm:$0xff] %v3577_v62  ;;  %v3589_v37 = vmul.f32 %v3150_v27, %v5224_v57  ;;  %v3593_v31 = vmul.f32 %v3146_v28, %v5226_v55  ;;  %v5228_v0 = vld [vmem:[#allocation56_spill] sm:$0xff]  ;;  %v5230_v62 = vld [vmem:[#allocation58_spill] sm:$0xff] }
 0x208   :  { %5221 = vst [vmem:[#allocation77_spill] sm:$0xff] %v3581_v17  ;;  %5223 = vst [vmem:[#allocation79_spill] sm:$0xff] %v3585_v7  ;;  %v3597_v23 = vmul.f32 %v3150_v27, %v5228_v0  ;;  %v3601_v16 = vmul.f32 %v3146_v28, %v5230_v62  ;;  %v5232_v17 = vld [vmem:[#allocation60_spill] sm:$0xff]  ;;  %v5234_v7 = vld [vmem:[#allocation62_spill] sm:$0xff] }
 0x209   :  { %5225 = vst [vmem:[#allocation81_spill] sm:$0xff] %v3589_v37  ;;  %5227 = vst [vmem:[#allocation83_spill] sm:$0xff] %v3593_v31  ;;  %v3605_v32 = vmul.f32 %v3150_v27, %v5232_v17  ;;  %v3609_v57 = vmul.f32 %v3146_v28, %v5234_v7  ;;  %v5236_v37 = vld [vmem:[#allocation64_spill] sm:$0xff]  ;;  %v5238_v31 = vld [vmem:[#allocation66_spill] sm:$0xff] }
 0x20a   :  { %5229 = vst [vmem:[#allocation85_spill] sm:$0xff] %v3597_v23  ;;  %5231 = vst [vmem:[#allocation87_spill] sm:$0xff] %v3601_v16  ;;  %v3613_v55 = vmul.f32 %v3150_v27, %v5236_v37  ;;  %v3617_v0 = vmul.f32 %v3146_v28, %v5238_v31  ;;  %v5240_v23 = vld [vmem:[#allocation68_spill] sm:$0xff]  ;;  %v5242_v16 = vld [vmem:[#allocation70_spill] sm:$0xff] }
 0x20b   :  { %5233 = vst [vmem:[#allocation89_spill] sm:$0xff] %v3605_v32  ;;  %5235 = vst [vmem:[#allocation91_spill] sm:$0xff] %v3609_v57  ;;  %v3621_v62 = vmul.f32 %v3150_v27, %v5240_v23  ;;  %v3625_v17 = vmul.f32 %v3146_v28, %v5242_v16  ;;  %v5244_v32 = vld [vmem:[#allocation72_spill] sm:$0xff]  ;;  %v5246_v57 = vld [vmem:[#allocation74_spill] sm:$0xff] }
 0x20c   :  { %5237 = vst [vmem:[#allocation40_spill] sm:$0xff] %v3613_v55  ;;  %5239 = vst [vmem:[#allocation42_spill] sm:$0xff] %v3617_v0  ;;  %v3629_v7 = vmul.f32 %v3150_v27, %v5244_v32  ;;  %v3633_v37 = vmul.f32 %v3146_v28, %v5246_v57  ;;  %v5248_v55 = vld [vmem:[#allocation76_spill] sm:$0xff]  ;;  %v5250_v0 = vld [vmem:[#allocation78_spill] sm:$0xff] }
 0x20d   :  { %5241 = vst [vmem:[#allocation44_spill] sm:$0xff] %v3621_v62  ;;  %5243 = vst [vmem:[#allocation46_spill] sm:$0xff] %v3625_v17  ;;  %v3637_v31 = vmul.f32 %v3150_v27, %v5248_v55  ;;  %v3641_v23 = vmul.f32 %v3146_v28, %v5250_v0  ;;  %v5252_v62 = vld [vmem:[#allocation80_spill] sm:$0xff]  ;;  %v5254_v17 = vld [vmem:[#allocation82_spill] sm:$0xff] }
 0x20e   :  { %5245 = vst [vmem:[#allocation48_spill] sm:$0xff] %v3629_v7  ;;  %5247 = vst [vmem:[#allocation50_spill] sm:$0xff] %v3633_v37  ;;  %v3645_v16 = vmul.f32 %v3150_v27, %v5252_v62  ;;  %v3649_v32 = vmul.f32 %v3146_v28, %v5254_v17  ;;  %v5256_v7 = vld [vmem:[#allocation84_spill] sm:$0xff]  ;;  %v5257_v37 = vld [vmem:[#allocation86_spill] sm:$0xff] }
 0x20f   :  { %5249 = vst [vmem:[#allocation52_spill] sm:$0xff] %v3637_v31  ;;  %5251 = vst [vmem:[#allocation54_spill] sm:$0xff] %v3641_v23  ;;  %v3653_v57 = vmul.f32 %v3150_v27, %v5256_v7  ;;  %v3657_v55 = vmul.f32 %v3146_v28, %v5257_v37  ;;  %v5259_v31 = vld [vmem:[#allocation88_spill] sm:$0xff]  ;;  %v5260_v23 = vld [vmem:[#allocation90_spill] sm:$0xff]  ;;  %v5263_v37 = vsub.s32 1, %v3136_v61 }
 0x210   :  { %5253 = vst [vmem:[#allocation56_spill] sm:$0xff] %v3645_v16  ;;  %5255 = vst [vmem:[#allocation58_spill] sm:$0xff] %v3649_v32  ;;  %v3661_v0 = vmul.f32 %v3150_v27, %v5259_v31  ;;  %v3665_v62 = vmul.f32 %v3146_v28, %v5260_v23  ;;  %v5261_v16 = vld [vmem:[#allocation92_spill] sm:$0xff]  ;;  %v5262_v32 = vsub.s32 0, %v3136_v61 }
 0x211   :  { %5258 = vst [vmem:[#allocation60_spill] sm:$0xff] %v3657_v55  ;;  %v3669_v17 = vmul.f32 %v3150_v27, %v5261_v16  ;;  %v3679_v55 = vrot.slane %v3265_v45, %v5263_v37  ;;  %v5273_v16 = vld [vmem:[#allocation3_spill] sm:$0xff]  ;;  %v5277_v37 = vld [vmem:[#allocation5_spill] sm:$0xff] }
 0x212   :  { %v3674_v7 = vrot.slane %v3265_v45, %v5262_v32  ;;  %v5271_v45 = vld [vmem:[#allocation2_spill] sm:$0xff]  ;;  %v5275_v32 = vld [vmem:[#allocation4_spill] sm:$0xff] }
 0x213   :  { %v3687_v28 = vadd.f32 %v3679_v55, %v3160_v14  ;;  %v3695_v23 = vadd.f32 %v3679_v55, %v3168_v11 }
 0x214   :  { %v3683_v31 = vadd.f32 %v3674_v7, %v3156_v47  ;;  %v3691_v27 = vadd.f32 %v3674_v7, %v3164_v25  ;;  %v3699_v61 = vadd.f32 %v3674_v7, %v3172_v9  ;;  %v3703_v47 = vadd.f32 %v3679_v55, %v3176_v49 }
 0x215   :  { %5265 = vst [vmem:[#allocation64_spill] sm:$0xff] %v3687_v28  ;;  %v3707_v14 = vadd.f32 %v3674_v7, %v3180_v48  ;;  %v3711_v25 = vadd.f32 %v3679_v55, %v3184_v20  ;;  %v3715_v11 = vadd.f32 %v3674_v7, %v3188_v39  ;;  %v3719_v9 = vadd.f32 %v3679_v55, %v5271_v45 }
 0x216   :  { %5264 = vst [vmem:[#allocation62_spill] sm:$0xff] %v3683_v31  ;;  %5266 = vst [vmem:[#allocation66_spill] sm:$0xff] %v3699_v61  ;;  %v3723_v49 = vadd.f32 %v3674_v7, %v5273_v16  ;;  %v3727_v48 = vadd.f32 %v3679_v55, %v5275_v32  ;;  %v3731_v20 = vadd.f32 %v3674_v7, %v5277_v37 }
 0x217   :  { %5267 = vst [vmem:[#allocation68_spill] sm:$0xff] %v3703_v47  ;;  %5268 = vst [vmem:[#allocation70_spill] sm:$0xff] %v3707_v14 }
 0x218   :  { %5269 = vst [vmem:[#allocation72_spill] sm:$0xff] %v3711_v25  ;;  %5270 = vst [vmem:[#allocation74_spill] sm:$0xff] %v3715_v11  ;;  %v5279_v25 = vld [vmem:[#allocation6_spill] sm:$0xff]  ;;  %v5281_v11 = vld [vmem:[#allocation7_spill] sm:$0xff] }
 0x219   :  { %5272 = vst [vmem:[#allocation76_spill] sm:$0xff] %v3719_v9  ;;  %5274 = vst [vmem:[#allocation78_spill] sm:$0xff] %v3723_v49  ;;  %v3735_v39 = vadd.f32 %v3679_v55, %v5279_v25  ;;  %v3739_v45 = vadd.f32 %v3674_v7, %v5281_v11  ;;  %v5283_v9 = vld [vmem:[#allocation8_spill] sm:$0xff]  ;;  %v5285_v49 = vld [vmem:[#allocation9_spill] sm:$0xff]  ;;  %v3759_v11 = vadd.f32 %v3679_v55, %v3235_v53 }
 0x21a   :  { %5276 = vst [vmem:[#allocation80_spill] sm:$0xff] %v3727_v48  ;;  %5278 = vst [vmem:[#allocation82_spill] sm:$0xff] %v3731_v20  ;;  %v3743_v16 = vadd.f32 %v3679_v55, %v5283_v9  ;;  %v3747_v32 = vadd.f32 %v3674_v7, %v5285_v49  ;;  %v5287_v48 = vld [vmem:[#allocation10_spill] sm:$0xff]  ;;  %v5289_v20 = vld [vmem:[#allocation11_spill] sm:$0xff]  ;;  %v3763_v9 = vadd.f32 %v3674_v7, %v3239_v41 }
 0x21b   :  { %5280 = vst [vmem:[#allocation84_spill] sm:$0xff] %v3735_v39  ;;  %5282 = vst [vmem:[#allocation86_spill] sm:$0xff] %v3739_v45  ;;  %v3751_v37 = vadd.f32 %v3679_v55, %v5287_v48  ;;  %v3755_v25 = vadd.f32 %v3674_v7, %v5289_v20 }
 0x21c   :  { %5284 = vst [vmem:[#allocation88_spill] sm:$0xff] %v3743_v16  ;;  %5286 = vst [vmem:[#allocation90_spill] sm:$0xff] %v3747_v32  ;;  %v5293_v16 = vld [vmem:[#allocation12_spill] sm:$0xff]  ;;  %v5295_v32 = vld [vmem:[#allocation13_spill] sm:$0xff] }
 0x21d   :  { %5288 = vst [vmem:[#allocation92_spill] sm:$0xff] %v3751_v37  ;;  %5290 = vst [vmem:[#allocation2_spill] sm:$0xff] %v3755_v25  ;;  %v3767_v49 = vadd.f32 %v3679_v55, %v5293_v16  ;;  %v3771_v48 = vadd.f32 %v3674_v7, %v5295_v32  ;;  %v5297_v37 = vld [vmem:[#allocation14_spill] sm:$0xff]  ;;  %v5299_v25 = vld [vmem:[#allocation15_spill] sm:$0xff]  ;;  %v3787_v16 = vadd.f32 %v3674_v7, %v3263_v43 }
 0x21e   :  { %5291 = vst [vmem:[#allocation3_spill] sm:$0xff] %v3759_v11  ;;  %5292 = vst [vmem:[#allocation4_spill] sm:$0xff] %v3763_v9  ;;  %v3775_v20 = vadd.f32 %v3679_v55, %v5297_v37  ;;  %v3779_v53 = vadd.f32 %v3674_v7, %v5299_v25  ;;  %v5301_v11 = vld [vmem:[#allocation16_spill] sm:$0xff] }
 0x21f   :  { %5294 = vst [vmem:[#allocation5_spill] sm:$0xff] %v3767_v49  ;;  %5296 = vst [vmem:[#allocation6_spill] sm:$0xff] %v3771_v48  ;;  %v3783_v41 = vadd.f32 %v3679_v55, %v5301_v11  ;;  %v5304_v49 = vld [vmem:[#allocation17_spill] sm:$0xff]  ;;  %v5306_v48 = vld [vmem:[#allocation18_spill] sm:$0xff] }
 0x220   :  { %5298 = vst [vmem:[#allocation7_spill] sm:$0xff] %v3775_v20  ;;  %5300 = vst [vmem:[#allocation8_spill] sm:$0xff] %v3779_v53  ;;  %v3791_v32 = vadd.f32 %v3679_v55, %v5304_v49  ;;  %v3795_v37 = vadd.f32 %v3674_v7, %v5306_v48  ;;  %v5308_v20 = vld [vmem:[#allocation19_spill] sm:$0xff]  ;;  %v5310_v53 = vld [vmem:[#allocation20_spill] sm:$0xff] }
 0x221   :  { %5302 = vst [vmem:[#allocation9_spill] sm:$0xff] %v3783_v41  ;;  %5303 = vst [vmem:[#allocation10_spill] sm:$0xff] %v3787_v16  ;;  %v3799_v25 = vadd.f32 %v3679_v55, %v5308_v20  ;;  %v3803_v11 = vadd.f32 %v3674_v7, %v5310_v53  ;;  %v5312_v41 = vld [vmem:[#allocation21_spill] sm:$0xff]  ;;  %v5314_v16 = vld [vmem:[#allocation22_spill] sm:$0xff] }
 0x222   :  { %5305 = vst [vmem:[#allocation11_spill] sm:$0xff] %v3791_v32  ;;  %5307 = vst [vmem:[#allocation12_spill] sm:$0xff] %v3795_v37  ;;  %v3807_v43 = vadd.f32 %v3679_v55, %v5312_v41  ;;  %v3811_v49 = vadd.f32 %v3674_v7, %v5314_v16  ;;  %v5316_v32 = vld [vmem:[#allocation23_spill] sm:$0xff]  ;;  %v5318_v37 = vld [vmem:[#allocation24_spill] sm:$0xff] }
 0x223   :  { %5309 = vst [vmem:[#allocation13_spill] sm:$0xff] %v3799_v25  ;;  %5311 = vst [vmem:[#allocation14_spill] sm:$0xff] %v3803_v11  ;;  %v3815_v48 = vadd.f32 %v3679_v55, %v5316_v32  ;;  %v3819_v20 = vadd.f32 %v3674_v7, %v5318_v37  ;;  %v5320_v25 = vld [vmem:[#allocation25_spill] sm:$0xff]  ;;  %v5322_v11 = vld [vmem:[#allocation26_spill] sm:$0xff] }
 0x224   :  { %5313 = vst [vmem:[#allocation15_spill] sm:$0xff] %v3807_v43  ;;  %5315 = vst [vmem:[#allocation16_spill] sm:$0xff] %v3811_v49  ;;  %v3823_v53 = vadd.f32 %v3679_v55, %v5320_v25  ;;  %v3827_v41 = vadd.f32 %v3674_v7, %v5322_v11  ;;  %v5324_v43 = vld [vmem:[#allocation27_spill] sm:$0xff]  ;;  %v5326_v49 = vld [vmem:[#allocation28_spill] sm:$0xff] }
 0x225   :  { %5317 = vst [vmem:[#allocation17_spill] sm:$0xff] %v3815_v48  ;;  %5319 = vst [vmem:[#allocation18_spill] sm:$0xff] %v3819_v20  ;;  %v3831_v16 = vadd.f32 %v3679_v55, %v5324_v43  ;;  %v3835_v32 = vadd.f32 %v3674_v7, %v5326_v49  ;;  %v5328_v48 = vld [vmem:[#allocation29_spill] sm:$0xff]  ;;  %v5330_v20 = vld [vmem:[#allocation30_spill] sm:$0xff] }
 0x226   :  { %5321 = vst [vmem:[#allocation19_spill] sm:$0xff] %v3823_v53  ;;  %5323 = vst [vmem:[#allocation20_spill] sm:$0xff] %v3827_v41  ;;  %v3839_v37 = vadd.f32 %v3679_v55, %v5328_v48  ;;  %v3843_v25 = vadd.f32 %v3674_v7, %v5330_v20  ;;  %v5332_v53 = vld [vmem:[#allocation31_spill] sm:$0xff]  ;;  %v5334_v41 = vld [vmem:[#allocation32_spill] sm:$0xff] }
 0x227   :  { %5325 = vst [vmem:[#allocation21_spill] sm:$0xff] %v3831_v16  ;;  %5327 = vst [vmem:[#allocation22_spill] sm:$0xff] %v3835_v32  ;;  %v3847_v11 = vadd.f32 %v3679_v55, %v5332_v53  ;;  %v3851_v43 = vadd.f32 %v3674_v7, %v5334_v41  ;;  %v5336_v16 = vld [vmem:[#allocation33_spill] sm:$0xff]  ;;  %v5338_v32 = vld [vmem:[#allocation34_spill] sm:$0xff] }
 0x228   :  { %5329 = vst [vmem:[#allocation23_spill] sm:$0xff] %v3839_v37  ;;  %5331 = vst [vmem:[#allocation24_spill] sm:$0xff] %v3843_v25  ;;  %v3855_v49 = vadd.f32 %v3679_v55, %v5336_v16  ;;  %v3859_v48 = vadd.f32 %v3674_v7, %v5338_v32  ;;  %v5340_v37 = vld [vmem:[#allocation35_spill] sm:$0xff]  ;;  %v5342_v25 = vld [vmem:[#allocation36_spill] sm:$0xff] }
 0x229   :  { %5333 = vst [vmem:[#allocation25_spill] sm:$0xff] %v3847_v11  ;;  %5335 = vst [vmem:[#allocation26_spill] sm:$0xff] %v3851_v43  ;;  %v3863_v20 = vadd.f32 %v3679_v55, %v5340_v37  ;;  %v3867_v53 = vadd.f32 %v3674_v7, %v5342_v25  ;;  %v5344_v11 = vld [vmem:[#allocation37_spill] sm:$0xff]  ;;  %v5346_v43 = vld [vmem:[#allocation38_spill] sm:$0xff] }
 0x22a   :  { %5337 = vst [vmem:[#allocation27_spill] sm:$0xff] %v3855_v49  ;;  %5339 = vst [vmem:[#allocation28_spill] sm:$0xff] %v3859_v48  ;;  %v3871_v41 = vadd.f32 %v3679_v55, %v5344_v11  ;;  %v3875_v16 = vadd.f32 %v3674_v7, %v5346_v43  ;;  %v5348_v49 = vld [vmem:[#allocation39_spill] sm:$0xff]  ;;  %v5350_v48 = vld [vmem:[#allocation41_spill] sm:$0xff] }
 0x22b   :  { %5341 = vst [vmem:[#allocation29_spill] sm:$0xff] %v3863_v20  ;;  %5343 = vst [vmem:[#allocation30_spill] sm:$0xff] %v3867_v53  ;;  %v3879_v32 = vadd.f32 %v3679_v55, %v5348_v49  ;;  %v3883_v37 = vadd.f32 %v3674_v7, %v5350_v48  ;;  %v5352_v20 = vld [vmem:[#allocation43_spill] sm:$0xff]  ;;  %v5354_v53 = vld [vmem:[#allocation45_spill] sm:$0xff] }
 0x22c   :  { %5345 = vst [vmem:[#allocation31_spill] sm:$0xff] %v3871_v41  ;;  %5347 = vst [vmem:[#allocation32_spill] sm:$0xff] %v3875_v16  ;;  %v3887_v25 = vadd.f32 %v3679_v55, %v5352_v20  ;;  %v3891_v11 = vadd.f32 %v3674_v7, %v5354_v53  ;;  %v5355_v41 = vld [vmem:[#allocation47_spill] sm:$0xff]  ;;  %v5356_v16 = vld [vmem:[#allocation49_spill] sm:$0xff] }
 0x22d   :  { %5349 = vst [vmem:[#allocation33_spill] sm:$0xff] %v3879_v32  ;;  %5351 = vst [vmem:[#allocation34_spill] sm:$0xff] %v3883_v37  ;;  %v3895_v43 = vadd.f32 %v3679_v55, %v5355_v41  ;;  %v3899_v49 = vadd.f32 %v3674_v7, %v5356_v16  ;;  %v5357_v32 = vld [vmem:[#allocation51_spill] sm:$0xff]  ;;  %v5358_v37 = vld [vmem:[#allocation53_spill] sm:$0xff]  ;;  %v3915_v41 = vadd.f32 %v3674_v7, %v3393_v1 }
 0x22e   :  { %5353 = vst [vmem:[#allocation35_spill] sm:$0xff] %v3887_v25  ;;  %v3903_v48 = vadd.f32 %v3679_v55, %v5357_v32  ;;  %v3907_v20 = vadd.f32 %v3674_v7, %v5358_v37  ;;  %v5359_v25 = vld [vmem:[#allocation55_spill] sm:$0xff]  ;;  %v3919_v16 = vadd.f32 %v3679_v55, %v3397_v36  ;;  %v3923_v32 = vadd.f32 %v3674_v7, %v3401_v29 }
 0x22f   :  { %v3911_v53 = vadd.f32 %v3679_v55, %v5359_v25  ;;  %v3927_v37 = vadd.f32 %v3679_v55, %v3405_v8  ;;  %v3931_v25 = vadd.f32 %v3674_v7, %v3409_v58  ;;  %v3935_v1 = vadd.f32 %v3679_v55, %v3413_v40 }
 0x230   :  { %v3939_v36 = vadd.f32 %v3674_v7, %v3417_v51  ;;  %v3943_v29 = vadd.f32 %v3679_v55, %v3421_v21  ;;  %v3947_v8 = vadd.f32 %v3674_v7, %v3425_v5  ;;  %v3951_v58 = vadd.f32 %v3679_v55, %v3429_v13  ;;  %v5473_v9 = vld [vmem:[#allocation26_spill] sm:$0xff] }
 0x231   :  { %v3955_v40 = vadd.f32 %v3674_v7, %v3433_v34  ;;  %v3959_v51 = vadd.f32 %v3679_v55, %v3437_v50  ;;  %v3963_v21 = vadd.f32 %v3674_v7, %v3441_v52  ;;  %v3967_v5 = vadd.f32 %v3679_v55, %v3445_v54  ;;  %v5475_v31 = vld [vmem:[#allocation28_spill] sm:$0xff] }
 0x232   :  { %v3971_v13 = vadd.f32 %v3674_v7, %v3449_v59  ;;  %v3975_v34 = vadd.f32 %v3679_v55, %v3453_v2  ;;  %v3979_v50 = vadd.f32 %v3674_v7, %v3457_v6  ;;  %v3983_v52 = vadd.f32 %v3679_v55, %v3461_v10  ;;  %v5476_v28 = vld [vmem:[#allocation29_spill] sm:$0xff]  ;;  %v5477_v39 = vld [vmem:[#allocation30_spill] sm:$0xff] }
 0x233   :  { %v3987_v54 = vadd.f32 %v3674_v7, %v3465_v15  ;;  %v3991_v59 = vadd.f32 %v3679_v55, %v3469_v22  ;;  %v3995_v2 = vadd.f32 %v3674_v7, %v3473_v26  ;;  %v3999_v6 = vadd.f32 %v3679_v55, %v3477_v30  ;;  %v5478_v45 = vld [vmem:[#allocation31_spill] sm:$0xff]  ;;  %v5479_v61 = vld [vmem:[#allocation32_spill] sm:$0xff] }
 0x234   :  { %v4003_v10 = vadd.f32 %v3674_v7, %v3481_v35  ;;  %v4007_v15 = vadd.f32 %v3679_v55, %v3485_v42  ;;  %v4011_v22 = vadd.f32 %v3674_v7, %v3489_v46  ;;  %v4015_v26 = vadd.f32 %v3679_v55, %v3493_v56  ;;  %v5480_v47 = vld [vmem:[#allocation33_spill] sm:$0xff]  ;;  %v5481_v14 = vld [vmem:[#allocation34_spill] sm:$0xff] }
 0x235   :  { %5360 = vst [vmem:[#allocation36_spill] sm:$0xff] %v3987_v54  ;;  %5361 = vst [vmem:[#allocation37_spill] sm:$0xff] %v3991_v59  ;;  %v4019_v30 = vadd.f32 %v3674_v7, %v3497_v63  ;;  %v4023_v35 = vadd.f32 %v3679_v55, %v3501_v12  ;;  %v4027_v42 = vadd.f32 %v3674_v7, %v3505_v18  ;;  %v5558_v59 = vld [vmem:[#allocation5_spill] sm:$0xff]  ;;  %v5562_v54 = vld [vmem:[#allocation7_spill] sm:$0xff] }
 0x236   :  { %5362 = vst [vmem:[#allocation38_spill] sm:$0xff] %v3995_v2  ;;  %5363 = vst [vmem:[#allocation39_spill] sm:$0xff] %v3999_v6  ;;  %v4031_v46 = vadd.f32 %v3679_v55, %v3509_v24  ;;  %v4035_v56 = vadd.f32 %v3674_v7, %v3513_v33  ;;  %v4039_v63 = vadd.f32 %v3679_v55, %v3517_v44  ;;  %v5525_v2 = vld [vmem:[#allocation66_spill] sm:$0xff]  ;;  %v5527_v6 = vld [vmem:[#allocation68_spill] sm:$0xff] }
 0x237   :  { %5364 = vst [vmem:[#allocation41_spill] sm:$0xff] %v4003_v10  ;;  %5365 = vst [vmem:[#allocation43_spill] sm:$0xff] %v4007_v15  ;;  %v4043_v12 = vadd.f32 %v3674_v7, %v3521_v60  ;;  %v4047_v18 = vadd.f32 %v3679_v55, %v3525_v4  ;;  %v4051_v24 = vadd.f32 %v3674_v7, %v3529_v19 }
 0x238   :  { %5366 = vst [vmem:[#allocation45_spill] sm:$0xff] %v4011_v22  ;;  %5367 = vst [vmem:[#allocation47_spill] sm:$0xff] %v4015_v26  ;;  %v4055_v33 = vadd.f32 %v3679_v55, %v3533_v38  ;;  %v4059_v44 = vadd.f32 %v3674_v7, %v3537_v3  ;;  %v5533_v26 = vld [vmem:[#allocation74_spill] sm:$0xff] }
 0x239   :  { %5368 = vst [vmem:[#allocation49_spill] sm:$0xff] %v4019_v30  ;;  %5369 = vst [vmem:[#allocation51_spill] sm:$0xff] %v4023_v35  ;;  %v5521_v35 = vld [vmem:[#allocation64_spill] sm:$0xff]  ;;  %v5554_v30 = vld [vmem:[#allocation3_spill] sm:$0xff] }
 0x23a   :  { %5370 = vst [vmem:[#allocation53_spill] sm:$0xff] %v4027_v42  ;;  %5371 = vst [vmem:[#allocation55_spill] sm:$0xff] %v4031_v46  ;;  %v5546_v46 = vld [vmem:[#allocation88_spill] sm:$0xff] }
 0x23b   :  { %5372 = vst [vmem:[#allocation93_spill] sm:$0xff] %v4035_v56  ;;  %5373 = vst [vmem:[#allocation94_spill] sm:$0xff] %v4039_v63  ;;  %v5379_v63 = vld [vmem:[#allocation57_spill] sm:$0xff]  ;;  %v5538_v56 = vld [vmem:[#allocation80_spill] sm:$0xff] }
 0x23c   :  { %5374 = vst [vmem:[#allocation95_spill] sm:$0xff] %v4043_v12  ;;  %5375 = vst [vmem:[#allocation96_spill] sm:$0xff] %v4047_v18  ;;  %v4063_v60 = vadd.f32 %v3679_v55, %v5379_v63  ;;  %v5381_v12 = vld [vmem:[#allocation59_spill] sm:$0xff]  ;;  %v5383_v18 = vld [vmem:[#allocation61_spill] sm:$0xff] }
 0x23d   :  { %5376 = vst [vmem:[#allocation97_spill] sm:$0xff] %v4051_v24  ;;  %5377 = vst [vmem:[#allocation98_spill] sm:$0xff] %v4055_v33  ;;  %v4067_v4 = vadd.f32 %v3674_v7, %v5381_v12  ;;  %v4071_v19 = vadd.f32 %v3679_v55, %v5383_v18  ;;  %v5385_v24 = vld [vmem:[#allocation63_spill] sm:$0xff]  ;;  %v5387_v33 = vld [vmem:[#allocation65_spill] sm:$0xff] }
 0x23e   :  { %5378 = vst [vmem:[#allocation99_spill] sm:$0xff] %v4059_v44  ;;  %5380 = vst [vmem:[#allocation57_spill] sm:$0xff] %v4063_v60  ;;  %v4075_v38 = vadd.f32 %v3674_v7, %v5385_v24  ;;  %v4079_v3 = vadd.f32 %v3679_v55, %v5387_v33  ;;  %v5389_v44 = vld [vmem:[#allocation67_spill] sm:$0xff]  ;;  %v5391_v60 = vld [vmem:[#allocation69_spill] sm:$0xff] }
 0x23f   :  { %5382 = vst [vmem:[#allocation59_spill] sm:$0xff] %v4067_v4  ;;  %5384 = vst [vmem:[#allocation61_spill] sm:$0xff] %v4071_v19  ;;  %v4083_v63 = vadd.f32 %v3674_v7, %v5389_v44  ;;  %v4087_v12 = vadd.f32 %v3679_v55, %v5391_v60  ;;  %v5393_v4 = vld [vmem:[#allocation71_spill] sm:$0xff]  ;;  %v5395_v19 = vld [vmem:[#allocation73_spill] sm:$0xff] }
 0x240   :  { %5386 = vst [vmem:[#allocation63_spill] sm:$0xff] %v4075_v38  ;;  %5388 = vst [vmem:[#allocation65_spill] sm:$0xff] %v4079_v3  ;;  %v4091_v18 = vadd.f32 %v3674_v7, %v5393_v4  ;;  %v4095_v24 = vadd.f32 %v3679_v55, %v5395_v19  ;;  %v5397_v38 = vld [vmem:[#allocation75_spill] sm:$0xff]  ;;  %v5399_v3 = vld [vmem:[#allocation77_spill] sm:$0xff] }
 0x241   :  { %5390 = vst [vmem:[#allocation67_spill] sm:$0xff] %v4083_v63  ;;  %5392 = vst [vmem:[#allocation69_spill] sm:$0xff] %v4087_v12  ;;  %v4099_v33 = vadd.f32 %v3674_v7, %v5397_v38  ;;  %v4103_v44 = vadd.f32 %v3679_v55, %v5399_v3  ;;  %v5401_v63 = vld [vmem:[#allocation79_spill] sm:$0xff]  ;;  %v5403_v12 = vld [vmem:[#allocation81_spill] sm:$0xff] }
 0x242   :  { %5394 = vst [vmem:[#allocation71_spill] sm:$0xff] %v4091_v18  ;;  %5396 = vst [vmem:[#allocation73_spill] sm:$0xff] %v4095_v24  ;;  %v4107_v60 = vadd.f32 %v3674_v7, %v5401_v63  ;;  %v4111_v4 = vadd.f32 %v3679_v55, %v5403_v12  ;;  %v5405_v18 = vld [vmem:[#allocation83_spill] sm:$0xff]  ;;  %v5407_v24 = vld [vmem:[#allocation85_spill] sm:$0xff] }
 0x243   :  { %5398 = vst [vmem:[#allocation75_spill] sm:$0xff] %v4099_v33  ;;  %5400 = vst [vmem:[#allocation77_spill] sm:$0xff] %v4103_v44  ;;  %v4115_v19 = vadd.f32 %v3674_v7, %v5405_v18  ;;  %v4119_v38 = vadd.f32 %v3679_v55, %v5407_v24  ;;  %v5409_v33 = vld [vmem:[#allocation87_spill] sm:$0xff]  ;;  %v5411_v44 = vld [vmem:[#allocation89_spill] sm:$0xff] }
 0x244   :  { %5402 = vst [vmem:[#allocation79_spill] sm:$0xff] %v4107_v60  ;;  %5404 = vst [vmem:[#allocation81_spill] sm:$0xff] %v4111_v4  ;;  %v4123_v3 = vadd.f32 %v3674_v7, %v5409_v33  ;;  %v4127_v63 = vadd.f32 %v3679_v55, %v5411_v44  ;;  %v5413_v60 = vld [vmem:[#allocation91_spill] sm:$0xff]  ;;  %v5415_v4 = vld [vmem:[#allocation40_spill] sm:$0xff] }
 0x245   :  { %5406 = vst [vmem:[#allocation83_spill] sm:$0xff] %v4115_v19  ;;  %5408 = vst [vmem:[#allocation85_spill] sm:$0xff] %v4119_v38  ;;  %v4131_v12 = vadd.f32 %v3674_v7, %v5413_v60  ;;  %v4135_v18 = vadd.f32 %v3679_v55, %v5415_v4  ;;  %v5417_v19 = vld [vmem:[#allocation42_spill] sm:$0xff]  ;;  %v5419_v38 = vld [vmem:[#allocation44_spill] sm:$0xff] }
 0x246   :  { %5410 = vst [vmem:[#allocation87_spill] sm:$0xff] %v4123_v3  ;;  %5412 = vst [vmem:[#allocation89_spill] sm:$0xff] %v4127_v63  ;;  %v4139_v24 = vadd.f32 %v3674_v7, %v5417_v19  ;;  %v4143_v33 = vadd.f32 %v3679_v55, %v5419_v38  ;;  %v5421_v3 = vld [vmem:[#allocation46_spill] sm:$0xff]  ;;  %v5423_v63 = vld [vmem:[#allocation48_spill] sm:$0xff] }
 0x247   :  { %5414 = vst [vmem:[#allocation91_spill] sm:$0xff] %v4131_v12  ;;  %5416 = vst [vmem:[#allocation40_spill] sm:$0xff] %v4135_v18  ;;  %v4147_v44 = vadd.f32 %v3674_v7, %v5421_v3  ;;  %v4151_v60 = vadd.f32 %v3679_v55, %v5423_v63  ;;  %v5425_v12 = vld [vmem:[#allocation50_spill] sm:$0xff]  ;;  %v5427_v18 = vld [vmem:[#allocation52_spill] sm:$0xff] }
 0x248   :  { %5418 = vst [vmem:[#allocation42_spill] sm:$0xff] %v4139_v24  ;;  %5420 = vst [vmem:[#allocation44_spill] sm:$0xff] %v4143_v33  ;;  %v4155_v4 = vadd.f32 %v3674_v7, %v5425_v12  ;;  %v4159_v19 = vadd.f32 %v3679_v55, %v5427_v18  ;;  %v5429_v24 = vld [vmem:[#allocation54_spill] sm:$0xff]  ;;  %v5431_v33 = vld [vmem:[#allocation56_spill] sm:$0xff]  ;;  %v4175_v12 = vadd.f32 %v3679_v55, %v3653_v57  ;;  %v5524_v57 = vmax.f32 %v3695_v23, 0.0 }
 0x249   :  { %5422 = vst [vmem:[#allocation46_spill] sm:$0xff] %v4147_v44  ;;  %5424 = vst [vmem:[#allocation48_spill] sm:$0xff] %v4151_v60  ;;  %v4163_v38 = vadd.f32 %v3674_v7, %v5429_v24  ;;  %v4167_v3 = vadd.f32 %v3679_v55, %v5431_v33  ;;  %v5433_v44 = vld [vmem:[#allocation58_spill] sm:$0xff]  ;;  %v4183_v24 = vadd.f32 %v3679_v55, %v3661_v0  ;;  %v5539_v23 = vmax.f32 %v5538_v56, 0.0  ;;  %v5550_v42 = vld [vmem:[#allocation92_spill] sm:$0xff] }
 0x24a   :  { %5426 = vst [vmem:[#allocation50_spill] sm:$0xff] %v4155_v4  ;;  %5428 = vst [vmem:[#allocation52_spill] sm:$0xff] %v4159_v19  ;;  %v4171_v63 = vadd.f32 %v3674_v7, %v5433_v44  ;;  %v5436_v4 = vld [vmem:[#allocation60_spill] sm:$0xff]  ;;  %v4187_v33 = vadd.f32 %v3674_v7, %v3665_v62  ;;  %v4191_v44 = vadd.f32 %v3679_v55, %v3669_v17  ;;  %v5482_v62 = vld [vmem:[#allocation35_spill] sm:$0xff]  ;;  %v5522_v17 = vmax.f32 %v5521_v35, 0.0 }
 0x24b   :  { %5430 = vst [vmem:[#allocation54_spill] sm:$0xff] %v4163_v38  ;;  %5432 = vst [vmem:[#allocation56_spill] sm:$0xff] %v4167_v3  ;;  %v4179_v18 = vadd.f32 %v3674_v7, %v5436_v4  ;;  %v5443_v55 = vld [vmem:[#allocation76_spill] sm:$0xff]  ;;  %v5519_v60 = vld [vmem:[#allocation62_spill] sm:$0xff]  ;;  %v5526_v4 = vmax.f32 %v5525_v2, 0.0  ;;  %v5555_v56 = vmax.f32 %v5554_v30, 0.0 }
 0x24c   :  { %5434 = vst [vmem:[#allocation58_spill] sm:$0xff] %v4171_v63  ;;  %5435 = vst [vmem:[#allocation100_spill] sm:$0xff] %v4175_v12  ;;  %v5520_v3 = vmax.f32 %v5519_v60, 0.0  ;;  %v5523_v63 = vmax.f32 %v3691_v27, 0.0  ;;  %v5529_v0 = vld [vmem:[#allocation70_spill] sm:$0xff]  ;;  %v5534_v60 = vmax.f32 %v5533_v26, 0.0 }
 0x24d   :  { %5437 = vst [vmem:[#allocation60_spill] sm:$0xff] %v4179_v18  ;;  %5438 = vst [vmem:[#allocation101_spill] sm:$0xff] %v4183_v24  ;;  %v5528_v18 = vmax.f32 %v5527_v6, 0.0  ;;  %v5530_v15 = vmax.f32 %v5529_v0, 0.0  ;;  %v5531_v24 = vld [vmem:[#allocation72_spill] sm:$0xff]  ;;  %v5535_v35 = vmax.f32 %v5443_v55, 0.0 }
 0x24e   :  { %5439 = vst [vmem:[#allocation102_spill] sm:$0xff] %v4187_v33  ;;  %5440 = vst [vmem:[#allocation103_spill] sm:$0xff] %v4191_v44  ;;  %v5472_v33 = vld [vmem:[#allocation25_spill] sm:$0xff]  ;;  %v5474_v44 = vld [vmem:[#allocation27_spill] sm:$0xff]  ;;  %v2151_v19 = vpack.c.bf16 %v5522_v17, %v5520_v3  ;;  %v2152_v12 = vpack.c.bf16 %v5524_v57, %v5523_v63  ;;  %v5532_v22 = vmax.f32 %v5531_v24, 0.0  ;;  %v5547_v24 = vmax.f32 %v5546_v46, 0.0 }
 0x24f   :  { %v2153_v10 = vpack.c.bf16 %v5528_v18, %v5526_v4  ;;  %v2155_v3 = vpack.c.bf16 %v5535_v35, %v5534_v60  ;;  %v5536_v17 = vld [vmem:[#allocation78_spill] sm:$0xff]  ;;  %v5542_v38 = vld [vmem:[#allocation84_spill] sm:$0xff]  ;;  %v5551_v55 = vmax.f32 %v5550_v42, 0.0  ;;  %v5563_v46 = vmax.f32 %v5562_v54, 0.0  ;;  %v5566_v54 = vld [vmem:[#allocation9_spill] sm:$0xff] }
 0x250   :  { %v2154_v7 = vpack.c.bf16 %v5532_v22, %v5530_v15  ;;  %v5537_v27 = vmax.f32 %v5536_v17, 0.0  ;;  %v5540_v57 = vld [vmem:[#allocation82_spill] sm:$0xff]  ;;  %v5543_v6 = vmax.f32 %v5542_v38, 0.0  ;;  %v5559_v38 = vmax.f32 %v5558_v59, 0.0  ;;  %1971 = vst [vmem:[%s4773_s4] sm:$0xff] %v2151_v19  ;;  %1972 = vst [vmem:[%s4773_s4 + $0x8] sm:$0xff] %v2152_v12  ;;  %v5564_v59 = vld [vmem:[#allocation8_spill] sm:$0xff] }
 0x251   :  { %v5541_v2 = vmax.f32 %v5540_v57, 0.0  ;;  %v5544_v4 = vld [vmem:[#allocation86_spill] sm:$0xff]  ;;  %1973 = vst [vmem:[%s4773_s4 + $0x10] sm:$0xff] %v2153_v10  ;;  %v5565_v30 = vmax.f32 %v5564_v59, 0.0  ;;  %v5567_v42 = vmax.f32 %v5566_v54, 0.0  ;;  %v5570_v19 = vld [vmem:[#allocation11_spill] sm:$0xff] }
 0x252   :  { %v2156_v63 = vpack.c.bf16 %v5539_v23, %v5537_v27  ;;  %v5545_v0 = vmax.f32 %v5544_v4, 0.0  ;;  %v5548_v22 = vld [vmem:[#allocation90_spill] sm:$0xff]  ;;  %v5556_v23 = vld [vmem:[#allocation4_spill] sm:$0xff]  ;;  %1974 = vst [vmem:[%s4773_s4 + $0x18] sm:$0xff] %v2154_v7  ;;  %1975 = vst [vmem:[%s4773_s4 + $0x20] sm:$0xff] %v2155_v3 }
 0x253   :  { %v2157_v18 = vpack.c.bf16 %v5543_v6, %v5541_v2  ;;  %v5549_v26 = vmax.f32 %v5548_v22, 0.0  ;;  %v5552_v35 = vld [vmem:[#allocation2_spill] sm:$0xff]  ;;  %v5557_v57 = vmax.f32 %v5556_v23, 0.0  ;;  %v5586_v3 = vld [vmem:[#allocation19_spill] sm:$0xff] }
 0x254   :  { %v2158_v15 = vpack.c.bf16 %v5547_v24, %v5545_v0  ;;  %v5553_v17 = vmax.f32 %v5552_v35, 0.0  ;;  %v5560_v6 = vld [vmem:[#allocation6_spill] sm:$0xff]  ;;  %v2163_v24 = vpack.c.bf16 %v5567_v42, %v5565_v30  ;;  %1976 = vst [vmem:[%s4773_s4 + $0x28] sm:$0xff] %v2156_v63  ;;  %v5582_v30 = vld [vmem:[#allocation17_spill] sm:$0xff] }
 0x255   :  { %v2159_v60 = vpack.c.bf16 %v5551_v55, %v5549_v26  ;;  %v2161_v2 = vpack.c.bf16 %v5559_v38, %v5557_v57  ;;  %v5561_v4 = vmax.f32 %v5560_v6, 0.0  ;;  %v5568_v22 = vld [vmem:[#allocation10_spill] sm:$0xff]  ;;  %v5571_v55 = vmax.f32 %v5570_v19, 0.0  ;;  %v5578_v6 = vld [vmem:[#allocation15_spill] sm:$0xff]  ;;  %1977 = vst [vmem:[%s4773_s4 + $0x30] sm:$0xff] %v2157_v18 }
 0x256   :  { %v2160_v27 = vpack.c.bf16 %v5555_v56, %v5553_v17  ;;  %v5569_v26 = vmax.f32 %v5568_v22, 0.0  ;;  %v5572_v17 = vld [vmem:[#allocation12_spill] sm:$0xff]  ;;  %v5574_v56 = vld [vmem:[#allocation13_spill] sm:$0xff]  ;;  %v5576_v10 = vld [vmem:[#allocation14_spill] sm:$0xff]  ;;  %1978 = vst [vmem:[%s4773_s4 + $0x38] sm:$0xff] %v2158_v15  ;;  %v5583_v54 = vmax.f32 %v5582_v30, 0.0 }
 0x257   :  { %v2162_v0 = vpack.c.bf16 %v5563_v46, %v5561_v4  ;;  %v5573_v12 = vmax.f32 %v5572_v17, 0.0  ;;  %v5575_v23 = vmax.f32 %v5574_v56, 0.0  ;;  %v5577_v38 = vmax.f32 %v5576_v10, 0.0  ;;  %v5580_v46 = vld [vmem:[#allocation16_spill] sm:$0xff]  ;;  %v5584_v22 = vld [vmem:[#allocation18_spill] sm:$0xff]  ;;  %1979 = vst [vmem:[%s4773_s4 + $0x40] sm:$0xff] %v2159_v60 }
 0x258   :  { %v2164_v35 = vpack.c.bf16 %v5571_v55, %v5569_v26  ;;  %v5579_v4 = vmax.f32 %v5578_v6, 0.0  ;;  %v5581_v59 = vmax.f32 %v5580_v46, 0.0  ;;  %v5585_v26 = vmax.f32 %v5584_v22, 0.0  ;;  %v5588_v17 = vld [vmem:[#allocation20_spill] sm:$0xff]  ;;  %v5592_v18 = vld [vmem:[#allocation22_spill] sm:$0xff]  ;;  %1980 = vst [vmem:[%s4773_s4 + $0x48] sm:$0xff] %v2160_v27 }
 0x259   :  { %v2165_v57 = vpack.c.bf16 %v5575_v23, %v5573_v12  ;;  %v5587_v19 = vmax.f32 %v5586_v3, 0.0  ;;  %v5589_v63 = vmax.f32 %v5588_v17, 0.0  ;;  %v5590_v12 = vld [vmem:[#allocation21_spill] sm:$0xff]  ;;  %v5593_v10 = vmax.f32 %v5592_v18, 0.0  ;;  %1981 = vst [vmem:[%s4773_s4 + $0x50] sm:$0xff] %v2161_v2  ;;  %1982 = vst [vmem:[%s4773_s4 + $0x58] sm:$0xff] %v2162_v0 }
 0x25a   :  { %v2166_v7 = vpack.c.bf16 %v5579_v4, %v5577_v38  ;;  %v2167_v42 = vpack.c.bf16 %v5583_v54, %v5581_v59  ;;  %v5591_v56 = vmax.f32 %v5590_v12, 0.0  ;;  %v5594_v38 = vld [vmem:[#allocation23_spill] sm:$0xff]  ;;  %v5596_v4 = vld [vmem:[#allocation24_spill] sm:$0xff]  ;;  %v5598_v59 = vmax.f32 %v5472_v33, 0.0  ;;  %1983 = vst [vmem:[%s4773_s4 + $0x60] sm:$0xff] %v2163_v24  ;;  %1984 = vst [vmem:[%s4773_s4 + $0x68] sm:$0xff] %v2164_v35 }
 0x25b   :  { %v2168_v55 = vpack.c.bf16 %v5587_v19, %v5585_v26  ;;  %v5595_v6 = vmax.f32 %v5594_v38, 0.0  ;;  %v5597_v46 = vmax.f32 %v5596_v4, 0.0  ;;  %v5599_v54 = vmax.f32 %v5473_v9, 0.0  ;;  %1985 = vst [vmem:[%s4773_s4 + $0x70] sm:$0xff] %v2165_v57  ;;  %v5635_v38 = vld [vmem:[#allocation37_spill] sm:$0xff]  ;;  %v5637_v4 = vld [vmem:[#allocation38_spill] sm:$0xff] }
 0x25c   :  { %v2169_v23 = vpack.c.bf16 %v5591_v56, %v5589_v63  ;;  %v5600_v60 = vmax.f32 %v5474_v44, 0.0  ;;  %v5601_v27 = vmax.f32 %v5475_v31, 0.0  ;;  %v5602_v26 = vmax.f32 %v5476_v28, 0.0  ;;  %1986 = vst [vmem:[%s4773_s4 + $0x78] sm:$0xff] %v2166_v7  ;;  %1987 = vst [vmem:[%s4773_s4 + $0x80] sm:$0xff] %v2167_v42 }
 0x25d   :  { %v2170_v15 = vpack.c.bf16 %v5595_v6, %v5593_v10  ;;  %v2171_v30 = vpack.c.bf16 %v5598_v59, %v5597_v46  ;;  %v5603_v2 = vmax.f32 %v5477_v39, 0.0  ;;  %v5604_v19 = vmax.f32 %v5478_v45, 0.0  ;;  %1988 = vst [vmem:[%s4773_s4 + $0x88] sm:$0xff] %v2168_v55  ;;  %v5639_v59 = vld [vmem:[#allocation39_spill] sm:$0xff] }
 0x25e   :  { %v2172_v22 = vpack.c.bf16 %v5600_v60, %v5599_v54  ;;  %v2173_v3 = vpack.c.bf16 %v5602_v26, %v5601_v27  ;;  %v5605_v31 = vmax.f32 %v5479_v61, 0.0  ;;  %v5606_v28 = vmax.f32 %v5480_v47, 0.0  ;;  %1989 = vst [vmem:[%s4773_s4 + $0x90] sm:$0xff] %v2169_v23  ;;  %v5647_v26 = vld [vmem:[#allocation47_spill] sm:$0xff] }
 0x25f   :  { %v2174_v0 = vpack.c.bf16 %v5604_v19, %v5603_v2  ;;  %v5607_v45 = vmax.f32 %v5481_v14, 0.0  ;;  %v5608_v9 = vmax.f32 %v5482_v62, 0.0  ;;  %v5609_v44 = vmax.f32 %v3891_v11, 0.0  ;;  %1990 = vst [vmem:[%s4773_s4 + $0x98] sm:$0xff] %v2170_v15  ;;  %1991 = vst [vmem:[%s4773_s4 + $0xa0] sm:$0xff] %v2171_v30  ;;  %v5649_v19 = vld [vmem:[#allocation49_spill] sm:$0xff] }
 0x260   :  { %v2175_v39 = vpack.c.bf16 %v5606_v28, %v5605_v31  ;;  %v5610_v24 = vmax.f32 %v3895_v43, 0.0  ;;  %v5611_v57 = vmax.f32 %v3899_v49, 0.0  ;;  %v5612_v17 = vmax.f32 %v3903_v48, 0.0  ;;  %1992 = vst [vmem:[%s4773_s4 + $0xa8] sm:$0xff] %v2172_v22  ;;  %1993 = vst [vmem:[%s4773_s4 + $0xb0] sm:$0xff] %v2173_v3  ;;  %v5645_v22 = vld [vmem:[#allocation45_spill] sm:$0xff] }
 0x261   :  { %v2176_v33 = vpack.c.bf16 %v5608_v9, %v5607_v45  ;;  %v5613_v61 = vmax.f32 %v3907_v20, 0.0  ;;  %v5614_v47 = vmax.f32 %v3911_v53, 0.0  ;;  %v5615_v11 = vmax.f32 %v3915_v41, 0.0  ;;  %1994 = vst [vmem:[%s4773_s4 + $0xb8] sm:$0xff] %v2174_v0  ;;  %v5651_v31 = vld [vmem:[#allocation51_spill] sm:$0xff]  ;;  %v5653_v45 = vld [vmem:[#allocation53_spill] sm:$0xff] }
 0x262   :  { %v2177_v35 = vpack.c.bf16 %v5610_v24, %v5609_v44  ;;  %v2178_v7 = vpack.c.bf16 %v5612_v17, %v5611_v57  ;;  %v5616_v43 = vmax.f32 %v3919_v16, 0.0  ;;  %v5617_v48 = vmax.f32 %v3923_v32, 0.0  ;;  %1995 = vst [vmem:[%s4773_s4 + $0xc0] sm:$0xff] %v2175_v39  ;;  %v5659_v17 = vld [vmem:[#allocation94_spill] sm:$0xff] }
 0x263   :  { %v2179_v14 = vpack.c.bf16 %v5614_v47, %v5613_v61  ;;  %v5618_v62 = vmax.f32 %v3927_v37, 0.0  ;;  %v5619_v55 = vmax.f32 %v3931_v25, 0.0  ;;  %v5620_v63 = vmax.f32 %v3935_v1, 0.0  ;;  %1996 = vst [vmem:[%s4773_s4 + $0xc8] sm:$0xff] %v2176_v33  ;;  %v5655_v33 = vld [vmem:[#allocation55_spill] sm:$0xff] }
 0x264   :  { %v2180_v49 = vpack.c.bf16 %v5616_v43, %v5615_v11  ;;  %v5621_v20 = vmax.f32 %v3939_v36, 0.0  ;;  %v5622_v53 = vmax.f32 %v3943_v29, 0.0  ;;  %v5623_v16 = vmax.f32 %v3947_v8, 0.0  ;;  %1997 = vst [vmem:[%s4773_s4 + $0xd0] sm:$0xff] %v2177_v35  ;;  %1998 = vst [vmem:[%s4773_s4 + $0xd8] sm:$0xff] %v2178_v7  ;;  %v5657_v35 = vld [vmem:[#allocation93_spill] sm:$0xff] }
 0x265   :  { %v2181_v42 = vpack.c.bf16 %v5618_v62, %v5617_v48  ;;  %v2182_v12 = vpack.c.bf16 %v5620_v63, %v5619_v55  ;;  %v5624_v32 = vmax.f32 %v3951_v58, 0.0  ;;  %v5625_v25 = vmax.f32 %v3955_v40, 0.0  ;;  %1999 = vst [vmem:[%s4773_s4 + $0xe0] sm:$0xff] %v2179_v14  ;;  %v5661_v47 = vld [vmem:[#allocation95_spill] sm:$0xff]  ;;  %v5663_v11 = vld [vmem:[#allocation96_spill] sm:$0xff]  ;;  %v5665_v48 = vld [vmem:[#allocation97_spill] sm:$0xff] }
 0x266   :  { %v2183_v41 = vpack.c.bf16 %v5622_v53, %v5621_v20  ;;  %v5626_v1 = vmax.f32 %v3959_v51, 0.0  ;;  %v5627_v23 = vmax.f32 %v3963_v21, 0.0  ;;  %v5628_v18 = vmax.f32 %v3967_v5, 0.0  ;;  %v5633_v21 = vld [vmem:[#allocation36_spill] sm:$0xff]  ;;  %2000 = vst [vmem:[%s4773_s4 + $0xe8] sm:$0xff] %v2180_v49  ;;  %v5671_v53 = vld [vmem:[#allocation57_spill] sm:$0xff] }
 0x267   :  { %v2184_v37 = vpack.c.bf16 %v5624_v32, %v5623_v16  ;;  %v5629_v36 = vmax.f32 %v3971_v13, 0.0  ;;  %v5630_v29 = vmax.f32 %v3975_v34, 0.0  ;;  %v5631_v58 = vmax.f32 %v3979_v50, 0.0  ;;  %2001 = vst [vmem:[%s4773_s4 + $0xf0] sm:$0xff] %v2181_v42  ;;  %2002 = vst [vmem:[%s4773_s4 + $0xf8] sm:$0xff] %v2182_v12  ;;  %v5641_v13 = vld [vmem:[#allocation41_spill] sm:$0xff] }
 0x268   :  { %v2185_v56 = vpack.c.bf16 %v5626_v1, %v5625_v25  ;;  %v2186_v10 = vpack.c.bf16 %v5628_v18, %v5627_v23  ;;  %v5632_v40 = vmax.f32 %v3983_v52, 0.0  ;;  %v5634_v5 = vmax.f32 %v5633_v21, 0.0  ;;  %v5643_v50 = vld [vmem:[#allocation43_spill] sm:$0xff]  ;;  %2003 = vst [vmem:[%s4773_s4 + $0x100] sm:$0xff] %v2183_v41  ;;  %v5667_v42 = vld [vmem:[#allocation98_spill] sm:$0xff]  ;;  %v5675_v25 = vld [vmem:[#allocation61_spill] sm:$0xff] }
 0x269   :  { %v2187_v8 = vpack.c.bf16 %v5630_v29, %v5629_v36  ;;  %v5636_v6 = vmax.f32 %v5635_v38, 0.0  ;;  %v5638_v46 = vmax.f32 %v5637_v4, 0.0  ;;  %v5640_v30 = vmax.f32 %v5639_v59, 0.0  ;;  %2004 = vst [vmem:[%s4773_s4 + $0x108] sm:$0xff] %v2184_v37  ;;  %v5669_v12 = vld [vmem:[#allocation99_spill] sm:$0xff] }
 0x26a   :  { %v2188_v51 = vpack.c.bf16 %v5632_v40, %v5631_v58  ;;  %v5642_v34 = vmax.f32 %v5641_v13, 0.0  ;;  %v5644_v52 = vmax.f32 %v5643_v50, 0.0  ;;  %v5646_v27 = vmax.f32 %v5645_v22, 0.0  ;;  %2005 = vst [vmem:[%s4773_s4 + $0x110] sm:$0xff] %v2185_v56  ;;  %2006 = vst [vmem:[%s4773_s4 + $0x118] sm:$0xff] %v2186_v10  ;;  %v5673_v32 = vld [vmem:[#allocation59_spill] sm:$0xff] }
 0x26b   :  { %v2189_v15 = vpack.c.bf16 %v5636_v6, %v5634_v5  ;;  %v2190_v54 = vpack.c.bf16 %v5640_v30, %v5638_v46  ;;  %v5648_v3 = vmax.f32 %v5647_v26, 0.0  ;;  %v5650_v0 = vmax.f32 %v5649_v19, 0.0  ;;  %2007 = vst [vmem:[%s4773_s4 + $0x120] sm:$0xff] %v2187_v8  ;;  %v5677_v23 = vld [vmem:[#allocation63_spill] sm:$0xff]  ;;  %v5679_v10 = vld [vmem:[#allocation65_spill] sm:$0xff] }
 0x26c   :  { %v2191_v60 = vpack.c.bf16 %v5644_v52, %v5642_v34  ;;  %v5652_v28 = vmax.f32 %v5651_v31, 0.0  ;;  %v5654_v9 = vmax.f32 %v5653_v45, 0.0  ;;  %v5656_v44 = vmax.f32 %v5655_v33, 0.0  ;;  %2008 = vst [vmem:[%s4773_s4 + $0x128] sm:$0xff] %v2188_v51  ;;  %v5681_v8 = vld [vmem:[#allocation67_spill] sm:$0xff]  ;;  %v5683_v40 = vld [vmem:[#allocation69_spill] sm:$0xff] }
 0x26d   :  { %v2192_v2 = vpack.c.bf16 %v5648_v3, %v5646_v27  ;;  %v5658_v57 = vmax.f32 %v5657_v35, 0.0  ;;  %v5660_v7 = vmax.f32 %v5659_v17, 0.0  ;;  %v5662_v14 = vmax.f32 %v5661_v47, 0.0  ;;  %2009 = vst [vmem:[%s4773_s4 + $0x130] sm:$0xff] %v2189_v15  ;;  %2010 = vst [vmem:[%s4773_s4 + $0x138] sm:$0xff] %v2190_v54  ;;  %v5685_v5 = vld [vmem:[#allocation71_spill] sm:$0xff] }
 0x26e   :  { %v2193_v39 = vpack.c.bf16 %v5652_v28, %v5650_v0  ;;  %v2194_v24 = vpack.c.bf16 %v5656_v44, %v5654_v9  ;;  %v5664_v43 = vmax.f32 %v5663_v11, 0.0  ;;  %v5666_v62 = vmax.f32 %v5665_v48, 0.0  ;;  %v5687_v6 = vld [vmem:[#allocation73_spill] sm:$0xff]  ;;  %2011 = vst [vmem:[%s4773_s4 + $0x140] sm:$0xff] %v2191_v60  ;;  %v5689_v46 = vld [vmem:[#allocation75_spill] sm:$0xff]  ;;  %v5707_v44 = vld [vmem:[#allocation40_spill] sm:$0xff] }
 0x26f   :  { %v2195_v61 = vpack.c.bf16 %v5660_v7, %v5658_v57  ;;  %v5668_v55 = vmax.f32 %v5667_v42, 0.0  ;;  %v5670_v20 = vmax.f32 %v5669_v12, 0.0  ;;  %v5672_v41 = vmax.f32 %v5671_v53, 0.0  ;;  %2012 = vst [vmem:[%s4773_s4 + $0x148] sm:$0xff] %v2192_v2  ;;  %v5691_v30 = vld [vmem:[#allocation77_spill] sm:$0xff]  ;;  %v5693_v34 = vld [vmem:[#allocation79_spill] sm:$0xff] }
 0x270   :  { %v2196_v49 = vpack.c.bf16 %v5664_v43, %v5662_v14  ;;  %v5674_v37 = vmax.f32 %v5673_v32, 0.0  ;;  %v5676_v1 = vmax.f32 %v5675_v25, 0.0  ;;  %v5678_v18 = vmax.f32 %v5677_v23, 0.0  ;;  %2013 = vst [vmem:[%s4773_s4 + $0x150] sm:$0xff] %v2193_v39  ;;  %2014 = vst [vmem:[%s4773_s4 + $0x158] sm:$0xff] %v2194_v24  ;;  %v5695_v52 = vld [vmem:[#allocation81_spill] sm:$0xff] }
 0x271   :  { %v2197_v63 = vpack.c.bf16 %v5668_v55, %v5666_v62  ;;  %v2198_v16 = vpack.c.bf16 %v5672_v41, %v5670_v20  ;;  %v5680_v36 = vmax.f32 %v5679_v10, 0.0  ;;  %v5682_v58 = vmax.f32 %v5681_v8, 0.0  ;;  %v5697_v27 = vld [vmem:[#allocation83_spill] sm:$0xff]  ;;  %v5699_v3 = vld [vmem:[#allocation85_spill] sm:$0xff]  ;;  %2015 = vst [vmem:[%s4773_s4 + $0x160] sm:$0xff] %v2195_v61  ;;  %v5709_v57 = vld [vmem:[#allocation42_spill] sm:$0xff] }
 0x272   :  { %v2199_v56 = vpack.c.bf16 %v5676_v1, %v5674_v37  ;;  %v5684_v51 = vmax.f32 %v5683_v40, 0.0  ;;  %v5686_v38 = vmax.f32 %v5685_v5, 0.0  ;;  %v5688_v15 = vmax.f32 %v5687_v6, 0.0  ;;  %v5701_v0 = vld [vmem:[#allocation87_spill] sm:$0xff]  ;;  %v5703_v28 = vld [vmem:[#allocation89_spill] sm:$0xff]  ;;  %2016 = vst [vmem:[%s4773_s4 + $0x168] sm:$0xff] %v2196_v49 }
 0x273   :  { %v2200_v29 = vpack.c.bf16 %v5680_v36, %v5678_v18  ;;  %v5690_v59 = vmax.f32 %v5689_v46, 0.0  ;;  %v5692_v54 = vmax.f32 %v5691_v30, 0.0  ;;  %v5694_v50 = vmax.f32 %v5693_v34, 0.0  ;;  %2017 = vst [vmem:[%s4773_s4 + $0x170] sm:$0xff] %v2197_v63  ;;  %2018 = vst [vmem:[%s4773_s4 + $0x178] sm:$0xff] %v2198_v16  ;;  %v5705_v9 = vld [vmem:[#allocation91_spill] sm:$0xff] }
 0x274   :  { %v2201_v21 = vpack.c.bf16 %v5684_v51, %v5682_v58  ;;  %v2202_v4 = vpack.c.bf16 %v5688_v15, %v5686_v38  ;;  %v5696_v60 = vmax.f32 %v5695_v52, 0.0  ;;  %v5698_v26 = vmax.f32 %v5697_v27, 0.0  ;;  %v5711_v7 = vld [vmem:[#allocation44_spill] sm:$0xff]  ;;  %v5713_v14 = vld [vmem:[#allocation46_spill] sm:$0xff]  ;;  %2019 = vst [vmem:[%s4773_s4 + $0x180] sm:$0xff] %v2199_v56  ;;  %v5731_v36 = vld [vmem:[#allocation101_spill] sm:$0xff] }
 0x275   :  { %v2203_v13 = vpack.c.bf16 %v5692_v54, %v5690_v59  ;;  %v5700_v2 = vmax.f32 %v5699_v3, 0.0  ;;  %v5702_v31 = vmax.f32 %v5701_v0, 0.0  ;;  %v5704_v39 = vmax.f32 %v5703_v28, 0.0  ;;  %v5715_v43 = vld [vmem:[#allocation48_spill] sm:$0xff]  ;;  %v5717_v62 = vld [vmem:[#allocation50_spill] sm:$0xff]  ;;  %2020 = vst [vmem:[%s4773_s4 + $0x188] sm:$0xff] %v2200_v29 }
 0x276   :  { %v2204_v22 = vpack.c.bf16 %v5696_v60, %v5694_v50  ;;  %v5706_v33 = vmax.f32 %v5705_v9, 0.0  ;;  %v5708_v24 = vmax.f32 %v5707_v44, 0.0  ;;  %v5710_v17 = vmax.f32 %v5709_v57, 0.0  ;;  %v5719_v55 = vld [vmem:[#allocation52_spill] sm:$0xff]  ;;  %2021 = vst [vmem:[%s4773_s4 + $0x190] sm:$0xff] %v2201_v21  ;;  %2022 = vst [vmem:[%s4773_s4 + $0x198] sm:$0xff] %v2202_v4 }
 0x277   :  { %v2205_v19 = vpack.c.bf16 %v5700_v2, %v5698_v26  ;;  %v2206_v45 = vpack.c.bf16 %v5704_v39, %v5702_v31  ;;  %v5712_v61 = vmax.f32 %v5711_v7, 0.0  ;;  %v5714_v11 = vmax.f32 %v5713_v14, 0.0  ;;  %v5721_v20 = vld [vmem:[#allocation54_spill] sm:$0xff]  ;;  %v5723_v41 = vld [vmem:[#allocation56_spill] sm:$0xff]  ;;  %v5735_v51 = vld [vmem:[#allocation103_spill] sm:$0xff]  ;;  %2023 = vst [vmem:[%s4773_s4 + $0x1a0] sm:$0xff] %v2203_v13 }
 0x278   :  { %v2207_v35 = vpack.c.bf16 %v5708_v24, %v5706_v33  ;;  %v5716_v49 = vmax.f32 %v5715_v43, 0.0  ;;  %v5718_v42 = vmax.f32 %v5717_v62, 0.0  ;;  %v5720_v63 = vmax.f32 %v5719_v55, 0.0  ;;  %v5725_v37 = vld [vmem:[#allocation58_spill] sm:$0xff]  ;;  %v5727_v1 = vld [vmem:[#allocation100_spill] sm:$0xff]  ;;  %2024 = vst [vmem:[%s4773_s4 + $0x1a8] sm:$0xff] %v2204_v22 }
 0x279   :  { %v2208_v47 = vpack.c.bf16 %v5712_v61, %v5710_v17  ;;  %v5722_v53 = vmax.f32 %v5721_v20, 0.0  ;;  %v5724_v16 = vmax.f32 %v5723_v41, 0.0  ;;  %v5726_v25 = vmax.f32 %v5725_v37, 0.0  ;;  %v5729_v18 = vld [vmem:[#allocation60_spill] sm:$0xff]  ;;  %v5733_v58 = vld [vmem:[#allocation102_spill] sm:$0xff]  ;;  %2025 = vst [vmem:[%s4773_s4 + $0x1b0] sm:$0xff] %v2205_v19 }
 0x27a   :  { %v2209_v48 = vpack.c.bf16 %v5716_v49, %v5714_v11  ;;  %v2210_v12 = vpack.c.bf16 %v5720_v63, %v5718_v42  ;;  %v5728_v56 = vmax.f32 %v5727_v1, 0.0  ;;  %v5730_v10 = vmax.f32 %v5729_v18, 0.0  ;;  %2026 = vst [vmem:[%s4773_s4 + $0x1b8] sm:$0xff] %v2206_v45  ;;  %2027 = vst [vmem:[%s4773_s4 + $0x1c0] sm:$0xff] %v2207_v35 }
 0x27b   :  { %v2211_v32 = vpack.c.bf16 %v5724_v16, %v5722_v53  ;;  %v5732_v29 = vmax.f32 %v5731_v36, 0.0  ;;  %v5734_v40 = vmax.f32 %v5733_v58, 0.0  ;;  %v5736_v21 = vmax.f32 %v5735_v51, 0.0  ;;  %2028 = vst [vmem:[%s4773_s4 + $0x1c8] sm:$0xff] %v2208_v47 }
 0x27c   :  { %v2212_v23 = vpack.c.bf16 %v5728_v56, %v5726_v25  ;;  %2029 = vst [vmem:[%s4773_s4 + $0x1d0] sm:$0xff] %v2209_v48  ;;  %2030 = vst [vmem:[%s4773_s4 + $0x1d8] sm:$0xff] %v2210_v12 }
 0x27d   :  { %v2213_v8 = vpack.c.bf16 %v5732_v29, %v5730_v10  ;;  %v2214_v5 = vpack.c.bf16 %v5736_v21, %v5734_v40  ;;  %2031 = vst [vmem:[%s4773_s4 + $0x1e0] sm:$0xff] %v2211_v32 }
 0x27e   :  { %2032 = vst [vmem:[%s4773_s4 + $0x1e8] sm:$0xff] %v2212_v23 }
 0x27f   :  { %2033 = vst [vmem:[%s4773_s4 + $0x1f0] sm:$0xff] %v2213_v8  ;;  %2034 = vst [vmem:[%s4773_s4 + $0x1f8] sm:$0xff] %v2214_v5 }

// kernel: exercise_model_forward.3
= control target key start
LH: loop header
LB: loop body
LE: loop exit
PB: predicated region body
PF: predicated region fallthrough
CT: control target
= control target key end

     0   :  { %8 = vsyncpa [#allocation3], 0  ;;  %s15508_s12 = smov 0   ;;  %s16850_s0 = inlined_call_operand.vmem [shape: bf16[2,65536], index: 0, kind: input, shape index: {}]   ;;  %s16851_s1 = inlined_call_operand.vmem [shape: bf16[65536,64], index: 1, kind: input, shape index: {}]   ;;  %s16852_s2 = inlined_call_operand.vmem [shape: f32[1,64], index: 2, kind: input, shape index: {}]   ;;  %s16853_s3 = inlined_call_operand.hbm [shape: f32[2,64], index: 3, kind: output, shape index: {}]  }
   0x1 LB: > { %s15514_s13 = sadd.s32 4294967295, %s15484_s12   ;;  %p11950_p0 = scmp.ge.s32.totalorder %s15484_s12, 1  ;;  %s15484_s12 = sphi %s15508_s12, %s14_s12  }
   0x2   : > { %p144_p1 = scmp.lt.s32.totalorder %s15484_s12, 5 }
   0x4   : > { %p145_p2 = pnand %p11950_p0, %p144_p1 }
   0x5   : > { %s11951_s14 = sshll.u32 (!%p145_p2), %s15514_s13, 7  ;;  %s11952_s15 = sshll.u32 (!%p145_p2), %s15514_s13, 11 }
   0x6   : > { %148 = sbr.rel (%p145_p2) target bundleno = 1284 (0x504), region = 32  ;;  %p168_p3 = scmp.lt.s32.totalorder (!%p145_p2), %s11951_s14, 511 }
   0x7   : > { %p173_p4 = scmp.lt.s32.totalorder (!%p145_p2), %s11952_s15, 8191  ;;  %p11954_p5 = scmp.ne.s32.totalorder (!%p145_p2), %s15514_s13, 0 }
   0xd   : > { %s16855_s14 = smov (!%p168_p3, %s11951_s14), 511  ;;  %s16857_s15 = smov (!%p173_p4, %s11952_s15), 8191 }
   0xe   : > { %s15523_s18 = scalar_lea.vmem %s16850_s0, %s16855_s14  ;;  %s11953_s19 = sshll.u32 %s16857_s15, 2  ;;  %v11955_v0 = vld [vmem:[%s16852_s2] ss:$0 sm:$0xff] (!%p11954_p5)  ;;  %vm190_vm0 = vcmask (!%p11954_p5), 517120  }
   0xf   : > { %s15528_s22 = scalar_lea.vmem %s16851_s1, %s11953_s19  ;;  %182 = sbr.rel (%p11954_p5) target bundleno = 22 (0x16), region = 36  ;;  %191 = vst.msk [vmem:[#allocation2] sm:$0x3] (!%p11954_p5), %vm190_vm0, %v11955_v0 }
  0x16 PF: > { %v14408_v1 = vld [vmem:[%s15528_s22 + $0x40] sm:$0xff]   ;;  %v14412_v5 = vld [vmem:[%s15528_s22 + $0x48] sm:$0xff]   ;;  %v14416_v9 = vld [vmem:[%s15528_s22 + $0x50] sm:$0xff]   ;;  %v2277_v29 = vlaneseq  ;;  %v15486_v37 = vmov 1966171168   ;;  %s15487_s25 = smov [#allocation2]  }
  0x17   : > { %v14409_v2 = vld [vmem:[%s15528_s22 + $0xc0] sm:$0xff]   ;;  %12984 = vmatprep.subr.bf16.mxu0 %v14408_v1  ;;  %v14413_v6 = vld [vmem:[%s15528_s22 + $0xc8] sm:$0xff]   ;;  %v14417_v10 = vld [vmem:[%s15528_s22 + $0xd0] sm:$0xff]   ;;  %v2275_v38 = vunpack.c.l.s4 %v15486_v37  ;;  %s11899_s26 = sshll.u32 %s15487_s25, 4  ;;  %vm11890_vm1 = vcmask 517120   ;;  %p14396_p6 = scmp.eq.s32.totalorder %s15514_s13, 3  ;;  %s11900_s26 = int_to_ptr.vmem [resolvable:$true] %s11899_s26 }
  0x18   : > { %v14410_v3 = vld [vmem:[%s15528_s22] sm:$0xff]   ;;  %13006 = vmatprep.subr.bf16.mxu1 %v14409_v2  ;;  %v14414_v7 = vld [vmem:[%s15528_s22 + $0x8] sm:$0xff]   ;;  %v14418_v11 = vld [vmem:[%s15528_s22 + $0x10] sm:$0xff]   ;;  %v2278_v34 = vshrl.u32 %v2277_v29, 7  ;;  %s15448_s27 = scalar_lea.vmem %s11900_s26, 32  ;;  %p15455_p10 = scmp.lt.s32.totalorder %s11900_s26, %s11900_s26 }
  0x19   : > { %v14411_v4 = vld [vmem:[%s15528_s22 + $0x80] sm:$0xff]   ;;  %12985 = vmatpush3.bf16.msra.mxu0 %v14410_v3  ;;  %v14415_v8 = vld [vmem:[%s15528_s22 + $0x88] sm:$0xff]   ;;  %v14419_v12 = vld [vmem:[%s15528_s22 + $0x90] sm:$0xff]   ;;  %v2276_v41 = vunpack.c.0.s8 %v2275_v38  ;;  %p15449_p7 = scmp.ne.s32.totalorder %s11900_s26, %s15448_s27  ;;  %p15456_p11 = scmp.lt.s32.totalorder %s15448_s27, %s15448_s27 }
  0x1a   : > { %13007 = vmatpush3.bf16.msra.mxu1 %v14411_v4  ;;  %12986 = vmatprep.subr.bf16.mxu0 %v14412_v5  ;;  %v14420_v13 = vld [vmem:[%s15528_s22 + $0x58] sm:$0xff]   ;;  %v14424_v17 = vld [vmem:[%s15528_s22 + $0x60] sm:$0xff]   ;;  %v14428_v21 = vld [vmem:[%s15528_s22 + $0x68] sm:$0xff]  }
  0x1b   : > { %13008 = vmatprep.subr.bf16.mxu1 %v14413_v6  ;;  %v14421_v14 = vld [vmem:[%s15528_s22 + $0xd8] sm:$0xff]   ;;  %v14425_v18 = vld [vmem:[%s15528_s22 + $0xe0] sm:$0xff]   ;;  %v14429_v22 = vld [vmem:[%s15528_s22 + $0xe8] sm:$0xff]   ;;  %v15569_v42 = vsub.s32 %v2276_v41, %v2278_v34  ;;  %p15450_p8 = pnand %p15449_p7, %p14396_p6  ;;  %p15457_p12 = por %p15456_p11, %p15455_p10 }
  0x1c   : > { %v14422_v15 = vld [vmem:[%s15528_s22 + $0x18] sm:$0xff]   ;;  %v14426_v19 = vld [vmem:[%s15528_s22 + $0x20] sm:$0xff]   ;;  %v14430_v23 = vld [vmem:[%s15528_s22 + $0x28] sm:$0xff]  }
  0x1d   : > { %12987 = vmatpush3.bf16.msra.mxu0 %v14414_v7  ;;  %v14423_v16 = vld [vmem:[%s15528_s22 + $0x98] sm:$0xff]   ;;  %v14427_v20 = vld [vmem:[%s15528_s22 + $0xa0] sm:$0xff]   ;;  %v14431_v24 = vld [vmem:[%s15528_s22 + $0xa8] sm:$0xff]   ;;  %p15451_p9 = pneg %p15450_p8 }
  0x1e   : > { %13009 = vmatpush3.bf16.msra.mxu1 %v14415_v8  ;;  %12988 = vmatprep.subr.bf16.mxu0 %v14416_v9  ;;  %v14432_v25 = vld [vmem:[%s15528_s22 + $0x70] sm:$0xff]   ;;  %v14436_v30 = vld [vmem:[%s15528_s22 + $0x78] sm:$0xff]   ;;  %v193_v35 = vld [vmem:[%s15523_s18] sm:$0xff] }
  0x1f   : > { %13010 = vmatprep.subr.bf16.mxu1 %v14417_v10  ;;  %v14433_v26 = vld [vmem:[%s15528_s22 + $0xf0] sm:$0xff]   ;;  %v14437_v31 = vld [vmem:[%s15528_s22 + $0xf8] sm:$0xff]   ;;  %v14441_v36 = vld [vmem:[%s15528_s22 + $0x140] sm:$0xff]   ;;  %v2273_v40 = vcombine.high %v193_v35, %v193_v35  ;;  %v2280_v43 = vrot.slane %v193_v35, %v15569_v42  ;;  %p15458_p13 = pnand %p15457_p12, %p15451_p9 }
  0x20   : > { %v14434_v27 = vld [vmem:[%s15528_s22 + $0x30] sm:$0xff]   ;;  %v14438_v32 = vld [vmem:[%s15528_s22 + $0x38] sm:$0xff]   ;;  %v14442_v39 = vld [vmem:[%s15528_s22 + $0x1c0] sm:$0xff]  }
  0x21   : > { %12989 = vmatpush3.bf16.msra.mxu0 %v14418_v11  ;;  %v14435_v28 = vld [vmem:[%s15528_s22 + $0xb0] sm:$0xff]   ;;  %v14439_v33 = vld [vmem:[%s15528_s22 + $0xb8] sm:$0xff]   ;;  %v15573_v44 = vrot.slane %v2273_v40, %v15569_v42  ;;  %v2288_v45 = vcombine.high %v2280_v43, %v2280_v43  ;;  %v2296_v46 = vrot.slane %v2280_v43, %v15569_v42  ;;  %v14443_v48 = vld [vmem:[%s15528_s22 + $0x100] sm:$0xff]  }
  0x22   : > { %13011 = vmatpush3.bf16.msra.mxu1 %v14419_v12  ;;  %12990 = vmatprep.subr.bf16.mxu0 %v14420_v13  ;;  %v14444_v50 = vld [vmem:[%s15528_s22 + $0x180] sm:$0xff]   ;;  %v14445_v53 = vld [vmem:[%s15528_s22 + $0x148] sm:$0xff]   ;;  %v14449_v59 = vld [vmem:[%s15528_s22 + $0x150] sm:$0xff]  }
  0x23   : > { %13012 = vmatprep.subr.bf16.mxu1 %v14421_v14  ;;  %v2289_v47 = vcombine.high %v15573_v44, %v15573_v44  ;;  %v2310_v49 = vrot.slane %v2288_v45, %v15569_v42  ;;  %v2318_v52 = vcombine.high %v2296_v46, %v2296_v46  ;;  %v14446_v55 = vld [vmem:[%s15528_s22 + $0x1c8] sm:$0xff]   ;;  %v14450_v60 = vld [vmem:[%s15528_s22 + $0x1d0] sm:$0xff]   ;;  %v14453_v63 = vld [vmem:[%s15528_s22 + $0x158] sm:$0xff]  }
  0x24   : > { %v14447_v56 = vld [vmem:[%s15528_s22 + $0x108] sm:$0xff]   ;;  %v14451_v61 = vld [vmem:[%s15528_s22 + $0x110] sm:$0xff]   ;;  %v14454_v0 = vld [vmem:[%s15528_s22 + $0x1d8] sm:$0xff]  }
  0x25   : > { %12991 = vmatpush3.bf16.msra.mxu0 %v14422_v15  ;;  %v2317_v51 = vrot.slane %v2289_v47, %v15569_v42  ;;  %9361 = vmatprep.mubr.bf16.mxu0 %v2310_v49  ;;  %v2320_v54 = vcombine.high %v2310_v49, %v2310_v49  ;;  %v14448_v58 = vld [vmem:[%s15528_s22 + $0x188] sm:$0xff]   ;;  %v14452_v62 = vld [vmem:[%s15528_s22 + $0x190] sm:$0xff]   ;;  %v14455_v1 = vld [vmem:[%s15528_s22 + $0x118] sm:$0xff]  }
  0x26   : > { %13013 = vmatpush3.bf16.msra.mxu1 %v14423_v16  ;;  %12992 = vmatprep.subr.bf16.mxu0 %v14424_v17  ;;  %v14456_v2 = vld [vmem:[%s15528_s22 + $0x198] sm:$0xff]   ;;  %v14457_v3 = vld [vmem:[%s15528_s22 + $0x160] sm:$0xff]   ;;  %v14461_v7 = vld [vmem:[%s15528_s22 + $0x168] sm:$0xff]  }
  0x27   : > { %13014 = vmatprep.subr.bf16.mxu1 %v14425_v18  ;;  %v2321_v57 = vcombine.high %v2317_v51, %v2317_v51  ;;  %9401 = vmatprep.mubr.bf16.mxu1 %v2320_v54  ;;  %v14458_v4 = vld [vmem:[%s15528_s22 + $0x1e0] sm:$0xff]   ;;  %v14462_v8 = vld [vmem:[%s15528_s22 + $0x1e8] sm:$0xff]   ;;  %v14465_v11 = vld [vmem:[%s15528_s22 + $0x170] sm:$0xff]  }
  0x28   : > { %v14459_v5 = vld [vmem:[%s15528_s22 + $0x120] sm:$0xff]   ;;  %v14463_v9 = vld [vmem:[%s15528_s22 + $0x128] sm:$0xff]   ;;  %v14466_v12 = vld [vmem:[%s15528_s22 + $0x1f0] sm:$0xff]  }
  0x29   : > { %12993 = vmatpush3.bf16.msra.mxu0 %v14426_v19  ;;  %v14460_v6 = vld [vmem:[%s15528_s22 + $0x1a0] sm:$0xff]   ;;  %v14464_v10 = vld [vmem:[%s15528_s22 + $0x1a8] sm:$0xff]   ;;  %v14467_v13 = vld [vmem:[%s15528_s22 + $0x130] sm:$0xff]   ;;  %v2303_v19 = vrot.slane %v15573_v44, %v15569_v42 }
  0x2a   : > { %13015 = vmatpush3.bf16.msra.mxu1 %v14427_v20  ;;  %12994 = vmatprep.subr.bf16.mxu0 %v14428_v21  ;;  %v14468_v14 = vld [vmem:[%s15528_s22 + $0x1b0] sm:$0xff]   ;;  %v14469_v15 = vld [vmem:[%s15528_s22 + $0x178] sm:$0xff]   ;;  %v14473_v20 = vld [vmem:[%s15528_s22 + $0x240] sm:$0xff]  }
  0x2b   : > { %13016 = vmatprep.subr.bf16.mxu1 %v14429_v22  ;;  %v14470_v16 = vld [vmem:[%s15528_s22 + $0x1f8] sm:$0xff]   ;;  %v14474_v21 = vld [vmem:[%s15528_s22 + $0x2c0] sm:$0xff]   ;;  %v14481_v29 = vld [vmem:[%s15528_s22 + $0x250] sm:$0xff]  }
  0x2c   : > { %v14471_v17 = vld [vmem:[%s15528_s22 + $0x138] sm:$0xff]   ;;  %v14475_v22 = vld [vmem:[%s15528_s22 + $0x200] sm:$0xff]   ;;  %v14493_v41 = vld [vmem:[%s15528_s22 + $0x268] sm:$0xff]  }
  0x2d   : > { %12995 = vmatpush3.bf16.msra.mxu0 %v14430_v23  ;;  %v14472_v18 = vld [vmem:[%s15528_s22 + $0x1b8] sm:$0xff]   ;;  %v14476_v23 = vld [vmem:[%s15528_s22 + $0x280] sm:$0xff]   ;;  %v14494_v43 = vld [vmem:[%s15528_s22 + $0x2e8] sm:$0xff]  }
  0x2e   : > { %13017 = vmatpush3.bf16.msra.mxu1 %v14431_v24  ;;  %12996 = vmatprep.subr.bf16.mxu0 %v14432_v25  ;;  %v2319_v24 = vcombine.high %v2303_v19, %v2303_v19  ;;  %v14477_v25 = vld [vmem:[%s15528_s22 + $0x248] sm:$0xff]   ;;  %v14486_v34 = vld [vmem:[%s15528_s22 + $0x2d8] sm:$0xff]   ;;  %v14489_v37 = vld [vmem:[%s15528_s22 + $0x260] sm:$0xff]  }
  0x2f   : > { %13018 = vmatprep.subr.bf16.mxu1 %v14433_v26  ;;  %v14478_v26 = vld [vmem:[%s15528_s22 + $0x2c8] sm:$0xff]   ;;  %v14487_v35 = vld [vmem:[%s15528_s22 + $0x218] sm:$0xff]   ;;  %v14490_v38 = vld [vmem:[%s15528_s22 + $0x2e0] sm:$0xff]  }
  0x30   : > { %v14492_v40 = vld [vmem:[%s15528_s22 + $0x2a0] sm:$0xff]   ;;  %v14495_v44 = vld [vmem:[%s15528_s22 + $0x228] sm:$0xff]  }
  0x31   : > { %12997 = vmatpush3.bf16.msra.mxu0 %v14434_v27  ;;  %v14479_v27 = vld [vmem:[%s15528_s22 + $0x208] sm:$0xff]  }
  0x32   : > { %13019 = vmatpush3.bf16.msra.mxu1 %v14435_v28  ;;  %12998 = vmatprep.subr.bf16.mxu0 %v14436_v30  ;;  %v14480_v28 = vld [vmem:[%s15528_s22 + $0x288] sm:$0xff]   ;;  %v14482_v30 = vld [vmem:[%s15528_s22 + $0x2d0] sm:$0xff]  }
  0x33   : > { %13020 = vmatprep.subr.bf16.mxu1 %v14437_v31  ;;  %v14483_v31 = vld [vmem:[%s15528_s22 + $0x210] sm:$0xff]   ;;  %v14496_v45 = vld [vmem:[%s15528_s22 + $0x2a8] sm:$0xff]  }
  0x34   : > { %v194_v47 = vld [vmem:[%s15523_s18 + $0x8] sm:$0xff] }
  0x35   : > { %12999 = vmatpush3.bf16.msra.mxu0 %v14438_v32  ;;  %v14484_v32 = vld [vmem:[%s15528_s22 + $0x290] sm:$0xff]   ;;  %v2329_v49 = vrot.slane %v194_v47, %v15569_v42 }
  0x36   : > { %13021 = vmatpush3.bf16.msra.mxu1 %v14439_v33  ;;  %13028 = vmatprep.subr.bf16.mxu0 %v14441_v36  ;;  %v14485_v33 = vld [vmem:[%s15528_s22 + $0x258] sm:$0xff]  }
  0x37   : > { %13050 = vmatprep.subr.bf16.mxu1 %v14442_v39  ;;  %v14488_v36 = vld [vmem:[%s15528_s22 + $0x298] sm:$0xff]   ;;  %v14491_v39 = vld [vmem:[%s15528_s22 + $0x220] sm:$0xff]  }
  0x38   : > { %9362 = vmatmul.mubr.bf16.vlgmr.msra.gmra.mrb[0].mxu0 %v2296_v46  ;;  %v14497_v46 = vld [vmem:[%s15528_s22 + $0x270] sm:$0xff]  }
  0x39   : > { %13029 = vmatpush3.bf16.msra.mxu0 %v14443_v48  ;;  %9402 = vmatmul.mubr.bf16.vlgmr.msra.gmra.mrb[0].mxu1 %v2318_v52  ;;  %v14498_v48 = vld [vmem:[%s15528_s22 + $0x2f0] sm:$0xff]  }
  0x3a   : > { %13030 = vmatprep.subr.bf16.mxu0 %v14445_v53  ;;  %13051 = vmatpush3.bf16.msra.mxu1 %v14444_v50  ;;  %v2322_v50 = vcombine.high %v194_v47, %v194_v47  ;;  %v14500_v52 = vld [vmem:[%s15528_s22 + $0x2b0] sm:$0xff]   ;;  %v2337_v53 = vcombine.high %v2329_v49, %v2329_v49 }
  0x3b   : > { %9441 = vmatprep.mubr.bf16.mxu0 %v2317_v51  ;;  %13052 = vmatprep.subr.bf16.mxu1 %v14446_v55  ;;  %v14499_v51 = vld [vmem:[%s15528_s22 + $0x230] sm:$0xff]   ;;  %v14501_v55 = vld [vmem:[%s15528_s22 + $0x278] sm:$0xff]  }
  0x3c   : > { %9481 = vmatprep.mubr.bf16.mxu1 %v2321_v57  ;;  %v15643_v54 = vrot.slane %v2322_v50, %v15569_v42  ;;  %v2359_v57 = vrot.slane %v2337_v53, %v15569_v42  ;;  %v14548_v47 = vld [vmem:[%s15528_s22 + $0x410] sm:$0xff]   ;;  %v14551_v50 = vld [vmem:[%s15528_s22 + $0x4d8] sm:$0xff]   ;;  %v14554_v53 = vld [vmem:[%s15528_s22 + $0x460] sm:$0xff]  }
  0x3d   : > { %13031 = vmatpush3.bf16.msra.mxu0 %v14447_v56  ;;  %v14502_v56 = vld [vmem:[%s15528_s22 + $0x2f8] sm:$0xff]  }
  0x3e   : > { %13032 = vmatprep.subr.bf16.mxu0 %v14449_v59  ;;  %13053 = vmatpush3.bf16.msra.mxu1 %v14448_v58  ;;  %v2338_v58 = vcombine.high %v15643_v54, %v15643_v54  ;;  %v14503_v59 = vld [vmem:[%s15528_s22 + $0x238] sm:$0xff]  }
  0x3f   : > { %13054 = vmatprep.subr.bf16.mxu1 %v14450_v60  ;;  %v14504_v60 = vld [vmem:[%s15528_s22 + $0x2b8] sm:$0xff]  }
  0x41   : > { %13033 = vmatpush3.bf16.msra.mxu0 %v14451_v61  ;;  %v2369_v61 = vcombine.high %v2359_v57, %v2359_v57 }
  0x42   : > { %13034 = vmatprep.subr.bf16.mxu0 %v14453_v63  ;;  %13055 = vmatpush3.bf16.msra.mxu1 %v14452_v62  ;;  %v2345_v62 = vrot.slane %v2329_v49, %v15569_v42  ;;  %v14505_v63 = vld [vmem:[%s15528_s22 + $0x340] sm:$0xff]   ;;  %v14550_v49 = vld [vmem:[%s15528_s22 + $0x458] sm:$0xff]  }
  0x43   : > { %13056 = vmatprep.subr.bf16.mxu1 %v14454_v0  ;;  %v14506_v0 = vld [vmem:[%s15528_s22 + $0x3c0] sm:$0xff]  }
  0x45   : > { %13035 = vmatpush3.bf16.msra.mxu0 %v14455_v1  ;;  %v2366_v1 = vrot.slane %v2338_v58, %v15569_v42  ;;  %v14559_v58 = vld [vmem:[%s15528_s22 + $0x4e8] sm:$0xff]  }
  0x46   : > { %13036 = vmatprep.subr.bf16.mxu0 %v14457_v3  ;;  %13057 = vmatpush3.bf16.msra.mxu1 %v14456_v2  ;;  %v14507_v2 = vld [vmem:[%s15528_s22 + $0x300] sm:$0xff]  }
  0x47   : > { %13058 = vmatprep.subr.bf16.mxu1 %v14458_v4  ;;  %v14508_v3 = vld [vmem:[%s15528_s22 + $0x380] sm:$0xff]   ;;  %v2367_v4 = vcombine.high %v2345_v62, %v2345_v62 }
  0x49   : > { %13037 = vmatpush3.bf16.msra.mxu0 %v14459_v5  ;;  %v14509_v5 = vld [vmem:[%s15528_s22 + $0x348] sm:$0xff]  }
  0x4a   : > { %13038 = vmatprep.subr.bf16.mxu0 %v14461_v7  ;;  %13059 = vmatpush3.bf16.msra.mxu1 %v14460_v6  ;;  %v14510_v6 = vld [vmem:[%s15528_s22 + $0x3c8] sm:$0xff]   ;;  %v2370_v7 = vcombine.high %v2366_v1, %v2366_v1 }
  0x4b   : > { %13060 = vmatprep.subr.bf16.mxu1 %v14462_v8  ;;  %v14511_v8 = vld [vmem:[%s15528_s22 + $0x308] sm:$0xff]  }
  0x4d   : > { %13039 = vmatpush3.bf16.msra.mxu0 %v14463_v9  ;;  %v14512_v9 = vld [vmem:[%s15528_s22 + $0x388] sm:$0xff]  }
  0x4e   : > { %13040 = vmatprep.subr.bf16.mxu0 %v14465_v11  ;;  %13061 = vmatpush3.bf16.msra.mxu1 %v14464_v10  ;;  %v14513_v10 = vld [vmem:[%s15528_s22 + $0x350] sm:$0xff]  }
  0x4f   : > { %13062 = vmatprep.subr.bf16.mxu1 %v14466_v12  ;;  %v14514_v11 = vld [vmem:[%s15528_s22 + $0x3d0] sm:$0xff]  }
  0x50   : > { %v14515_v12 = vld [vmem:[%s15528_s22 + $0x310] sm:$0xff]  }
  0x51   : > { %13041 = vmatpush3.bf16.msra.mxu0 %v14467_v13  ;;  %v14516_v13 = vld [vmem:[%s15528_s22 + $0x390] sm:$0xff]  }
  0x52   : > { %13042 = vmatprep.subr.bf16.mxu0 %v14469_v15  ;;  %13063 = vmatpush3.bf16.msra.mxu1 %v14468_v14  ;;  %v14517_v14 = vld [vmem:[%s15528_s22 + $0x358] sm:$0xff]  }
  0x53   : > { %13064 = vmatprep.subr.bf16.mxu1 %v14470_v16  ;;  %v14518_v15 = vld [vmem:[%s15528_s22 + $0x3d8] sm:$0xff]  }
  0x54   : > { %v14519_v16 = vld [vmem:[%s15528_s22 + $0x318] sm:$0xff]  }
  0x55   : > { %13043 = vmatpush3.bf16.msra.mxu0 %v14471_v17  ;;  %v14520_v17 = vld [vmem:[%s15528_s22 + $0x398] sm:$0xff]  }
  0x56   : > { %13072 = vmatprep.subr.bf16.mxu0 %v14473_v20  ;;  %13065 = vmatpush3.bf16.msra.mxu1 %v14472_v18  ;;  %v14521_v18 = vld [vmem:[%s15528_s22 + $0x360] sm:$0xff]  }
  0x57   : > { %13094 = vmatprep.subr.bf16.mxu1 %v14474_v21  ;;  %v14523_v20 = vld [vmem:[%s15528_s22 + $0x320] sm:$0xff]  }
  0x58   : > { %9442 = vmatmul.mubr.bf16.vlgmr.msra.gmra.mrb[4].mxu0 %v2303_v19  ;;  %v14522_v19 = vld [vmem:[%s15528_s22 + $0x3e0] sm:$0xff]  }
  0x59   : > { %13073 = vmatpush3.bf16.msra.mxu0 %v14475_v22  ;;  %9482 = vmatmul.mubr.bf16.vlgmr.msra.gmra.mrb[4].mxu1 %v2319_v24  ;;  %v14524_v21 = vld [vmem:[%s15528_s22 + $0x3a0] sm:$0xff]   ;;  %v14525_v22 = vld [vmem:[%s15528_s22 + $0x368] sm:$0xff]  }
  0x5a   : > { %13074 = vmatprep.subr.bf16.mxu0 %v14477_v25  ;;  %13095 = vmatpush3.bf16.msra.mxu1 %v14476_v23  ;;  %v14526_v23 = vld [vmem:[%s15528_s22 + $0x3e8] sm:$0xff]  }
  0x5b   : > { %13096 = vmatprep.subr.bf16.mxu1 %v14478_v26  ;;  %9521 = vmatprep.mubr.bf16.mxu0 %v2359_v57  ;;  %v14527_v24 = vld [vmem:[%s15528_s22 + $0x328] sm:$0xff]   ;;  %v14529_v26 = vld [vmem:[%s15528_s22 + $0x370] sm:$0xff]  }
  0x5c   : > { %9561 = vmatprep.mubr.bf16.mxu1 %v2369_v61  ;;  %v14528_v25 = vld [vmem:[%s15528_s22 + $0x3a8] sm:$0xff]   ;;  %v14562_v61 = vld [vmem:[%s15528_s22 + $0x470] sm:$0xff]  }
  0x5d   : > { %13075 = vmatpush3.bf16.msra.mxu0 %v14479_v27  ;;  %v14530_v27 = vld [vmem:[%s15528_s22 + $0x3f0] sm:$0xff]   ;;  %v14558_v57 = vld [vmem:[%s15528_s22 + $0x468] sm:$0xff]  }
  0x5e   : > { %13076 = vmatprep.subr.bf16.mxu0 %v14481_v29  ;;  %13097 = vmatpush3.bf16.msra.mxu1 %v14480_v28  ;;  %v14531_v28 = vld [vmem:[%s15528_s22 + $0x330] sm:$0xff]  }
  0x5f   : > { %13098 = vmatprep.subr.bf16.mxu1 %v14482_v30  ;;  %v14532_v29 = vld [vmem:[%s15528_s22 + $0x3b0] sm:$0xff]   ;;  %v14533_v30 = vld [vmem:[%s15528_s22 + $0x378] sm:$0xff]  }
  0x61   : > { %13077 = vmatpush3.bf16.msra.mxu0 %v14483_v31  ;;  %v14534_v31 = vld [vmem:[%s15528_s22 + $0x3f8] sm:$0xff]  }
  0x62   : > { %13078 = vmatprep.subr.bf16.mxu0 %v14485_v33  ;;  %13099 = vmatpush3.bf16.msra.mxu1 %v14484_v32  ;;  %v14535_v32 = vld [vmem:[%s15528_s22 + $0x338] sm:$0xff]  }
  0x63   : > { %13100 = vmatprep.subr.bf16.mxu1 %v14486_v34  ;;  %v14536_v33 = vld [vmem:[%s15528_s22 + $0x3b8] sm:$0xff]   ;;  %v2352_v34 = vrot.slane %v15643_v54, %v15569_v42  ;;  %v14555_v54 = vld [vmem:[%s15528_s22 + $0x4e0] sm:$0xff]  }
  0x65   : > { %13079 = vmatpush3.bf16.msra.mxu0 %v14487_v35  ;;  %v14538_v35 = vld [vmem:[%s15528_s22 + $0x440] sm:$0xff]  }
  0x66   : > { %13080 = vmatprep.subr.bf16.mxu0 %v14489_v37  ;;  %13101 = vmatpush3.bf16.msra.mxu1 %v14488_v36  ;;  %v14539_v36 = vld [vmem:[%s15528_s22 + $0x4c0] sm:$0xff]  }
  0x67   : > { %13102 = vmatprep.subr.bf16.mxu1 %v14490_v38  ;;  %v14540_v37 = vld [vmem:[%s15528_s22 + $0x400] sm:$0xff]  }
  0x68   : > { %v14541_v38 = vld [vmem:[%s15528_s22 + $0x480] sm:$0xff]  }
  0x69   : > { %13081 = vmatpush3.bf16.msra.mxu0 %v14491_v39  ;;  %v2368_v39 = vcombine.high %v2352_v34, %v2352_v34 }
  0x6a   : > { %13082 = vmatprep.subr.bf16.mxu0 %v14493_v41  ;;  %13103 = vmatpush3.bf16.msra.mxu1 %v14492_v40  ;;  %v14542_v40 = vld [vmem:[%s15528_s22 + $0x448] sm:$0xff]  }
  0x6b   : > { %13104 = vmatprep.subr.bf16.mxu1 %v14494_v43  ;;  %v14543_v41 = vld [vmem:[%s15528_s22 + $0x4c8] sm:$0xff]  }
  0x6c   : > { %v14544_v43 = vld [vmem:[%s15528_s22 + $0x408] sm:$0xff]  }
  0x6d   : > { %13083 = vmatpush3.bf16.msra.mxu0 %v14495_v44  ;;  %v14545_v44 = vld [vmem:[%s15528_s22 + $0x488] sm:$0xff]  }
  0x6e   : > { %13084 = vmatprep.subr.bf16.mxu0 %v14497_v46  ;;  %13105 = vmatpush3.bf16.msra.mxu1 %v14496_v45  ;;  %v14546_v45 = vld [vmem:[%s15528_s22 + $0x450] sm:$0xff]  }
  0x6f   : > { %13106 = vmatprep.subr.bf16.mxu1 %v14498_v48  ;;  %v14547_v46 = vld [vmem:[%s15528_s22 + $0x4d0] sm:$0xff]  }
  0x70   : > { %v14549_v48 = vld [vmem:[%s15528_s22 + $0x490] sm:$0xff]  }
  0x71   : > { %13085 = vmatpush3.bf16.msra.mxu0 %v14499_v51  ;;  %v14552_v51 = vld [vmem:[%s15528_s22 + $0x418] sm:$0xff]  }
  0x72   : > { %13086 = vmatprep.subr.bf16.mxu0 %v14501_v55  ;;  %13107 = vmatpush3.bf16.msra.mxu1 %v14500_v52  ;;  %v14553_v52 = vld [vmem:[%s15528_s22 + $0x498] sm:$0xff]   ;;  %v14556_v55 = vld [vmem:[%s15528_s22 + $0x420] sm:$0xff]  }
  0x73   : > { %13108 = vmatprep.subr.bf16.mxu1 %v14502_v56  ;;  %v14557_v56 = vld [vmem:[%s15528_s22 + $0x4a0] sm:$0xff]  }
  0x75   : > { %13087 = vmatpush3.bf16.msra.mxu0 %v14503_v59  ;;  %v14560_v59 = vld [vmem:[%s15528_s22 + $0x428] sm:$0xff]  }
  0x76   : > { %13116 = vmatprep.subr.bf16.mxu0 %v14505_v63  ;;  %13109 = vmatpush3.bf16.msra.mxu1 %v14504_v60  ;;  %v14561_v60 = vld [vmem:[%s15528_s22 + $0x4a8] sm:$0xff]   ;;  %v14563_v63 = vld [vmem:[%s15528_s22 + $0x4f0] sm:$0xff]  }
  0x77   : > { %13138 = vmatprep.subr.bf16.mxu1 %v14506_v0 }
  0x78   : > { %9522 = vmatmul.mubr.bf16.vlgmr.msra.gmra.mrb[8].mxu0 %v2345_v62  ;;  %v195_v62 = vld [vmem:[%s15523_s18 + $0x10] sm:$0xff] }
  0x79   : > { %13117 = vmatpush3.bf16.msra.mxu0 %v14507_v2  ;;  %9601 = vmatprep.mubr.bf16.mxu0 %v2366_v1  ;;  %v2378_v0 = vrot.slane %v195_v62, %v15569_v42  ;;  %v2371_v1 = vcombine.high %v195_v62, %v195_v62  ;;  %v14564_v2 = vld [vmem:[%s15528_s22 + $0x430] sm:$0xff]  }
  0x7a   : > { %9562 = vmatmul.mubr.bf16.vlgmr.msra.gmra.mrb[8].mxu1 %v2367_v4  ;;  %13118 = vmatprep.subr.bf16.mxu0 %v14509_v5  ;;  %v14613_v62 = vld [vmem:[%s15528_s22 + $0x610] sm:$0xff]  }
  0x7b   : > { %13139 = vmatpush3.bf16.msra.mxu1 %v14508_v3  ;;  %9641 = vmatprep.mubr.bf16.mxu1 %v2370_v7  ;;  %v14565_v3 = vld [vmem:[%s15528_s22 + $0x4b0] sm:$0xff]   ;;  %v2386_v4 = vcombine.high %v2378_v0, %v2378_v0  ;;  %v15719_v5 = vrot.slane %v2371_v1, %v15569_v42  ;;  %v14567_v7 = vld [vmem:[%s15528_s22 + $0x4f8] sm:$0xff]  }
  0x7c   : > { %13140 = vmatprep.subr.bf16.mxu1 %v14510_v6  ;;  %v14566_v6 = vld [vmem:[%s15528_s22 + $0x478] sm:$0xff]  }
  0x7d   : > { %13119 = vmatpush3.bf16.msra.mxu0 %v14511_v8  ;;  %v2408_v8 = vrot.slane %v2386_v4, %v15569_v42  ;;  %v14616_v1 = vld [vmem:[%s15528_s22 + $0x6d8] sm:$0xff]   ;;  %v14619_v4 = vld [vmem:[%s15528_s22 + $0x660] sm:$0xff]  }
  0x7e   : > { %13120 = vmatprep.subr.bf16.mxu0 %v14513_v10  ;;  %v14568_v10 = vld [vmem:[%s15528_s22 + $0x438] sm:$0xff]  }
  0x7f   : > { %13141 = vmatpush3.bf16.msra.mxu1 %v14512_v9  ;;  %v2387_v9 = vcombine.high %v15719_v5, %v15719_v5 }
  0x80   : > { %13142 = vmatprep.subr.bf16.mxu1 %v14514_v11  ;;  %v14569_v11 = vld [vmem:[%s15528_s22 + $0x4b8] sm:$0xff]  }
  0x81   : > { %13121 = vmatpush3.bf16.msra.mxu0 %v14515_v12  ;;  %v2418_v12 = vcombine.high %v2408_v8, %v2408_v8 }
  0x82   : > { %13122 = vmatprep.subr.bf16.mxu0 %v14517_v14  ;;  %v14570_v14 = vld [vmem:[%s15528_s22 + $0x540] sm:$0xff]  }
  0x83   : > { %13143 = vmatpush3.bf16.msra.mxu1 %v14516_v13  ;;  %v2394_v13 = vrot.slane %v2378_v0, %v15569_v42  ;;  %v14615_v0 = vld [vmem:[%s15528_s22 + $0x658] sm:$0xff]  }
  0x84   : > { %13144 = vmatprep.subr.bf16.mxu1 %v14518_v15  ;;  %v14571_v15 = vld [vmem:[%s15528_s22 + $0x5c0] sm:$0xff]  }
  0x85   : > { %13123 = vmatpush3.bf16.msra.mxu0 %v14519_v16  ;;  %v2415_v16 = vrot.slane %v2387_v9, %v15569_v42  ;;  %v14624_v9 = vld [vmem:[%s15528_s22 + $0x6e8] sm:$0xff]  }
  0x86   : > { %13124 = vmatprep.subr.bf16.mxu0 %v14521_v18  ;;  %v14573_v18 = vld [vmem:[%s15528_s22 + $0x580] sm:$0xff]  }
  0x87   : > { %13145 = vmatpush3.bf16.msra.mxu1 %v14520_v17  ;;  %v14572_v17 = vld [vmem:[%s15528_s22 + $0x500] sm:$0xff]  }
  0x88   : > { %13146 = vmatprep.subr.bf16.mxu1 %v14522_v19  ;;  %v2416_v19 = vcombine.high %v2394_v13, %v2394_v13 }
  0x89   : > { %13125 = vmatpush3.bf16.msra.mxu0 %v14523_v20  ;;  %v14574_v20 = vld [vmem:[%s15528_s22 + $0x548] sm:$0xff]  }
  0x8a   : > { %13126 = vmatprep.subr.bf16.mxu0 %v14525_v22  ;;  %v2419_v22 = vcombine.high %v2415_v16, %v2415_v16 }
  0x8b   : > { %13147 = vmatpush3.bf16.msra.mxu1 %v14524_v21  ;;  %v14575_v21 = vld [vmem:[%s15528_s22 + $0x5c8] sm:$0xff]  }
  0x8c   : > { %13148 = vmatprep.subr.bf16.mxu1 %v14526_v23  ;;  %v14576_v23 = vld [vmem:[%s15528_s22 + $0x508] sm:$0xff]  }
  0x8d   : > { %13127 = vmatpush3.bf16.msra.mxu0 %v14527_v24  ;;  %v14577_v24 = vld [vmem:[%s15528_s22 + $0x588] sm:$0xff]  }
  0x8e   : > { %13128 = vmatprep.subr.bf16.mxu0 %v14529_v26  ;;  %v14579_v26 = vld [vmem:[%s15528_s22 + $0x5d0] sm:$0xff]  }
  0x8f   : > { %13149 = vmatpush3.bf16.msra.mxu1 %v14528_v25  ;;  %v14578_v25 = vld [vmem:[%s15528_s22 + $0x550] sm:$0xff]  }
  0x90   : > { %13150 = vmatprep.subr.bf16.mxu1 %v14530_v27  ;;  %v14580_v27 = vld [vmem:[%s15528_s22 + $0x510] sm:$0xff]  }
  0x91   : > { %13129 = vmatpush3.bf16.msra.mxu0 %v14531_v28  ;;  %v14581_v28 = vld [vmem:[%s15528_s22 + $0x590] sm:$0xff]  }
  0x92   : > { %13130 = vmatprep.subr.bf16.mxu0 %v14533_v30  ;;  %v14583_v30 = vld [vmem:[%s15528_s22 + $0x5d8] sm:$0xff]  }
  0x93   : > { %13151 = vmatpush3.bf16.msra.mxu1 %v14532_v29  ;;  %v14582_v29 = vld [vmem:[%s15528_s22 + $0x558] sm:$0xff]  }
  0x94   : > { %13152 = vmatprep.subr.bf16.mxu1 %v14534_v31  ;;  %v14584_v31 = vld [vmem:[%s15528_s22 + $0x518] sm:$0xff]  }
  0x95   : > { %13131 = vmatpush3.bf16.msra.mxu0 %v14535_v32  ;;  %v14585_v32 = vld [vmem:[%s15528_s22 + $0x598] sm:$0xff]  }
  0x96   : > { %13160 = vmatprep.subr.bf16.mxu0 %v14538_v35  ;;  %v14588_v35 = vld [vmem:[%s15528_s22 + $0x520] sm:$0xff]  }
  0x97   : > { %13153 = vmatpush3.bf16.msra.mxu1 %v14536_v33  ;;  %v14586_v33 = vld [vmem:[%s15528_s22 + $0x560] sm:$0xff]  }
  0x98   : > { %9602 = vmatmul.mubr.bf16.vlgmr.msra.gmra.mrb[12].mxu0 %v2352_v34  ;;  %13182 = vmatprep.subr.bf16.mxu1 %v14539_v36  ;;  %v14587_v34 = vld [vmem:[%s15528_s22 + $0x5e0] sm:$0xff]  }
  0x99   : > { %13161 = vmatpush3.bf16.msra.mxu0 %v14540_v37  ;;  %9681 = vmatprep.mubr.bf16.mxu0 %v2408_v8  ;;  %v14589_v36 = vld [vmem:[%s15528_s22 + $0x5a0] sm:$0xff]   ;;  %v14590_v37 = vld [vmem:[%s15528_s22 + $0x568] sm:$0xff]  }
  0x9a   : > { %9642 = vmatmul.mubr.bf16.vlgmr.msra.gmra.mrb[12].mxu1 %v2368_v39  ;;  %13162 = vmatprep.subr.bf16.mxu0 %v14542_v40  ;;  %v14592_v39 = vld [vmem:[%s15528_s22 + $0x528] sm:$0xff]  }
  0x9b   : > { %13183 = vmatpush3.bf16.msra.mxu1 %v14541_v38  ;;  %9721 = vmatprep.mubr.bf16.mxu1 %v2418_v12  ;;  %v14591_v38 = vld [vmem:[%s15528_s22 + $0x5e8] sm:$0xff]   ;;  %v14627_v12 = vld [vmem:[%s15528_s22 + $0x670] sm:$0xff]  }
  0x9c   : > { %13184 = vmatprep.subr.bf16.mxu1 %v14543_v41  ;;  %v14593_v40 = vld [vmem:[%s15528_s22 + $0x5a8] sm:$0xff]   ;;  %v14594_v41 = vld [vmem:[%s15528_s22 + $0x570] sm:$0xff]  }
  0x9d   : > { %13163 = vmatpush3.bf16.msra.mxu0 %v14544_v43  ;;  %v14595_v43 = vld [vmem:[%s15528_s22 + $0x5f0] sm:$0xff]   ;;  %v14623_v8 = vld [vmem:[%s15528_s22 + $0x668] sm:$0xff]  }
  0x9e   : > { %13164 = vmatprep.subr.bf16.mxu0 %v14546_v45  ;;  %v14597_v45 = vld [vmem:[%s15528_s22 + $0x5b0] sm:$0xff]  }
  0x9f   : > { %13185 = vmatpush3.bf16.msra.mxu1 %v14545_v44  ;;  %v14596_v44 = vld [vmem:[%s15528_s22 + $0x530] sm:$0xff]  }
  0xa0   : > { %13186 = vmatprep.subr.bf16.mxu1 %v14547_v46  ;;  %v14598_v46 = vld [vmem:[%s15528_s22 + $0x578] sm:$0xff]  }
  0xa1   : > { %13165 = vmatpush3.bf16.msra.mxu0 %v14548_v47  ;;  %v14599_v47 = vld [vmem:[%s15528_s22 + $0x5f8] sm:$0xff]  }
  0xa2   : > { %13166 = vmatprep.subr.bf16.mxu0 %v14550_v49  ;;  %v14601_v49 = vld [vmem:[%s15528_s22 + $0x5b8] sm:$0xff]  }
  0xa3   : > { %13187 = vmatpush3.bf16.msra.mxu1 %v14549_v48  ;;  %v14600_v48 = vld [vmem:[%s15528_s22 + $0x538] sm:$0xff]  }
  0xa4   : > { %13188 = vmatprep.subr.bf16.mxu1 %v14551_v50  ;;  %v2401_v50 = vrot.slane %v15719_v5, %v15569_v42  ;;  %v14620_v5 = vld [vmem:[%s15528_s22 + $0x6e0] sm:$0xff]  }
  0xa5   : > { %13167 = vmatpush3.bf16.msra.mxu0 %v14552_v51  ;;  %v14603_v51 = vld [vmem:[%s15528_s22 + $0x640] sm:$0xff]  }
  0xa6   : > { %13168 = vmatprep.subr.bf16.mxu0 %v14554_v53  ;;  %v14605_v53 = vld [vmem:[%s15528_s22 + $0x600] sm:$0xff]  }
  0xa7   : > { %13189 = vmatpush3.bf16.msra.mxu1 %v14553_v52  ;;  %v14604_v52 = vld [vmem:[%s15528_s22 + $0x6c0] sm:$0xff]  }
  0xa8   : > { %13190 = vmatprep.subr.bf16.mxu1 %v14555_v54  ;;  %v14606_v54 = vld [vmem:[%s15528_s22 + $0x680] sm:$0xff]  }
  0xa9   : > { %13169 = vmatpush3.bf16.msra.mxu0 %v14556_v55  ;;  %v2417_v55 = vcombine.high %v2401_v50, %v2401_v50 }
  0xaa   : > { %13170 = vmatprep.subr.bf16.mxu0 %v14558_v57  ;;  %v14608_v57 = vld [vmem:[%s15528_s22 + $0x6c8] sm:$0xff]  }
  0xab   : > { %13191 = vmatpush3.bf16.msra.mxu1 %v14557_v56  ;;  %v14607_v56 = vld [vmem:[%s15528_s22 + $0x648] sm:$0xff]  }
  0xac   : > { %13192 = vmatprep.subr.bf16.mxu1 %v14559_v58  ;;  %v14609_v58 = vld [vmem:[%s15528_s22 + $0x608] sm:$0xff]  }
  0xad   : > { %13171 = vmatpush3.bf16.msra.mxu0 %v14560_v59  ;;  %v14610_v59 = vld [vmem:[%s15528_s22 + $0x688] sm:$0xff]  }
  0xae   : > { %13172 = vmatprep.subr.bf16.mxu0 %v14562_v61  ;;  %v14612_v61 = vld [vmem:[%s15528_s22 + $0x6d0] sm:$0xff]  }
  0xaf   : > { %13193 = vmatpush3.bf16.msra.mxu1 %v14561_v60  ;;  %v14611_v60 = vld [vmem:[%s15528_s22 + $0x650] sm:$0xff]  }
  0xb0   : > { %13194 = vmatprep.subr.bf16.mxu1 %v14563_v63  ;;  %v14614_v63 = vld [vmem:[%s15528_s22 + $0x690] sm:$0xff]  }
  0xb1   : > { %13173 = vmatpush3.bf16.msra.mxu0 %v14564_v2  ;;  %v14617_v2 = vld [vmem:[%s15528_s22 + $0x618] sm:$0xff]  }
  0xb2   : > { %13174 = vmatprep.subr.bf16.mxu0 %v14566_v6  ;;  %v14621_v6 = vld [vmem:[%s15528_s22 + $0x620] sm:$0xff]  }
  0xb3   : > { %13195 = vmatpush3.bf16.msra.mxu1 %v14565_v3  ;;  %v14618_v3 = vld [vmem:[%s15528_s22 + $0x698] sm:$0xff]  }
  0xb4   : > { %13196 = vmatprep.subr.bf16.mxu1 %v14567_v7  ;;  %v14622_v7 = vld [vmem:[%s15528_s22 + $0x6a0] sm:$0xff]  }
  0xb5   : > { %13175 = vmatpush3.bf16.msra.mxu0 %v14568_v10  ;;  %v14625_v10 = vld [vmem:[%s15528_s22 + $0x628] sm:$0xff]  }
  0xb6   : > { %13204 = vmatprep.subr.bf16.mxu0 %v14570_v14  ;;  %v196_v14 = vld [vmem:[%s15523_s18 + $0x18] sm:$0xff] }
  0xb7   : > { %13197 = vmatpush3.bf16.msra.mxu1 %v14569_v11  ;;  %v14626_v11 = vld [vmem:[%s15528_s22 + $0x6a8] sm:$0xff]  }
  0xb8   : > { %9682 = vmatmul.mubr.bf16.vlgmr.msra.gmra.mrb[16].mxu0 %v2394_v13  ;;  %13226 = vmatprep.subr.bf16.mxu1 %v14571_v15  ;;  %v14628_v13 = vld [vmem:[%s15528_s22 + $0x6f0] sm:$0xff]  }
  0xb9   : > { %13205 = vmatpush3.bf16.msra.mxu0 %v14572_v17  ;;  %9761 = vmatprep.mubr.bf16.mxu0 %v2415_v16  ;;  %v14629_v15 = vld [vmem:[%s15528_s22 + $0x630] sm:$0xff]   ;;  %v2427_v16 = vrot.slane %v196_v14, %v15569_v42  ;;  %v2420_v17 = vcombine.high %v196_v14, %v196_v14  ;;  %v14669_v14 = vld [vmem:[%s15528_s22 + $0x8c0] sm:$0xff]  }
  0xba   : > { %9722 = vmatmul.mubr.bf16.vlgmr.msra.gmra.mrb[16].mxu1 %v2416_v19  ;;  %13206 = vmatprep.subr.bf16.mxu0 %v14574_v20  ;;  %v14631_v19 = vld [vmem:[%s15528_s22 + $0x678] sm:$0xff]  }
  0xbb   : > { %13227 = vmatpush3.bf16.msra.mxu1 %v14573_v18  ;;  %9801 = vmatprep.mubr.bf16.mxu1 %v2419_v22  ;;  %v14630_v18 = vld [vmem:[%s15528_s22 + $0x6b0] sm:$0xff]   ;;  %v2435_v20 = vcombine.high %v2427_v16, %v2427_v16  ;;  %v14632_v22 = vld [vmem:[%s15528_s22 + $0x6f8] sm:$0xff]  }
  0xbc   : > { %13228 = vmatprep.subr.bf16.mxu1 %v14575_v21  ;;  %v15796_v21 = vrot.slane %v2420_v17, %v15569_v42 }
  0xbd   : > { %13207 = vmatpush3.bf16.msra.mxu0 %v14576_v23  ;;  %v14633_v23 = vld [vmem:[%s15528_s22 + $0x638] sm:$0xff]  }
  0xbe   : > { %13208 = vmatprep.subr.bf16.mxu0 %v14578_v25  ;;  %v2436_v25 = vcombine.high %v15796_v21, %v15796_v21 }
  0xbf   : > { %13229 = vmatpush3.bf16.msra.mxu1 %v14577_v24  ;;  %v2457_v24 = vrot.slane %v2435_v20, %v15569_v42  ;;  %v14674_v20 = vld [vmem:[%s15528_s22 + $0x808] sm:$0xff]  }
  0xc0   : > { %13230 = vmatprep.subr.bf16.mxu1 %v14579_v26  ;;  %v14634_v26 = vld [vmem:[%s15528_s22 + $0x6b8] sm:$0xff]  }
  0xc1   : > { %13209 = vmatpush3.bf16.msra.mxu0 %v14580_v27  ;;  %v2467_v27 = vcombine.high %v2457_v24, %v2457_v24 }
  0xc2   : > { %13210 = vmatprep.subr.bf16.mxu0 %v14582_v29  ;;  %v14635_v29 = vld [vmem:[%s15528_s22 + $0x740] sm:$0xff]  }
  0xc3   : > { %13231 = vmatpush3.bf16.msra.mxu1 %v14581_v28  ;;  %v2443_v28 = vrot.slane %v2427_v16, %v15569_v42  ;;  %v14671_v16 = vld [vmem:[%s15528_s22 + $0x880] sm:$0xff]  }
  0xc4   : > { %13232 = vmatprep.subr.bf16.mxu1 %v14583_v30  ;;  %v14636_v30 = vld [vmem:[%s15528_s22 + $0x7c0] sm:$0xff]  }
  0xc5   : > { %13211 = vmatpush3.bf16.msra.mxu0 %v14584_v31  ;;  %v2464_v31 = vrot.slane %v2436_v25, %v15569_v42  ;;  %v14679_v25 = vld [vmem:[%s15528_s22 + $0x890] sm:$0xff]  }
  0xc6   : > { %13212 = vmatprep.subr.bf16.mxu0 %v14586_v33  ;;  %v14638_v33 = vld [vmem:[%s15528_s22 + $0x780] sm:$0xff]  }
  0xc7   : > { %13233 = vmatpush3.bf16.msra.mxu1 %v14585_v32  ;;  %v14637_v32 = vld [vmem:[%s15528_s22 + $0x700] sm:$0xff]  }
  0xc8   : > { %13234 = vmatprep.subr.bf16.mxu1 %v14587_v34  ;;  %v2465_v34 = vcombine.high %v2443_v28, %v2443_v28 }
  0xc9   : > { %13213 = vmatpush3.bf16.msra.mxu0 %v14588_v35  ;;  %v14639_v35 = vld [vmem:[%s15528_s22 + $0x748] sm:$0xff]  }
  0xca   : > { %13214 = vmatprep.subr.bf16.mxu0 %v14590_v37  ;;  %v2468_v37 = vcombine.high %v2464_v31, %v2464_v31 }
  0xcb   : > { %13235 = vmatpush3.bf16.msra.mxu1 %v14589_v36  ;;  %v14640_v36 = vld [vmem:[%s15528_s22 + $0x7c8] sm:$0xff]  }
  0xcc   : > { %13236 = vmatprep.subr.bf16.mxu1 %v14591_v38  ;;  %v14641_v38 = vld [vmem:[%s15528_s22 + $0x708] sm:$0xff]  }
  0xcd   : > { %13215 = vmatpush3.bf16.msra.mxu0 %v14592_v39  ;;  %v14642_v39 = vld [vmem:[%s15528_s22 + $0x788] sm:$0xff]  }
  0xce   : > { %13216 = vmatprep.subr.bf16.mxu0 %v14594_v41  ;;  %v14644_v41 = vld [vmem:[%s15528_s22 + $0x7d0] sm:$0xff]  }
  0xcf   : > { %13237 = vmatpush3.bf16.msra.mxu1 %v14593_v40  ;;  %v14643_v40 = vld [vmem:[%s15528_s22 + $0x750] sm:$0xff]  }
  0xd0   : > { %13238 = vmatprep.subr.bf16.mxu1 %v14595_v43  ;;  %v14645_v43 = vld [vmem:[%s15528_s22 + $0x710] sm:$0xff]  }
  0xd1   : > { %13217 = vmatpush3.bf16.msra.mxu0 %v14596_v44  ;;  %v14646_v44 = vld [vmem:[%s15528_s22 + $0x790] sm:$0xff]  }
  0xd2   : > { %13218 = vmatprep.subr.bf16.mxu0 %v14598_v46  ;;  %v14648_v46 = vld [vmem:[%s15528_s22 + $0x7d8] sm:$0xff]  }
  0xd3   : > { %13239 = vmatpush3.bf16.msra.mxu1 %v14597_v45  ;;  %v14647_v45 = vld [vmem:[%s15528_s22 + $0x758] sm:$0xff]  }
  0xd4   : > { %13240 = vmatprep.subr.bf16.mxu1 %v14599_v47  ;;  %v14649_v47 = vld [vmem:[%s15528_s22 + $0x718] sm:$0xff]  }
  0xd5   : > { %13219 = vmatpush3.bf16.msra.mxu0 %v14600_v48  ;;  %v14650_v48 = vld [vmem:[%s15528_s22 + $0x798] sm:$0xff]  }
  0xd6   : > { %13248 = vmatprep.subr.bf16.mxu0 %v14603_v51  ;;  %v14653_v51 = vld [vmem:[%s15528_s22 + $0x720] sm:$0xff]  }
  0xd7   : > { %13241 = vmatpush3.bf16.msra.mxu1 %v14601_v49  ;;  %v14651_v49 = vld [vmem:[%s15528_s22 + $0x760] sm:$0xff]  }
  0xd8   : > { %9762 = vmatmul.mubr.bf16.vlgmr.msra.gmra.mrb[20].mxu0 %v2401_v50  ;;  %13270 = vmatprep.subr.bf16.mxu1 %v14604_v52  ;;  %v14652_v50 = vld [vmem:[%s15528_s22 + $0x7e0] sm:$0xff]  }
  0xd9   : > { %13249 = vmatpush3.bf16.msra.mxu0 %v14605_v53  ;;  %9841 = vmatprep.mubr.bf16.mxu0 %v2457_v24  ;;  %v14654_v52 = vld [vmem:[%s15528_s22 + $0x7a0] sm:$0xff]   ;;  %v14655_v53 = vld [vmem:[%s15528_s22 + $0x768] sm:$0xff]   ;;  %v14678_v24 = vld [vmem:[%s15528_s22 + $0x810] sm:$0xff]  }
  0xda   : > { %9802 = vmatmul.mubr.bf16.vlgmr.msra.gmra.mrb[20].mxu1 %v2417_v55  ;;  %13250 = vmatprep.subr.bf16.mxu0 %v14607_v56  ;;  %v14657_v55 = vld [vmem:[%s15528_s22 + $0x728] sm:$0xff]  }
  0xdb   : > { %13271 = vmatpush3.bf16.msra.mxu1 %v14606_v54  ;;  %9881 = vmatprep.mubr.bf16.mxu1 %v2467_v27  ;;  %v14656_v54 = vld [vmem:[%s15528_s22 + $0x7e8] sm:$0xff]   ;;  %v14681_v27 = vld [vmem:[%s15528_s22 + $0x8d8] sm:$0xff]  }
  0xdc   : > { %13272 = vmatprep.subr.bf16.mxu1 %v14608_v57  ;;  %v14658_v56 = vld [vmem:[%s15528_s22 + $0x7a8] sm:$0xff]   ;;  %v14659_v57 = vld [vmem:[%s15528_s22 + $0x770] sm:$0xff]  }
  0xdd   : > { %13251 = vmatpush3.bf16.msra.mxu0 %v14609_v58 }
  0xde   : > { %13252 = vmatprep.subr.bf16.mxu0 %v14611_v60 }
  0xdf   : > { %13273 = vmatpush3.bf16.msra.mxu1 %v14610_v59  ;;  %v14660_v59 = vld [vmem:[%s15528_s22 + $0x7f0] sm:$0xff]  }
  0xe0   : > { %13274 = vmatprep.subr.bf16.mxu1 %v14612_v61  ;;  %v14661_v61 = vld [vmem:[%s15528_s22 + $0x730] sm:$0xff]  }
  0xe1   : > { %13253 = vmatpush3.bf16.msra.mxu0 %v14613_v62 }
  0xe2   : > { %13254 = vmatprep.subr.bf16.mxu0 %v14615_v0 }
  0xe3   : > { %13275 = vmatpush3.bf16.msra.mxu1 %v14614_v63 }
  0xe4   : > { %13276 = vmatprep.subr.bf16.mxu1 %v14616_v1  ;;  %v14662_v1 = vld [vmem:[%s15528_s22 + $0x7b0] sm:$0xff]  }
  0xe5   : > { %13255 = vmatpush3.bf16.msra.mxu0 %v14617_v2  ;;  %v14663_v2 = vld [vmem:[%s15528_s22 + $0x778] sm:$0xff]  }
  0xe6   : > { %13256 = vmatprep.subr.bf16.mxu0 %v14619_v4 }
  0xe7   : > { %13277 = vmatpush3.bf16.msra.mxu1 %v14618_v3 }
  0xe8   : > { %13278 = vmatprep.subr.bf16.mxu1 %v14620_v5 }
  0xe9   : > { %13257 = vmatpush3.bf16.msra.mxu0 %v14621_v6 }
  0xea   : > { %13258 = vmatprep.subr.bf16.mxu0 %v14623_v8 }
  0xeb   : > { %13279 = vmatpush3.bf16.msra.mxu1 %v14622_v7  ;;  %v14664_v7 = vld [vmem:[%s15528_s22 + $0x7f8] sm:$0xff]  }
  0xec   : > { %13280 = vmatprep.subr.bf16.mxu1 %v14624_v9  ;;  %v14665_v9 = vld [vmem:[%s15528_s22 + $0x738] sm:$0xff]  }
  0xed   : > { %13259 = vmatpush3.bf16.msra.mxu0 %v14625_v10 }
  0xee   : > { %13260 = vmatprep.subr.bf16.mxu0 %v14627_v12  ;;  %v2450_v12 = vrot.slane %v15796_v21, %v15569_v42  ;;  %v14675_v21 = vld [vmem:[%s15528_s22 + $0x888] sm:$0xff]  }
  0xef   : > { %13281 = vmatpush3.bf16.msra.mxu1 %v14626_v11  ;;  %v14666_v11 = vld [vmem:[%s15528_s22 + $0x7b8] sm:$0xff]  }
  0xf0   : > { %13282 = vmatprep.subr.bf16.mxu1 %v14628_v13  ;;  %v14668_v13 = vld [vmem:[%s15528_s22 + $0x840] sm:$0xff]   ;;  %v2466_v17 = vcombine.high %v2450_v12, %v2450_v12 }
  0xf1   : > { %13261 = vmatpush3.bf16.msra.mxu0 %v14629_v15  ;;  %v14670_v15 = vld [vmem:[%s15528_s22 + $0x800] sm:$0xff]  }
  0xf2   : > { %13262 = vmatprep.subr.bf16.mxu0 %v14631_v19  ;;  %v14673_v19 = vld [vmem:[%s15528_s22 + $0x8c8] sm:$0xff]  }
  0xf3   : > { %13283 = vmatpush3.bf16.msra.mxu1 %v14630_v18  ;;  %v14672_v18 = vld [vmem:[%s15528_s22 + $0x848] sm:$0xff]  }
  0xf4   : > { %13284 = vmatprep.subr.bf16.mxu1 %v14632_v22  ;;  %v14676_v22 = vld [vmem:[%s15528_s22 + $0x850] sm:$0xff]  }
  0xf5   : > { %13263 = vmatpush3.bf16.msra.mxu0 %v14633_v23  ;;  %v14677_v23 = vld [vmem:[%s15528_s22 + $0x8d0] sm:$0xff]  }
  0xf6   : > { %13292 = vmatprep.subr.bf16.mxu0 %v14635_v29  ;;  %v14683_v29 = vld [vmem:[%s15528_s22 + $0x898] sm:$0xff]  }
  0xf7   : > { %13285 = vmatpush3.bf16.msra.mxu1 %v14634_v26  ;;  %v14680_v26 = vld [vmem:[%s15528_s22 + $0x858] sm:$0xff]  }
  0xf8   : > { %9842 = vmatmul.mubr.bf16.vlgmr.msra.gmra.mrb[24].mxu0 %v2443_v28  ;;  %13314 = vmatprep.subr.bf16.mxu1 %v14636_v30  ;;  %v14682_v28 = vld [vmem:[%s15528_s22 + $0x818] sm:$0xff]   ;;  %v14684_v30 = vld [vmem:[%s15528_s22 + $0x860] sm:$0xff]  }
  0xf9   : > { %13293 = vmatpush3.bf16.msra.mxu0 %v14637_v32  ;;  %9921 = vmatprep.mubr.bf16.mxu0 %v2464_v31  ;;  %v14685_v31 = vld [vmem:[%s15528_s22 + $0x8e0] sm:$0xff]  }
  0xfa   : > { %9882 = vmatmul.mubr.bf16.vlgmr.msra.gmra.mrb[24].mxu1 %v2465_v34  ;;  %13294 = vmatprep.subr.bf16.mxu0 %v14639_v35  ;;  %v14686_v32 = vld [vmem:[%s15528_s22 + $0x820] sm:$0xff]   ;;  %v14688_v34 = vld [vmem:[%s15528_s22 + $0x868] sm:$0xff]  }
  0xfb   : > { %13315 = vmatpush3.bf16.msra.mxu1 %v14638_v33  ;;  %9961 = vmatprep.mubr.bf16.mxu1 %v2468_v37  ;;  %v14687_v33 = vld [vmem:[%s15528_s22 + $0x8a0] sm:$0xff]   ;;  %v14689_v35 = vld [vmem:[%s15528_s22 + $0x8e8] sm:$0xff]  }
  0xfc   : > { %13316 = vmatprep.subr.bf16.mxu1 %v14640_v36  ;;  %v14690_v36 = vld [vmem:[%s15528_s22 + $0x828] sm:$0xff]  }
  0xfd   : > { %13295 = vmatpush3.bf16.msra.mxu0 %v14641_v38  ;;  %v14691_v37 = vld [vmem:[%s15528_s22 + $0x8a8] sm:$0xff]   ;;  %v14692_v38 = vld [vmem:[%s15528_s22 + $0x870] sm:$0xff]  }
  0xfe   : > { %13296 = vmatprep.subr.bf16.mxu0 %v14643_v40  ;;  %v14693_v40 = vld [vmem:[%s15528_s22 + $0x8f0] sm:$0xff]  }
  0xff   : > { %13317 = vmatpush3.bf16.msra.mxu1 %v14642_v39 }
 0x100   : > { %13318 = vmatprep.subr.bf16.mxu1 %v14644_v41  ;;  %v197_v41 = vld [vmem:[%s15523_s18 + $0x20] sm:$0xff] }
 0x101   : > { %13297 = vmatpush3.bf16.msra.mxu0 %v14645_v43 }
 0x102   : > { %13298 = vmatprep.subr.bf16.mxu0 %v14647_v45  ;;  %v2476_v45 = vrot.slane %v197_v41, %v15569_v42 }
 0x103   : > { %13319 = vmatpush3.bf16.msra.mxu1 %v14646_v44  ;;  %v14694_v44 = vld [vmem:[%s15528_s22 + $0x830] sm:$0xff]  }
 0x104   : > { %13320 = vmatprep.subr.bf16.mxu1 %v14648_v46  ;;  %v2469_v46 = vcombine.high %v197_v41, %v197_v41 }
 0x105   : > { %13299 = vmatpush3.bf16.msra.mxu0 %v14649_v47 }
 0x106   : > { %13300 = vmatprep.subr.bf16.mxu0 %v14651_v49 }
 0x107   : > { %13321 = vmatpush3.bf16.msra.mxu1 %v14650_v48 }
 0x108   : > { %13322 = vmatprep.subr.bf16.mxu1 %v14652_v50 }
 0x109   : > { %13301 = vmatpush3.bf16.msra.mxu0 %v14653_v51 }
 0x10a   : > { %13302 = vmatprep.subr.bf16.mxu0 %v14655_v53  ;;  %v14696_v53 = vld [vmem:[%s15528_s22 + $0x878] sm:$0xff]  }
 0x10b   : > { %13323 = vmatpush3.bf16.msra.mxu1 %v14654_v52  ;;  %v13000_v58 = vpop.f32.mrb[0].mxu0  ;;  %v14695_v52 = vld [vmem:[%s15528_s22 + $0x8b0] sm:$0xff]  }
 0x10c   : > { %v13001_v60 = vpop.f32.mrb[1].mxu0  ;;  %13324 = vmatprep.subr.bf16.mxu1 %v14656_v54  ;;  %v13022_v62 = vpop.f32.mrb[0].mxu1  ;;  %v2484_v54 = vcombine.high %v2476_v45, %v2476_v45 }
 0x10d   : > { %v13002_v63 = vadd.f32 %v13001_v60, %v13000_v58  ;;  %v13003_v0 = vpop.f32.mrb[2].mxu0  ;;  %13303 = vmatpush3.bf16.msra.mxu0 %v14657_v55  ;;  %v13023_v3 = vpop.f32.mrb[1].mxu1  ;;  %v15874_v55 = vrot.slane %v2469_v46, %v15569_v42 }
 0x10e   : > { %v13004_v4 = vpop.f32.mrb[3].mxu0  ;;  %13304 = vmatprep.subr.bf16.mxu0 %v14659_v57  ;;  %v13024_v5 = vadd.f32 %v13023_v3, %v13022_v62  ;;  %v13025_v6 = vpop.f32.mrb[2].mxu1  ;;  %v2506_v62 = vrot.slane %v2484_v54, %v15569_v42  ;;  %v2492_v3 = vrot.slane %v2476_v45, %v15569_v42  ;;  %v14734_v54 = vld [vmem:[%s15528_s22 + $0xac0] sm:$0xff]  }
 0x10f   : > { %13325 = vmatpush3.bf16.msra.mxu1 %v14658_v56  ;;  %v13026_v8 = vpop.f32.mrb[3].mxu1  ;;  %v14700_v4 = vld [vmem:[%s15528_s22 + $0x940] sm:$0xff]  }
 0x110   : > { %13326 = vmatprep.subr.bf16.mxu1 %v14660_v59  ;;  %v15837_v10 = vadd.f32 %v13024_v5, %v13002_v63  ;;  %v14697_v59 = vld [vmem:[%s15528_s22 + $0x8f8] sm:$0xff]   ;;  %v2485_v63 = vcombine.high %v15874_v55, %v15874_v55  ;;  %v14701_v5 = vld [vmem:[%s15528_s22 + $0x9c0] sm:$0xff]  }
 0x111   : > { %13305 = vmatpush3.bf16.msra.mxu0 %v14661_v61  ;;  %v14698_v61 = vld [vmem:[%s15528_s22 + $0x838] sm:$0xff]   ;;  %v14703_v8 = vld [vmem:[%s15528_s22 + $0x980] sm:$0xff]  }
 0x112   : > { %13306 = vmatprep.subr.bf16.mxu0 %v14663_v2  ;;  %v2516_v2 = vcombine.high %v2506_v62, %v2506_v62  ;;  %v2513_v6 = vrot.slane %v2485_v63, %v15569_v42  ;;  %v14742_v63 = vld [vmem:[%s15528_s22 + $0xad0] sm:$0xff]  }
 0x113   : > { %13327 = vmatpush3.bf16.msra.mxu1 %v14662_v1  ;;  %v14699_v1 = vld [vmem:[%s15528_s22 + $0x8b8] sm:$0xff]  }
 0x114   : > { %13328 = vmatprep.subr.bf16.mxu1 %v14664_v7  ;;  %v14702_v7 = vld [vmem:[%s15528_s22 + $0x900] sm:$0xff]  }
 0x115   : > { %13307 = vmatpush3.bf16.msra.mxu0 %v14665_v9  ;;  %v2514_v9 = vcombine.high %v2492_v3, %v2492_v3 }
 0x116   : > { %13336 = vmatprep.subr.bf16.mxu0 %v14668_v13  ;;  %v14706_v13 = vld [vmem:[%s15528_s22 + $0x908] sm:$0xff]  }
 0x117   : > { %13329 = vmatpush3.bf16.msra.mxu1 %v14666_v11  ;;  %v14705_v11 = vld [vmem:[%s15528_s22 + $0x9c8] sm:$0xff]  }
 0x118   : > { %9922 = vmatmul.mubr.bf16.vlgmr.msra.gmra.mrb[28].mxu0 %v2450_v12  ;;  %13358 = vmatprep.subr.bf16.mxu1 %v14669_v14  ;;  %v2517_v12 = vcombine.high %v2513_v6, %v2513_v6  ;;  %v14707_v14 = vld [vmem:[%s15528_s22 + $0x988] sm:$0xff]  }
 0x119   : > { %13337 = vmatpush3.bf16.msra.mxu0 %v14670_v15  ;;  %10001 = vmatprep.mubr.bf16.mxu0 %v2506_v62  ;;  %v14708_v15 = vld [vmem:[%s15528_s22 + $0x950] sm:$0xff]  }
 0x11a   : > { %9962 = vmatmul.mubr.bf16.vlgmr.msra.gmra.mrb[28].mxu1 %v2466_v17  ;;  %13338 = vmatprep.subr.bf16.mxu0 %v14672_v18  ;;  %v14710_v17 = vld [vmem:[%s15528_s22 + $0x910] sm:$0xff]  }
 0x11b   : > { %13359 = vmatpush3.bf16.msra.mxu1 %v14671_v16  ;;  %10041 = vmatprep.mubr.bf16.mxu1 %v2516_v2  ;;  %v14709_v16 = vld [vmem:[%s15528_s22 + $0x9d0] sm:$0xff]   ;;  %v14745_v2 = vld [vmem:[%s15528_s22 + $0xa58] sm:$0xff]  }
 0x11c   : > { %13360 = vmatprep.subr.bf16.mxu1 %v14673_v19  ;;  %v14711_v18 = vld [vmem:[%s15528_s22 + $0x990] sm:$0xff]   ;;  %v14712_v19 = vld [vmem:[%s15528_s22 + $0x958] sm:$0xff]  }
 0x11d   : > { %13339 = vmatpush3.bf16.msra.mxu0 %v14674_v20  ;;  %v14713_v20 = vld [vmem:[%s15528_s22 + $0x9d8] sm:$0xff]   ;;  %v14741_v62 = vld [vmem:[%s15528_s22 + $0xa50] sm:$0xff]  }
 0x11e   : > { %13340 = vmatprep.subr.bf16.mxu0 %v14676_v22  ;;  %v14715_v22 = vld [vmem:[%s15528_s22 + $0x998] sm:$0xff]  }
 0x11f   : > { %13361 = vmatpush3.bf16.msra.mxu1 %v14675_v21  ;;  %v14714_v21 = vld [vmem:[%s15528_s22 + $0x918] sm:$0xff]  }
 0x120   : > { %13362 = vmatprep.subr.bf16.mxu1 %v14677_v23  ;;  %v14716_v23 = vld [vmem:[%s15528_s22 + $0x960] sm:$0xff]  }
 0x121   : > { %13341 = vmatpush3.bf16.msra.mxu0 %v14678_v24  ;;  %v14717_v24 = vld [vmem:[%s15528_s22 + $0x9e0] sm:$0xff]  }
 0x122   : > { %13342 = vmatprep.subr.bf16.mxu0 %v14680_v26  ;;  %v14719_v26 = vld [vmem:[%s15528_s22 + $0x9a0] sm:$0xff]  }
 0x123   : > { %13363 = vmatpush3.bf16.msra.mxu1 %v14679_v25  ;;  %v14718_v25 = vld [vmem:[%s15528_s22 + $0x920] sm:$0xff]  }
 0x124   : > { %13364 = vmatprep.subr.bf16.mxu1 %v14681_v27  ;;  %v14720_v27 = vld [vmem:[%s15528_s22 + $0x968] sm:$0xff]  }
 0x125   : > { %13343 = vmatpush3.bf16.msra.mxu0 %v14682_v28  ;;  %v14721_v28 = vld [vmem:[%s15528_s22 + $0x9e8] sm:$0xff]  }
 0x126   : > { %13344 = vmatprep.subr.bf16.mxu0 %v14684_v30  ;;  %v14723_v30 = vld [vmem:[%s15528_s22 + $0x9a8] sm:$0xff]  }
 0x127   : > { %13365 = vmatpush3.bf16.msra.mxu1 %v14683_v29  ;;  %v14722_v29 = vld [vmem:[%s15528_s22 + $0x928] sm:$0xff]  }
 0x128   : > { %13366 = vmatprep.subr.bf16.mxu1 %v14685_v31  ;;  %v14724_v31 = vld [vmem:[%s15528_s22 + $0x970] sm:$0xff]  }
 0x129   : > { %13345 = vmatpush3.bf16.msra.mxu0 %v14686_v32 }
 0x12a   : > { %13346 = vmatprep.subr.bf16.mxu0 %v14688_v34 }
 0x12b   : > { %13367 = vmatpush3.bf16.msra.mxu1 %v14687_v33  ;;  %v13044_v39 = vpop.f32.mrb[4].mxu0  ;;  %v14725_v33 = vld [vmem:[%s15528_s22 + $0x9f0] sm:$0xff]  }
 0x12c   : > { %v13045_v43 = vpop.f32.mrb[5].mxu0  ;;  %13368 = vmatprep.subr.bf16.mxu1 %v14689_v35  ;;  %v13066_v47 = vpop.f32.mrb[4].mxu1  ;;  %v14726_v35 = vld [vmem:[%s15528_s22 + $0x930] sm:$0xff]  }
 0x12d   : > { %v13046_v48 = vadd.f32 %v13045_v43, %v13044_v39  ;;  %v13047_v49 = vpop.f32.mrb[6].mxu0  ;;  %13347 = vmatpush3.bf16.msra.mxu0 %v14690_v36  ;;  %v13067_v50 = vpop.f32.mrb[5].mxu1  ;;  %v14727_v39 = vld [vmem:[%s15528_s22 + $0x9b0] sm:$0xff]  }
 0x12e   : > { %v13048_v51 = vpop.f32.mrb[7].mxu0  ;;  %13348 = vmatprep.subr.bf16.mxu0 %v14692_v38  ;;  %v13068_v57 = vadd.f32 %v13067_v50, %v13066_v47  ;;  %v13069_v58 = vpop.f32.mrb[6].mxu1  ;;  %v14729_v47 = vld [vmem:[%s15528_s22 + $0x9f8] sm:$0xff]  }
 0x12f   : > { %v9444_v56 = vadd.f32 %v13046_v48, %v15837_v10  ;;  %13369 = vmatpush3.bf16.msra.mxu1 %v14691_v37  ;;  %v13070_v60 = vpop.f32.mrb[7].mxu1  ;;  %v14704_v10 = vld [vmem:[%s15528_s22 + $0x948] sm:$0xff]   ;;  %v14730_v49 = vld [vmem:[%s15528_s22 + $0x938] sm:$0xff]  }
 0x130   : > { %13370 = vmatprep.subr.bf16.mxu1 %v14693_v40  ;;  %v14728_v40 = vld [vmem:[%s15528_s22 + $0x978] sm:$0xff]   ;;  %v14738_v60 = vld [vmem:[%s15528_s22 + $0xac8] sm:$0xff]  }
 0x131   : > { %v15882_v0 = vadd.f32 %v13068_v57, %v9444_v56  ;;  %13349 = vmatpush3.bf16.msra.mxu0 %v14694_v44  ;;  %v14731_v51 = vld [vmem:[%s15528_s22 + $0x9b8] sm:$0xff]   ;;  %v14735_v56 = vld [vmem:[%s15528_s22 + $0xa00] sm:$0xff]  }
 0x132   : > { %13350 = vmatprep.subr.bf16.mxu0 %v14696_v53  ;;  %v14733_v53 = vld [vmem:[%s15528_s22 + $0xa40] sm:$0xff]  }
 0x133   : > { %13371 = vmatpush3.bf16.msra.mxu1 %v14695_v52  ;;  %v2499_v52 = vrot.slane %v15874_v55, %v15569_v42  ;;  %v14736_v57 = vld [vmem:[%s15528_s22 + $0xa80] sm:$0xff]   ;;  %v14739_v55 = vld [vmem:[%s15528_s22 + $0xa08] sm:$0xff]  }
 0x134   : > { %13372 = vmatprep.subr.bf16.mxu1 %v14697_v59  ;;  %v14737_v59 = vld [vmem:[%s15528_s22 + $0xa48] sm:$0xff]  }
 0x135   : > { %13351 = vmatpush3.bf16.msra.mxu0 %v14698_v61  ;;  %v2515_v58 = vcombine.high %v2499_v52, %v2499_v52  ;;  %v14740_v61 = vld [vmem:[%s15528_s22 + $0xa88] sm:$0xff]  }
 0x136   : > { %13380 = vmatprep.subr.bf16.mxu0 %v14700_v4  ;;  %v14747_v4 = vld [vmem:[%s15528_s22 + $0xa18] sm:$0xff]  }
 0x137   : > { %13373 = vmatpush3.bf16.msra.mxu1 %v14699_v1  ;;  %v14744_v1 = vld [vmem:[%s15528_s22 + $0xa90] sm:$0xff]  }
 0x138   : > { %10002 = vmatmul.mubr.bf16.vlgmr.msra.gmra.mrb[32].mxu0 %v2492_v3  ;;  %13402 = vmatprep.subr.bf16.mxu1 %v14701_v5  ;;  %v14746_v3 = vld [vmem:[%s15528_s22 + $0xad8] sm:$0xff]  }
 0x139   : > { %13381 = vmatpush3.bf16.msra.mxu0 %v14702_v7  ;;  %10081 = vmatprep.mubr.bf16.mxu0 %v2513_v6  ;;  %v14748_v5 = vld [vmem:[%s15528_s22 + $0xa98] sm:$0xff]   ;;  %v14749_v6 = vld [vmem:[%s15528_s22 + $0xa60] sm:$0xff]  }
 0x13a   : > { %10042 = vmatmul.mubr.bf16.vlgmr.msra.gmra.mrb[32].mxu1 %v2514_v9  ;;  %13382 = vmatprep.subr.bf16.mxu0 %v14704_v10  ;;  %v14750_v7 = vld [vmem:[%s15528_s22 + $0xae0] sm:$0xff]   ;;  %v14753_v10 = vld [vmem:[%s15528_s22 + $0xa68] sm:$0xff]  }
 0x13b   : > { %13403 = vmatpush3.bf16.msra.mxu1 %v14703_v8  ;;  %10121 = vmatprep.mubr.bf16.mxu1 %v2517_v12  ;;  %v14751_v8 = vld [vmem:[%s15528_s22 + $0xa20] sm:$0xff]   ;;  %v14755_v12 = vld [vmem:[%s15528_s22 + $0xa28] sm:$0xff]  }
 0x13c   : > { %13404 = vmatprep.subr.bf16.mxu1 %v14705_v11  ;;  %v14752_v9 = vld [vmem:[%s15528_s22 + $0xaa0] sm:$0xff]   ;;  %v14754_v11 = vld [vmem:[%s15528_s22 + $0xae8] sm:$0xff]  }
 0x13d   : > { %13383 = vmatpush3.bf16.msra.mxu0 %v14706_v13  ;;  %v14756_v13 = vld [vmem:[%s15528_s22 + $0xaa8] sm:$0xff]  }
 0x13e   : > { %13384 = vmatprep.subr.bf16.mxu0 %v14708_v15 }
 0x13f   : > { %13405 = vmatpush3.bf16.msra.mxu1 %v14707_v14  ;;  %v14757_v14 = vld [vmem:[%s15528_s22 + $0xa70] sm:$0xff]  }
 0x140   : > { %13406 = vmatprep.subr.bf16.mxu1 %v14709_v16  ;;  %v14758_v16 = vld [vmem:[%s15528_s22 + $0xaf0] sm:$0xff]  }
 0x141   : > { %13385 = vmatpush3.bf16.msra.mxu0 %v14710_v17 }
 0x142   : > { %13386 = vmatprep.subr.bf16.mxu0 %v14712_v19  ;;  %v198_v19 = vld [vmem:[%s15523_s18 + $0x28] sm:$0xff] }
 0x143   : > { %13407 = vmatpush3.bf16.msra.mxu1 %v14711_v18  ;;  %v14759_v18 = vld [vmem:[%s15528_s22 + $0xa30] sm:$0xff]  }
 0x144   : > { %13408 = vmatprep.subr.bf16.mxu1 %v14713_v20 }
 0x145   : > { %13387 = vmatpush3.bf16.msra.mxu0 %v14714_v21 }
 0x146   : > { %13388 = vmatprep.subr.bf16.mxu0 %v14716_v23  ;;  %v2525_v23 = vrot.slane %v198_v19, %v15569_v42 }
 0x147   : > { %13409 = vmatpush3.bf16.msra.mxu1 %v14715_v22 }
 0x148   : > { %13410 = vmatprep.subr.bf16.mxu1 %v14717_v24  ;;  %v2518_v24 = vcombine.high %v198_v19, %v198_v19 }
 0x149   : > { %13389 = vmatpush3.bf16.msra.mxu0 %v14718_v25 }
 0x14a   : > { %13390 = vmatprep.subr.bf16.mxu0 %v14720_v27  ;;  %v14760_v27 = vld [vmem:[%s15528_s22 + $0xab0] sm:$0xff]  }
 0x14b   : > { %13411 = vmatpush3.bf16.msra.mxu1 %v14719_v26  ;;  %v13088_v32 = vpop.f32.mrb[8].mxu0 }
 0x14c   : > { %v13089_v34 = vpop.f32.mrb[9].mxu0  ;;  %13412 = vmatprep.subr.bf16.mxu1 %v14721_v28  ;;  %v14761_v28 = vld [vmem:[%s15528_s22 + $0xa78] sm:$0xff]  }
 0x14d   : > { %v13110_v36 = vpop.f32.mrb[8].mxu1  ;;  %v13090_v37 = vadd.f32 %v13089_v34, %v13088_v32  ;;  %v13091_v38 = vpop.f32.mrb[10].mxu0  ;;  %13391 = vmatpush3.bf16.msra.mxu0 %v14722_v29  ;;  %v14762_v32 = vld [vmem:[%s15528_s22 + $0xaf8] sm:$0xff]  }
 0x14e   : > { %v13111_v41 = vpop.f32.mrb[9].mxu1  ;;  %v13092_v43 = vpop.f32.mrb[11].mxu0  ;;  %13392 = vmatprep.subr.bf16.mxu0 %v14724_v31  ;;  %v14764_v38 = vld [vmem:[%s15528_s22 + $0xab8] sm:$0xff]  }
 0x14f   : > { %v9524_v44 = vadd.f32 %v13090_v37, %v15882_v0  ;;  %v13112_v45 = vadd.f32 %v13111_v41, %v13110_v36  ;;  %v13113_v46 = vpop.f32.mrb[10].mxu1  ;;  %13413 = vmatpush3.bf16.msra.mxu1 %v14723_v30  ;;  %v14743_v0 = vld [vmem:[%s15528_s22 + $0xa10] sm:$0xff]   ;;  %v15959_v36 = vrot.slane %v2518_v24, %v15569_v42  ;;  %v14765_v41 = vld [vmem:[%s15528_s22 + $0xb40] sm:$0xff]   ;;  %v14795_v24 = vld [vmem:[%s15528_s22 + $0xb38] sm:$0xff]  }
 0x150   : > { %v13114_v48 = vpop.f32.mrb[11].mxu1  ;;  %13414 = vmatprep.subr.bf16.mxu1 %v14725_v33  ;;  %v2533_v33 = vcombine.high %v2525_v23, %v2525_v23  ;;  %v14767_v46 = vld [vmem:[%s15528_s22 + $0xb00] sm:$0xff]  }
 0x151   : > { %v15919_v50 = vadd.f32 %v13112_v45, %v9524_v44  ;;  %13393 = vmatpush3.bf16.msra.mxu0 %v14726_v35  ;;  %v14763_v35 = vld [vmem:[%s15528_s22 + $0xa38] sm:$0xff]   ;;  %v2534_v43 = vcombine.high %v15959_v36, %v15959_v36  ;;  %v14766_v45 = vld [vmem:[%s15528_s22 + $0xbc0] sm:$0xff]  }
 0x152   : > { %13394 = vmatprep.subr.bf16.mxu0 %v14728_v40  ;;  %v2541_v40 = vrot.slane %v2525_v23, %v15569_v42  ;;  %v14768_v48 = vld [vmem:[%s15528_s22 + $0xb80] sm:$0xff]  }
 0x153   : > { %13415 = vmatpush3.bf16.msra.mxu1 %v14727_v39  ;;  %v2555_v39 = vrot.slane %v2533_v33, %v15569_v42  ;;  %v14802_v33 = vld [vmem:[%s15528_s22 + $0xc48] sm:$0xff]  }
 0x154   : > { %13416 = vmatprep.subr.bf16.mxu1 %v14729_v47  ;;  %v2562_v47 = vrot.slane %v2534_v43, %v15569_v42  ;;  %v14811_v43 = vld [vmem:[%s15528_s22 + $0xcd8] sm:$0xff]  }
 0x155   : > { %13395 = vmatpush3.bf16.msra.mxu0 %v14730_v49  ;;  %v2565_v44 = vcombine.high %v2555_v39, %v2555_v39  ;;  %v2563_v49 = vcombine.high %v2541_v40, %v2541_v40 }
 0x156   : > { %13424 = vmatprep.subr.bf16.mxu0 %v14733_v53  ;;  %v14771_v53 = vld [vmem:[%s15528_s22 + $0xb08] sm:$0xff]  }
 0x157   : > { %13417 = vmatpush3.bf16.msra.mxu1 %v14731_v51  ;;  %v14770_v51 = vld [vmem:[%s15528_s22 + $0xbc8] sm:$0xff]  }
 0x158   : > { %10082 = vmatmul.mubr.bf16.vlgmr.msra.gmra.mrb[36].mxu0 %v2499_v52  ;;  %13446 = vmatprep.subr.bf16.mxu1 %v14734_v54  ;;  %v2566_v52 = vcombine.high %v2562_v47, %v2562_v47  ;;  %v14772_v54 = vld [vmem:[%s15528_s22 + $0xb88] sm:$0xff]  }
 0x159   : > { %13425 = vmatpush3.bf16.msra.mxu0 %v14735_v56  ;;  %10161 = vmatprep.mubr.bf16.mxu0 %v2555_v39  ;;  %v14773_v56 = vld [vmem:[%s15528_s22 + $0xb50] sm:$0xff]  }
 0x15a   : > { %10122 = vmatmul.mubr.bf16.vlgmr.msra.gmra.mrb[36].mxu1 %v2515_v58  ;;  %13426 = vmatprep.subr.bf16.mxu0 %v14737_v59  ;;  %v14775_v58 = vld [vmem:[%s15528_s22 + $0xb10] sm:$0xff]  }
 0x15b   : > { %13447 = vmatpush3.bf16.msra.mxu1 %v14736_v57  ;;  %10201 = vmatprep.mubr.bf16.mxu1 %v2565_v44  ;;  %v14774_v57 = vld [vmem:[%s15528_s22 + $0xbd0] sm:$0xff]   ;;  %v14812_v44 = vld [vmem:[%s15528_s22 + $0xc18] sm:$0xff]  }
 0x15c   : > { %13448 = vmatprep.subr.bf16.mxu1 %v14738_v60  ;;  %v14776_v59 = vld [vmem:[%s15528_s22 + $0xb90] sm:$0xff]   ;;  %v14777_v60 = vld [vmem:[%s15528_s22 + $0xb58] sm:$0xff]  }
 0x15d   : > { %13427 = vmatpush3.bf16.msra.mxu0 %v14739_v55  ;;  %v14778_v55 = vld [vmem:[%s15528_s22 + $0xbd8] sm:$0xff]   ;;  %v14808_v39 = vld [vmem:[%s15528_s22 + $0xc10] sm:$0xff]  }
 0x15e   : > { %13428 = vmatprep.subr.bf16.mxu0 %v14741_v62  ;;  %v14780_v62 = vld [vmem:[%s15528_s22 + $0xb98] sm:$0xff]  }
 0x15f   : > { %13449 = vmatpush3.bf16.msra.mxu1 %v14740_v61  ;;  %v14779_v61 = vld [vmem:[%s15528_s22 + $0xb18] sm:$0xff]  }
 0x160   : > { %13450 = vmatprep.subr.bf16.mxu1 %v14742_v63  ;;  %v14781_v63 = vld [vmem:[%s15528_s22 + $0xb60] sm:$0xff]  }
 0x161   : > { %13429 = vmatpush3.bf16.msra.mxu0 %v14743_v0  ;;  %v14782_v0 = vld [vmem:[%s15528_s22 + $0xbe0] sm:$0xff]  }
 0x162   : > { %13430 = vmatprep.subr.bf16.mxu0 %v14745_v2  ;;  %v14784_v2 = vld [vmem:[%s15528_s22 + $0xba0] sm:$0xff]  }
 0x163   : > { %13451 = vmatpush3.bf16.msra.mxu1 %v14744_v1  ;;  %v14783_v1 = vld [vmem:[%s15528_s22 + $0xb20] sm:$0xff]  }
 0x164   : > { %13452 = vmatprep.subr.bf16.mxu1 %v14746_v3  ;;  %v14785_v3 = vld [vmem:[%s15528_s22 + $0xb68] sm:$0xff]  }
 0x165   : > { %13431 = vmatpush3.bf16.msra.mxu0 %v14747_v4  ;;  %v14786_v4 = vld [vmem:[%s15528_s22 + $0xbe8] sm:$0xff]  }
 0x166   : > { %13432 = vmatprep.subr.bf16.mxu0 %v14749_v6  ;;  %v14788_v6 = vld [vmem:[%s15528_s22 + $0xba8] sm:$0xff]  }
 0x167   : > { %13453 = vmatpush3.bf16.msra.mxu1 %v14748_v5  ;;  %v14787_v5 = vld [vmem:[%s15528_s22 + $0xb28] sm:$0xff]  }
 0x168   : > { %13454 = vmatprep.subr.bf16.mxu1 %v14750_v7  ;;  %v14789_v7 = vld [vmem:[%s15528_s22 + $0xb70] sm:$0xff]  }
 0x169   : > { %13433 = vmatpush3.bf16.msra.mxu0 %v14751_v8 }
 0x16a   : > { %13434 = vmatprep.subr.bf16.mxu0 %v14753_v10 }
 0x16b   : > { %13455 = vmatpush3.bf16.msra.mxu1 %v14752_v9  ;;  %v13132_v15 = vpop.f32.mrb[12].mxu0  ;;  %v14790_v9 = vld [vmem:[%s15528_s22 + $0xbf0] sm:$0xff]  }
 0x16c   : > { %v13133_v17 = vpop.f32.mrb[13].mxu0  ;;  %13456 = vmatprep.subr.bf16.mxu1 %v14754_v11  ;;  %v14791_v11 = vld [vmem:[%s15528_s22 + $0xb30] sm:$0xff]  }
 0x16d   : > { %v13154_v20 = vpop.f32.mrb[12].mxu1  ;;  %v13134_v21 = vadd.f32 %v13133_v17, %v13132_v15  ;;  %v13135_v22 = vpop.f32.mrb[14].mxu0  ;;  %13435 = vmatpush3.bf16.msra.mxu0 %v14755_v12  ;;  %v14792_v15 = vld [vmem:[%s15528_s22 + $0xbb0] sm:$0xff]  }
 0x16e   : > { %v13155_v25 = vpop.f32.mrb[13].mxu1  ;;  %v13136_v26 = vpop.f32.mrb[15].mxu0  ;;  %13436 = vmatprep.subr.bf16.mxu0 %v14757_v14  ;;  %v14794_v22 = vld [vmem:[%s15528_s22 + $0xbf8] sm:$0xff]  }
 0x16f   : > { %v9604_v29 = vadd.f32 %v13134_v21, %v15919_v50  ;;  %v13156_v30 = vadd.f32 %v13155_v25, %v13154_v20  ;;  %v13157_v31 = vpop.f32.mrb[14].mxu1  ;;  %13457 = vmatpush3.bf16.msra.mxu1 %v14756_v13  ;;  %v14769_v50 = vld [vmem:[%s15528_s22 + $0xb48] sm:$0xff]   ;;  %v14796_v26 = vld [vmem:[%s15528_s22 + $0xbb8] sm:$0xff]  }
 0x170   : > { %v13158_v34 = vpop.f32.mrb[15].mxu1  ;;  %13458 = vmatprep.subr.bf16.mxu1 %v14758_v16  ;;  %v14793_v16 = vld [vmem:[%s15528_s22 + $0xb78] sm:$0xff]   ;;  %v14801_v31 = vld [vmem:[%s15528_s22 + $0xc80] sm:$0xff]  }
 0x171   : > { %v15961_v37 = vadd.f32 %v13156_v30, %v9604_v29  ;;  %13437 = vmatpush3.bf16.msra.mxu0 %v14759_v18  ;;  %v14799_v29 = vld [vmem:[%s15528_s22 + $0xcc0] sm:$0xff]   ;;  %v14803_v34 = vld [vmem:[%s15528_s22 + $0xcc8] sm:$0xff]  }
 0x172   : > { %13438 = vmatprep.subr.bf16.mxu0 %v14761_v28  ;;  %v14798_v28 = vld [vmem:[%s15528_s22 + $0xc40] sm:$0xff]  }
 0x173   : > { %13459 = vmatpush3.bf16.msra.mxu1 %v14760_v27  ;;  %v2548_v27 = vrot.slane %v15959_v36, %v15569_v42  ;;  %v14800_v30 = vld [vmem:[%s15528_s22 + $0xc00] sm:$0xff]   ;;  %v14805_v36 = vld [vmem:[%s15528_s22 + $0xc88] sm:$0xff]  }
 0x174   : > { %13460 = vmatprep.subr.bf16.mxu1 %v14762_v32 }
 0x175   : > { %13439 = vmatpush3.bf16.msra.mxu0 %v14763_v35  ;;  %v2564_v32 = vcombine.high %v2548_v27, %v2548_v27  ;;  %v14804_v35 = vld [vmem:[%s15528_s22 + $0xc08] sm:$0xff]  }
 0x176   : > { %13468 = vmatprep.subr.bf16.mxu0 %v14765_v41  ;;  %v14810_v41 = vld [vmem:[%s15528_s22 + $0xc58] sm:$0xff]  }
 0x177   : > { %13461 = vmatpush3.bf16.msra.mxu1 %v14764_v38  ;;  %v14807_v38 = vld [vmem:[%s15528_s22 + $0xcd0] sm:$0xff]  }
 0x178   : > { %10162 = vmatmul.mubr.bf16.vlgmr.msra.gmra.mrb[40].mxu0 %v2541_v40  ;;  %13490 = vmatprep.subr.bf16.mxu1 %v14766_v45  ;;  %v14809_v40 = vld [vmem:[%s15528_s22 + $0xc90] sm:$0xff]   ;;  %v14813_v45 = vld [vmem:[%s15528_s22 + $0xc98] sm:$0xff]  }
 0x179   : > { %13469 = vmatpush3.bf16.msra.mxu0 %v14767_v46  ;;  %10241 = vmatprep.mubr.bf16.mxu0 %v2562_v47  ;;  %v14814_v46 = vld [vmem:[%s15528_s22 + $0xc60] sm:$0xff]  }
 0x17a   : > { %10202 = vmatmul.mubr.bf16.vlgmr.msra.gmra.mrb[40].mxu1 %v2563_v49  ;;  %13470 = vmatprep.subr.bf16.mxu0 %v14769_v50  ;;  %v14815_v47 = vld [vmem:[%s15528_s22 + $0xce0] sm:$0xff]   ;;  %v14818_v50 = vld [vmem:[%s15528_s22 + $0xc68] sm:$0xff]  }
 0x17b   : > { %13491 = vmatpush3.bf16.msra.mxu1 %v14768_v48  ;;  %10281 = vmatprep.mubr.bf16.mxu1 %v2566_v52  ;;  %v14816_v48 = vld [vmem:[%s15528_s22 + $0xc20] sm:$0xff]   ;;  %v14820_v52 = vld [vmem:[%s15528_s22 + $0xc28] sm:$0xff]  }
 0x17c   : > { %13492 = vmatprep.subr.bf16.mxu1 %v14770_v51  ;;  %v14817_v49 = vld [vmem:[%s15528_s22 + $0xca0] sm:$0xff]   ;;  %v14819_v51 = vld [vmem:[%s15528_s22 + $0xce8] sm:$0xff]  }
 0x17d   : > { %13471 = vmatpush3.bf16.msra.mxu0 %v14771_v53  ;;  %v14821_v53 = vld [vmem:[%s15528_s22 + $0xca8] sm:$0xff]  }
 0x17e   : > { %13472 = vmatprep.subr.bf16.mxu0 %v14773_v56 }
 0x17f   : > { %13493 = vmatpush3.bf16.msra.mxu1 %v14772_v54  ;;  %v14822_v54 = vld [vmem:[%s15528_s22 + $0xc70] sm:$0xff]  }
 0x180   : > { %13494 = vmatprep.subr.bf16.mxu1 %v14774_v57  ;;  %v14823_v57 = vld [vmem:[%s15528_s22 + $0xcf0] sm:$0xff]  }
 0x181   : > { %13473 = vmatpush3.bf16.msra.mxu0 %v14775_v58 }
 0x182   : > { %13474 = vmatprep.subr.bf16.mxu0 %v14777_v60 }
 0x183   : > { %13495 = vmatpush3.bf16.msra.mxu1 %v14776_v59  ;;  %v14824_v59 = vld [vmem:[%s15528_s22 + $0xc30] sm:$0xff]  }
 0x184   : > { %13496 = vmatprep.subr.bf16.mxu1 %v14778_v55 }
 0x185   : > { %13475 = vmatpush3.bf16.msra.mxu0 %v14779_v61 }
 0x186   : > { %13476 = vmatprep.subr.bf16.mxu0 %v14781_v63  ;;  %v14826_v63 = vld [vmem:[%s15528_s22 + $0xc78] sm:$0xff]  }
 0x187   : > { %13497 = vmatpush3.bf16.msra.mxu1 %v14780_v62  ;;  %v14825_v62 = vld [vmem:[%s15528_s22 + $0xcb0] sm:$0xff]  }
 0x188   : > { %13498 = vmatprep.subr.bf16.mxu1 %v14782_v0  ;;  %v199_v0 = vld [vmem:[%s15523_s18 + $0x30] sm:$0xff] }
 0x189   : > { %13477 = vmatpush3.bf16.msra.mxu0 %v14783_v1 }
 0x18a   : > { %13478 = vmatprep.subr.bf16.mxu0 %v14785_v3  ;;  %v2574_v3 = vrot.slane %v199_v0, %v15569_v42 }
 0x18b   : > { %13499 = vmatpush3.bf16.msra.mxu1 %v14784_v2  ;;  %v13176_v8 = vpop.f32.mrb[16].mxu0 }
 0x18c   : > { %v13177_v10 = vpop.f32.mrb[17].mxu0  ;;  %13500 = vmatprep.subr.bf16.mxu1 %v14786_v4  ;;  %v2567_v4 = vcombine.high %v199_v0, %v199_v0  ;;  %v14860_v0 = vld [vmem:[%s15528_s22 + $0xd38] sm:$0xff]  }
 0x18d   : > { %v13198_v12 = vpop.f32.mrb[16].mxu1  ;;  %v13178_v13 = vadd.f32 %v13177_v10, %v13176_v8  ;;  %v13179_v14 = vpop.f32.mrb[18].mxu0  ;;  %13479 = vmatpush3.bf16.msra.mxu0 %v14787_v5  ;;  %v14827_v8 = vld [vmem:[%s15528_s22 + $0xcf8] sm:$0xff]  }
 0x18e   : > { %v13199_v17 = vpop.f32.mrb[17].mxu1  ;;  %v13180_v18 = vpop.f32.mrb[19].mxu0  ;;  %13480 = vmatprep.subr.bf16.mxu0 %v14789_v7  ;;  %v14828_v10 = vld [vmem:[%s15528_s22 + $0xc38] sm:$0xff]  }
 0x18f   : > { %v9684_v19 = vadd.f32 %v13178_v13, %v15961_v37  ;;  %v13200_v20 = vadd.f32 %v13199_v17, %v13198_v12  ;;  %v13201_v21 = vpop.f32.mrb[18].mxu1  ;;  %13501 = vmatpush3.bf16.msra.mxu1 %v14788_v6  ;;  %v14806_v37 = vld [vmem:[%s15528_s22 + $0xc50] sm:$0xff]   ;;  %v16041_v12 = vrot.slane %v2567_v4, %v15569_v42  ;;  %v14829_v14 = vld [vmem:[%s15528_s22 + $0xcb8] sm:$0xff]   ;;  %v14830_v17 = vld [vmem:[%s15528_s22 + $0xd40] sm:$0xff]  }
 0x190   : > { %v13202_v23 = vpop.f32.mrb[19].mxu1  ;;  %13502 = vmatprep.subr.bf16.mxu1 %v14790_v9  ;;  %v14832_v21 = vld [vmem:[%s15528_s22 + $0xd00] sm:$0xff]  }
 0x191   : > { %v16001_v25 = vadd.f32 %v13200_v20, %v9684_v19  ;;  %13481 = vmatpush3.bf16.msra.mxu0 %v14791_v11  ;;  %v2582_v11 = vcombine.high %v2574_v3, %v2574_v3  ;;  %v2583_v18 = vcombine.high %v16041_v12, %v16041_v12  ;;  %v14831_v19 = vld [vmem:[%s15528_s22 + $0xdc0] sm:$0xff]  }
 0x192   : > { %13482 = vmatprep.subr.bf16.mxu0 %v14793_v16  ;;  %v2590_v16 = vrot.slane %v2574_v3, %v15569_v42  ;;  %v14833_v23 = vld [vmem:[%s15528_s22 + $0xd80] sm:$0xff]   ;;  %v2597_v3 = vrot.slane %v16041_v12, %v15569_v42  ;;  %v14870_v12 = vld [vmem:[%s15528_s22 + $0xe88] sm:$0xff]  }
 0x193   : > { %13503 = vmatpush3.bf16.msra.mxu1 %v14792_v15  ;;  %v2604_v15 = vrot.slane %v2582_v11, %v15569_v42  ;;  %v14863_v4 = vld [vmem:[%s15528_s22 + $0xe40] sm:$0xff]   ;;  %v14869_v11 = vld [vmem:[%s15528_s22 + $0xe08] sm:$0xff]  }
 0x194   : > { %13504 = vmatprep.subr.bf16.mxu1 %v14794_v22  ;;  %v2611_v22 = vrot.slane %v2583_v18, %v15569_v42  ;;  %v14876_v18 = vld [vmem:[%s15528_s22 + $0xed8] sm:$0xff]  }
 0x195   : > { %13483 = vmatpush3.bf16.msra.mxu0 %v14795_v24  ;;  %v2614_v20 = vcombine.high %v2604_v15, %v2604_v15  ;;  %v2612_v24 = vcombine.high %v2590_v16, %v2590_v16 }
 0x196   : > { %13512 = vmatprep.subr.bf16.mxu0 %v14798_v28  ;;  %v14836_v28 = vld [vmem:[%s15528_s22 + $0xd08] sm:$0xff]  }
 0x197   : > { %13505 = vmatpush3.bf16.msra.mxu1 %v14796_v26  ;;  %v14835_v26 = vld [vmem:[%s15528_s22 + $0xdc8] sm:$0xff]  }
 0x198   : > { %10242 = vmatmul.mubr.bf16.vlgmr.msra.gmra.mrb[44].mxu0 %v2548_v27  ;;  %13534 = vmatprep.subr.bf16.mxu1 %v14799_v29  ;;  %v2615_v27 = vcombine.high %v2611_v22, %v2611_v22  ;;  %v14837_v29 = vld [vmem:[%s15528_s22 + $0xd88] sm:$0xff]  }
 0x199   : > { %13513 = vmatpush3.bf16.msra.mxu0 %v14800_v30  ;;  %10321 = vmatprep.mubr.bf16.mxu0 %v2604_v15  ;;  %v14838_v30 = vld [vmem:[%s15528_s22 + $0xd50] sm:$0xff]  }
 0x19a   : > { %10282 = vmatmul.mubr.bf16.vlgmr.msra.gmra.mrb[44].mxu1 %v2564_v32  ;;  %13514 = vmatprep.subr.bf16.mxu0 %v14802_v33  ;;  %v14840_v32 = vld [vmem:[%s15528_s22 + $0xd10] sm:$0xff]  }
 0x19b   : > { %13535 = vmatpush3.bf16.msra.mxu1 %v14801_v31  ;;  %10361 = vmatprep.mubr.bf16.mxu1 %v2614_v20  ;;  %v14839_v31 = vld [vmem:[%s15528_s22 + $0xdd0] sm:$0xff]   ;;  %v14878_v20 = vld [vmem:[%s15528_s22 + $0xe98] sm:$0xff]  }
 0x19c   : > { %13536 = vmatprep.subr.bf16.mxu1 %v14803_v34  ;;  %v14841_v33 = vld [vmem:[%s15528_s22 + $0xd90] sm:$0xff]   ;;  %v14842_v34 = vld [vmem:[%s15528_s22 + $0xd58] sm:$0xff]  }
 0x19d   : > { %13515 = vmatpush3.bf16.msra.mxu0 %v14804_v35  ;;  %v14843_v35 = vld [vmem:[%s15528_s22 + $0xdd8] sm:$0xff]   ;;  %v14873_v15 = vld [vmem:[%s15528_s22 + $0xe10] sm:$0xff]  }
 0x19e   : > { %13516 = vmatprep.subr.bf16.mxu0 %v14806_v37  ;;  %v14845_v37 = vld [vmem:[%s15528_s22 + $0xd98] sm:$0xff]  }
 0x19f   : > { %13537 = vmatpush3.bf16.msra.mxu1 %v14805_v36  ;;  %v14844_v36 = vld [vmem:[%s15528_s22 + $0xd18] sm:$0xff]  }
 0x1a0   : > { %13538 = vmatprep.subr.bf16.mxu1 %v14807_v38  ;;  %v14846_v38 = vld [vmem:[%s15528_s22 + $0xd60] sm:$0xff]  }
 0x1a1   : > { %13517 = vmatpush3.bf16.msra.mxu0 %v14808_v39  ;;  %v14847_v39 = vld [vmem:[%s15528_s22 + $0xde0] sm:$0xff]  }
 0x1a2   : > { %13518 = vmatprep.subr.bf16.mxu0 %v14810_v41  ;;  %v14849_v41 = vld [vmem:[%s15528_s22 + $0xda0] sm:$0xff]  }
 0x1a3   : > { %13539 = vmatpush3.bf16.msra.mxu1 %v14809_v40  ;;  %v14848_v40 = vld [vmem:[%s15528_s22 + $0xd20] sm:$0xff]  }
 0x1a4   : > { %13540 = vmatprep.subr.bf16.mxu1 %v14811_v43  ;;  %v14850_v43 = vld [vmem:[%s15528_s22 + $0xd68] sm:$0xff]  }
 0x1a5   : > { %13519 = vmatpush3.bf16.msra.mxu0 %v14812_v44  ;;  %v14851_v44 = vld [vmem:[%s15528_s22 + $0xde8] sm:$0xff]  }
 0x1a6   : > { %13520 = vmatprep.subr.bf16.mxu0 %v14814_v46  ;;  %v14853_v46 = vld [vmem:[%s15528_s22 + $0xda8] sm:$0xff]  }
 0x1a7   : > { %13541 = vmatpush3.bf16.msra.mxu1 %v14813_v45  ;;  %v14852_v45 = vld [vmem:[%s15528_s22 + $0xd28] sm:$0xff]  }
 0x1a8   : > { %13542 = vmatprep.subr.bf16.mxu1 %v14815_v47  ;;  %v14854_v47 = vld [vmem:[%s15528_s22 + $0xd70] sm:$0xff]  }
 0x1a9   : > { %13521 = vmatpush3.bf16.msra.mxu0 %v14816_v48 }
 0x1aa   : > { %13522 = vmatprep.subr.bf16.mxu0 %v14818_v50 }
 0x1ab   : > { %13543 = vmatpush3.bf16.msra.mxu1 %v14817_v49  ;;  %v13220_v56 = vpop.f32.mrb[20].mxu0  ;;  %v14855_v49 = vld [vmem:[%s15528_s22 + $0xdf0] sm:$0xff]  }
 0x1ac   : > { %v13221_v58 = vpop.f32.mrb[21].mxu0  ;;  %13544 = vmatprep.subr.bf16.mxu1 %v14819_v51  ;;  %v14856_v51 = vld [vmem:[%s15528_s22 + $0xd30] sm:$0xff]  }
 0x1ad   : > { %v13242_v60 = vpop.f32.mrb[20].mxu1  ;;  %v13222_v55 = vadd.f32 %v13221_v58, %v13220_v56  ;;  %v13223_v61 = vpop.f32.mrb[22].mxu0  ;;  %13523 = vmatpush3.bf16.msra.mxu0 %v14820_v52  ;;  %v14857_v56 = vld [vmem:[%s15528_s22 + $0xdb0] sm:$0xff]  }
 0x1ae   : > { %v13243_v1 = vpop.f32.mrb[21].mxu1  ;;  %v13224_v2 = vpop.f32.mrb[23].mxu0  ;;  %13524 = vmatprep.subr.bf16.mxu0 %v14822_v54 }
 0x1af   : > { %v9764_v5 = vadd.f32 %v13222_v55, %v16001_v25  ;;  %v13244_v6 = vadd.f32 %v13243_v1, %v13242_v60  ;;  %v13245_v7 = vpop.f32.mrb[22].mxu1  ;;  %13545 = vmatpush3.bf16.msra.mxu1 %v14821_v53  ;;  %v14834_v25 = vld [vmem:[%s15528_s22 + $0xd48] sm:$0xff]   ;;  %v14861_v2 = vld [vmem:[%s15528_s22 + $0xdb8] sm:$0xff]  }
 0x1b0   : > { %v13246_v9 = vpop.f32.mrb[23].mxu1  ;;  %13546 = vmatprep.subr.bf16.mxu1 %v14823_v57  ;;  %v14858_v57 = vld [vmem:[%s15528_s22 + $0xd78] sm:$0xff]   ;;  %v14866_v7 = vld [vmem:[%s15528_s22 + $0xe80] sm:$0xff]  }
 0x1b1   : > { %v16043_v13 = vadd.f32 %v13244_v6, %v9764_v5  ;;  %13525 = vmatpush3.bf16.msra.mxu0 %v14824_v59  ;;  %v14864_v5 = vld [vmem:[%s15528_s22 + $0xec0] sm:$0xff]   ;;  %v14867_v9 = vld [vmem:[%s15528_s22 + $0xe48] sm:$0xff]  }
 0x1b2   : > { %13526 = vmatprep.subr.bf16.mxu0 %v14826_v63  ;;  %v14865_v6 = vld [vmem:[%s15528_s22 + $0xe00] sm:$0xff]  }
 0x1b3   : > { %13547 = vmatpush3.bf16.msra.mxu1 %v14825_v62  ;;  %v14859_v62 = vld [vmem:[%s15528_s22 + $0xdf8] sm:$0xff]  }
 0x1b4   : > { %13548 = vmatprep.subr.bf16.mxu1 %v14827_v8  ;;  %v2613_v8 = vcombine.high %v2597_v3, %v2597_v3 }
 0x1b5   : > { %13527 = vmatpush3.bf16.msra.mxu0 %v14828_v10  ;;  %v14868_v10 = vld [vmem:[%s15528_s22 + $0xec8] sm:$0xff]  }
 0x1b6   : > { %13556 = vmatprep.subr.bf16.mxu0 %v14830_v17  ;;  %v14875_v17 = vld [vmem:[%s15528_s22 + $0xe58] sm:$0xff]  }
 0x1b7   : > { %13549 = vmatpush3.bf16.msra.mxu1 %v14829_v14  ;;  %v14872_v14 = vld [vmem:[%s15528_s22 + $0xed0] sm:$0xff]  }
 0x1b8   : > { %10322 = vmatmul.mubr.bf16.vlgmr.msra.gmra.mrb[48].mxu0 %v2590_v16  ;;  %13578 = vmatprep.subr.bf16.mxu1 %v14831_v19  ;;  %v14874_v16 = vld [vmem:[%s15528_s22 + $0xe90] sm:$0xff]   ;;  %v14877_v19 = vld [vmem:[%s15528_s22 + $0xe18] sm:$0xff]  }
 0x1b9   : > { %13557 = vmatpush3.bf16.msra.mxu0 %v14832_v21  ;;  %10401 = vmatprep.mubr.bf16.mxu0 %v2611_v22  ;;  %v14879_v21 = vld [vmem:[%s15528_s22 + $0xe60] sm:$0xff]  }
 0x1ba   : > { %10362 = vmatmul.mubr.bf16.vlgmr.msra.gmra.mrb[48].mxu1 %v2612_v24  ;;  %13558 = vmatprep.subr.bf16.mxu0 %v14834_v25  ;;  %v14880_v22 = vld [vmem:[%s15528_s22 + $0xee0] sm:$0xff]   ;;  %v14883_v25 = vld [vmem:[%s15528_s22 + $0xe68] sm:$0xff]  }
 0x1bb   : > { %13579 = vmatpush3.bf16.msra.mxu1 %v14833_v23  ;;  %10441 = vmatprep.mubr.bf16.mxu1 %v2615_v27  ;;  %v14881_v23 = vld [vmem:[%s15528_s22 + $0xe20] sm:$0xff]   ;;  %v14885_v27 = vld [vmem:[%s15528_s22 + $0xe28] sm:$0xff]  }
 0x1bc   : > { %13580 = vmatprep.subr.bf16.mxu1 %v14835_v26  ;;  %v14882_v24 = vld [vmem:[%s15528_s22 + $0xea0] sm:$0xff]   ;;  %v14884_v26 = vld [vmem:[%s15528_s22 + $0xee8] sm:$0xff]  }
 0x1bd   : > { %13559 = vmatpush3.bf16.msra.mxu0 %v14836_v28  ;;  %v14886_v28 = vld [vmem:[%s15528_s22 + $0xea8] sm:$0xff]  }
 0x1be   : > { %13560 = vmatprep.subr.bf16.mxu0 %v14838_v30 }
 0x1bf   : > { %13581 = vmatpush3.bf16.msra.mxu1 %v14837_v29  ;;  %v14887_v29 = vld [vmem:[%s15528_s22 + $0xe70] sm:$0xff]  }
 0x1c0   : > { %13582 = vmatprep.subr.bf16.mxu1 %v14839_v31  ;;  %v14888_v31 = vld [vmem:[%s15528_s22 + $0xef0] sm:$0xff]  }
 0x1c1   : > { %13561 = vmatpush3.bf16.msra.mxu0 %v14840_v32 }
 0x1c2   : > { %13562 = vmatprep.subr.bf16.mxu0 %v14842_v34 }
 0x1c3   : > { %13583 = vmatpush3.bf16.msra.mxu1 %v14841_v33  ;;  %v14889_v33 = vld [vmem:[%s15528_s22 + $0xe30] sm:$0xff]  }
 0x1c4   : > { %13584 = vmatprep.subr.bf16.mxu1 %v14843_v35 }
 0x1c5   : > { %13563 = vmatpush3.bf16.msra.mxu0 %v14844_v36 }
 0x1c6   : > { %13564 = vmatprep.subr.bf16.mxu0 %v14846_v38  ;;  %v14891_v38 = vld [vmem:[%s15528_s22 + $0xe78] sm:$0xff]  }
 0x1c7   : > { %13585 = vmatpush3.bf16.msra.mxu1 %v14845_v37  ;;  %v14890_v37 = vld [vmem:[%s15528_s22 + $0xeb0] sm:$0xff]  }
 0x1c8   : > { %13586 = vmatprep.subr.bf16.mxu1 %v14847_v39 }
 0x1c9   : > { %13565 = vmatpush3.bf16.msra.mxu0 %v14848_v40 }
 0x1ca   : > { %13566 = vmatprep.subr.bf16.mxu0 %v14850_v43 }
 0x1cb   : > { %13587 = vmatpush3.bf16.msra.mxu1 %v14849_v41  ;;  %v13264_v48 = vpop.f32.mrb[24].mxu0  ;;  %v14892_v41 = vld [vmem:[%s15528_s22 + $0xef8] sm:$0xff]  }
 0x1cc   : > { %v13265_v50 = vpop.f32.mrb[25].mxu0  ;;  %13588 = vmatprep.subr.bf16.mxu1 %v14851_v44 }
 0x1cd   : > { %v13286_v52 = vpop.f32.mrb[24].mxu1  ;;  %v13266_v53 = vadd.f32 %v13265_v50, %v13264_v48  ;;  %v13267_v54 = vpop.f32.mrb[26].mxu0  ;;  %13567 = vmatpush3.bf16.msra.mxu0 %v14852_v45  ;;  %v14893_v48 = vld [vmem:[%s15528_s22 + $0xe38] sm:$0xff]  }
 0x1ce   : > { %v13287_v58 = vpop.f32.mrb[25].mxu1  ;;  %v13268_v59 = vpop.f32.mrb[27].mxu0  ;;  %13568 = vmatprep.subr.bf16.mxu0 %v14854_v47 }
 0x1cf   : > { %v9844_v60 = vadd.f32 %v13266_v53, %v16043_v13  ;;  %v13288_v55 = vadd.f32 %v13287_v58, %v13286_v52  ;;  %v13289_v61 = vpop.f32.mrb[26].mxu1  ;;  %13589 = vmatpush3.bf16.msra.mxu1 %v14853_v46  ;;  %v14871_v13 = vld [vmem:[%s15528_s22 + $0xe50] sm:$0xff]   ;;  %v200_v46 = vld [vmem:[%s15523_s18 + $0x38] sm:$0xff]  ;;  %v14896_v58 = vld [vmem:[%s15528_s22 + $0xfc0] sm:$0xff]  }
 0x1d0   : > { %v13290_v63 = vpop.f32.mrb[27].mxu1  ;;  %13590 = vmatprep.subr.bf16.mxu1 %v14855_v49  ;;  %v2623_v49 = vrot.slane %v200_v46, %v15569_v42  ;;  %v2616_v50 = vcombine.high %v200_v46, %v200_v46  ;;  %v14894_v52 = vld [vmem:[%s15528_s22 + $0xeb8] sm:$0xff]   ;;  %v14898_v61 = vld [vmem:[%s15528_s22 + $0xf80] sm:$0xff]  }
 0x1d1   : > { %v16083_v1 = vadd.f32 %v13288_v55, %v9844_v60  ;;  %13569 = vmatpush3.bf16.msra.mxu0 %v14856_v51  ;;  %v14897_v60 = vld [vmem:[%s15528_s22 + $0xf00] sm:$0xff]  }
 0x1d2   : > { %13570 = vmatprep.subr.bf16.mxu0 %v14858_v57  ;;  %v2631_v53 = vcombine.high %v2623_v49, %v2623_v49  ;;  %v2639_v54 = vrot.slane %v2623_v49, %v15569_v42  ;;  %v16128_v57 = vrot.slane %v2616_v50, %v15569_v42  ;;  %v14930_v46 = vld [vmem:[%s15528_s22 + $0x1000] sm:$0xff]   ;;  %v14932_v49 = vld [vmem:[%s15528_s22 + $0x1048] sm:$0xff]  }
 0x1d3   : > { %13591 = vmatpush3.bf16.msra.mxu1 %v14857_v56  ;;  %v14895_v56 = vld [vmem:[%s15528_s22 + $0xf40] sm:$0xff]   ;;  %v14933_v50 = vld [vmem:[%s15528_s22 + $0x10c8] sm:$0xff]  }
 0x1d4   : > { %13592 = vmatprep.subr.bf16.mxu1 %v14859_v62  ;;  %v2653_v59 = vrot.slane %v2631_v53, %v15569_v42  ;;  %v2632_v55 = vcombine.high %v16128_v57, %v16128_v57  ;;  %v2661_v63 = vcombine.high %v2639_v54, %v2639_v54  ;;  %v14936_v53 = vld [vmem:[%s15528_s22 + $0x1050] sm:$0xff]  }
 0x1d5   : > { %13571 = vmatpush3.bf16.msra.mxu0 %v14860_v0  ;;  %v14899_v0 = vld [vmem:[%s15528_s22 + $0xf48] sm:$0xff]  }
 0x1d6   : > { %13600 = vmatprep.subr.bf16.mxu0 %v14863_v4  ;;  %v2663_v62 = vcombine.high %v2653_v59, %v2653_v59 }
 0x1d7   : > { %13593 = vmatpush3.bf16.msra.mxu1 %v14861_v2  ;;  %v14900_v2 = vld [vmem:[%s15528_s22 + $0xfc8] sm:$0xff]  }
 0x1d8   : > { %10402 = vmatmul.mubr.bf16.vlgmr.msra.gmra.mrb[52].mxu0 %v2597_v3  ;;  %13622 = vmatprep.subr.bf16.mxu1 %v14864_v5  ;;  %v14901_v3 = vld [vmem:[%s15528_s22 + $0xf08] sm:$0xff]  }
 0x1d9   : > { %13601 = vmatpush3.bf16.msra.mxu0 %v14865_v6  ;;  %10481 = vmatprep.mubr.bf16.mxu0 %v2653_v59  ;;  %v14902_v5 = vld [vmem:[%s15528_s22 + $0xf88] sm:$0xff]   ;;  %v14903_v6 = vld [vmem:[%s15528_s22 + $0xf50] sm:$0xff]   ;;  %v14941_v59 = vld [vmem:[%s15528_s22 + $0x10d8] sm:$0xff]  }
 0x1da   : > { %10442 = vmatmul.mubr.bf16.vlgmr.msra.gmra.mrb[52].mxu1 %v2613_v8  ;;  %13602 = vmatprep.subr.bf16.mxu0 %v14867_v9  ;;  %v14905_v8 = vld [vmem:[%s15528_s22 + $0xf10] sm:$0xff]  }
 0x1db   : > { %13623 = vmatpush3.bf16.msra.mxu1 %v14866_v7  ;;  %10521 = vmatprep.mubr.bf16.mxu1 %v2663_v62  ;;  %v14904_v7 = vld [vmem:[%s15528_s22 + $0xfd0] sm:$0xff]   ;;  %v14945_v62 = vld [vmem:[%s15528_s22 + $0x10e0] sm:$0xff]  }
 0x1dc   : > { %13624 = vmatprep.subr.bf16.mxu1 %v14868_v10  ;;  %v14906_v9 = vld [vmem:[%s15528_s22 + $0xf90] sm:$0xff]   ;;  %v14907_v10 = vld [vmem:[%s15528_s22 + $0xf58] sm:$0xff]  }
 0x1dd   : > { %13603 = vmatpush3.bf16.msra.mxu0 %v14869_v11  ;;  %v14908_v11 = vld [vmem:[%s15528_s22 + $0xfd8] sm:$0xff]  }
 0x1de   : > { %13604 = vmatprep.subr.bf16.mxu0 %v14871_v13  ;;  %v14910_v13 = vld [vmem:[%s15528_s22 + $0xf98] sm:$0xff]  }
 0x1df   : > { %13625 = vmatpush3.bf16.msra.mxu1 %v14870_v12  ;;  %v14909_v12 = vld [vmem:[%s15528_s22 + $0xf18] sm:$0xff]  }
 0x1e0   : > { %13626 = vmatprep.subr.bf16.mxu1 %v14872_v14  ;;  %v14911_v14 = vld [vmem:[%s15528_s22 + $0xf60] sm:$0xff]  }
 0x1e1   : > { %13605 = vmatpush3.bf16.msra.mxu0 %v14873_v15  ;;  %v14912_v15 = vld [vmem:[%s15528_s22 + $0xfe0] sm:$0xff]  }
 0x1e2   : > { %13606 = vmatprep.subr.bf16.mxu0 %v14875_v17  ;;  %v14914_v17 = vld [vmem:[%s15528_s22 + $0xfa0] sm:$0xff]  }
 0x1e3   : > { %13627 = vmatpush3.bf16.msra.mxu1 %v14874_v16  ;;  %v14913_v16 = vld [vmem:[%s15528_s22 + $0xf20] sm:$0xff]  }
 0x1e4   : > { %13628 = vmatprep.subr.bf16.mxu1 %v14876_v18  ;;  %v14915_v18 = vld [vmem:[%s15528_s22 + $0xf68] sm:$0xff]  }
 0x1e5   : > { %13607 = vmatpush3.bf16.msra.mxu0 %v14877_v19  ;;  %v14916_v19 = vld [vmem:[%s15528_s22 + $0xfe8] sm:$0xff]  }
 0x1e6   : > { %13608 = vmatprep.subr.bf16.mxu0 %v14879_v21  ;;  %v14918_v21 = vld [vmem:[%s15528_s22 + $0xfa8] sm:$0xff]  }
 0x1e7   : > { %13629 = vmatpush3.bf16.msra.mxu1 %v14878_v20  ;;  %v14917_v20 = vld [vmem:[%s15528_s22 + $0xf28] sm:$0xff]  }
 0x1e8   : > { %13630 = vmatprep.subr.bf16.mxu1 %v14880_v22  ;;  %v14919_v22 = vld [vmem:[%s15528_s22 + $0xf70] sm:$0xff]  }
 0x1e9   : > { %13609 = vmatpush3.bf16.msra.mxu0 %v14881_v23 }
 0x1ea   : > { %13610 = vmatprep.subr.bf16.mxu0 %v14883_v25 }
 0x1eb   : > { %13631 = vmatpush3.bf16.msra.mxu1 %v14882_v24  ;;  %v13308_v30 = vpop.f32.mrb[28].mxu0  ;;  %v14920_v24 = vld [vmem:[%s15528_s22 + $0xff0] sm:$0xff]  }
 0x1ec   : > { %v13309_v32 = vpop.f32.mrb[29].mxu0  ;;  %13632 = vmatprep.subr.bf16.mxu1 %v14884_v26  ;;  %v14921_v26 = vld [vmem:[%s15528_s22 + $0xf30] sm:$0xff]  }
 0x1ed   : > { %v13330_v34 = vpop.f32.mrb[28].mxu1  ;;  %v13310_v35 = vadd.f32 %v13309_v32, %v13308_v30  ;;  %v13311_v36 = vpop.f32.mrb[30].mxu0  ;;  %13611 = vmatpush3.bf16.msra.mxu0 %v14885_v27  ;;  %v14922_v30 = vld [vmem:[%s15528_s22 + $0xfb0] sm:$0xff]  }
 0x1ee   : > { %v13331_v39 = vpop.f32.mrb[29].mxu1  ;;  %v13312_v40 = vpop.f32.mrb[31].mxu0  ;;  %13612 = vmatprep.subr.bf16.mxu0 %v14887_v29 }
 0x1ef   : > { %v9924_v43 = vadd.f32 %v13310_v35, %v16083_v1  ;;  %v13332_v44 = vadd.f32 %v13331_v39, %v13330_v34  ;;  %v13333_v45 = vpop.f32.mrb[30].mxu1  ;;  %13633 = vmatpush3.bf16.msra.mxu1 %v14886_v28  ;;  %v2660_v1 = vrot.slane %v2632_v55, %v15569_v42  ;;  %v14925_v39 = vld [vmem:[%s15528_s22 + $0xf38] sm:$0xff]  }
 0x1f0   : > { %v13334_v47 = vpop.f32.mrb[31].mxu1  ;;  %13634 = vmatprep.subr.bf16.mxu1 %v14888_v31  ;;  %v14923_v31 = vld [vmem:[%s15528_s22 + $0xf78] sm:$0xff]   ;;  %v14929_v45 = vld [vmem:[%s15528_s22 + $0x10c0] sm:$0xff]  }
 0x1f1   : > { %v16122_v51 = vadd.f32 %v13332_v44, %v9924_v43  ;;  %13613 = vmatpush3.bf16.msra.mxu0 %v14889_v33  ;;  %v2664_v4 = vcombine.high %v2660_v1, %v2660_v1  ;;  %v2646_v43 = vrot.slane %v16128_v57, %v15569_v42  ;;  %v14928_v44 = vld [vmem:[%s15528_s22 + $0x1040] sm:$0xff]   ;;  %v14939_v57 = vld [vmem:[%s15528_s22 + $0x1090] sm:$0xff]   ;;  %v14943_v55 = vld [vmem:[%s15528_s22 + $0x1098] sm:$0xff]  }
 0x1f2   : > { %13614 = vmatprep.subr.bf16.mxu0 %v14891_v38  ;;  %v14931_v47 = vld [vmem:[%s15528_s22 + $0x1080] sm:$0xff]  }
 0x1f3   : > { %13635 = vmatpush3.bf16.msra.mxu1 %v14890_v37  ;;  %v14924_v37 = vld [vmem:[%s15528_s22 + $0xff8] sm:$0xff]  }
 0x1f4   : > { %13636 = vmatprep.subr.bf16.mxu1 %v14892_v41  ;;  %v14926_v41 = vld [vmem:[%s15528_s22 + $0xfb8] sm:$0xff]  }
 0x1f5   : > { %13615 = vmatpush3.bf16.msra.mxu0 %v14893_v48  ;;  %v2662_v48 = vcombine.high %v2646_v43, %v2646_v43 }
 0x1f6   : > { %13644 = vmatprep.subr.bf16.mxu0 %v14895_v56  ;;  %v14938_v56 = vld [vmem:[%s15528_s22 + $0x1010] sm:$0xff]  }
 0x1f7   : > { %13637 = vmatpush3.bf16.msra.mxu1 %v14894_v52  ;;  %v14935_v52 = vld [vmem:[%s15528_s22 + $0x1088] sm:$0xff]  }
 0x1f8   : > { %10482 = vmatmul.mubr.bf16.vlgmr.msra.gmra.mrb[56].mxu0 %v2639_v54  ;;  %13666 = vmatprep.subr.bf16.mxu1 %v14896_v58  ;;  %v14937_v54 = vld [vmem:[%s15528_s22 + $0x10d0] sm:$0xff]   ;;  %v14940_v58 = vld [vmem:[%s15528_s22 + $0x1058] sm:$0xff]  }
 0x1f9   : > { %13645 = vmatpush3.bf16.msra.mxu0 %v14897_v60  ;;  %10561 = vmatprep.mubr.bf16.mxu0 %v2660_v1  ;;  %v14942_v60 = vld [vmem:[%s15528_s22 + $0x1018] sm:$0xff]   ;;  %v14948_v1 = vld [vmem:[%s15528_s22 + $0x1068] sm:$0xff]  }
 0x1fa   : > { %10522 = vmatmul.mubr.bf16.vlgmr.msra.gmra.mrb[56].mxu1 %v2661_v63  ;;  %13646 = vmatprep.subr.bf16.mxu0 %v14899_v0  ;;  %v14946_v63 = vld [vmem:[%s15528_s22 + $0x1020] sm:$0xff]  }
 0x1fb   : > { %13667 = vmatpush3.bf16.msra.mxu1 %v14898_v61  ;;  %10601 = vmatprep.mubr.bf16.mxu1 %v2664_v4  ;;  %v14944_v61 = vld [vmem:[%s15528_s22 + $0x1060] sm:$0xff]   ;;  %v14951_v4 = vld [vmem:[%s15528_s22 + $0x10a8] sm:$0xff]  }
 0x1fc   : > { %13668 = vmatprep.subr.bf16.mxu1 %v14900_v2  ;;  %v14947_v0 = vld [vmem:[%s15528_s22 + $0x10a0] sm:$0xff]   ;;  %v14949_v2 = vld [vmem:[%s15528_s22 + $0x10e8] sm:$0xff]  }
 0x1fd   : > { %13647 = vmatpush3.bf16.msra.mxu0 %v14901_v3  ;;  %v14950_v3 = vld [vmem:[%s15528_s22 + $0x1028] sm:$0xff]  }
 0x1fe   : > { %13648 = vmatprep.subr.bf16.mxu0 %v14903_v6 }
 0x1ff   : > { %13669 = vmatpush3.bf16.msra.mxu1 %v14902_v5  ;;  %v14952_v5 = vld [vmem:[%s15528_s22 + $0x1070] sm:$0xff]  }
 0x200   : > { %13670 = vmatprep.subr.bf16.mxu1 %v14904_v7  ;;  %v14953_v7 = vld [vmem:[%s15528_s22 + $0x10f0] sm:$0xff]  }
 0x201   : > { %13649 = vmatpush3.bf16.msra.mxu0 %v14905_v8 }
 0x202   : > { %13650 = vmatprep.subr.bf16.mxu0 %v14907_v10 }
 0x203   : > { %13671 = vmatpush3.bf16.msra.mxu1 %v14906_v9  ;;  %v14954_v9 = vld [vmem:[%s15528_s22 + $0x1030] sm:$0xff]  }
 0x204   : > { %13672 = vmatprep.subr.bf16.mxu1 %v14908_v11 }
 0x205   : > { %13651 = vmatpush3.bf16.msra.mxu0 %v14909_v12 }
 0x206   : > { %13652 = vmatprep.subr.bf16.mxu0 %v14911_v14  ;;  %v14956_v14 = vld [vmem:[%s15528_s22 + $0x1078] sm:$0xff]  }
 0x207   : > { %13673 = vmatpush3.bf16.msra.mxu1 %v14910_v13  ;;  %v14955_v13 = vld [vmem:[%s15528_s22 + $0x10b0] sm:$0xff]  }
 0x208   : > { %13674 = vmatprep.subr.bf16.mxu1 %v14912_v15 }
 0x209   : > { %13653 = vmatpush3.bf16.msra.mxu0 %v14913_v16 }
 0x20a   : > { %13654 = vmatprep.subr.bf16.mxu0 %v14915_v18 }
 0x20b   : > { %13675 = vmatpush3.bf16.msra.mxu1 %v14914_v17  ;;  %v13352_v23 = vpop.f32.mrb[32].mxu0  ;;  %v14957_v17 = vld [vmem:[%s15528_s22 + $0x10f8] sm:$0xff]  }
 0x20c   : > { %v13353_v25 = vpop.f32.mrb[33].mxu0  ;;  %13676 = vmatprep.subr.bf16.mxu1 %v14916_v19 }
 0x20d   : > { %v13374_v27 = vpop.f32.mrb[32].mxu1  ;;  %v13354_v28 = vadd.f32 %v13353_v25, %v13352_v23  ;;  %v13355_v29 = vpop.f32.mrb[34].mxu0  ;;  %13655 = vmatpush3.bf16.msra.mxu0 %v14917_v20  ;;  %v201_v23 = vld [vmem:[%s15523_s18 + $0x40] sm:$0xff]  ;;  %v14959_v25 = vld [vmem:[%s15528_s22 + $0x10b8] sm:$0xff]  }
 0x20e   : > { %v13375_v32 = vpop.f32.mrb[33].mxu1  ;;  %v13356_v33 = vpop.f32.mrb[35].mxu0  ;;  %13656 = vmatprep.subr.bf16.mxu0 %v14919_v22 }
 0x20f   : > { %v10004_v34 = vadd.f32 %v13354_v28, %v16122_v51  ;;  %v13376_v35 = vadd.f32 %v13375_v32, %v13374_v27  ;;  %v13377_v36 = vpop.f32.mrb[34].mxu1  ;;  %13677 = vmatpush3.bf16.msra.mxu1 %v14918_v21  ;;  %v14934_v51 = vld [vmem:[%s15528_s22 + $0x1008] sm:$0xff]   ;;  %v14958_v21 = vld [vmem:[%s15528_s22 + $0x1038] sm:$0xff]   ;;  %v2665_v27 = vcombine.high %v201_v23, %v201_v23  ;;  %v14960_v28 = vld [vmem:[%s15528_s22 + $0x1140] sm:$0xff]  }
 0x210   : > { %v13378_v38 = vpop.f32.mrb[35].mxu1  ;;  %13678 = vmatprep.subr.bf16.mxu1 %v14920_v24  ;;  %v14962_v33 = vld [vmem:[%s15528_s22 + $0x1100] sm:$0xff]  }
 0x211   : > { %v16165_v40 = vadd.f32 %v13376_v35, %v10004_v34  ;;  %13657 = vmatpush3.bf16.msra.mxu0 %v14921_v26  ;;  %v2672_v26 = vrot.slane %v201_v23, %v15569_v42  ;;  %v16211_v32 = vrot.slane %v2665_v27, %v15569_v42  ;;  %v14963_v35 = vld [vmem:[%s15528_s22 + $0x1180] sm:$0xff]   ;;  %v14964_v38 = vld [vmem:[%s15528_s22 + $0x1148] sm:$0xff]  }
 0x212   : > { %13658 = vmatprep.subr.bf16.mxu0 %v14923_v31  ;;  %v14961_v31 = vld [vmem:[%s15528_s22 + $0x11c0] sm:$0xff]   ;;  %v15000_v27 = vld [vmem:[%s15528_s22 + $0x1288] sm:$0xff]  }
 0x213   : > { %13679 = vmatpush3.bf16.msra.mxu1 %v14922_v30  ;;  %v2680_v29 = vcombine.high %v2672_v26, %v2672_v26  ;;  %v2688_v30 = vrot.slane %v2672_v26, %v15569_v42  ;;  %v2681_v36 = vcombine.high %v16211_v32, %v16211_v32  ;;  %v14999_v26 = vld [vmem:[%s15528_s22 + $0x1208] sm:$0xff]  }
 0x214   : > { %13680 = vmatprep.subr.bf16.mxu1 %v14924_v37 }
 0x215   : > { %13659 = vmatpush3.bf16.msra.mxu0 %v14925_v39  ;;  %v2702_v34 = vrot.slane %v2680_v29, %v15569_v42  ;;  %v2710_v37 = vcombine.high %v2688_v30, %v2688_v30  ;;  %v15002_v29 = vld [vmem:[%s15528_s22 + $0x12d0] sm:$0xff]  }
 0x216   : > { %13688 = vmatprep.subr.bf16.mxu0 %v14928_v44  ;;  %v14967_v44 = vld [vmem:[%s15528_s22 + $0x1188] sm:$0xff]  }
 0x217   : > { %13681 = vmatpush3.bf16.msra.mxu1 %v14926_v41  ;;  %v2712_v39 = vcombine.high %v2702_v34, %v2702_v34  ;;  %v2709_v41 = vrot.slane %v2681_v36, %v15569_v42  ;;  %v15009_v36 = vld [vmem:[%s15528_s22 + $0x1260] sm:$0xff]  }
 0x218   : > { %10562 = vmatmul.mubr.bf16.vlgmr.msra.gmra.mrb[60].mxu0 %v2646_v43  ;;  %13710 = vmatprep.subr.bf16.mxu1 %v14929_v45  ;;  %v14966_v43 = vld [vmem:[%s15528_s22 + $0x1108] sm:$0xff]  }
 0x219   : > { %13689 = vmatpush3.bf16.msra.mxu0 %v14930_v46  ;;  %10641 = vmatprep.mubr.bf16.mxu0 %v2702_v34  ;;  %v2713_v45 = vcombine.high %v2709_v41, %v2709_v41  ;;  %v14968_v46 = vld [vmem:[%s15528_s22 + $0x1150] sm:$0xff]   ;;  %v15007_v34 = vld [vmem:[%s15528_s22 + $0x1218] sm:$0xff]  }
 0x21a   : > { %10602 = vmatmul.mubr.bf16.vlgmr.msra.gmra.mrb[60].mxu1 %v2662_v48  ;;  %13690 = vmatprep.subr.bf16.mxu0 %v14932_v49  ;;  %v14970_v48 = vld [vmem:[%s15528_s22 + $0x1110] sm:$0xff]  }
 0x21b   : > { %13711 = vmatpush3.bf16.msra.mxu1 %v14931_v47  ;;  %10681 = vmatprep.mubr.bf16.mxu1 %v2712_v39  ;;  %v14969_v47 = vld [vmem:[%s15528_s22 + $0x11d0] sm:$0xff]   ;;  %v15012_v39 = vld [vmem:[%s15528_s22 + $0x12a0] sm:$0xff]  }
 0x21c   : > { %13712 = vmatprep.subr.bf16.mxu1 %v14933_v50  ;;  %v14971_v49 = vld [vmem:[%s15528_s22 + $0x1190] sm:$0xff]   ;;  %v14972_v50 = vld [vmem:[%s15528_s22 + $0x1158] sm:$0xff]  }
 0x21d   : > { %13691 = vmatpush3.bf16.msra.mxu0 %v14934_v51  ;;  %v14973_v51 = vld [vmem:[%s15528_s22 + $0x11d8] sm:$0xff]  }
 0x21e   : > { %13692 = vmatprep.subr.bf16.mxu0 %v14936_v53  ;;  %v14975_v53 = vld [vmem:[%s15528_s22 + $0x1198] sm:$0xff]  }
 0x21f   : > { %13713 = vmatpush3.bf16.msra.mxu1 %v14935_v52  ;;  %v14974_v52 = vld [vmem:[%s15528_s22 + $0x1118] sm:$0xff]  }
 0x220   : > { %13714 = vmatprep.subr.bf16.mxu1 %v14937_v54  ;;  %v14976_v54 = vld [vmem:[%s15528_s22 + $0x1160] sm:$0xff]  }
 0x221   : > { %13693 = vmatpush3.bf16.msra.mxu0 %v14938_v56  ;;  %v14977_v56 = vld [vmem:[%s15528_s22 + $0x11e0] sm:$0xff]  }
 0x222   : > { %13694 = vmatprep.subr.bf16.mxu0 %v14940_v58  ;;  %v14979_v58 = vld [vmem:[%s15528_s22 + $0x11a0] sm:$0xff]  }
 0x223   : > { %13715 = vmatpush3.bf16.msra.mxu1 %v14939_v57  ;;  %v14978_v57 = vld [vmem:[%s15528_s22 + $0x1120] sm:$0xff]  }
 0x224   : > { %13716 = vmatprep.subr.bf16.mxu1 %v14941_v59  ;;  %v14980_v59 = vld [vmem:[%s15528_s22 + $0x1168] sm:$0xff]  }
 0x225   : > { %13695 = vmatpush3.bf16.msra.mxu0 %v14942_v60  ;;  %v14981_v60 = vld [vmem:[%s15528_s22 + $0x11e8] sm:$0xff]  }
 0x226   : > { %13696 = vmatprep.subr.bf16.mxu0 %v14944_v61  ;;  %v14983_v61 = vld [vmem:[%s15528_s22 + $0x11a8] sm:$0xff]  }
 0x227   : > { %13717 = vmatpush3.bf16.msra.mxu1 %v14943_v55  ;;  %v14982_v55 = vld [vmem:[%s15528_s22 + $0x1128] sm:$0xff]  }
 0x228   : > { %13718 = vmatprep.subr.bf16.mxu1 %v14945_v62  ;;  %v14984_v62 = vld [vmem:[%s15528_s22 + $0x1170] sm:$0xff]  }
 0x229   : > { %13697 = vmatpush3.bf16.msra.mxu0 %v14946_v63 }
 0x22a   : > { %13698 = vmatprep.subr.bf16.mxu0 %v14948_v1 }
 0x22b   : > { %13719 = vmatpush3.bf16.msra.mxu1 %v14947_v0  ;;  %v13396_v6 = vpop.f32.mrb[36].mxu0  ;;  %v14985_v0 = vld [vmem:[%s15528_s22 + $0x11f0] sm:$0xff]  }
 0x22c   : > { %v13397_v8 = vpop.f32.mrb[37].mxu0  ;;  %13720 = vmatprep.subr.bf16.mxu1 %v14949_v2  ;;  %v14986_v2 = vld [vmem:[%s15528_s22 + $0x1130] sm:$0xff]  }
 0x22d   : > { %v13418_v10 = vpop.f32.mrb[36].mxu1  ;;  %v13398_v11 = vadd.f32 %v13397_v8, %v13396_v6  ;;  %v13399_v12 = vpop.f32.mrb[38].mxu0  ;;  %13699 = vmatpush3.bf16.msra.mxu0 %v14950_v3  ;;  %v14987_v6 = vld [vmem:[%s15528_s22 + $0x11b0] sm:$0xff]  }
 0x22e   : > { %v13419_v15 = vpop.f32.mrb[37].mxu1  ;;  %v13400_v16 = vpop.f32.mrb[39].mxu0  ;;  %13700 = vmatprep.subr.bf16.mxu0 %v14952_v5 }
 0x22f   : > { %v10084_v18 = vadd.f32 %v13398_v11, %v16165_v40  ;;  %v13420_v19 = vadd.f32 %v13419_v15, %v13418_v10  ;;  %v13421_v20 = vpop.f32.mrb[38].mxu1  ;;  %13721 = vmatpush3.bf16.msra.mxu1 %v14951_v4  ;;  %v14965_v40 = vld [vmem:[%s15528_s22 + $0x11c8] sm:$0xff]   ;;  %v14990_v15 = vld [vmem:[%s15528_s22 + $0x1138] sm:$0xff]  }
 0x230   : > { %v13422_v22 = vpop.f32.mrb[39].mxu1  ;;  %13722 = vmatprep.subr.bf16.mxu1 %v14953_v7  ;;  %v14988_v7 = vld [vmem:[%s15528_s22 + $0x1178] sm:$0xff]   ;;  %v14994_v20 = vld [vmem:[%s15528_s22 + $0x12c0] sm:$0xff]  }
 0x231   : > { %v16203_v24 = vadd.f32 %v13420_v19, %v10084_v18  ;;  %13701 = vmatpush3.bf16.msra.mxu0 %v14954_v9  ;;  %v2695_v18 = vrot.slane %v16211_v32, %v15569_v42  ;;  %v14993_v19 = vld [vmem:[%s15528_s22 + $0x1240] sm:$0xff]   ;;  %v15005_v32 = vld [vmem:[%s15528_s22 + $0x1258] sm:$0xff]  }
 0x232   : > { %13702 = vmatprep.subr.bf16.mxu0 %v14956_v14  ;;  %v14996_v22 = vld [vmem:[%s15528_s22 + $0x1280] sm:$0xff]  }
 0x233   : > { %13723 = vmatpush3.bf16.msra.mxu1 %v14955_v13  ;;  %v14989_v13 = vld [vmem:[%s15528_s22 + $0x11f8] sm:$0xff]   ;;  %v2711_v23 = vcombine.high %v2695_v18, %v2695_v18 }
 0x234   : > { %13724 = vmatprep.subr.bf16.mxu1 %v14957_v17  ;;  %v14991_v17 = vld [vmem:[%s15528_s22 + $0x11b8] sm:$0xff]  }
 0x235   : > { %13703 = vmatpush3.bf16.msra.mxu0 %v14958_v21  ;;  %v14995_v21 = vld [vmem:[%s15528_s22 + $0x1200] sm:$0xff]  }
 0x236   : > { %13732 = vmatprep.subr.bf16.mxu0 %v14960_v28  ;;  %v15001_v28 = vld [vmem:[%s15528_s22 + $0x1250] sm:$0xff]  }
 0x237   : > { %13725 = vmatpush3.bf16.msra.mxu1 %v14959_v25  ;;  %v14998_v25 = vld [vmem:[%s15528_s22 + $0x12c8] sm:$0xff]  }
 0x238   : > { %10642 = vmatmul.mubr.bf16.vlgmr.msra.gmra.mrb[64].mxu0 %v2688_v30  ;;  %13754 = vmatprep.subr.bf16.mxu1 %v14961_v31  ;;  %v15003_v30 = vld [vmem:[%s15528_s22 + $0x1210] sm:$0xff]  }
 0x239   : > { %13733 = vmatpush3.bf16.msra.mxu0 %v14962_v33  ;;  %10721 = vmatprep.mubr.bf16.mxu0 %v2709_v41  ;;  %v15004_v31 = vld [vmem:[%s15528_s22 + $0x1290] sm:$0xff]   ;;  %v15006_v33 = vld [vmem:[%s15528_s22 + $0x12d8] sm:$0xff]   ;;  %v15014_v41 = vld [vmem:[%s15528_s22 + $0x12e8] sm:$0xff]  }
 0x23a   : > { %10682 = vmatmul.mubr.bf16.vlgmr.msra.gmra.mrb[64].mxu1 %v2710_v37  ;;  %13734 = vmatprep.subr.bf16.mxu0 %v14964_v38  ;;  %v15010_v37 = vld [vmem:[%s15528_s22 + $0x12e0] sm:$0xff]  }
 0x23b   : > { %13755 = vmatpush3.bf16.msra.mxu1 %v14963_v35  ;;  %10761 = vmatprep.mubr.bf16.mxu1 %v2713_v45  ;;  %v15008_v35 = vld [vmem:[%s15528_s22 + $0x1298] sm:$0xff]   ;;  %v15011_v38 = vld [vmem:[%s15528_s22 + $0x1220] sm:$0xff]   ;;  %v15017_v45 = vld [vmem:[%s15528_s22 + $0x1270] sm:$0xff]  }
 0x23c   : > { %13756 = vmatprep.subr.bf16.mxu1 %v14965_v40  ;;  %v15013_v40 = vld [vmem:[%s15528_s22 + $0x1268] sm:$0xff]  }
 0x23d   : > { %13735 = vmatpush3.bf16.msra.mxu0 %v14966_v43  ;;  %v15015_v43 = vld [vmem:[%s15528_s22 + $0x1228] sm:$0xff]  }
 0x23e   : > { %13736 = vmatprep.subr.bf16.mxu0 %v14968_v46 }
 0x23f   : > { %13757 = vmatpush3.bf16.msra.mxu1 %v14967_v44  ;;  %v15016_v44 = vld [vmem:[%s15528_s22 + $0x12a8] sm:$0xff]  }
 0x240   : > { %13758 = vmatprep.subr.bf16.mxu1 %v14969_v47  ;;  %v15018_v47 = vld [vmem:[%s15528_s22 + $0x12f0] sm:$0xff]  }
 0x241   : > { %13737 = vmatpush3.bf16.msra.mxu0 %v14970_v48 }
 0x242   : > { %13738 = vmatprep.subr.bf16.mxu0 %v14972_v50 }
 0x243   : > { %13759 = vmatpush3.bf16.msra.mxu1 %v14971_v49  ;;  %v15019_v49 = vld [vmem:[%s15528_s22 + $0x1230] sm:$0xff]  }
 0x244   : > { %13760 = vmatprep.subr.bf16.mxu1 %v14973_v51 }
 0x245   : > { %13739 = vmatpush3.bf16.msra.mxu0 %v14974_v52 }
 0x246   : > { %13740 = vmatprep.subr.bf16.mxu0 %v14976_v54  ;;  %v15021_v54 = vld [vmem:[%s15528_s22 + $0x1278] sm:$0xff]  }
 0x247   : > { %13761 = vmatpush3.bf16.msra.mxu1 %v14975_v53  ;;  %v15020_v53 = vld [vmem:[%s15528_s22 + $0x12b0] sm:$0xff]  }
 0x248   : > { %13762 = vmatprep.subr.bf16.mxu1 %v14977_v56 }
 0x249   : > { %13741 = vmatpush3.bf16.msra.mxu0 %v14978_v57 }
 0x24a   : > { %13742 = vmatprep.subr.bf16.mxu0 %v14980_v59 }
 0x24b   : > { %13763 = vmatpush3.bf16.msra.mxu1 %v14979_v58  ;;  %v13440_v63 = vpop.f32.mrb[40].mxu0 }
 0x24c   : > { %v13441_v1 = vpop.f32.mrb[41].mxu0  ;;  %13764 = vmatprep.subr.bf16.mxu1 %v14981_v60 }
 0x24d   : > { %v13462_v3 = vpop.f32.mrb[40].mxu1  ;;  %v13442_v4 = vadd.f32 %v13441_v1, %v13440_v63  ;;  %v13443_v5 = vpop.f32.mrb[42].mxu0  ;;  %13743 = vmatpush3.bf16.msra.mxu0 %v14982_v55  ;;  %v15022_v55 = vld [vmem:[%s15528_s22 + $0x12f8] sm:$0xff]  }
 0x24e   : > { %v13463_v8 = vpop.f32.mrb[41].mxu1  ;;  %v13444_v9 = vpop.f32.mrb[43].mxu0  ;;  %13744 = vmatprep.subr.bf16.mxu0 %v14984_v62  ;;  %v15023_v62 = vld [vmem:[%s15528_s22 + $0x1238] sm:$0xff]  }
 0x24f   : > { %v10164_v10 = vadd.f32 %v13442_v4, %v16203_v24  ;;  %v13464_v11 = vadd.f32 %v13463_v8, %v13462_v3  ;;  %v13465_v12 = vpop.f32.mrb[42].mxu1  ;;  %13765 = vmatpush3.bf16.msra.mxu1 %v14983_v61  ;;  %v14997_v24 = vld [vmem:[%s15528_s22 + $0x1248] sm:$0xff]   ;;  %v15024_v4 = vld [vmem:[%s15528_s22 + $0x12b8] sm:$0xff]  }
 0x250   : > { %v13466_v14 = vpop.f32.mrb[43].mxu1  ;;  %13766 = vmatprep.subr.bf16.mxu1 %v14985_v0  ;;  %v202_v0 = vld [vmem:[%s15523_s18 + $0x48] sm:$0xff] }
 0x251   : > { %v16247_v16 = vadd.f32 %v13464_v11, %v10164_v10  ;;  %13745 = vmatpush3.bf16.msra.mxu0 %v14986_v2  ;;  %v2721_v1 = vrot.slane %v202_v0, %v15569_v42  ;;  %v15025_v2 = vld [vmem:[%s15528_s22 + $0x1340] sm:$0xff]   ;;  %v2714_v3 = vcombine.high %v202_v0, %v202_v0 }
 0x252   : > { %13746 = vmatprep.subr.bf16.mxu0 %v14988_v7  ;;  %v15026_v7 = vld [vmem:[%s15528_s22 + $0x13c0] sm:$0xff]  }
 0x253   : > { %13767 = vmatpush3.bf16.msra.mxu1 %v14987_v6  ;;  %v2729_v5 = vcombine.high %v2721_v1, %v2721_v1  ;;  %v2737_v6 = vrot.slane %v2721_v1, %v15569_v42  ;;  %v16293_v8 = vrot.slane %v2714_v3, %v15569_v42  ;;  %v15027_v10 = vld [vmem:[%s15528_s22 + $0x1300] sm:$0xff]   ;;  %v15063_v1 = vld [vmem:[%s15528_s22 + $0x14c8] sm:$0xff]   ;;  %v15066_v3 = vld [vmem:[%s15528_s22 + $0x1450] sm:$0xff]  }
 0x254   : > { %13768 = vmatprep.subr.bf16.mxu1 %v14989_v13  ;;  %v15029_v13 = vld [vmem:[%s15528_s22 + $0x1348] sm:$0xff]   ;;  %v15061_v0 = vld [vmem:[%s15528_s22 + $0x1480] sm:$0xff]  }
 0x255   : > { %13747 = vmatpush3.bf16.msra.mxu0 %v14990_v15  ;;  %v2751_v9 = vrot.slane %v2729_v5, %v15569_v42  ;;  %v2730_v11 = vcombine.high %v16293_v8, %v16293_v8  ;;  %v2759_v12 = vcombine.high %v2737_v6, %v2737_v6  ;;  %v15028_v15 = vld [vmem:[%s15528_s22 + $0x1380] sm:$0xff]   ;;  %v15067_v5 = vld [vmem:[%s15528_s22 + $0x14d0] sm:$0xff]  }
 0x256   : > { %13776 = vmatprep.subr.bf16.mxu0 %v14993_v19 }
 0x257   : > { %13769 = vmatpush3.bf16.msra.mxu1 %v14991_v17  ;;  %v2761_v14 = vcombine.high %v2751_v9, %v2751_v9  ;;  %v15030_v17 = vld [vmem:[%s15528_s22 + $0x13c8] sm:$0xff]  }
 0x258   : > { %10722 = vmatmul.mubr.bf16.vlgmr.msra.gmra.mrb[68].mxu0 %v2695_v18  ;;  %13798 = vmatprep.subr.bf16.mxu1 %v14994_v20  ;;  %v15031_v18 = vld [vmem:[%s15528_s22 + $0x1308] sm:$0xff]   ;;  %v15033_v20 = vld [vmem:[%s15528_s22 + $0x1350] sm:$0xff]  }
 0x259   : > { %13777 = vmatpush3.bf16.msra.mxu0 %v14995_v21  ;;  %10801 = vmatprep.mubr.bf16.mxu0 %v2751_v9  ;;  %v15032_v21 = vld [vmem:[%s15528_s22 + $0x1388] sm:$0xff]   ;;  %v15071_v9 = vld [vmem:[%s15528_s22 + $0x14d8] sm:$0xff]  }
 0x25a   : > { %10762 = vmatmul.mubr.bf16.vlgmr.msra.gmra.mrb[68].mxu1 %v2711_v23  ;;  %13778 = vmatprep.subr.bf16.mxu0 %v14997_v24  ;;  %v15035_v23 = vld [vmem:[%s15528_s22 + $0x1310] sm:$0xff]   ;;  %v15037_v24 = vld [vmem:[%s15528_s22 + $0x1358] sm:$0xff]  }
 0x25b   : > { %13799 = vmatpush3.bf16.msra.mxu1 %v14996_v22  ;;  %10841 = vmatprep.mubr.bf16.mxu1 %v2761_v14  ;;  %v15034_v22 = vld [vmem:[%s15528_s22 + $0x13d0] sm:$0xff]   ;;  %v15076_v14 = vld [vmem:[%s15528_s22 + $0x1420] sm:$0xff]  }
 0x25c   : > { %13800 = vmatprep.subr.bf16.mxu1 %v14998_v25  ;;  %v15036_v25 = vld [vmem:[%s15528_s22 + $0x1390] sm:$0xff]  }
 0x25d   : > { %13779 = vmatpush3.bf16.msra.mxu0 %v14999_v26  ;;  %v15038_v26 = vld [vmem:[%s15528_s22 + $0x13d8] sm:$0xff]  }
 0x25e   : > { %13780 = vmatprep.subr.bf16.mxu0 %v15001_v28  ;;  %v15041_v28 = vld [vmem:[%s15528_s22 + $0x1360] sm:$0xff]  }
 0x25f   : > { %13801 = vmatpush3.bf16.msra.mxu1 %v15000_v27  ;;  %v15039_v27 = vld [vmem:[%s15528_s22 + $0x1318] sm:$0xff]  }
 0x260   : > { %13802 = vmatprep.subr.bf16.mxu1 %v15002_v29  ;;  %v15040_v29 = vld [vmem:[%s15528_s22 + $0x1398] sm:$0xff]  }
 0x261   : > { %13781 = vmatpush3.bf16.msra.mxu0 %v15003_v30  ;;  %v15042_v30 = vld [vmem:[%s15528_s22 + $0x13e0] sm:$0xff]  }
 0x262   : > { %13782 = vmatprep.subr.bf16.mxu0 %v15005_v32  ;;  %v15045_v32 = vld [vmem:[%s15528_s22 + $0x1368] sm:$0xff]  }
 0x263   : > { %13803 = vmatpush3.bf16.msra.mxu1 %v15004_v31  ;;  %v15043_v31 = vld [vmem:[%s15528_s22 + $0x1320] sm:$0xff]  }
 0x264   : > { %13804 = vmatprep.subr.bf16.mxu1 %v15006_v33  ;;  %v15044_v33 = vld [vmem:[%s15528_s22 + $0x13a0] sm:$0xff]  }
 0x265   : > { %13783 = vmatpush3.bf16.msra.mxu0 %v15007_v34  ;;  %v15046_v34 = vld [vmem:[%s15528_s22 + $0x13e8] sm:$0xff]  }
 0x266   : > { %13784 = vmatprep.subr.bf16.mxu0 %v15009_v36 }
 0x267   : > { %13805 = vmatpush3.bf16.msra.mxu1 %v15008_v35  ;;  %v15047_v35 = vld [vmem:[%s15528_s22 + $0x1328] sm:$0xff]  }
 0x268   : > { %13806 = vmatprep.subr.bf16.mxu1 %v15010_v37  ;;  %v15049_v37 = vld [vmem:[%s15528_s22 + $0x1370] sm:$0xff]  }
 0x269   : > { %13785 = vmatpush3.bf16.msra.mxu0 %v15011_v38 }
 0x26a   : > { %13786 = vmatprep.subr.bf16.mxu0 %v15013_v40 }
 0x26b   : > { %13807 = vmatpush3.bf16.msra.mxu1 %v15012_v39  ;;  %v13484_v46 = vpop.f32.mrb[44].mxu0  ;;  %v15048_v39 = vld [vmem:[%s15528_s22 + $0x13a8] sm:$0xff]  }
 0x26c   : > { %v13485_v48 = vpop.f32.mrb[45].mxu0  ;;  %13808 = vmatprep.subr.bf16.mxu1 %v15014_v41 }
 0x26d   : > { %v13506_v50 = vpop.f32.mrb[44].mxu1  ;;  %v13486_v51 = vadd.f32 %v13485_v48, %v13484_v46  ;;  %v13487_v52 = vpop.f32.mrb[46].mxu0  ;;  %13787 = vmatpush3.bf16.msra.mxu0 %v15015_v43 }
 0x26e   : > { %v13507_v56 = vpop.f32.mrb[45].mxu1  ;;  %v13488_v57 = vpop.f32.mrb[47].mxu0  ;;  %13788 = vmatprep.subr.bf16.mxu0 %v15017_v45  ;;  %v15051_v45 = vld [vmem:[%s15528_s22 + $0x1330] sm:$0xff]  }
 0x26f   : > { %v10244_v58 = vadd.f32 %v13486_v51, %v16247_v16  ;;  %v13508_v59 = vadd.f32 %v13507_v56, %v13506_v50  ;;  %v13509_v60 = vpop.f32.mrb[46].mxu1  ;;  %13809 = vmatpush3.bf16.msra.mxu1 %v15016_v44  ;;  %v2758_v16 = vrot.slane %v2730_v11, %v15569_v42  ;;  %v15050_v44 = vld [vmem:[%s15528_s22 + $0x13f0] sm:$0xff]   ;;  %v15053_v51 = vld [vmem:[%s15528_s22 + $0x1378] sm:$0xff]   ;;  %v15074_v11 = vld [vmem:[%s15528_s22 + $0x1460] sm:$0xff]  }
 0x270   : > { %v13510_v61 = vpop.f32.mrb[47].mxu1  ;;  %13810 = vmatprep.subr.bf16.mxu1 %v15018_v47  ;;  %v15054_v56 = vld [vmem:[%s15528_s22 + $0x13f8] sm:$0xff]  }
 0x271   : > { %v16284_v63 = vadd.f32 %v13508_v59, %v10244_v58  ;;  %13789 = vmatpush3.bf16.msra.mxu0 %v15019_v49  ;;  %v2762_v19 = vcombine.high %v2758_v16, %v2758_v16  ;;  %v15055_v57 = vld [vmem:[%s15528_s22 + $0x1338] sm:$0xff]   ;;  %v2744_v58 = vrot.slane %v16293_v8, %v15569_v42  ;;  %v15058_v59 = vld [vmem:[%s15528_s22 + $0x1440] sm:$0xff]   ;;  %v15069_v8 = vld [vmem:[%s15528_s22 + $0x1490] sm:$0xff]  }
 0x272   : > { %13790 = vmatprep.subr.bf16.mxu0 %v15021_v54  ;;  %v15056_v60 = vld [vmem:[%s15528_s22 + $0x13b8] sm:$0xff]   ;;  %v15060_v61 = vld [vmem:[%s15528_s22 + $0x1400] sm:$0xff]  }
 0x273   : > { %13811 = vmatpush3.bf16.msra.mxu1 %v15020_v53  ;;  %v15052_v53 = vld [vmem:[%s15528_s22 + $0x13b0] sm:$0xff]  }
 0x274   : > { %13812 = vmatprep.subr.bf16.mxu1 %v15022_v55  ;;  %v15059_v55 = vld [vmem:[%s15528_s22 + $0x14c0] sm:$0xff]  }
 0x275   : > { %13791 = vmatpush3.bf16.msra.mxu0 %v15023_v62  ;;  %v2760_v62 = vcombine.high %v2744_v58, %v2744_v58 }
 0x276   : > { %13820 = vmatprep.subr.bf16.mxu0 %v15025_v2  ;;  %v15064_v2 = vld [vmem:[%s15528_s22 + $0x1408] sm:$0xff]  }
 0x277   : > { %13813 = vmatpush3.bf16.msra.mxu1 %v15024_v4  ;;  %v15065_v4 = vld [vmem:[%s15528_s22 + $0x1488] sm:$0xff]  }
 0x278   : > { %13842 = vmatprep.subr.bf16.mxu1 %v15026_v7  ;;  %10802 = vmatmul.mubr.bf16.vlgmr.msra.gmra.mrb[72].mxu0 %v2737_v6  ;;  %v15068_v6 = vld [vmem:[%s15528_s22 + $0x1410] sm:$0xff]   ;;  %v15070_v7 = vld [vmem:[%s15528_s22 + $0x1458] sm:$0xff]  }
 0x279   : > { %13821 = vmatpush3.bf16.msra.mxu0 %v15027_v10  ;;  %10881 = vmatprep.mubr.bf16.mxu0 %v2758_v16  ;;  %v15072_v10 = vld [vmem:[%s15528_s22 + $0x1418] sm:$0xff]   ;;  %v15077_v16 = vld [vmem:[%s15528_s22 + $0x14a0] sm:$0xff]  }
 0x27a   : > { %10842 = vmatmul.mubr.bf16.vlgmr.msra.gmra.mrb[72].mxu1 %v2759_v12  ;;  %13822 = vmatprep.subr.bf16.mxu0 %v15029_v13  ;;  %v15073_v12 = vld [vmem:[%s15528_s22 + $0x1498] sm:$0xff]   ;;  %v15075_v13 = vld [vmem:[%s15528_s22 + $0x14e0] sm:$0xff]  }
 0x27b   : > { %13843 = vmatpush3.bf16.msra.mxu1 %v15028_v15  ;;  %10921 = vmatprep.mubr.bf16.mxu1 %v2762_v19  ;;  %v15078_v15 = vld [vmem:[%s15528_s22 + $0x1468] sm:$0xff]  }
 0x27c   : > { %13844 = vmatprep.subr.bf16.mxu1 %v15030_v17  ;;  %v15079_v17 = vld [vmem:[%s15528_s22 + $0x14e8] sm:$0xff]  }
 0x27d   : > { %13823 = vmatpush3.bf16.msra.mxu0 %v15031_v18  ;;  %v15080_v18 = vld [vmem:[%s15528_s22 + $0x1428] sm:$0xff]  }
 0x27e   : > { %13824 = vmatprep.subr.bf16.mxu0 %v15033_v20  ;;  %v15082_v20 = vld [vmem:[%s15528_s22 + $0x1470] sm:$0xff]  }
 0x27f   : > { %13845 = vmatpush3.bf16.msra.mxu1 %v15032_v21 }
 0x280   : > { %13846 = vmatprep.subr.bf16.mxu1 %v15034_v22  ;;  %v15081_v22 = vld [vmem:[%s15528_s22 + $0x14a8] sm:$0xff]  }
 0x281   : > { %13825 = vmatpush3.bf16.msra.mxu0 %v15035_v23 }
 0x282   : > { %13826 = vmatprep.subr.bf16.mxu0 %v15037_v24 }
 0x283   : > { %13847 = vmatpush3.bf16.msra.mxu1 %v15036_v25 }
 0x284   : > { %13848 = vmatprep.subr.bf16.mxu1 %v15038_v26  ;;  %v15083_v26 = vld [vmem:[%s15528_s22 + $0x14f0] sm:$0xff]  }
 0x285   : > { %13827 = vmatpush3.bf16.msra.mxu0 %v15039_v27  ;;  %v15084_v27 = vld [vmem:[%s15528_s22 + $0x1430] sm:$0xff]  }
 0x286   : > { %13828 = vmatprep.subr.bf16.mxu0 %v15041_v28 }
 0x287   : > { %13849 = vmatpush3.bf16.msra.mxu1 %v15040_v29 }
 0x288   : > { %13850 = vmatprep.subr.bf16.mxu1 %v15042_v30  ;;  %v15085_v30 = vld [vmem:[%s15528_s22 + $0x14b0] sm:$0xff]  }
 0x289   : > { %13829 = vmatpush3.bf16.msra.mxu0 %v15043_v31 }
 0x28a   : > { %13830 = vmatprep.subr.bf16.mxu0 %v15045_v32 }
 0x28b   : > { %v13528_v36 = vpop.f32.mrb[48].mxu0  ;;  %13851 = vmatpush3.bf16.msra.mxu1 %v15044_v33 }
 0x28c   : > { %v13529_v38 = vpop.f32.mrb[49].mxu0  ;;  %13852 = vmatprep.subr.bf16.mxu1 %v15046_v34  ;;  %v15086_v34 = vld [vmem:[%s15528_s22 + $0x1478] sm:$0xff]  }
 0x28d   : > { %v13550_v40 = vpop.f32.mrb[48].mxu1  ;;  %v13530_v41 = vadd.f32 %v13529_v38, %v13528_v36  ;;  %v13531_v43 = vpop.f32.mrb[50].mxu0  ;;  %13831 = vmatpush3.bf16.msra.mxu0 %v15047_v35  ;;  %v15087_v36 = vld [vmem:[%s15528_s22 + $0x14f8] sm:$0xff]  }
 0x28e   : > { %v13551_v46 = vpop.f32.mrb[49].mxu1  ;;  %v13532_v47 = vpop.f32.mrb[51].mxu0  ;;  %13832 = vmatprep.subr.bf16.mxu0 %v15049_v37  ;;  %v15088_v38 = vld [vmem:[%s15528_s22 + $0x1438] sm:$0xff]  }
 0x28f   : > { %v10324_v48 = vadd.f32 %v13530_v41, %v16284_v63  ;;  %v13552_v49 = vadd.f32 %v13551_v46, %v13550_v40  ;;  %v13553_v50 = vpop.f32.mrb[50].mxu1  ;;  %13853 = vmatpush3.bf16.msra.mxu1 %v15048_v39  ;;  %v15062_v63 = vld [vmem:[%s15528_s22 + $0x1448] sm:$0xff]   ;;  %v203_v39 = vld [vmem:[%s15523_s18 + $0x50] sm:$0xff]  ;;  %v15090_v41 = vld [vmem:[%s15528_s22 + $0x1540] sm:$0xff]  }
 0x290   : > { %v13554_v52 = vpop.f32.mrb[51].mxu1  ;;  %13854 = vmatprep.subr.bf16.mxu1 %v15050_v44  ;;  %v2770_v40 = vrot.slane %v203_v39, %v15569_v42  ;;  %v2763_v43 = vcombine.high %v203_v39, %v203_v39  ;;  %v15089_v44 = vld [vmem:[%s15528_s22 + $0x14b8] sm:$0xff]   ;;  %v15091_v47 = vld [vmem:[%s15528_s22 + $0x15c0] sm:$0xff]   ;;  %v15127_v39 = vld [vmem:[%s15528_s22 + $0x1648] sm:$0xff]  }
 0x291   : > { %v16327_v54 = vadd.f32 %v13552_v49, %v10324_v48  ;;  %13833 = vmatpush3.bf16.msra.mxu0 %v15051_v45  ;;  %v15092_v49 = vld [vmem:[%s15528_s22 + $0x1500] sm:$0xff]  }
 0x292   : > { %13834 = vmatprep.subr.bf16.mxu0 %v15053_v51  ;;  %v2778_v45 = vcombine.high %v2770_v40, %v2770_v40  ;;  %v2786_v46 = vrot.slane %v2770_v40, %v15569_v42  ;;  %v16375_v48 = vrot.slane %v2763_v43, %v15569_v42  ;;  %v15093_v51 = vld [vmem:[%s15528_s22 + $0x1580] sm:$0xff]   ;;  %v15128_v40 = vld [vmem:[%s15528_s22 + $0x16c8] sm:$0xff]  }
 0x293   : > { %13855 = vmatpush3.bf16.msra.mxu1 %v15052_v53  ;;  %v15130_v43 = vld [vmem:[%s15528_s22 + $0x1688] sm:$0xff]  }
 0x294   : > { %13856 = vmatprep.subr.bf16.mxu1 %v15054_v56  ;;  %v2800_v50 = vrot.slane %v2778_v45, %v15569_v42  ;;  %v2779_v52 = vcombine.high %v16375_v48, %v16375_v48  ;;  %v2808_v53 = vcombine.high %v2786_v46, %v2786_v46  ;;  %v15132_v45 = vld [vmem:[%s15528_s22 + $0x16d0] sm:$0xff]  }
 0x295   : > { %13835 = vmatpush3.bf16.msra.mxu0 %v15055_v57  ;;  %v15095_v57 = vld [vmem:[%s15528_s22 + $0x15c8] sm:$0xff]  }
 0x296   : > { %13864 = vmatprep.subr.bf16.mxu0 %v15058_v59  ;;  %v2810_v56 = vcombine.high %v2800_v50, %v2800_v50  ;;  %v15096_v59 = vld [vmem:[%s15528_s22 + $0x1508] sm:$0xff]  }
 0x297   : > { %13857 = vmatpush3.bf16.msra.mxu1 %v15056_v60  ;;  %v15097_v60 = vld [vmem:[%s15528_s22 + $0x1588] sm:$0xff]  }
 0x298   : > { %10882 = vmatmul.mubr.bf16.vlgmr.msra.gmra.mrb[76].mxu0 %v2744_v58  ;;  %13886 = vmatprep.subr.bf16.mxu1 %v15059_v55  ;;  %v2807_v58 = vrot.slane %v2779_v52, %v15569_v42  ;;  %v15139_v52 = vld [vmem:[%s15528_s22 + $0x1660] sm:$0xff]  }
 0x299   : > { %13865 = vmatpush3.bf16.msra.mxu0 %v15060_v61  ;;  %10961 = vmatprep.mubr.bf16.mxu0 %v2800_v50  ;;  %v15098_v61 = vld [vmem:[%s15528_s22 + $0x1550] sm:$0xff]   ;;  %v15137_v50 = vld [vmem:[%s15528_s22 + $0x1618] sm:$0xff]  }
 0x29a   : > { %10922 = vmatmul.mubr.bf16.vlgmr.msra.gmra.mrb[76].mxu1 %v2760_v62  ;;  %13866 = vmatprep.subr.bf16.mxu0 %v15062_v63  ;;  %v2811_v55 = vcombine.high %v2807_v58, %v2807_v58  ;;  %v15099_v62 = vld [vmem:[%s15528_s22 + $0x15d0] sm:$0xff]  }
 0x29b   : > { %13887 = vmatpush3.bf16.msra.mxu1 %v15061_v0  ;;  %11001 = vmatprep.mubr.bf16.mxu1 %v2810_v56  ;;  %v15100_v63 = vld [vmem:[%s15528_s22 + $0x1510] sm:$0xff]   ;;  %v15142_v56 = vld [vmem:[%s15528_s22 + $0x16a0] sm:$0xff]  }
 0x29c   : > { %13888 = vmatprep.subr.bf16.mxu1 %v15063_v1  ;;  %v15101_v0 = vld [vmem:[%s15528_s22 + $0x1590] sm:$0xff]   ;;  %v15102_v1 = vld [vmem:[%s15528_s22 + $0x1558] sm:$0xff]  }
 0x29d   : > { %13867 = vmatpush3.bf16.msra.mxu0 %v15064_v2  ;;  %v15103_v2 = vld [vmem:[%s15528_s22 + $0x15d8] sm:$0xff]  }
 0x29e   : > { %13868 = vmatprep.subr.bf16.mxu0 %v15066_v3  ;;  %v15104_v3 = vld [vmem:[%s15528_s22 + $0x1518] sm:$0xff]  }
 0x29f   : > { %13889 = vmatpush3.bf16.msra.mxu1 %v15065_v4  ;;  %v15105_v4 = vld [vmem:[%s15528_s22 + $0x1598] sm:$0xff]  }
 0x2a0   : > { %13890 = vmatprep.subr.bf16.mxu1 %v15067_v5  ;;  %v15106_v5 = vld [vmem:[%s15528_s22 + $0x1560] sm:$0xff]  }
 0x2a1   : > { %13869 = vmatpush3.bf16.msra.mxu0 %v15068_v6  ;;  %v15107_v6 = vld [vmem:[%s15528_s22 + $0x15e0] sm:$0xff]  }
 0x2a2   : > { %13870 = vmatprep.subr.bf16.mxu0 %v15070_v7  ;;  %v15108_v7 = vld [vmem:[%s15528_s22 + $0x1520] sm:$0xff]  }
 0x2a3   : > { %13891 = vmatpush3.bf16.msra.mxu1 %v15069_v8  ;;  %v15109_v8 = vld [vmem:[%s15528_s22 + $0x15a0] sm:$0xff]  }
 0x2a4   : > { %13892 = vmatprep.subr.bf16.mxu1 %v15071_v9  ;;  %v15110_v9 = vld [vmem:[%s15528_s22 + $0x1568] sm:$0xff]  }
 0x2a5   : > { %13871 = vmatpush3.bf16.msra.mxu0 %v15072_v10  ;;  %v15111_v10 = vld [vmem:[%s15528_s22 + $0x15e8] sm:$0xff]  }
 0x2a6   : > { %13872 = vmatprep.subr.bf16.mxu0 %v15074_v11  ;;  %v15112_v11 = vld [vmem:[%s15528_s22 + $0x1528] sm:$0xff]  }
 0x2a7   : > { %13893 = vmatpush3.bf16.msra.mxu1 %v15073_v12 }
 0x2a8   : > { %13894 = vmatprep.subr.bf16.mxu1 %v15075_v13  ;;  %v15113_v13 = vld [vmem:[%s15528_s22 + $0x15a8] sm:$0xff]  }
 0x2a9   : > { %13873 = vmatpush3.bf16.msra.mxu0 %v15076_v14 }
 0x2aa   : > { %13874 = vmatprep.subr.bf16.mxu0 %v15078_v15  ;;  %v15114_v15 = vld [vmem:[%s15528_s22 + $0x1570] sm:$0xff]  }
 0x2ab   : > { %v13572_v19 = vpop.f32.mrb[52].mxu0  ;;  %13895 = vmatpush3.bf16.msra.mxu1 %v15077_v16 }
 0x2ac   : > { %v13573_v21 = vpop.f32.mrb[53].mxu0  ;;  %13896 = vmatprep.subr.bf16.mxu1 %v15079_v17 }
 0x2ad   : > { %v13594_v23 = vpop.f32.mrb[52].mxu1  ;;  %v13574_v24 = vadd.f32 %v13573_v21, %v13572_v19  ;;  %v13575_v25 = vpop.f32.mrb[54].mxu0  ;;  %13875 = vmatpush3.bf16.msra.mxu0 %v15080_v18  ;;  %v15115_v19 = vld [vmem:[%s15528_s22 + $0x15f0] sm:$0xff]  }
 0x2ae   : > { %v13595_v28 = vpop.f32.mrb[53].mxu1  ;;  %v13576_v29 = vpop.f32.mrb[55].mxu0  ;;  %13876 = vmatprep.subr.bf16.mxu0 %v15082_v20  ;;  %v15116_v20 = vld [vmem:[%s15528_s22 + $0x1530] sm:$0xff]  }
 0x2af   : > { %v10404_v31 = vadd.f32 %v13574_v24, %v16327_v54  ;;  %v13596_v32 = vadd.f32 %v13595_v28, %v13594_v23  ;;  %v13597_v33 = vpop.f32.mrb[54].mxu1  ;;  %13897 = vmatpush3.bf16.msra.mxu1 %v15081_v22  ;;  %v15094_v54 = vld [vmem:[%s15528_s22 + $0x1548] sm:$0xff]   ;;  %v15118_v28 = vld [vmem:[%s15528_s22 + $0x1578] sm:$0xff]  }
 0x2b0   : > { %v13598_v35 = vpop.f32.mrb[55].mxu1  ;;  %13898 = vmatprep.subr.bf16.mxu1 %v15083_v26  ;;  %v15117_v26 = vld [vmem:[%s15528_s22 + $0x15b0] sm:$0xff]   ;;  %v2793_v33 = vrot.slane %v16375_v48, %v15569_v42  ;;  %v15135_v48 = vld [vmem:[%s15528_s22 + $0x1658] sm:$0xff]  }
 0x2b1   : > { %v16365_v37 = vadd.f32 %v13596_v32, %v10404_v31  ;;  %13877 = vmatpush3.bf16.msra.mxu0 %v15084_v27  ;;  %v15120_v31 = vld [vmem:[%s15528_s22 + $0x1538] sm:$0xff]   ;;  %v15124_v35 = vld [vmem:[%s15528_s22 + $0x16c0] sm:$0xff]  }
 0x2b2   : > { %13878 = vmatprep.subr.bf16.mxu0 %v15086_v34  ;;  %v15121_v32 = vld [vmem:[%s15528_s22 + $0x15b8] sm:$0xff]   ;;  %v15123_v34 = vld [vmem:[%s15528_s22 + $0x1640] sm:$0xff]  }
 0x2b3   : > { %13899 = vmatpush3.bf16.msra.mxu1 %v15085_v30  ;;  %v15119_v30 = vld [vmem:[%s15528_s22 + $0x15f8] sm:$0xff]  }
 0x2b4   : > { %13900 = vmatprep.subr.bf16.mxu1 %v15087_v36  ;;  %v15125_v36 = vld [vmem:[%s15528_s22 + $0x1600] sm:$0xff]  }
 0x2b5   : > { %13879 = vmatpush3.bf16.msra.mxu0 %v15088_v38  ;;  %v2809_v38 = vcombine.high %v2793_v33, %v2793_v33 }
 0x2b6   : > { %13908 = vmatprep.subr.bf16.mxu0 %v15090_v41  ;;  %v15129_v41 = vld [vmem:[%s15528_s22 + $0x1608] sm:$0xff]  }
 0x2b7   : > { %13901 = vmatpush3.bf16.msra.mxu1 %v15089_v44  ;;  %v15131_v44 = vld [vmem:[%s15528_s22 + $0x1650] sm:$0xff]  }
 0x2b8   : > { %13930 = vmatprep.subr.bf16.mxu1 %v15091_v47  ;;  %10962 = vmatmul.mubr.bf16.vlgmr.msra.gmra.mrb[80].mxu0 %v2786_v46  ;;  %v15133_v46 = vld [vmem:[%s15528_s22 + $0x1610] sm:$0xff]  }
 0x2b9   : > { %13909 = vmatpush3.bf16.msra.mxu0 %v15092_v49  ;;  %11041 = vmatprep.mubr.bf16.mxu0 %v2807_v58  ;;  %v15134_v47 = vld [vmem:[%s15528_s22 + $0x1690] sm:$0xff]   ;;  %v15136_v49 = vld [vmem:[%s15528_s22 + $0x16d8] sm:$0xff]   ;;  %v15144_v58 = vld [vmem:[%s15528_s22 + $0x16e8] sm:$0xff]  }
 0x2ba   : > { %11002 = vmatmul.mubr.bf16.vlgmr.msra.gmra.mrb[80].mxu1 %v2808_v53  ;;  %13910 = vmatprep.subr.bf16.mxu0 %v15094_v54  ;;  %v15140_v53 = vld [vmem:[%s15528_s22 + $0x16e0] sm:$0xff]  }
 0x2bb   : > { %13931 = vmatpush3.bf16.msra.mxu1 %v15093_v51  ;;  %11081 = vmatprep.mubr.bf16.mxu1 %v2811_v55  ;;  %v15138_v51 = vld [vmem:[%s15528_s22 + $0x1698] sm:$0xff]   ;;  %v15141_v54 = vld [vmem:[%s15528_s22 + $0x1620] sm:$0xff]   ;;  %v15146_v55 = vld [vmem:[%s15528_s22 + $0x16a8] sm:$0xff]  }
 0x2bc   : > { %13932 = vmatprep.subr.bf16.mxu1 %v15095_v57  ;;  %v15143_v57 = vld [vmem:[%s15528_s22 + $0x1668] sm:$0xff]  }
 0x2bd   : > { %13911 = vmatpush3.bf16.msra.mxu0 %v15096_v59  ;;  %v15145_v59 = vld [vmem:[%s15528_s22 + $0x1628] sm:$0xff]  }
 0x2be   : > { %13912 = vmatprep.subr.bf16.mxu0 %v15098_v61 }
 0x2bf   : > { %13933 = vmatpush3.bf16.msra.mxu1 %v15097_v60 }
 0x2c0   : > { %13934 = vmatprep.subr.bf16.mxu1 %v15099_v62  ;;  %v15147_v62 = vld [vmem:[%s15528_s22 + $0x1670] sm:$0xff]  }
 0x2c1   : > { %13913 = vmatpush3.bf16.msra.mxu0 %v15100_v63 }
 0x2c2   : > { %13914 = vmatprep.subr.bf16.mxu0 %v15102_v1 }
 0x2c3   : > { %13935 = vmatpush3.bf16.msra.mxu1 %v15101_v0 }
 0x2c4   : > { %13936 = vmatprep.subr.bf16.mxu1 %v15103_v2  ;;  %v15148_v2 = vld [vmem:[%s15528_s22 + $0x16f0] sm:$0xff]  }
 0x2c5   : > { %13915 = vmatpush3.bf16.msra.mxu0 %v15104_v3  ;;  %v15149_v3 = vld [vmem:[%s15528_s22 + $0x1630] sm:$0xff]  }
 0x2c6   : > { %13916 = vmatprep.subr.bf16.mxu0 %v15106_v5 }
 0x2c7   : > { %13937 = vmatpush3.bf16.msra.mxu1 %v15105_v4 }
 0x2c8   : > { %13938 = vmatprep.subr.bf16.mxu1 %v15107_v6 }
 0x2c9   : > { %13917 = vmatpush3.bf16.msra.mxu0 %v15108_v7 }
 0x2ca   : > { %13918 = vmatprep.subr.bf16.mxu0 %v15110_v9  ;;  %v15150_v9 = vld [vmem:[%s15528_s22 + $0x16b0] sm:$0xff]  }
 0x2cb   : > { %v13616_v12 = vpop.f32.mrb[56].mxu0  ;;  %13939 = vmatpush3.bf16.msra.mxu1 %v15109_v8 }
 0x2cc   : > { %v13617_v14 = vpop.f32.mrb[57].mxu0  ;;  %13940 = vmatprep.subr.bf16.mxu1 %v15111_v10 }
 0x2cd   : > { %v13638_v16 = vpop.f32.mrb[56].mxu1  ;;  %v13618_v17 = vadd.f32 %v13617_v14, %v13616_v12  ;;  %v13619_v18 = vpop.f32.mrb[58].mxu0  ;;  %13919 = vmatpush3.bf16.msra.mxu0 %v15112_v11  ;;  %v15151_v11 = vld [vmem:[%s15528_s22 + $0x1678] sm:$0xff]  }
 0x2ce   : > { %v13639_v21 = vpop.f32.mrb[57].mxu1  ;;  %v13620_v22 = vpop.f32.mrb[59].mxu0  ;;  %13920 = vmatprep.subr.bf16.mxu0 %v15114_v15  ;;  %v15153_v14 = vld [vmem:[%s15528_s22 + $0x1638] sm:$0xff]  }
 0x2cf   : > { %v10484_v23 = vadd.f32 %v13618_v17, %v16365_v37  ;;  %v13640_v24 = vadd.f32 %v13639_v21, %v13638_v16  ;;  %v13641_v25 = vpop.f32.mrb[58].mxu1  ;;  %13941 = vmatpush3.bf16.msra.mxu1 %v15113_v13  ;;  %v15126_v37 = vld [vmem:[%s15528_s22 + $0x1680] sm:$0xff]   ;;  %v15152_v13 = vld [vmem:[%s15528_s22 + $0x16f8] sm:$0xff]  }
 0x2d0   : > { %v13642_v27 = vpop.f32.mrb[59].mxu1  ;;  %13942 = vmatprep.subr.bf16.mxu1 %v15115_v19  ;;  %v204_v15 = vld [vmem:[%s15523_s18 + $0x58] sm:$0xff]  ;;  %v15155_v17 = vld [vmem:[%s15528_s22 + $0x1740] sm:$0xff]  }
 0x2d1   : > { %v16409_v29 = vadd.f32 %v13640_v24, %v10484_v23  ;;  %13921 = vmatpush3.bf16.msra.mxu0 %v15116_v20  ;;  %v2819_v16 = vrot.slane %v204_v15, %v15569_v42  ;;  %v2812_v18 = vcombine.high %v204_v15, %v204_v15  ;;  %v15154_v19 = vld [vmem:[%s15528_s22 + $0x16b8] sm:$0xff]   ;;  %v15156_v22 = vld [vmem:[%s15528_s22 + $0x17c0] sm:$0xff]   ;;  %v15192_v15 = vld [vmem:[%s15528_s22 + $0x1848] sm:$0xff]  }
 0x2d2   : > { %13922 = vmatprep.subr.bf16.mxu0 %v15118_v28  ;;  %v15157_v24 = vld [vmem:[%s15528_s22 + $0x1700] sm:$0xff]  }
 0x2d3   : > { %13943 = vmatpush3.bf16.msra.mxu1 %v15117_v26  ;;  %v2827_v20 = vcombine.high %v2819_v16, %v2819_v16  ;;  %v2835_v21 = vrot.slane %v2819_v16, %v15569_v42  ;;  %v16457_v23 = vrot.slane %v2812_v18, %v15569_v42  ;;  %v15158_v26 = vld [vmem:[%s15528_s22 + $0x1780] sm:$0xff]   ;;  %v15193_v16 = vld [vmem:[%s15528_s22 + $0x18c8] sm:$0xff]  }
 0x2d4   : > { %13944 = vmatprep.subr.bf16.mxu1 %v15119_v30  ;;  %v15195_v18 = vld [vmem:[%s15528_s22 + $0x1888] sm:$0xff]  }
 0x2d5   : > { %13923 = vmatpush3.bf16.msra.mxu0 %v15120_v31  ;;  %v2849_v25 = vrot.slane %v2827_v20, %v15569_v42  ;;  %v2828_v27 = vcombine.high %v16457_v23, %v16457_v23  ;;  %v2857_v28 = vcombine.high %v2835_v21, %v2835_v21  ;;  %v15160_v31 = vld [vmem:[%s15528_s22 + $0x17c8] sm:$0xff]   ;;  %v15197_v20 = vld [vmem:[%s15528_s22 + $0x18d0] sm:$0xff]  }
 0x2d6   : > { %13952 = vmatprep.subr.bf16.mxu0 %v15123_v34  ;;  %v15162_v34 = vld [vmem:[%s15528_s22 + $0x1788] sm:$0xff]  }
 0x2d7   : > { %13945 = vmatpush3.bf16.msra.mxu1 %v15121_v32  ;;  %v2859_v30 = vcombine.high %v2849_v25, %v2849_v25  ;;  %v2856_v32 = vrot.slane %v2828_v27, %v15569_v42  ;;  %v15204_v27 = vld [vmem:[%s15528_s22 + $0x1860] sm:$0xff]  }
 0x2d8   : > { %11042 = vmatmul.mubr.bf16.vlgmr.msra.gmra.mrb[84].mxu0 %v2793_v33  ;;  %13974 = vmatprep.subr.bf16.mxu1 %v15124_v35  ;;  %v15161_v33 = vld [vmem:[%s15528_s22 + $0x1708] sm:$0xff]  }
 0x2d9   : > { %13953 = vmatpush3.bf16.msra.mxu0 %v15125_v36  ;;  %11121 = vmatprep.mubr.bf16.mxu0 %v2849_v25  ;;  %v2860_v35 = vcombine.high %v2856_v32, %v2856_v32  ;;  %v15163_v36 = vld [vmem:[%s15528_s22 + $0x1750] sm:$0xff]   ;;  %v15202_v25 = vld [vmem:[%s15528_s22 + $0x1818] sm:$0xff]  }
 0x2da   : > { %11082 = vmatmul.mubr.bf16.vlgmr.msra.gmra.mrb[84].mxu1 %v2809_v38  ;;  %13954 = vmatprep.subr.bf16.mxu0 %v15127_v39  ;;  %v15165_v38 = vld [vmem:[%s15528_s22 + $0x1710] sm:$0xff]  }
 0x2db   : > { %13975 = vmatpush3.bf16.msra.mxu1 %v15126_v37  ;;  %11161 = vmatprep.mubr.bf16.mxu1 %v2859_v30  ;;  %v15164_v37 = vld [vmem:[%s15528_s22 + $0x17d0] sm:$0xff]   ;;  %v15207_v30 = vld [vmem:[%s15528_s22 + $0x18a0] sm:$0xff]  }
 0x2dc   : > { %13976 = vmatprep.subr.bf16.mxu1 %v15128_v40  ;;  %v15166_v39 = vld [vmem:[%s15528_s22 + $0x1790] sm:$0xff]   ;;  %v15167_v40 = vld [vmem:[%s15528_s22 + $0x1758] sm:$0xff]  }
 0x2dd   : > { %13955 = vmatpush3.bf16.msra.mxu0 %v15129_v41  ;;  %v15168_v41 = vld [vmem:[%s15528_s22 + $0x17d8] sm:$0xff]  }
 0x2de   : > { %13956 = vmatprep.subr.bf16.mxu0 %v15131_v44  ;;  %v15170_v44 = vld [vmem:[%s15528_s22 + $0x1798] sm:$0xff]  }
 0x2df   : > { %13977 = vmatpush3.bf16.msra.mxu1 %v15130_v43  ;;  %v15169_v43 = vld [vmem:[%s15528_s22 + $0x1718] sm:$0xff]  }
 0x2e0   : > { %13978 = vmatprep.subr.bf16.mxu1 %v15132_v45  ;;  %v15171_v45 = vld [vmem:[%s15528_s22 + $0x1760] sm:$0xff]  }
 0x2e1   : > { %13957 = vmatpush3.bf16.msra.mxu0 %v15133_v46  ;;  %v15172_v46 = vld [vmem:[%s15528_s22 + $0x17e0] sm:$0xff]  }
 0x2e2   : > { %13958 = vmatprep.subr.bf16.mxu0 %v15135_v48  ;;  %v15174_v48 = vld [vmem:[%s15528_s22 + $0x17a0] sm:$0xff]  }
 0x2e3   : > { %13979 = vmatpush3.bf16.msra.mxu1 %v15134_v47  ;;  %v15173_v47 = vld [vmem:[%s15528_s22 + $0x1720] sm:$0xff]  }
 0x2e4   : > { %13980 = vmatprep.subr.bf16.mxu1 %v15136_v49  ;;  %v15175_v49 = vld [vmem:[%s15528_s22 + $0x1768] sm:$0xff]  }
 0x2e5   : > { %13959 = vmatpush3.bf16.msra.mxu0 %v15137_v50  ;;  %v15176_v50 = vld [vmem:[%s15528_s22 + $0x17e8] sm:$0xff]  }
 0x2e6   : > { %13960 = vmatprep.subr.bf16.mxu0 %v15139_v52  ;;  %v15177_v52 = vld [vmem:[%s15528_s22 + $0x1728] sm:$0xff]  }
 0x2e7   : > { %13981 = vmatpush3.bf16.msra.mxu1 %v15138_v51 }
 0x2e8   : > { %13982 = vmatprep.subr.bf16.mxu1 %v15140_v53 }
 0x2e9   : > { %13961 = vmatpush3.bf16.msra.mxu0 %v15141_v54  ;;  %v15178_v54 = vld [vmem:[%s15528_s22 + $0x17a8] sm:$0xff]  }
 0x2ea   : > { %13962 = vmatprep.subr.bf16.mxu0 %v15143_v57 }
 0x2eb   : > { %v13660_v60 = vpop.f32.mrb[60].mxu0  ;;  %13983 = vmatpush3.bf16.msra.mxu1 %v15142_v56 }
 0x2ec   : > { %v13661_v61 = vpop.f32.mrb[61].mxu0  ;;  %13984 = vmatprep.subr.bf16.mxu1 %v15144_v58 }
 0x2ed   : > { %v13682_v63 = vpop.f32.mrb[60].mxu1  ;;  %v13662_v0 = vadd.f32 %v13661_v61, %v13660_v60  ;;  %v13663_v1 = vpop.f32.mrb[62].mxu0  ;;  %13963 = vmatpush3.bf16.msra.mxu0 %v15145_v59  ;;  %v15179_v59 = vld [vmem:[%s15528_s22 + $0x1770] sm:$0xff]  }
 0x2ee   : > { %v13683_v4 = vpop.f32.mrb[61].mxu1  ;;  %v13664_v5 = vpop.f32.mrb[63].mxu0  ;;  %13964 = vmatprep.subr.bf16.mxu0 %v15147_v62  ;;  %v15180_v60 = vld [vmem:[%s15528_s22 + $0x17f0] sm:$0xff]  }
 0x2ef   : > { %v10564_v6 = vadd.f32 %v13662_v0, %v16409_v29  ;;  %v13684_v7 = vadd.f32 %v13683_v4, %v13682_v63  ;;  %v13685_v8 = vpop.f32.mrb[62].mxu1  ;;  %13985 = vmatpush3.bf16.msra.mxu1 %v15146_v55  ;;  %v15159_v29 = vld [vmem:[%s15528_s22 + $0x1748] sm:$0xff]   ;;  %v15181_v1 = vld [vmem:[%s15528_s22 + $0x1730] sm:$0xff]   ;;  %v15183_v5 = vld [vmem:[%s15528_s22 + $0x1778] sm:$0xff]  }
 0x2f0   : > { %v13686_v10 = vpop.f32.mrb[63].mxu1  ;;  %13986 = vmatprep.subr.bf16.mxu1 %v15148_v2  ;;  %v15186_v8 = vld [vmem:[%s15528_s22 + $0x17b8] sm:$0xff]  }
 0x2f1   : > { %v16446_v12 = vadd.f32 %v13684_v7, %v10564_v6  ;;  %13965 = vmatpush3.bf16.msra.mxu0 %v15149_v3  ;;  %v15182_v3 = vld [vmem:[%s15528_s22 + $0x17b0] sm:$0xff]   ;;  %v15184_v6 = vld [vmem:[%s15528_s22 + $0x17f8] sm:$0xff]   ;;  %v15188_v10 = vld [vmem:[%s15528_s22 + $0x1840] sm:$0xff]  }
 0x2f2   : > { %13966 = vmatprep.subr.bf16.mxu0 %v15151_v11  ;;  %v15185_v7 = vld [vmem:[%s15528_s22 + $0x1738] sm:$0xff]   ;;  %v15189_v11 = vld [vmem:[%s15528_s22 + $0x18c0] sm:$0xff]  }
 0x2f3   : > { %13987 = vmatpush3.bf16.msra.mxu1 %v15150_v9  ;;  %v2842_v9 = vrot.slane %v16457_v23, %v15569_v42  ;;  %v15200_v23 = vld [vmem:[%s15528_s22 + $0x1858] sm:$0xff]  }
 0x2f4   : > { %13988 = vmatprep.subr.bf16.mxu1 %v15152_v13  ;;  %v15191_v13 = vld [vmem:[%s15528_s22 + $0x1880] sm:$0xff]  }
 0x2f5   : > { %13967 = vmatpush3.bf16.msra.mxu0 %v15153_v14  ;;  %v2858_v14 = vcombine.high %v2842_v9, %v2842_v9 }
 0x2f6   : > { %13996 = vmatprep.subr.bf16.mxu0 %v15155_v17  ;;  %v15194_v17 = vld [vmem:[%s15528_s22 + $0x1808] sm:$0xff]  }
 0x2f7   : > { %13989 = vmatpush3.bf16.msra.mxu1 %v15154_v19  ;;  %v15196_v19 = vld [vmem:[%s15528_s22 + $0x1850] sm:$0xff]  }
 0x2f8   : > { %14018 = vmatprep.subr.bf16.mxu1 %v15156_v22  ;;  %11122 = vmatmul.mubr.bf16.vlgmr.msra.gmra.mrb[88].mxu0 %v2835_v21  ;;  %v15198_v21 = vld [vmem:[%s15528_s22 + $0x1810] sm:$0xff]  }
 0x2f9   : > { %13997 = vmatpush3.bf16.msra.mxu0 %v15157_v24  ;;  %11201 = vmatprep.mubr.bf16.mxu0 %v2856_v32  ;;  %v15199_v22 = vld [vmem:[%s15528_s22 + $0x1890] sm:$0xff]   ;;  %v15201_v24 = vld [vmem:[%s15528_s22 + $0x18d8] sm:$0xff]   ;;  %v15209_v32 = vld [vmem:[%s15528_s22 + $0x18e8] sm:$0xff]  }
 0x2fa   : > { %11162 = vmatmul.mubr.bf16.vlgmr.msra.gmra.mrb[88].mxu1 %v2857_v28  ;;  %13998 = vmatprep.subr.bf16.mxu0 %v15159_v29  ;;  %v15205_v28 = vld [vmem:[%s15528_s22 + $0x18e0] sm:$0xff]  }
 0x2fb   : > { %14019 = vmatpush3.bf16.msra.mxu1 %v15158_v26  ;;  %11241 = vmatprep.mubr.bf16.mxu1 %v2860_v35  ;;  %v15203_v26 = vld [vmem:[%s15528_s22 + $0x1898] sm:$0xff]   ;;  %v15206_v29 = vld [vmem:[%s15528_s22 + $0x1820] sm:$0xff]  }
 0x2fc   : > { %14020 = vmatprep.subr.bf16.mxu1 %v15160_v31  ;;  %v15208_v31 = vld [vmem:[%s15528_s22 + $0x1868] sm:$0xff]  }
 0x2fd   : > { %13999 = vmatpush3.bf16.msra.mxu0 %v15161_v33 }
 0x2fe   : > { %14000 = vmatprep.subr.bf16.mxu0 %v15163_v36  ;;  %v15211_v36 = vld [vmem:[%s15528_s22 + $0x18a8] sm:$0xff]  }
 0x2ff   : > { %14021 = vmatpush3.bf16.msra.mxu1 %v15162_v34  ;;  %v15210_v34 = vld [vmem:[%s15528_s22 + $0x1828] sm:$0xff]  }
 0x300   : > { %14022 = vmatprep.subr.bf16.mxu1 %v15164_v37 }
 0x301   : > { %14001 = vmatpush3.bf16.msra.mxu0 %v15165_v38 }
 0x302   : > { %14002 = vmatprep.subr.bf16.mxu0 %v15167_v40  ;;  %v15212_v40 = vld [vmem:[%s15528_s22 + $0x1870] sm:$0xff]  }
 0x303   : > { %14023 = vmatpush3.bf16.msra.mxu1 %v15166_v39 }
 0x304   : > { %14024 = vmatprep.subr.bf16.mxu1 %v15168_v41  ;;  %v15213_v41 = vld [vmem:[%s15528_s22 + $0x18f0] sm:$0xff]  }
 0x305   : > { %14003 = vmatpush3.bf16.msra.mxu0 %v15169_v43 }
 0x306   : > { %14004 = vmatprep.subr.bf16.mxu0 %v15171_v45 }
 0x307   : > { %14025 = vmatpush3.bf16.msra.mxu1 %v15170_v44 }
 0x308   : > { %14026 = vmatprep.subr.bf16.mxu1 %v15172_v46 }
 0x309   : > { %14005 = vmatpush3.bf16.msra.mxu0 %v15173_v47 }
 0x30a   : > { %14006 = vmatprep.subr.bf16.mxu0 %v15175_v49 }
 0x30b   : > { %v13704_v51 = vpop.f32.mrb[64].mxu0  ;;  %14027 = vmatpush3.bf16.msra.mxu1 %v15174_v48  ;;  %v15214_v48 = vld [vmem:[%s15528_s22 + $0x1830] sm:$0xff]  }
 0x30c   : > { %v13705_v53 = vpop.f32.mrb[65].mxu0  ;;  %14028 = vmatprep.subr.bf16.mxu1 %v15176_v50  ;;  %v15215_v50 = vld [vmem:[%s15528_s22 + $0x18b0] sm:$0xff]  }
 0x30d   : > { %v13726_v56 = vpop.f32.mrb[64].mxu1  ;;  %v13706_v57 = vadd.f32 %v13705_v53, %v13704_v51  ;;  %v13707_v58 = vpop.f32.mrb[66].mxu0  ;;  %14007 = vmatpush3.bf16.msra.mxu0 %v15177_v52  ;;  %v15216_v52 = vld [vmem:[%s15528_s22 + $0x1878] sm:$0xff]  }
 0x30e   : > { %v13727_v55 = vpop.f32.mrb[65].mxu1  ;;  %v13708_v61 = vpop.f32.mrb[67].mxu0  ;;  %14008 = vmatprep.subr.bf16.mxu0 %v15179_v59  ;;  %v15217_v53 = vld [vmem:[%s15528_s22 + $0x18f8] sm:$0xff]   ;;  %v15220_v58 = vld [vmem:[%s15528_s22 + $0x1940] sm:$0xff]  }
 0x30f   : > { %v10644_v62 = vadd.f32 %v13706_v57, %v16446_v12  ;;  %v13728_v63 = vadd.f32 %v13727_v55, %v13726_v56  ;;  %v13729_v0 = vpop.f32.mrb[66].mxu1  ;;  %14029 = vmatpush3.bf16.msra.mxu1 %v15178_v54  ;;  %v15190_v12 = vld [vmem:[%s15528_s22 + $0x1800] sm:$0xff]   ;;  %v15218_v54 = vld [vmem:[%s15528_s22 + $0x1838] sm:$0xff]  }
 0x310   : > { %v13730_v2 = vpop.f32.mrb[67].mxu1  ;;  %14030 = vmatprep.subr.bf16.mxu1 %v15180_v60  ;;  %v205_v56 = vld [vmem:[%s15523_s18 + $0x60] sm:$0xff]  ;;  %v15219_v60 = vld [vmem:[%s15528_s22 + $0x18b8] sm:$0xff]  }
 0x311   : > { %v16490_v4 = vadd.f32 %v13728_v63, %v10644_v62  ;;  %14009 = vmatpush3.bf16.msra.mxu0 %v15181_v1  ;;  %v2868_v57 = vrot.slane %v205_v56, %v15569_v42  ;;  %v2861_v59 = vcombine.high %v205_v56, %v205_v56  ;;  %v15221_v62 = vld [vmem:[%s15528_s22 + $0x19c0] sm:$0xff]   ;;  %v15257_v56 = vld [vmem:[%s15528_s22 + $0x1a48] sm:$0xff]  }
 0x312   : > { %14010 = vmatprep.subr.bf16.mxu0 %v15183_v5  ;;  %v15222_v0 = vld [vmem:[%s15528_s22 + $0x1900] sm:$0xff]   ;;  %v15224_v5 = vld [vmem:[%s15528_s22 + $0x1948] sm:$0xff]  }
 0x313   : > { %14031 = vmatpush3.bf16.msra.mxu1 %v15182_v3  ;;  %v2876_v55 = vcombine.high %v2868_v57, %v2868_v57  ;;  %v2884_v61 = vrot.slane %v2868_v57, %v15569_v42  ;;  %v16539_v63 = vrot.slane %v2861_v59, %v15569_v42  ;;  %v15223_v2 = vld [vmem:[%s15528_s22 + $0x1980] sm:$0xff]   ;;  %v15258_v57 = vld [vmem:[%s15528_s22 + $0x1ac8] sm:$0xff]  }
 0x314   : > { %14032 = vmatprep.subr.bf16.mxu1 %v15184_v6  ;;  %v15260_v59 = vld [vmem:[%s15528_s22 + $0x1a88] sm:$0xff]  }
 0x315   : > { %14011 = vmatpush3.bf16.msra.mxu0 %v15185_v7  ;;  %v2898_v1 = vrot.slane %v2876_v55, %v15569_v42  ;;  %v2877_v3 = vcombine.high %v16539_v63, %v16539_v63  ;;  %v15225_v7 = vld [vmem:[%s15528_s22 + $0x19c8] sm:$0xff]   ;;  %v15262_v55 = vld [vmem:[%s15528_s22 + $0x1ad0] sm:$0xff]  }
 0x316   : > { %14040 = vmatprep.subr.bf16.mxu0 %v15188_v10  ;;  %v15227_v10 = vld [vmem:[%s15528_s22 + $0x1988] sm:$0xff]  }
 0x317   : > { %14033 = vmatpush3.bf16.msra.mxu1 %v15186_v8  ;;  %v2908_v6 = vcombine.high %v2898_v1, %v2898_v1  ;;  %v2905_v8 = vrot.slane %v2877_v3, %v15569_v42  ;;  %v15269_v3 = vld [vmem:[%s15528_s22 + $0x1a60] sm:$0xff]  }
 0x318   : > { %11202 = vmatmul.mubr.bf16.vlgmr.msra.gmra.mrb[92].mxu0 %v2842_v9  ;;  %14062 = vmatprep.subr.bf16.mxu1 %v15189_v11  ;;  %v15226_v9 = vld [vmem:[%s15528_s22 + $0x1908] sm:$0xff]  }
 0x319   : > { %14041 = vmatpush3.bf16.msra.mxu0 %v15190_v12  ;;  %11281 = vmatprep.mubr.bf16.mxu0 %v2898_v1  ;;  %v2909_v11 = vcombine.high %v2905_v8, %v2905_v8  ;;  %v15228_v12 = vld [vmem:[%s15528_s22 + $0x1950] sm:$0xff]   ;;  %v15267_v1 = vld [vmem:[%s15528_s22 + $0x1a18] sm:$0xff]  }
 0x31a   : > { %11242 = vmatmul.mubr.bf16.vlgmr.msra.gmra.mrb[92].mxu1 %v2858_v14  ;;  %14042 = vmatprep.subr.bf16.mxu0 %v15192_v15  ;;  %v15230_v14 = vld [vmem:[%s15528_s22 + $0x1910] sm:$0xff]  }
 0x31b   : > { %14063 = vmatpush3.bf16.msra.mxu1 %v15191_v13  ;;  %11321 = vmatprep.mubr.bf16.mxu1 %v2908_v6  ;;  %v15229_v13 = vld [vmem:[%s15528_s22 + $0x19d0] sm:$0xff]   ;;  %v15272_v6 = vld [vmem:[%s15528_s22 + $0x1aa0] sm:$0xff]  }
 0x31c   : > { %14064 = vmatprep.subr.bf16.mxu1 %v15193_v16  ;;  %v15231_v15 = vld [vmem:[%s15528_s22 + $0x1990] sm:$0xff]   ;;  %v15232_v16 = vld [vmem:[%s15528_s22 + $0x1958] sm:$0xff]  }
 0x31d   : > { %14043 = vmatpush3.bf16.msra.mxu0 %v15194_v17  ;;  %v15233_v17 = vld [vmem:[%s15528_s22 + $0x19d8] sm:$0xff]  }
 0x31e   : > { %14044 = vmatprep.subr.bf16.mxu0 %v15196_v19  ;;  %v15235_v19 = vld [vmem:[%s15528_s22 + $0x1998] sm:$0xff]  }
 0x31f   : > { %14065 = vmatpush3.bf16.msra.mxu1 %v15195_v18  ;;  %v15234_v18 = vld [vmem:[%s15528_s22 + $0x1918] sm:$0xff]  }
 0x320   : > { %14066 = vmatprep.subr.bf16.mxu1 %v15197_v20  ;;  %v15236_v20 = vld [vmem:[%s15528_s22 + $0x1960] sm:$0xff]  }
 0x321   : > { %14045 = vmatpush3.bf16.msra.mxu0 %v15198_v21  ;;  %v15237_v21 = vld [vmem:[%s15528_s22 + $0x19e0] sm:$0xff]  }
 0x322   : > { %14046 = vmatprep.subr.bf16.mxu0 %v15200_v23  ;;  %v15239_v23 = vld [vmem:[%s15528_s22 + $0x19a0] sm:$0xff]  }
 0x323   : > { %14067 = vmatpush3.bf16.msra.mxu1 %v15199_v22  ;;  %v15238_v22 = vld [vmem:[%s15528_s22 + $0x1920] sm:$0xff]  }
 0x324   : > { %14068 = vmatprep.subr.bf16.mxu1 %v15201_v24  ;;  %v15240_v24 = vld [vmem:[%s15528_s22 + $0x1968] sm:$0xff]  }
 0x325   : > { %14047 = vmatpush3.bf16.msra.mxu0 %v15202_v25  ;;  %v15241_v25 = vld [vmem:[%s15528_s22 + $0x19e8] sm:$0xff]  }
 0x326   : > { %14048 = vmatprep.subr.bf16.mxu0 %v15204_v27  ;;  %v15242_v27 = vld [vmem:[%s15528_s22 + $0x1928] sm:$0xff]  }
 0x327   : > { %14069 = vmatpush3.bf16.msra.mxu1 %v15203_v26 }
 0x328   : > { %14070 = vmatprep.subr.bf16.mxu1 %v15205_v28 }
 0x329   : > { %14049 = vmatpush3.bf16.msra.mxu0 %v15206_v29  ;;  %v15243_v29 = vld [vmem:[%s15528_s22 + $0x19a8] sm:$0xff]  }
 0x32a   : > { %14050 = vmatprep.subr.bf16.mxu0 %v15208_v31 }
 0x32b   : > { %v13748_v33 = vpop.f32.mrb[68].mxu0  ;;  %14071 = vmatpush3.bf16.msra.mxu1 %v15207_v30 }
 0x32c   : > { %v13749_v35 = vpop.f32.mrb[69].mxu0  ;;  %14072 = vmatprep.subr.bf16.mxu1 %v15209_v32 }
 0x32d   : > { %v13770_v37 = vpop.f32.mrb[68].mxu1  ;;  %v13750_v38 = vadd.f32 %v13749_v35, %v13748_v33  ;;  %v13751_v39 = vpop.f32.mrb[70].mxu0  ;;  %14051 = vmatpush3.bf16.msra.mxu0 %v15210_v34  ;;  %v15244_v33 = vld [vmem:[%s15528_s22 + $0x1970] sm:$0xff]  }
 0x32e   : > { %v13771_v43 = vpop.f32.mrb[69].mxu1  ;;  %v13752_v44 = vpop.f32.mrb[71].mxu0  ;;  %14052 = vmatprep.subr.bf16.mxu0 %v15212_v40  ;;  %v15245_v34 = vld [vmem:[%s15528_s22 + $0x19f0] sm:$0xff]  }
 0x32f   : > { %v10724_v45 = vadd.f32 %v13750_v38, %v16490_v4  ;;  %v13772_v46 = vadd.f32 %v13771_v43, %v13770_v37  ;;  %v13773_v47 = vpop.f32.mrb[70].mxu1  ;;  %14073 = vmatpush3.bf16.msra.mxu1 %v15211_v36  ;;  %v2906_v4 = vcombine.high %v2884_v61, %v2884_v61  ;;  %v15246_v40 = vld [vmem:[%s15528_s22 + $0x1930] sm:$0xff]  }
 0x330   : > { %v13774_v49 = vpop.f32.mrb[71].mxu1  ;;  %14074 = vmatprep.subr.bf16.mxu1 %v15213_v41  ;;  %v15247_v43 = vld [vmem:[%s15528_s22 + $0x19b0] sm:$0xff]   ;;  %v15250_v47 = vld [vmem:[%s15528_s22 + $0x1938] sm:$0xff]  }
 0x331   : > { %v16527_v51 = vadd.f32 %v13772_v46, %v10724_v45  ;;  %14053 = vmatpush3.bf16.msra.mxu0 %v15214_v48  ;;  %v15248_v45 = vld [vmem:[%s15528_s22 + $0x1978] sm:$0xff]   ;;  %v2891_v49 = vrot.slane %v16539_v63, %v15569_v42 }
 0x332   : > { %14054 = vmatprep.subr.bf16.mxu0 %v15216_v52  ;;  %v15249_v46 = vld [vmem:[%s15528_s22 + $0x19f8] sm:$0xff]   ;;  %v15255_v52 = vld [vmem:[%s15528_s22 + $0x1a00] sm:$0xff]  }
 0x333   : > { %14075 = vmatpush3.bf16.msra.mxu1 %v15215_v50  ;;  %v15251_v48 = vld [vmem:[%s15528_s22 + $0x19b8] sm:$0xff]   ;;  %v15253_v50 = vld [vmem:[%s15528_s22 + $0x1a40] sm:$0xff]  }
 0x334   : > { %14076 = vmatprep.subr.bf16.mxu1 %v15217_v53  ;;  %v15256_v53 = vld [vmem:[%s15528_s22 + $0x1a80] sm:$0xff]   ;;  %v15265_v63 = vld [vmem:[%s15528_s22 + $0x1a58] sm:$0xff]  }
 0x335   : > { %14055 = vmatpush3.bf16.msra.mxu0 %v15218_v54  ;;  %v2907_v54 = vcombine.high %v2891_v49, %v2891_v49 }
 0x336   : > { %14084 = vmatprep.subr.bf16.mxu0 %v15220_v58  ;;  %v15259_v58 = vld [vmem:[%s15528_s22 + $0x1a08] sm:$0xff]  }
 0x337   : > { %14077 = vmatpush3.bf16.msra.mxu1 %v15219_v60  ;;  %v15261_v60 = vld [vmem:[%s15528_s22 + $0x1a50] sm:$0xff]  }
 0x338   : > { %14106 = vmatprep.subr.bf16.mxu1 %v15221_v62  ;;  %11282 = vmatmul.mubr.bf16.vlgmr.msra.gmra.mrb[96].mxu0 %v2884_v61  ;;  %v15263_v61 = vld [vmem:[%s15528_s22 + $0x1a10] sm:$0xff]  }
 0x339   : > { %14085 = vmatpush3.bf16.msra.mxu0 %v15222_v0  ;;  %11361 = vmatprep.mubr.bf16.mxu0 %v2905_v8  ;;  %v15264_v62 = vld [vmem:[%s15528_s22 + $0x1a90] sm:$0xff]   ;;  %v15266_v0 = vld [vmem:[%s15528_s22 + $0x1ad8] sm:$0xff]   ;;  %v15274_v8 = vld [vmem:[%s15528_s22 + $0x1ae8] sm:$0xff]  }
 0x33a   : > { %11322 = vmatmul.mubr.bf16.vlgmr.msra.gmra.mrb[96].mxu1 %v2906_v4  ;;  %14086 = vmatprep.subr.bf16.mxu0 %v15224_v5  ;;  %v15270_v4 = vld [vmem:[%s15528_s22 + $0x1ae0] sm:$0xff]  }
 0x33b   : > { %14107 = vmatpush3.bf16.msra.mxu1 %v15223_v2  ;;  %11401 = vmatprep.mubr.bf16.mxu1 %v2909_v11  ;;  %v15268_v2 = vld [vmem:[%s15528_s22 + $0x1a98] sm:$0xff]   ;;  %v15271_v5 = vld [vmem:[%s15528_s22 + $0x1a20] sm:$0xff]  }
 0x33c   : > { %14108 = vmatprep.subr.bf16.mxu1 %v15225_v7  ;;  %v15273_v7 = vld [vmem:[%s15528_s22 + $0x1a68] sm:$0xff]  }
 0x33d   : > { %14087 = vmatpush3.bf16.msra.mxu0 %v15226_v9 }
 0x33e   : > { %14088 = vmatprep.subr.bf16.mxu0 %v15228_v12  ;;  %v15276_v12 = vld [vmem:[%s15528_s22 + $0x1aa8] sm:$0xff]  }
 0x33f   : > { %14109 = vmatpush3.bf16.msra.mxu1 %v15227_v10  ;;  %v15275_v10 = vld [vmem:[%s15528_s22 + $0x1a28] sm:$0xff]  }
 0x340   : > { %14110 = vmatprep.subr.bf16.mxu1 %v15229_v13 }
 0x341   : > { %14089 = vmatpush3.bf16.msra.mxu0 %v15230_v14 }
 0x342   : > { %14090 = vmatprep.subr.bf16.mxu0 %v15232_v16  ;;  %v15277_v16 = vld [vmem:[%s15528_s22 + $0x1a70] sm:$0xff]  }
 0x343   : > { %14111 = vmatpush3.bf16.msra.mxu1 %v15231_v15 }
 0x344   : > { %14112 = vmatprep.subr.bf16.mxu1 %v15233_v17  ;;  %v15278_v17 = vld [vmem:[%s15528_s22 + $0x1af0] sm:$0xff]  }
 0x345   : > { %14091 = vmatpush3.bf16.msra.mxu0 %v15234_v18 }
 0x346   : > { %14092 = vmatprep.subr.bf16.mxu0 %v15236_v20 }
 0x347   : > { %14113 = vmatpush3.bf16.msra.mxu1 %v15235_v19 }
 0x348   : > { %14114 = vmatprep.subr.bf16.mxu1 %v15237_v21 }
 0x349   : > { %14093 = vmatpush3.bf16.msra.mxu0 %v15238_v22 }
 0x34a   : > { %14094 = vmatprep.subr.bf16.mxu0 %v15240_v24 }
 0x34b   : > { %v13792_v26 = vpop.f32.mrb[72].mxu0  ;;  %14115 = vmatpush3.bf16.msra.mxu1 %v15239_v23  ;;  %v15279_v23 = vld [vmem:[%s15528_s22 + $0x1a30] sm:$0xff]  }
 0x34c   : > { %v13793_v28 = vpop.f32.mrb[73].mxu0  ;;  %14116 = vmatprep.subr.bf16.mxu1 %v15241_v25  ;;  %v15280_v25 = vld [vmem:[%s15528_s22 + $0x1ab0] sm:$0xff]  }
 0x34d   : > { %v13814_v30 = vpop.f32.mrb[72].mxu1  ;;  %v13794_v31 = vadd.f32 %v13793_v28, %v13792_v26  ;;  %v13795_v32 = vpop.f32.mrb[74].mxu0  ;;  %14095 = vmatpush3.bf16.msra.mxu0 %v15242_v27  ;;  %v15281_v27 = vld [vmem:[%s15528_s22 + $0x1a78] sm:$0xff]  }
 0x34e   : > { %v13815_v35 = vpop.f32.mrb[73].mxu1  ;;  %v13796_v36 = vpop.f32.mrb[75].mxu0  ;;  %14096 = vmatprep.subr.bf16.mxu0 %v15244_v33  ;;  %v15282_v28 = vld [vmem:[%s15528_s22 + $0x1af8] sm:$0xff]   ;;  %v15285_v32 = vld [vmem:[%s15528_s22 + $0x1b40] sm:$0xff]  }
 0x34f   : > { %v10804_v37 = vadd.f32 %v13794_v31, %v16527_v51  ;;  %v13816_v38 = vadd.f32 %v13815_v35, %v13814_v30  ;;  %v13817_v39 = vpop.f32.mrb[74].mxu1  ;;  %14117 = vmatpush3.bf16.msra.mxu1 %v15243_v29  ;;  %v15254_v51 = vld [vmem:[%s15528_s22 + $0x1ac0] sm:$0xff]   ;;  %v15283_v29 = vld [vmem:[%s15528_s22 + $0x1a38] sm:$0xff]   ;;  %v206_v30 = vld [vmem:[%s15523_s18 + $0x68] sm:$0xff] }
 0x350   : > { %v13818_v41 = vpop.f32.mrb[75].mxu1  ;;  %14118 = vmatprep.subr.bf16.mxu1 %v15245_v34  ;;  %v2917_v31 = vrot.slane %v206_v30, %v15569_v42  ;;  %v2910_v33 = vcombine.high %v206_v30, %v206_v30  ;;  %v15284_v34 = vld [vmem:[%s15528_s22 + $0x1ab8] sm:$0xff]   ;;  %v15287_v39 = vld [vmem:[%s15528_s22 + $0x1b00] sm:$0xff]   ;;  %v15322_v30 = vld [vmem:[%s15528_s22 + $0x1c48] sm:$0xff]  }
 0x351   : > { %v16572_v44 = vadd.f32 %v13816_v38, %v10804_v37  ;;  %14097 = vmatpush3.bf16.msra.mxu0 %v15246_v40  ;;  %v15286_v37 = vld [vmem:[%s15528_s22 + $0x1bc0] sm:$0xff]  }
 0x352   : > { %14098 = vmatprep.subr.bf16.mxu0 %v15248_v45  ;;  %v2925_v35 = vcombine.high %v2917_v31, %v2917_v31  ;;  %v2933_v36 = vrot.slane %v2917_v31, %v15569_v42  ;;  %v16621_v38 = vrot.slane %v2910_v33, %v15569_v42  ;;  %v15288_v41 = vld [vmem:[%s15528_s22 + $0x1b80] sm:$0xff]   ;;  %v15289_v45 = vld [vmem:[%s15528_s22 + $0x1b48] sm:$0xff]  }
 0x353   : > { %14119 = vmatpush3.bf16.msra.mxu1 %v15247_v43  ;;  %v15323_v31 = vld [vmem:[%s15528_s22 + $0x1cc8] sm:$0xff]  }
 0x354   : > { %14120 = vmatprep.subr.bf16.mxu1 %v15249_v46  ;;  %v2947_v40 = vrot.slane %v2925_v35, %v15569_v42  ;;  %v2926_v43 = vcombine.high %v16621_v38, %v16621_v38  ;;  %v15325_v33 = vld [vmem:[%s15528_s22 + $0x1c88] sm:$0xff]   ;;  %v15327_v35 = vld [vmem:[%s15528_s22 + $0x1cd0] sm:$0xff]  }
 0x355   : > { %14099 = vmatpush3.bf16.msra.mxu0 %v15250_v47  ;;  %v15290_v47 = vld [vmem:[%s15528_s22 + $0x1bc8] sm:$0xff]  }
 0x356   : > { %14128 = vmatprep.subr.bf16.mxu0 %v15253_v50  ;;  %v2957_v46 = vcombine.high %v2947_v40, %v2947_v40  ;;  %v15292_v50 = vld [vmem:[%s15528_s22 + $0x1b88] sm:$0xff]  }
 0x357   : > { %14121 = vmatpush3.bf16.msra.mxu1 %v15251_v48  ;;  %v2954_v48 = vrot.slane %v2926_v43, %v15569_v42  ;;  %v15334_v43 = vld [vmem:[%s15528_s22 + $0x1c60] sm:$0xff]  }
 0x358   : > { %11362 = vmatmul.mubr.bf16.vlgmr.msra.gmra.mrb[100].mxu0 %v2891_v49  ;;  %14150 = vmatprep.subr.bf16.mxu1 %v15254_v51  ;;  %v15291_v49 = vld [vmem:[%s15528_s22 + $0x1b08] sm:$0xff]  }
 0x359   : > { %14129 = vmatpush3.bf16.msra.mxu0 %v15255_v52  ;;  %11441 = vmatprep.mubr.bf16.mxu0 %v2947_v40  ;;  %v2958_v51 = vcombine.high %v2954_v48, %v2954_v48  ;;  %v15293_v52 = vld [vmem:[%s15528_s22 + $0x1b50] sm:$0xff]   ;;  %v15332_v40 = vld [vmem:[%s15528_s22 + $0x1c18] sm:$0xff]  }
 0x35a   : > { %11402 = vmatmul.mubr.bf16.vlgmr.msra.gmra.mrb[100].mxu1 %v2907_v54  ;;  %14130 = vmatprep.subr.bf16.mxu0 %v15257_v56  ;;  %v15295_v54 = vld [vmem:[%s15528_s22 + $0x1b10] sm:$0xff]  }
 0x35b   : > { %14151 = vmatpush3.bf16.msra.mxu1 %v15256_v53  ;;  %11481 = vmatprep.mubr.bf16.mxu1 %v2957_v46  ;;  %v15294_v53 = vld [vmem:[%s15528_s22 + $0x1bd0] sm:$0xff]   ;;  %v15337_v46 = vld [vmem:[%s15528_s22 + $0x1ca0] sm:$0xff]  }
 0x35c   : > { %14152 = vmatprep.subr.bf16.mxu1 %v15258_v57  ;;  %v15296_v56 = vld [vmem:[%s15528_s22 + $0x1b90] sm:$0xff]   ;;  %v15297_v57 = vld [vmem:[%s15528_s22 + $0x1b58] sm:$0xff]  }
 0x35d   : > { %14131 = vmatpush3.bf16.msra.mxu0 %v15259_v58  ;;  %v15298_v58 = vld [vmem:[%s15528_s22 + $0x1bd8] sm:$0xff]  }
 0x35e   : > { %14132 = vmatprep.subr.bf16.mxu0 %v15261_v60  ;;  %v15300_v60 = vld [vmem:[%s15528_s22 + $0x1b98] sm:$0xff]  }
 0x35f   : > { %14153 = vmatpush3.bf16.msra.mxu1 %v15260_v59  ;;  %v15299_v59 = vld [vmem:[%s15528_s22 + $0x1b18] sm:$0xff]  }
 0x360   : > { %14154 = vmatprep.subr.bf16.mxu1 %v15262_v55  ;;  %v15301_v55 = vld [vmem:[%s15528_s22 + $0x1b60] sm:$0xff]  }
 0x361   : > { %14133 = vmatpush3.bf16.msra.mxu0 %v15263_v61  ;;  %v15302_v61 = vld [vmem:[%s15528_s22 + $0x1be0] sm:$0xff]  }
 0x362   : > { %14134 = vmatprep.subr.bf16.mxu0 %v15265_v63  ;;  %v15304_v63 = vld [vmem:[%s15528_s22 + $0x1ba0] sm:$0xff]  }
 0x363   : > { %14155 = vmatpush3.bf16.msra.mxu1 %v15264_v62  ;;  %v15303_v62 = vld [vmem:[%s15528_s22 + $0x1b20] sm:$0xff]  }
 0x364   : > { %14156 = vmatprep.subr.bf16.mxu1 %v15266_v0  ;;  %v15305_v0 = vld [vmem:[%s15528_s22 + $0x1b68] sm:$0xff]  }
 0x365   : > { %14135 = vmatpush3.bf16.msra.mxu0 %v15267_v1  ;;  %v15306_v1 = vld [vmem:[%s15528_s22 + $0x1be8] sm:$0xff]  }
 0x366   : > { %14136 = vmatprep.subr.bf16.mxu0 %v15269_v3  ;;  %v15307_v3 = vld [vmem:[%s15528_s22 + $0x1b28] sm:$0xff]  }
 0x367   : > { %14157 = vmatpush3.bf16.msra.mxu1 %v15268_v2 }
 0x368   : > { %14158 = vmatprep.subr.bf16.mxu1 %v15270_v4 }
 0x369   : > { %14137 = vmatpush3.bf16.msra.mxu0 %v15271_v5  ;;  %v15308_v5 = vld [vmem:[%s15528_s22 + $0x1ba8] sm:$0xff]  }
 0x36a   : > { %14138 = vmatprep.subr.bf16.mxu0 %v15273_v7 }
 0x36b   : > { %v13836_v9 = vpop.f32.mrb[76].mxu0  ;;  %14159 = vmatpush3.bf16.msra.mxu1 %v15272_v6 }
 0x36c   : > { %v13837_v11 = vpop.f32.mrb[77].mxu0  ;;  %14160 = vmatprep.subr.bf16.mxu1 %v15274_v8 }
 0x36d   : > { %v13858_v13 = vpop.f32.mrb[76].mxu1  ;;  %v13838_v14 = vadd.f32 %v13837_v11, %v13836_v9  ;;  %v13839_v15 = vpop.f32.mrb[78].mxu0  ;;  %14139 = vmatpush3.bf16.msra.mxu0 %v15275_v10  ;;  %v15309_v9 = vld [vmem:[%s15528_s22 + $0x1b70] sm:$0xff]  }
 0x36e   : > { %v13859_v18 = vpop.f32.mrb[77].mxu1  ;;  %v13840_v19 = vpop.f32.mrb[79].mxu0  ;;  %14140 = vmatprep.subr.bf16.mxu0 %v15277_v16  ;;  %v15310_v10 = vld [vmem:[%s15528_s22 + $0x1bf0] sm:$0xff]  }
 0x36f   : > { %v10884_v20 = vadd.f32 %v13838_v14, %v16572_v44  ;;  %v13860_v21 = vadd.f32 %v13859_v18, %v13858_v13  ;;  %v13861_v22 = vpop.f32.mrb[78].mxu1  ;;  %14161 = vmatpush3.bf16.msra.mxu1 %v15276_v12  ;;  %v2955_v44 = vcombine.high %v2933_v36, %v2933_v36  ;;  %v15311_v16 = vld [vmem:[%s15528_s22 + $0x1b30] sm:$0xff]  }
 0x370   : > { %v13862_v24 = vpop.f32.mrb[79].mxu1  ;;  %14162 = vmatprep.subr.bf16.mxu1 %v15278_v17  ;;  %v15312_v18 = vld [vmem:[%s15528_s22 + $0x1bb0] sm:$0xff]   ;;  %v15315_v22 = vld [vmem:[%s15528_s22 + $0x1b38] sm:$0xff]  }
 0x371   : > { %v16609_v26 = vadd.f32 %v13860_v21, %v10884_v20  ;;  %14141 = vmatpush3.bf16.msra.mxu0 %v15279_v23  ;;  %v15313_v20 = vld [vmem:[%s15528_s22 + $0x1b78] sm:$0xff]   ;;  %v2940_v24 = vrot.slane %v16621_v38, %v15569_v42 }
 0x372   : > { %14142 = vmatprep.subr.bf16.mxu0 %v15281_v27  ;;  %v15314_v21 = vld [vmem:[%s15528_s22 + $0x1bf8] sm:$0xff]   ;;  %v15320_v27 = vld [vmem:[%s15528_s22 + $0x1c00] sm:$0xff]  }
 0x373   : > { %14163 = vmatpush3.bf16.msra.mxu1 %v15280_v25  ;;  %v15316_v23 = vld [vmem:[%s15528_s22 + $0x1bb8] sm:$0xff]   ;;  %v15318_v25 = vld [vmem:[%s15528_s22 + $0x1c40] sm:$0xff]  }
 0x374   : > { %14164 = vmatprep.subr.bf16.mxu1 %v15282_v28  ;;  %v15321_v28 = vld [vmem:[%s15528_s22 + $0x1c80] sm:$0xff]   ;;  %v15330_v38 = vld [vmem:[%s15528_s22 + $0x1c58] sm:$0xff]  }
 0x375   : > { %14143 = vmatpush3.bf16.msra.mxu0 %v15283_v29  ;;  %v2956_v29 = vcombine.high %v2940_v24, %v2940_v24 }
 0x376   : > { %14172 = vmatprep.subr.bf16.mxu0 %v15285_v32  ;;  %v15324_v32 = vld [vmem:[%s15528_s22 + $0x1c08] sm:$0xff]  }
 0x377   : > { %14165 = vmatpush3.bf16.msra.mxu1 %v15284_v34  ;;  %v15326_v34 = vld [vmem:[%s15528_s22 + $0x1c50] sm:$0xff]  }
 0x378   : > { %14194 = vmatprep.subr.bf16.mxu1 %v15286_v37  ;;  %11442 = vmatmul.mubr.bf16.vlgmr.msra.gmra.mrb[104].mxu0 %v2933_v36  ;;  %v15328_v36 = vld [vmem:[%s15528_s22 + $0x1c10] sm:$0xff]  }
 0x379   : > { %14173 = vmatpush3.bf16.msra.mxu0 %v15287_v39  ;;  %11521 = vmatprep.mubr.bf16.mxu0 %v2954_v48  ;;  %v15329_v37 = vld [vmem:[%s15528_s22 + $0x1c90] sm:$0xff]   ;;  %v15331_v39 = vld [vmem:[%s15528_s22 + $0x1cd8] sm:$0xff]   ;;  %v15339_v48 = vld [vmem:[%s15528_s22 + $0x1ce8] sm:$0xff]  }
 0x37a   : > { %11482 = vmatmul.mubr.bf16.vlgmr.msra.gmra.mrb[104].mxu1 %v2955_v44  ;;  %14174 = vmatprep.subr.bf16.mxu0 %v15289_v45  ;;  %v15335_v44 = vld [vmem:[%s15528_s22 + $0x1ce0] sm:$0xff]  }
 0x37b   : > { %14195 = vmatpush3.bf16.msra.mxu1 %v15288_v41  ;;  %11561 = vmatprep.mubr.bf16.mxu1 %v2958_v51  ;;  %v15333_v41 = vld [vmem:[%s15528_s22 + $0x1c98] sm:$0xff]   ;;  %v15336_v45 = vld [vmem:[%s15528_s22 + $0x1c20] sm:$0xff]  }
 0x37c   : > { %14196 = vmatprep.subr.bf16.mxu1 %v15290_v47  ;;  %v15338_v47 = vld [vmem:[%s15528_s22 + $0x1c68] sm:$0xff]  }
 0x37d   : > { %14175 = vmatpush3.bf16.msra.mxu0 %v15291_v49 }
 0x37e   : > { %14176 = vmatprep.subr.bf16.mxu0 %v15293_v52  ;;  %v15341_v52 = vld [vmem:[%s15528_s22 + $0x1ca8] sm:$0xff]  }
 0x37f   : > { %14197 = vmatpush3.bf16.msra.mxu1 %v15292_v50  ;;  %v15340_v50 = vld [vmem:[%s15528_s22 + $0x1c28] sm:$0xff]  }
 0x380   : > { %14198 = vmatprep.subr.bf16.mxu1 %v15294_v53 }
 0x381   : > { %14177 = vmatpush3.bf16.msra.mxu0 %v15295_v54 }
 0x382   : > { %14178 = vmatprep.subr.bf16.mxu0 %v15297_v57  ;;  %v15342_v57 = vld [vmem:[%s15528_s22 + $0x1c70] sm:$0xff]  }
 0x383   : > { %14199 = vmatpush3.bf16.msra.mxu1 %v15296_v56 }
 0x384   : > { %14200 = vmatprep.subr.bf16.mxu1 %v15298_v58  ;;  %v15343_v58 = vld [vmem:[%s15528_s22 + $0x1cf0] sm:$0xff]  }
 0x385   : > { %14179 = vmatpush3.bf16.msra.mxu0 %v15299_v59 }
 0x386   : > { %14180 = vmatprep.subr.bf16.mxu0 %v15301_v55 }
 0x387   : > { %14201 = vmatpush3.bf16.msra.mxu1 %v15300_v60 }
 0x388   : > { %14202 = vmatprep.subr.bf16.mxu1 %v15302_v61 }
 0x389   : > { %14181 = vmatpush3.bf16.msra.mxu0 %v15303_v62 }
 0x38a   : > { %14182 = vmatprep.subr.bf16.mxu0 %v15305_v0 }
 0x38b   : > { %v13880_v2 = vpop.f32.mrb[80].mxu0  ;;  %14203 = vmatpush3.bf16.msra.mxu1 %v15304_v63  ;;  %v15344_v63 = vld [vmem:[%s15528_s22 + $0x1c30] sm:$0xff]  }
 0x38c   : > { %v13881_v4 = vpop.f32.mrb[81].mxu0  ;;  %14204 = vmatprep.subr.bf16.mxu1 %v15306_v1  ;;  %v15345_v1 = vld [vmem:[%s15528_s22 + $0x1cb0] sm:$0xff]  }
 0x38d   : > { %v13902_v6 = vpop.f32.mrb[80].mxu1  ;;  %v13882_v7 = vadd.f32 %v13881_v4, %v13880_v2  ;;  %v13883_v8 = vpop.f32.mrb[82].mxu0  ;;  %14183 = vmatpush3.bf16.msra.mxu0 %v15307_v3  ;;  %v15346_v3 = vld [vmem:[%s15528_s22 + $0x1c78] sm:$0xff]  }
 0x38e   : > { %v13903_v11 = vpop.f32.mrb[81].mxu1  ;;  %v13884_v12 = vpop.f32.mrb[83].mxu0  ;;  %14184 = vmatprep.subr.bf16.mxu0 %v15309_v9  ;;  %v15347_v4 = vld [vmem:[%s15528_s22 + $0x1cf8] sm:$0xff]   ;;  %v15350_v8 = vld [vmem:[%s15528_s22 + $0x1d40] sm:$0xff]  }
 0x38f   : > { %v10964_v13 = vadd.f32 %v13882_v7, %v16609_v26  ;;  %v13904_v14 = vadd.f32 %v13903_v11, %v13902_v6  ;;  %v13905_v15 = vpop.f32.mrb[82].mxu1  ;;  %14205 = vmatpush3.bf16.msra.mxu1 %v15308_v5  ;;  %v15319_v26 = vld [vmem:[%s15528_s22 + $0x1cc0] sm:$0xff]   ;;  %v15348_v5 = vld [vmem:[%s15528_s22 + $0x1c38] sm:$0xff]   ;;  %v207_v6 = vld [vmem:[%s15523_s18 + $0x70] sm:$0xff] }
 0x390   : > { %v13906_v17 = vpop.f32.mrb[83].mxu1  ;;  %14206 = vmatprep.subr.bf16.mxu1 %v15310_v10  ;;  %v2966_v7 = vrot.slane %v207_v6, %v15569_v42  ;;  %v2959_v9 = vcombine.high %v207_v6, %v207_v6  ;;  %v15349_v10 = vld [vmem:[%s15528_s22 + $0x1cb8] sm:$0xff]   ;;  %v15352_v15 = vld [vmem:[%s15528_s22 + $0x1d00] sm:$0xff]   ;;  %v15387_v6 = vld [vmem:[%s15528_s22 + $0x1e48] sm:$0xff]  }
 0x391   : > { %v16654_v19 = vadd.f32 %v13904_v14, %v10964_v13  ;;  %14185 = vmatpush3.bf16.msra.mxu0 %v15311_v16  ;;  %v15351_v13 = vld [vmem:[%s15528_s22 + $0x1dc0] sm:$0xff]  }
 0x392   : > { %14186 = vmatprep.subr.bf16.mxu0 %v15313_v20  ;;  %v2974_v11 = vcombine.high %v2966_v7, %v2966_v7  ;;  %v2982_v12 = vrot.slane %v2966_v7, %v15569_v42  ;;  %v16703_v14 = vrot.slane %v2959_v9, %v15569_v42  ;;  %v15353_v17 = vld [vmem:[%s15528_s22 + $0x1d80] sm:$0xff]   ;;  %v15354_v20 = vld [vmem:[%s15528_s22 + $0x1d48] sm:$0xff]  }
 0x393   : > { %14207 = vmatpush3.bf16.msra.mxu1 %v15312_v18  ;;  %v15388_v7 = vld [vmem:[%s15528_s22 + $0x1ec8] sm:$0xff]  }
 0x394   : > { %14208 = vmatprep.subr.bf16.mxu1 %v15314_v21  ;;  %v2996_v16 = vrot.slane %v2974_v11, %v15569_v42  ;;  %v2975_v18 = vcombine.high %v16703_v14, %v16703_v14  ;;  %v15390_v9 = vld [vmem:[%s15528_s22 + $0x1e88] sm:$0xff]   ;;  %v15392_v11 = vld [vmem:[%s15528_s22 + $0x1ed0] sm:$0xff]  }
 0x395   : > { %14187 = vmatpush3.bf16.msra.mxu0 %v15315_v22  ;;  %v15355_v22 = vld [vmem:[%s15528_s22 + $0x1dc8] sm:$0xff]  }
 0x396   : > { %14216 = vmatprep.subr.bf16.mxu0 %v15318_v25  ;;  %v3006_v21 = vcombine.high %v2996_v16, %v2996_v16  ;;  %v15357_v25 = vld [vmem:[%s15528_s22 + $0x1d88] sm:$0xff]  }
 0x397   : > { %14209 = vmatpush3.bf16.msra.mxu1 %v15316_v23  ;;  %v3003_v23 = vrot.slane %v2975_v18, %v15569_v42  ;;  %v15399_v18 = vld [vmem:[%s15528_s22 + $0x1e60] sm:$0xff]  }
 0x398   : > { %11522 = vmatmul.mubr.bf16.vlgmr.msra.gmra.mrb[108].mxu0 %v2940_v24  ;;  %14238 = vmatprep.subr.bf16.mxu1 %v15319_v26  ;;  %v15356_v24 = vld [vmem:[%s15528_s22 + $0x1d08] sm:$0xff]  }
 0x399   : > { %14217 = vmatpush3.bf16.msra.mxu0 %v15320_v27  ;;  %11601 = vmatprep.mubr.bf16.mxu0 %v2996_v16  ;;  %v3007_v26 = vcombine.high %v3003_v23, %v3003_v23  ;;  %v15358_v27 = vld [vmem:[%s15528_s22 + $0x1d50] sm:$0xff]   ;;  %v15397_v16 = vld [vmem:[%s15528_s22 + $0x1e18] sm:$0xff]  }
 0x39a   : > { %11562 = vmatmul.mubr.bf16.vlgmr.msra.gmra.mrb[108].mxu1 %v2956_v29  ;;  %14218 = vmatprep.subr.bf16.mxu0 %v15322_v30  ;;  %v15360_v29 = vld [vmem:[%s15528_s22 + $0x1d10] sm:$0xff]  }
 0x39b   : > { %14239 = vmatpush3.bf16.msra.mxu1 %v15321_v28  ;;  %11641 = vmatprep.mubr.bf16.mxu1 %v3006_v21  ;;  %v15359_v28 = vld [vmem:[%s15528_s22 + $0x1dd0] sm:$0xff]   ;;  %v15402_v21 = vld [vmem:[%s15528_s22 + $0x1ea0] sm:$0xff]  }
 0x39c   : > { %14240 = vmatprep.subr.bf16.mxu1 %v15323_v31  ;;  %v15361_v30 = vld [vmem:[%s15528_s22 + $0x1d90] sm:$0xff]   ;;  %v15362_v31 = vld [vmem:[%s15528_s22 + $0x1d58] sm:$0xff]  }
 0x39d   : > { %14219 = vmatpush3.bf16.msra.mxu0 %v15324_v32  ;;  %v15363_v32 = vld [vmem:[%s15528_s22 + $0x1dd8] sm:$0xff]  }
 0x39e   : > { %14220 = vmatprep.subr.bf16.mxu0 %v15326_v34  ;;  %v15365_v34 = vld [vmem:[%s15528_s22 + $0x1d98] sm:$0xff]  }
 0x39f   : > { %14241 = vmatpush3.bf16.msra.mxu1 %v15325_v33  ;;  %v15364_v33 = vld [vmem:[%s15528_s22 + $0x1d18] sm:$0xff]  }
 0x3a0   : > { %14242 = vmatprep.subr.bf16.mxu1 %v15327_v35  ;;  %v15366_v35 = vld [vmem:[%s15528_s22 + $0x1d60] sm:$0xff]  }
 0x3a1   : > { %14221 = vmatpush3.bf16.msra.mxu0 %v15328_v36  ;;  %v15367_v36 = vld [vmem:[%s15528_s22 + $0x1de0] sm:$0xff]  }
 0x3a2   : > { %14222 = vmatprep.subr.bf16.mxu0 %v15330_v38  ;;  %v15369_v38 = vld [vmem:[%s15528_s22 + $0x1da0] sm:$0xff]  }
 0x3a3   : > { %14243 = vmatpush3.bf16.msra.mxu1 %v15329_v37  ;;  %v15368_v37 = vld [vmem:[%s15528_s22 + $0x1d20] sm:$0xff]  }
 0x3a4   : > { %14244 = vmatprep.subr.bf16.mxu1 %v15331_v39  ;;  %v15370_v39 = vld [vmem:[%s15528_s22 + $0x1d68] sm:$0xff]  }
 0x3a5   : > { %14223 = vmatpush3.bf16.msra.mxu0 %v15332_v40  ;;  %v15371_v40 = vld [vmem:[%s15528_s22 + $0x1de8] sm:$0xff]  }
 0x3a6   : > { %14224 = vmatprep.subr.bf16.mxu0 %v15334_v43  ;;  %v15372_v43 = vld [vmem:[%s15528_s22 + $0x1d28] sm:$0xff]  }
 0x3a7   : > { %14245 = vmatpush3.bf16.msra.mxu1 %v15333_v41 }
 0x3a8   : > { %14246 = vmatprep.subr.bf16.mxu1 %v15335_v44 }
 0x3a9   : > { %14225 = vmatpush3.bf16.msra.mxu0 %v15336_v45  ;;  %v15373_v45 = vld [vmem:[%s15528_s22 + $0x1da8] sm:$0xff]  }
 0x3aa   : > { %14226 = vmatprep.subr.bf16.mxu0 %v15338_v47 }
 0x3ab   : > { %v13924_v49 = vpop.f32.mrb[84].mxu0  ;;  %14247 = vmatpush3.bf16.msra.mxu1 %v15337_v46 }
 0x3ac   : > { %v13925_v51 = vpop.f32.mrb[85].mxu0  ;;  %14248 = vmatprep.subr.bf16.mxu1 %v15339_v48 }
 0x3ad   : > { %v13946_v53 = vpop.f32.mrb[84].mxu1  ;;  %v13926_v54 = vadd.f32 %v13925_v51, %v13924_v49  ;;  %v13927_v56 = vpop.f32.mrb[86].mxu0  ;;  %14227 = vmatpush3.bf16.msra.mxu0 %v15340_v50  ;;  %v15374_v49 = vld [vmem:[%s15528_s22 + $0x1d70] sm:$0xff]  }
 0x3ae   : > { %v13947_v59 = vpop.f32.mrb[85].mxu1  ;;  %v13928_v60 = vpop.f32.mrb[87].mxu0  ;;  %14228 = vmatprep.subr.bf16.mxu0 %v15342_v57  ;;  %v15375_v50 = vld [vmem:[%s15528_s22 + $0x1df0] sm:$0xff]  }
 0x3af   : > { %v11044_v55 = vadd.f32 %v13926_v54, %v16654_v19  ;;  %v13948_v61 = vadd.f32 %v13947_v59, %v13946_v53  ;;  %v13949_v62 = vpop.f32.mrb[86].mxu1  ;;  %14249 = vmatpush3.bf16.msra.mxu1 %v15341_v52  ;;  %v3004_v19 = vcombine.high %v2982_v12, %v2982_v12  ;;  %v15376_v57 = vld [vmem:[%s15528_s22 + $0x1d30] sm:$0xff]  }
 0x3b0   : > { %v13950_v0 = vpop.f32.mrb[87].mxu1  ;;  %14250 = vmatprep.subr.bf16.mxu1 %v15343_v58  ;;  %v15377_v59 = vld [vmem:[%s15528_s22 + $0x1db0] sm:$0xff]   ;;  %v15380_v62 = vld [vmem:[%s15528_s22 + $0x1d38] sm:$0xff]  }
 0x3b1   : > { %v16691_v2 = vadd.f32 %v13948_v61, %v11044_v55  ;;  %14229 = vmatpush3.bf16.msra.mxu0 %v15344_v63  ;;  %v15378_v55 = vld [vmem:[%s15528_s22 + $0x1d78] sm:$0xff]   ;;  %v2989_v0 = vrot.slane %v16703_v14, %v15569_v42 }
 0x3b2   : > { %14230 = vmatprep.subr.bf16.mxu0 %v15346_v3  ;;  %v15379_v61 = vld [vmem:[%s15528_s22 + $0x1df8] sm:$0xff]   ;;  %v15385_v3 = vld [vmem:[%s15528_s22 + $0x1e00] sm:$0xff]  }
 0x3b3   : > { %14251 = vmatpush3.bf16.msra.mxu1 %v15345_v1  ;;  %v15381_v63 = vld [vmem:[%s15528_s22 + $0x1db8] sm:$0xff]   ;;  %v15383_v1 = vld [vmem:[%s15528_s22 + $0x1e40] sm:$0xff]  }
 0x3b4   : > { %14252 = vmatprep.subr.bf16.mxu1 %v15347_v4  ;;  %v15386_v4 = vld [vmem:[%s15528_s22 + $0x1e80] sm:$0xff]   ;;  %v15395_v14 = vld [vmem:[%s15528_s22 + $0x1e58] sm:$0xff]  }
 0x3b5   : > { %14231 = vmatpush3.bf16.msra.mxu0 %v15348_v5  ;;  %v3005_v5 = vcombine.high %v2989_v0, %v2989_v0 }
 0x3b6   : > { %14260 = vmatprep.subr.bf16.mxu0 %v15350_v8  ;;  %v15389_v8 = vld [vmem:[%s15528_s22 + $0x1e08] sm:$0xff]  }
 0x3b7   : > { %14253 = vmatpush3.bf16.msra.mxu1 %v15349_v10  ;;  %v15391_v10 = vld [vmem:[%s15528_s22 + $0x1e50] sm:$0xff]  }
 0x3b8   : > { %14282 = vmatprep.subr.bf16.mxu1 %v15351_v13  ;;  %11602 = vmatmul.mubr.bf16.vlgmr.msra.gmra.mrb[112].mxu0 %v2982_v12  ;;  %v15393_v12 = vld [vmem:[%s15528_s22 + $0x1e10] sm:$0xff]  }
 0x3b9   : > { %14261 = vmatpush3.bf16.msra.mxu0 %v15352_v15  ;;  %11681 = vmatprep.mubr.bf16.mxu0 %v3003_v23  ;;  %v15394_v13 = vld [vmem:[%s15528_s22 + $0x1e90] sm:$0xff]   ;;  %v15396_v15 = vld [vmem:[%s15528_s22 + $0x1ed8] sm:$0xff]   ;;  %v15404_v23 = vld [vmem:[%s15528_s22 + $0x1ee8] sm:$0xff]  }
 0x3ba   : > { %11642 = vmatmul.mubr.bf16.vlgmr.msra.gmra.mrb[112].mxu1 %v3004_v19  ;;  %14262 = vmatprep.subr.bf16.mxu0 %v15354_v20  ;;  %v15400_v19 = vld [vmem:[%s15528_s22 + $0x1ee0] sm:$0xff]  }
 0x3bb   : > { %14283 = vmatpush3.bf16.msra.mxu1 %v15353_v17  ;;  %11721 = vmatprep.mubr.bf16.mxu1 %v3007_v26  ;;  %v15398_v17 = vld [vmem:[%s15528_s22 + $0x1e98] sm:$0xff]   ;;  %v15401_v20 = vld [vmem:[%s15528_s22 + $0x1e20] sm:$0xff]  }
 0x3bc   : > { %14284 = vmatprep.subr.bf16.mxu1 %v15355_v22  ;;  %v15403_v22 = vld [vmem:[%s15528_s22 + $0x1e68] sm:$0xff]  }
 0x3bd   : > { %14263 = vmatpush3.bf16.msra.mxu0 %v15356_v24 }
 0x3be   : > { %14264 = vmatprep.subr.bf16.mxu0 %v15358_v27  ;;  %v15406_v27 = vld [vmem:[%s15528_s22 + $0x1ea8] sm:$0xff]  }
 0x3bf   : > { %14285 = vmatpush3.bf16.msra.mxu1 %v15357_v25  ;;  %v15405_v25 = vld [vmem:[%s15528_s22 + $0x1e28] sm:$0xff]  }
 0x3c0   : > { %14286 = vmatprep.subr.bf16.mxu1 %v15359_v28 }
 0x3c1   : > { %14265 = vmatpush3.bf16.msra.mxu0 %v15360_v29 }
 0x3c2   : > { %14266 = vmatprep.subr.bf16.mxu0 %v15362_v31  ;;  %v15407_v31 = vld [vmem:[%s15528_s22 + $0x1e70] sm:$0xff]  }
 0x3c3   : > { %14287 = vmatpush3.bf16.msra.mxu1 %v15361_v30 }
 0x3c4   : > { %14288 = vmatprep.subr.bf16.mxu1 %v15363_v32  ;;  %v15408_v32 = vld [vmem:[%s15528_s22 + $0x1ef0] sm:$0xff]  }
 0x3c5   : > { %14267 = vmatpush3.bf16.msra.mxu0 %v15364_v33 }
 0x3c6   : > { %14268 = vmatprep.subr.bf16.mxu0 %v15366_v35 }
 0x3c7   : > { %14289 = vmatpush3.bf16.msra.mxu1 %v15365_v34 }
 0x3c8   : > { %14290 = vmatprep.subr.bf16.mxu1 %v15367_v36 }
 0x3c9   : > { %14269 = vmatpush3.bf16.msra.mxu0 %v15368_v37 }
 0x3ca   : > { %14270 = vmatprep.subr.bf16.mxu0 %v15370_v39 }
 0x3cb   : > { %v13968_v41 = vpop.f32.mrb[88].mxu0  ;;  %14291 = vmatpush3.bf16.msra.mxu1 %v15369_v38  ;;  %v15409_v38 = vld [vmem:[%s15528_s22 + $0x1e30] sm:$0xff]  }
 0x3cc   : > { %v13969_v44 = vpop.f32.mrb[89].mxu0  ;;  %14292 = vmatprep.subr.bf16.mxu1 %v15371_v40  ;;  %v15410_v40 = vld [vmem:[%s15528_s22 + $0x1eb0] sm:$0xff]  }
 0x3cd   : > { %v13990_v46 = vpop.f32.mrb[88].mxu1  ;;  %v13970_v47 = vadd.f32 %v13969_v44, %v13968_v41  ;;  %v13971_v48 = vpop.f32.mrb[90].mxu0  ;;  %14271 = vmatpush3.bf16.msra.mxu0 %v15372_v43  ;;  %v15411_v43 = vld [vmem:[%s15528_s22 + $0x1e78] sm:$0xff]  }
 0x3ce   : > { %v13991_v51 = vpop.f32.mrb[89].mxu1  ;;  %v13972_v52 = vpop.f32.mrb[91].mxu0  ;;  %14272 = vmatprep.subr.bf16.mxu0 %v15374_v49  ;;  %v15412_v44 = vld [vmem:[%s15528_s22 + $0x1ef8] sm:$0xff]   ;;  %v15415_v48 = vld [vmem:[%s15528_s22 + $0x1f40] sm:$0xff]  }
 0x3cf   : > { %v11124_v53 = vadd.f32 %v13970_v47, %v16691_v2  ;;  %v13992_v54 = vadd.f32 %v13991_v51, %v13990_v46  ;;  %v13993_v56 = vpop.f32.mrb[90].mxu1  ;;  %14293 = vmatpush3.bf16.msra.mxu1 %v15373_v45  ;;  %v15384_v2 = vld [vmem:[%s15528_s22 + $0x1ec0] sm:$0xff]   ;;  %v15413_v45 = vld [vmem:[%s15528_s22 + $0x1e38] sm:$0xff]  }
 0x3d0   : > { %v13994_v58 = vpop.f32.mrb[91].mxu1  ;;  %14294 = vmatprep.subr.bf16.mxu1 %v15375_v50  ;;  %v208_v46 = vld [vmem:[%s15523_s18 + $0x78] sm:$0xff] }
 0x3d1   : > { %v16736_v60 = vadd.f32 %v13992_v54, %v11124_v53  ;;  %14273 = vmatpush3.bf16.msra.mxu0 %v15376_v57  ;;  %v3015_v47 = vrot.slane %v208_v46, %v15569_v42  ;;  %v3008_v49 = vcombine.high %v208_v46, %v208_v46  ;;  %v15414_v50 = vld [vmem:[%s15528_s22 + $0x1eb8] sm:$0xff]   ;;  %v15416_v53 = vld [vmem:[%s15528_s22 + $0x1fc0] sm:$0xff]  }
 0x3d2   : > { %14274 = vmatprep.subr.bf16.mxu0 %v15378_v55  ;;  %v15417_v57 = vld [vmem:[%s15528_s22 + $0x1f00] sm:$0xff]  }
 0x3d3   : > { %14295 = vmatpush3.bf16.msra.mxu1 %v15377_v59  ;;  %v3023_v51 = vcombine.high %v3015_v47, %v3015_v47  ;;  %v3031_v52 = vrot.slane %v3015_v47, %v15569_v42  ;;  %v16785_v54 = vrot.slane %v3008_v49, %v15569_v42 }
 0x3d4   : > { %14296 = vmatprep.subr.bf16.mxu1 %v15379_v61  ;;  %v15418_v61 = vld [vmem:[%s15528_s22 + $0x1f80] sm:$0xff]  }
 0x3d5   : > { %14275 = vmatpush3.bf16.msra.mxu0 %v15380_v62  ;;  %v3045_v56 = vrot.slane %v3023_v51, %v15569_v42  ;;  %v3024_v58 = vcombine.high %v16785_v54, %v16785_v54  ;;  %v3053_v59 = vcombine.high %v3031_v52, %v3031_v52 }
 0x3d6   : > { %14304 = vmatprep.subr.bf16.mxu0 %v15383_v1 }
 0x3d7   : > { %14297 = vmatpush3.bf16.msra.mxu1 %v15381_v63  ;;  %v3055_v55 = vcombine.high %v3045_v56, %v3045_v56  ;;  %v3052_v62 = vrot.slane %v3024_v58, %v15569_v42  ;;  %v15420_v63 = vld [vmem:[%s15528_s22 + $0x1fc8] sm:$0xff]  }
 0x3d8   : > { %11682 = vmatmul.mubr.bf16.vlgmr.msra.gmra.mrb[116].mxu0 %v2989_v0  ;;  %14326 = vmatprep.subr.bf16.mxu1 %v15384_v2  ;;  %v15421_v0 = vld [vmem:[%s15528_s22 + $0x1f08] sm:$0xff]   ;;  %v15423_v2 = vld [vmem:[%s15528_s22 + $0x1f50] sm:$0xff]  }
 0x3d9   : > { %14305 = vmatpush3.bf16.msra.mxu0 %v15385_v3  ;;  %11761 = vmatprep.mubr.bf16.mxu0 %v3045_v56  ;;  %v3056_v1 = vcombine.high %v3052_v62, %v3052_v62  ;;  %v15422_v3 = vld [vmem:[%s15528_s22 + $0x1f88] sm:$0xff]  }
 0x3da   : > { %11722 = vmatmul.mubr.bf16.vlgmr.msra.gmra.mrb[116].mxu1 %v3005_v5  ;;  %14306 = vmatprep.subr.bf16.mxu0 %v15387_v6  ;;  %v15425_v5 = vld [vmem:[%s15528_s22 + $0x1f10] sm:$0xff]   ;;  %v15427_v6 = vld [vmem:[%s15528_s22 + $0x1f58] sm:$0xff]  }
 0x3db   : > { %14327 = vmatpush3.bf16.msra.mxu1 %v15386_v4  ;;  %11801 = vmatprep.mubr.bf16.mxu1 %v3055_v55  ;;  %v15424_v4 = vld [vmem:[%s15528_s22 + $0x1fd0] sm:$0xff]  }
 0x3dc   : > { %14328 = vmatprep.subr.bf16.mxu1 %v15388_v7  ;;  %v15426_v7 = vld [vmem:[%s15528_s22 + $0x1f90] sm:$0xff]  }
 0x3dd   : > { %14307 = vmatpush3.bf16.msra.mxu0 %v15389_v8  ;;  %v15428_v8 = vld [vmem:[%s15528_s22 + $0x1fd8] sm:$0xff]  }
 0x3de   : > { %14308 = vmatprep.subr.bf16.mxu0 %v15391_v10  ;;  %v15431_v10 = vld [vmem:[%s15528_s22 + $0x1f60] sm:$0xff]  }
 0x3df   : > { %14329 = vmatpush3.bf16.msra.mxu1 %v15390_v9  ;;  %v15429_v9 = vld [vmem:[%s15528_s22 + $0x1f18] sm:$0xff]  }
 0x3e0   : > { %14330 = vmatprep.subr.bf16.mxu1 %v15392_v11  ;;  %v15430_v11 = vld [vmem:[%s15528_s22 + $0x1f98] sm:$0xff]  }
 0x3e1   : > { %14309 = vmatpush3.bf16.msra.mxu0 %v15393_v12  ;;  %v15432_v12 = vld [vmem:[%s15528_s22 + $0x1fe0] sm:$0xff]  }
 0x3e2   : > { %14310 = vmatprep.subr.bf16.mxu0 %v15395_v14  ;;  %v15435_v14 = vld [vmem:[%s15528_s22 + $0x1f68] sm:$0xff]  }
 0x3e3   : > { %14331 = vmatpush3.bf16.msra.mxu1 %v15394_v13  ;;  %v15433_v13 = vld [vmem:[%s15528_s22 + $0x1f20] sm:$0xff]  }
 0x3e4   : > { %14332 = vmatprep.subr.bf16.mxu1 %v15396_v15  ;;  %v15434_v15 = vld [vmem:[%s15528_s22 + $0x1fa0] sm:$0xff]  }
 0x3e5   : > { %14311 = vmatpush3.bf16.msra.mxu0 %v15397_v16 }
 0x3e6   : > { %14312 = vmatprep.subr.bf16.mxu0 %v15399_v18 }
 0x3e7   : > { %14333 = vmatpush3.bf16.msra.mxu1 %v15398_v17  ;;  %v15436_v17 = vld [vmem:[%s15528_s22 + $0x1fe8] sm:$0xff]  }
 0x3e8   : > { %14334 = vmatprep.subr.bf16.mxu1 %v15400_v19  ;;  %v15437_v19 = vld [vmem:[%s15528_s22 + $0x1f28] sm:$0xff]  }
 0x3e9   : > { %14313 = vmatpush3.bf16.msra.mxu0 %v15401_v20 }
 0x3ea   : > { %14314 = vmatprep.subr.bf16.mxu0 %v15403_v22 }
 0x3eb   : > { %v14012_v24 = vpop.f32.mrb[92].mxu0  ;;  %14335 = vmatpush3.bf16.msra.mxu1 %v15402_v21 }
 0x3ec   : > { %v14013_v26 = vpop.f32.mrb[93].mxu0  ;;  %14336 = vmatprep.subr.bf16.mxu1 %v15404_v23  ;;  %v15438_v23 = vld [vmem:[%s15528_s22 + $0x1fa8] sm:$0xff]  }
 0x3ed   : > { %v14034_v28 = vpop.f32.mrb[92].mxu1  ;;  %v14014_v29 = vadd.f32 %v14013_v26, %v14012_v24  ;;  %v14015_v30 = vpop.f32.mrb[94].mxu0  ;;  %14315 = vmatpush3.bf16.msra.mxu0 %v15405_v25  ;;  %v15439_v24 = vld [vmem:[%s15528_s22 + $0x1f70] sm:$0xff]  }
 0x3ee   : > { %v14035_v33 = vpop.f32.mrb[93].mxu1  ;;  %v14016_v34 = vpop.f32.mrb[95].mxu0  ;;  %14316 = vmatprep.subr.bf16.mxu0 %v15407_v31  ;;  %v15440_v30 = vld [vmem:[%s15528_s22 + $0x1ff0] sm:$0xff]  }
 0x3ef   : > { %v11204_v35 = vadd.f32 %v14014_v29, %v16736_v60  ;;  %v14036_v36 = vadd.f32 %v14035_v33, %v14034_v28  ;;  %v14037_v37 = vpop.f32.mrb[94].mxu1  ;;  %14337 = vmatpush3.bf16.msra.mxu1 %v15406_v27  ;;  %v15419_v60 = vld [vmem:[%s15528_s22 + $0x1f48] sm:$0xff]   ;;  %v15443_v34 = vld [vmem:[%s15528_s22 + $0x1f78] sm:$0xff]  }
 0x3f0   : > { %v14038_v39 = vpop.f32.mrb[95].mxu1  ;;  %14338 = vmatprep.subr.bf16.mxu1 %v15408_v32  ;;  %v15441_v32 = vld [vmem:[%s15528_s22 + $0x1f30] sm:$0xff]   ;;  %v15445_v37 = vld [vmem:[%s15528_s22 + $0x1f38] sm:$0xff]  }
 0x3f1   : > { %v16773_v41 = vadd.f32 %v14036_v36, %v11204_v35  ;;  %14317 = vmatpush3.bf16.msra.mxu0 %v15409_v38  ;;  %v15442_v35 = vld [vmem:[%s15528_s22 + $0x1fb0] sm:$0xff]   ;;  %v15444_v36 = vld [vmem:[%s15528_s22 + $0x1ff8] sm:$0xff]   ;;  %v3038_v38 = vrot.slane %v16785_v54, %v15569_v42 }
 0x3f2   : > { %14318 = vmatprep.subr.bf16.mxu0 %v15411_v43  ;;  %v15446_v39 = vld [vmem:[%s15528_s22 + $0x1fb8] sm:$0xff]  }
 0x3f3   : > { %14339 = vmatpush3.bf16.msra.mxu1 %v15410_v40  ;;  %v3054_v40 = vcombine.high %v3038_v38, %v3038_v38 }
 0x3f4   : > { %14340 = vmatprep.subr.bf16.mxu1 %v15412_v44 }
 0x3f5   : > { %14319 = vmatpush3.bf16.msra.mxu0 %v15413_v45 }
 0x3f6   : > { %14348 = vmatprep.subr.bf16.mxu0 %v15415_v48 }
 0x3f7   : > { %14341 = vmatpush3.bf16.msra.mxu1 %v15414_v50 }
 0x3f8   : > { %14370 = vmatprep.subr.bf16.mxu1 %v15416_v53  ;;  %11762 = vmatmul.mubr.bf16.vlgmr.msra.gmra.mrb[120].mxu0 %v3031_v52 }
 0x3f9   : > { %14349 = vmatpush3.bf16.msra.mxu0 %v15417_v57  ;;  %11841 = vmatprep.mubr.bf16.mxu0 %v3052_v62 }
 0x3fa   : > { %11802 = vmatmul.mubr.bf16.vlgmr.msra.gmra.mrb[120].mxu1 %v3053_v59  ;;  %14350 = vmatprep.subr.bf16.mxu0 %v15419_v60 }
 0x3fb   : > { %14371 = vmatpush3.bf16.msra.mxu1 %v15418_v61  ;;  %11881 = vmatprep.mubr.bf16.mxu1 %v3056_v1 }
 0x3fc   : > { %14372 = vmatprep.subr.bf16.mxu1 %v15420_v63 }
 0x3fd   : > { %14351 = vmatpush3.bf16.msra.mxu0 %v15421_v0 }
 0x3fe   : > { %14352 = vmatprep.subr.bf16.mxu0 %v15423_v2 }
 0x3ff   : > { %14373 = vmatpush3.bf16.msra.mxu1 %v15422_v3 }
 0x400   : > { %14374 = vmatprep.subr.bf16.mxu1 %v15424_v4 }
 0x401   : > { %14353 = vmatpush3.bf16.msra.mxu0 %v15425_v5 }
 0x402   : > { %14354 = vmatprep.subr.bf16.mxu0 %v15427_v6 }
 0x403   : > { %14375 = vmatpush3.bf16.msra.mxu1 %v15426_v7 }
 0x404   : > { %14376 = vmatprep.subr.bf16.mxu1 %v15428_v8 }
 0x405   : > { %14355 = vmatpush3.bf16.msra.mxu0 %v15429_v9 }
 0x406   : > { %14356 = vmatprep.subr.bf16.mxu0 %v15431_v10 }
 0x407   : > { %14377 = vmatpush3.bf16.msra.mxu1 %v15430_v11 }
 0x408   : > { %14378 = vmatprep.subr.bf16.mxu1 %v15432_v12 }
 0x409   : > { %14357 = vmatpush3.bf16.msra.mxu0 %v15433_v13 }
 0x40a   : > { %14358 = vmatprep.subr.bf16.mxu0 %v15435_v14 }
 0x40b   : > { %v14056_v16 = vpop.f32.mrb[96].mxu0  ;;  %14379 = vmatpush3.bf16.msra.mxu1 %v15434_v15 }
 0x40c   : > { %v14057_v18 = vpop.f32.mrb[97].mxu0  ;;  %14380 = vmatprep.subr.bf16.mxu1 %v15436_v17 }
 0x40d   : > { %v14078_v20 = vpop.f32.mrb[96].mxu1  ;;  %v14058_v21 = vadd.f32 %v14057_v18, %v14056_v16  ;;  %v14059_v22 = vpop.f32.mrb[98].mxu0  ;;  %14359 = vmatpush3.bf16.msra.mxu0 %v15437_v19 }
 0x40e   : > { %v14079_v25 = vpop.f32.mrb[97].mxu1  ;;  %v14060_v26 = vpop.f32.mrb[99].mxu0  ;;  %14360 = vmatprep.subr.bf16.mxu0 %v15439_v24 }
 0x40f   : > { %v11284_v27 = vadd.f32 %v14058_v21, %v16773_v41  ;;  %v14080_v28 = vadd.f32 %v14079_v25, %v14078_v20  ;;  %v14081_v29 = vpop.f32.mrb[98].mxu1  ;;  %14381 = vmatpush3.bf16.msra.mxu1 %v15438_v23 }
 0x410   : > { %v14082_v31 = vpop.f32.mrb[99].mxu1  ;;  %14382 = vmatprep.subr.bf16.mxu1 %v15440_v30 }
 0x411   : > { %v11324_v33 = vadd.f32 %v14080_v28, %v11284_v27  ;;  %14361 = vmatpush3.bf16.msra.mxu0 %v15441_v32 }
 0x412   : > { %14362 = vmatprep.subr.bf16.mxu0 %v15443_v34 }
 0x413   : > { %14383 = vmatpush3.bf16.msra.mxu1 %v15442_v35 }
 0x414   : > { %14384 = vmatprep.subr.bf16.mxu1 %v15444_v36 }
 0x415   : > { %14363 = vmatpush3.bf16.msra.mxu0 %v15445_v37 }
 0x417   : > { %14385 = vmatpush3.bf16.msra.mxu1 %v15446_v39 }
 0x418   : > { %11842 = vmatmul.mubr.bf16.vlgmr.msra.gmra.mrb[124].mxu0 %v3038_v38 }
 0x41a   : > { %11882 = vmatmul.mubr.bf16.vlgmr.msra.gmra.mrb[124].mxu1 %v3054_v40 }
 0x42b   : > { %v14100_v41 = vpop.f32.mrb[100].mxu0 }
 0x42c   : > { %v14101_v43 = vpop.f32.mrb[101].mxu0 }
 0x42d   : > { %v14122_v44 = vpop.f32.mrb[100].mxu1  ;;  %v14102_v45 = vadd.f32 %v14101_v43, %v14100_v41  ;;  %v14103_v46 = vpop.f32.mrb[102].mxu0 }
 0x42e   : > { %v14123_v47 = vpop.f32.mrb[101].mxu1  ;;  %v14104_v48 = vpop.f32.mrb[103].mxu0 }
 0x42f   : > { %v11364_v49 = vadd.f32 %v14102_v45, %v11324_v33  ;;  %v14124_v50 = vadd.f32 %v14123_v47, %v14122_v44  ;;  %v14125_v51 = vpop.f32.mrb[102].mxu1 }
 0x430   : > { %v14126_v52 = vpop.f32.mrb[103].mxu1 }
 0x431   : > { %v11404_v42 = vadd.f32 %v14124_v50, %v11364_v49 }
 0x44b   : > { %v14144_v53 = vpop.f32.mrb[104].mxu0 }
 0x44c   : > { %v14145_v54 = vpop.f32.mrb[105].mxu0 }
 0x44d   : > { %v14166_v56 = vpop.f32.mrb[104].mxu1  ;;  %v14146_v57 = vadd.f32 %v14145_v54, %v14144_v53  ;;  %v14147_v58 = vpop.f32.mrb[106].mxu0 }
 0x44e   : > { %v14167_v59 = vpop.f32.mrb[105].mxu1  ;;  %v14148_v60 = vpop.f32.mrb[107].mxu0 }
 0x44f   : > { %v11444_v55 = vadd.f32 %v14146_v57, %v11404_v42  ;;  %v14168_v61 = vadd.f32 %v14167_v59, %v14166_v56  ;;  %v14169_v62 = vpop.f32.mrb[106].mxu1 }
 0x450   : > { %v14170_v63 = vpop.f32.mrb[107].mxu1 }
 0x451   : > { %v11484_v0 = vadd.f32 %v14168_v61, %v11444_v55  ;;  %v192_v55 = vld [vmem:[#allocation2] sm:$0x3] }
 0x46b   : > { %v14188_v1 = vpop.f32.mrb[108].mxu0 }
 0x46c   : > { %v14189_v2 = vpop.f32.mrb[109].mxu0 }
 0x46d   : > { %v14210_v3 = vpop.f32.mrb[108].mxu1  ;;  %v14190_v4 = vadd.f32 %v14189_v2, %v14188_v1  ;;  %v14191_v5 = vpop.f32.mrb[110].mxu0 }
 0x46e   : > { %v14211_v6 = vpop.f32.mrb[109].mxu1  ;;  %v14192_v7 = vpop.f32.mrb[111].mxu0 }
 0x46f   : > { %v11524_v8 = vadd.f32 %v14190_v4, %v11484_v0  ;;  %v14212_v9 = vadd.f32 %v14211_v6, %v14210_v3  ;;  %v14213_v10 = vpop.f32.mrb[110].mxu1 }
 0x470   : > { %v14214_v11 = vpop.f32.mrb[111].mxu1 }
 0x471   : > { %v11564_v12 = vadd.f32 %v14212_v9, %v11524_v8 }
 0x48b   : > { %v14232_v13 = vpop.f32.mrb[112].mxu0 }
 0x48c   : > { %v14233_v14 = vpop.f32.mrb[113].mxu0 }
 0x48d   : > { %v14254_v15 = vpop.f32.mrb[112].mxu1  ;;  %v14234_v16 = vadd.f32 %v14233_v14, %v14232_v13  ;;  %v14235_v17 = vpop.f32.mrb[114].mxu0 }
 0x48e   : > { %v14255_v18 = vpop.f32.mrb[113].mxu1  ;;  %v14236_v19 = vpop.f32.mrb[115].mxu0 }
 0x48f   : > { %v11604_v20 = vadd.f32 %v14234_v16, %v11564_v12  ;;  %v14256_v21 = vadd.f32 %v14255_v18, %v14254_v15  ;;  %v14257_v22 = vpop.f32.mrb[114].mxu1 }
 0x490   : > { %v14258_v23 = vpop.f32.mrb[115].mxu1 }
 0x491   : > { %v11644_v24 = vadd.f32 %v14256_v21, %v11604_v20 }
 0x4ab   : > { %v14276_v25 = vpop.f32.mrb[116].mxu0 }
 0x4ac   : > { %v14277_v26 = vpop.f32.mrb[117].mxu0 }
 0x4ad   : > { %v14298_v27 = vpop.f32.mrb[116].mxu1  ;;  %v14278_v28 = vadd.f32 %v14277_v26, %v14276_v25  ;;  %v14279_v29 = vpop.f32.mrb[118].mxu0 }
 0x4ae   : > { %v14299_v30 = vpop.f32.mrb[117].mxu1  ;;  %v14280_v31 = vpop.f32.mrb[119].mxu0 }
 0x4af   : > { %v11684_v32 = vadd.f32 %v14278_v28, %v11644_v24  ;;  %v14300_v33 = vadd.f32 %v14299_v30, %v14298_v27  ;;  %v14301_v34 = vpop.f32.mrb[118].mxu1 }
 0x4b0   : > { %v14302_v35 = vpop.f32.mrb[119].mxu1 }
 0x4b1   : > { %v11724_v36 = vadd.f32 %v14300_v33, %v11684_v32 }
 0x4cb   : > { %v14320_v37 = vpop.f32.mrb[120].mxu0 }
 0x4cc   : > { %v14321_v38 = vpop.f32.mrb[121].mxu0 }
 0x4cd   : > { %v14342_v39 = vpop.f32.mrb[120].mxu1  ;;  %v14322_v40 = vadd.f32 %v14321_v38, %v14320_v37  ;;  %v14323_v41 = vpop.f32.mrb[122].mxu0 }
 0x4ce   : > { %v14343_v43 = vpop.f32.mrb[121].mxu1  ;;  %v14324_v44 = vpop.f32.mrb[123].mxu0 }
 0x4cf   : > { %v11764_v45 = vadd.f32 %v14322_v40, %v11724_v36  ;;  %v14344_v46 = vadd.f32 %v14343_v43, %v14342_v39  ;;  %v14345_v47 = vpop.f32.mrb[122].mxu1 }
 0x4d0   : > { %v14346_v48 = vpop.f32.mrb[123].mxu1 }
 0x4d1   : > { %v11804_v49 = vadd.f32 %v14344_v46, %v11764_v45 }
 0x4eb   : > { %v14364_v50 = vpop.f32.mrb[124].mxu0 }
 0x4ec   : > { %v14365_v51 = vpop.f32.mrb[125].mxu0 }
 0x4ed   : > { %v14386_v52 = vpop.f32.mrb[124].mxu1  ;;  %v14366_v42 = vadd.f32 %v14365_v51, %v14364_v50  ;;  %v14367_v53 = vpop.f32.mrb[126].mxu0 }
 0x4ee   : > { %v14387_v54 = vpop.f32.mrb[125].mxu1  ;;  %v14368_v56 = vpop.f32.mrb[127].mxu0 }
 0x4ef   : > { %v11844_v57 = vadd.f32 %v14366_v42, %v11804_v49  ;;  %v14388_v58 = vadd.f32 %v14387_v54, %v14386_v52  ;;  %v14389_v59 = vpop.f32.mrb[126].mxu1 }
 0x4f0   : > { %v14390_v60 = vpop.f32.mrb[127].mxu1 }
 0x4f1   : > { %v11884_v61 = vadd.f32 %v14388_v58, %v11844_v57 }
 0x4f3   : > { %v11889_v62 = vadd.f32 %v11884_v61, %v192_v55 }
 0x4f5   : > { %11891 = vst.msk [vmem:[#allocation2] sm:$0x3] %vm11890_vm1, %v11889_v62 }
 0x4f6   : > { %15461 = shalt.err (!%p15458_p13)
}
 0x4f7   : > { %s15462_s30 = scalar_lea.hbm %s16853_s3, 32 }
 0x4f8   : > { %p15463_p0 = scmp.ne.s32.totalorder %s16853_s3, %s15462_s30  ;;  %p15468_p3 = scmp.lt.u32.totalorder %s15462_s30, %s16853_s3 }
 0x4fa   : > { %p15464_p1 = pnand %p15463_p0, %p14396_p6 }
 0x4fc   : > { %p15465_p2 = pneg %p15464_p1 }
 0x4fe   : > { %p15470_p4 = pnand %p15468_p3, %p15465_p2 }
 0x500   : > { %15473 = shalt.err (!%p15470_p4)
}
 0x501   : > { %14393 = dma.vmem_to_hbm [thread:$0]  (%p14396_p6), %s11900_s26, 32, %s16853_s3, [#allocation3]  }
 0x502   : > { %15479 = dma.done.wait (%p14396_p6), [#allocation3], 32  }
 0x503   : > { %15481 = vsyncadd (%p14396_p6), [#allocation3], 4294967264 }
 0x504 PF: > { %s14_s12 = sadd.s32 1, %s15484_s12  }
 0x505   : > { %p11_p5 = scmp.ge.s32.totalorder %s14_s12, 6  }
 0x507   :  { %13 = sbr.rel (!%p11_p5) target bundleno = 1 (0x1), region = 66 }
 0x50e   :  { %11912 = vsyncpa [#allocation3], 1 }
 0x50f   :  { %11914 = vsyncpa [#allocation3 + $0x1], 1 }

</bundles_post_ra>
